<compile_context>
chip_gen: v5e
topology: v5e:2x2
jax: 0.10.0
libtpu: 0.0.40
codegen_flags: <defaults>
</compile_context>

<pallas_src>
import functools

import jax
import jax.numpy as jnp
from jax import lax
from jax.experimental import pallas as pl
from jax.experimental.pallas import tpu as pltpu


# ----------------------------------------------------------------------------
# Small helpers
# ----------------------------------------------------------------------------
def _round_up(x, m):
    return (x + m - 1) // m * m


def _largest_divisor_leq(n, target):
    target = max(1, min(int(target), n))
    for c in range(target, 0, -1):
        if n % c == 0:
            return c
    return 1


# Packed gate order is (i, f, o, g): one sigmoid over the first 3*Hp columns,
# one tanh over the last Hp columns.  PyTorch LSTM order is (i, f, g, o).
_GATE_ORDER = (0, 1, 3, 2)   # packed block k <- PyTorch gate _GATE_ORDER[k]


def _pack_gate_weight(w, hp, din_p, dtype):
    # w: (4H, Din) PyTorch layout -> (Din_p, 4*Hp), packed gate order (i,f,o,g),
    # each gate padded to its own 128-lane-aligned Hp-wide column block.
    four_h, din = w.shape
    h = four_h // 4
    out = jnp.zeros((din_p, 4 * hp), jnp.float32)
    for k, src in enumerate(_GATE_ORDER):
        out = out.at[:din, k * hp:k * hp + h].set(w[src * h:(src + 1) * h, :].T)
    return out.astype(dtype)


def _pack_gate_bias(b, hp):
    h = b.shape[0] // 4
    out = jnp.zeros((1, 4 * hp), jnp.float32)
    for k, src in enumerate(_GATE_ORDER):
        out = out.at[0, k * hp:k * hp + h].set(b[src * h:(src + 1) * h])
    return out


def _const_block_spec(shape, index_map):
    """BlockSpec for a grid-constant (resident) input: single-buffered."""
    try:
        return pl.BlockSpec(shape, index_map, pipeline_mode=pl.Buffered(1))
    except TypeError:
        # Older API without pipeline_mode kwarg: fall back to default buffering.
        return pl.BlockSpec(shape, index_map)


def _vmem_budget_bytes():
    try:
        cap = int(pltpu.get_tpu_info().vmem_capacity_bytes)
    except Exception:
        cap = 64 * 1024 * 1024   # conservative default (v7x-sized)
    return int(0.78 * cap)       # ~50 MiB on v7x (64 MiB), ~100 MiB on v5e/v6e


def _num_batch_chunks(bp):
    # v7x has 2 TensorCores per chip: split the batch into exactly 2 chunks so
    # both cores are used; never finer (single-TC v5e/v6e gain nothing).
    try:
        kind = jax.devices()[0].device_kind.lower()
    except Exception:
        kind = ""
    if ("v7" in kind or "7x" in kind) and bp >= 32 and (bp // 2) % 16 == 0:
        return 2
    return 1


# ----------------------------------------------------------------------------
# Pallas kernel: the whole LSTM stack for one (batch-chunk, time-chunk) tile.
# ----------------------------------------------------------------------------
def _stacked_lstm_kernel(*args, nlayers):
    # inputs : x, h0, c0, [wih_l, whh_l, b_l] * nlayers
    # outputs: y (last layer, per step, bf16), hT, cT
    # scratch: gate slab (bf16), inter-layer activations (bf16), h carry, c carry
    x_ref, h0_ref, c0_ref = args[0:3]
    w_args = args[3:3 + 3 * nlayers]
    n_in = 3 + 3 * nlayers
    y_ref, hT_ref, cT_ref = args[n_in:n_in + 3]
    g_sc, a_sc, h_sc, c_sc = args[n_in + 3:]

    tc, bb, _ = x_ref.shape
    hp = h_sc.shape[-1]
    # NOTE: the h/c carry in VMEM scratch is only correct because the time axis
    # is the innermost, sequentially iterated ("arbitrary") grid axis.  Do NOT
    # reorder the grid or mark the time axis "parallel".
    t_idx = pl.program_id(1)

    # Initialize the recurrent carry at the first time chunk of each batch chunk.
    @pl.when(t_idx == 0)
    def _init():
        h_sc[...] = h0_ref[...]
        c_sc[...] = c0_ref[...]

    # Bound vreg pressure for large hidden sizes (gates is bb x 4*hp f32).
    if hp >= 512:
        unroll = 2
    else:
        unroll = True if tc <= 16 else 4

    for l in range(nlayers):
        wih_ref = w_args[3 * l + 0]
        whh_ref = w_args[3 * l + 1]
        b_ref = w_args[3 * l + 2]
        out_ref = y_ref if l == nlayers - 1 else a_sc

        # ---- hoisted input projection: one big MXU matmul for the whole chunk
        inp = x_ref[...] if l == 0 else a_sc[...]
        din = inp.shape[-1]
        xg = jnp.dot(inp.reshape(tc * bb, din), wih_ref[...],
                     preferred_element_type=jnp.float32) + b_ref[...]
        g_sc[...] = xg.reshape(tc, bb, 4 * hp).astype(g_sc.dtype)

        # ---- serial recurrence: only h @ W_hh is left on the critical path
        def step(t, carry, whh_ref=whh_ref, out_ref=out_ref):
            h, c = carry
            gates = g_sc[t].astype(jnp.float32) + jnp.dot(
                h.astype(whh_ref.dtype), whh_ref[...],
                preferred_element_type=jnp.float32)
            sig = jax.nn.sigmoid(gates[:, 0:3 * hp])     # i, f, o in one EUP pass
            i_g = sig[:, 0 * hp:1 * hp]
            f_g = sig[:, 1 * hp:2 * hp]
            o_g = sig[:, 2 * hp:3 * hp]
            g_g = jnp.tanh(gates[:, 3 * hp:4 * hp])
            c_new = f_g * c + i_g * g_g
            h_new = o_g * jnp.tanh(c_new)
            out_ref[t] = h_new.astype(out_ref.dtype)
            return h_new, c_new

        h_fin, c_fin = lax.fori_loop(0, tc, step, (h_sc[l], c_sc[l]),
                                     unroll=unroll)
        h_sc[l] = h_fin
        c_sc[l] = c_fin

    # Emit the final hidden/cell states once per batch chunk.
    @pl.when(t_idx == pl.num_programs(1) - 1)
    def _final():
        hT_ref[...] = h_sc[...]
        cT_ref[...] = c_sc[...]


def stacked_lstm(x, h0, c0, layers, *, time_chunk=16, block_b=None):
    """x: (T, Bp, Din0p) bf16 time-major; h0/c0: (nlayers, Bp, Hp) f32.

    Returns (y (T, Bp, Hp) bf16, hT (nlayers, Bp, Hp) f32, cT (nlayers, Bp, Hp) f32).
    """
    T, bp, din0p = x.shape
    nlayers, _, hp = h0.shape
    tc = _largest_divisor_leq(T, time_chunk)
    bb = bp if block_b is None else block_b
    assert bp % bb == 0 and bb % 16 == 0

    # Grid order matters: batch chunks outer ("parallel"), time chunks innermost
    # ("arbitrary") so the VMEM h/c carry is walked sequentially in time.
    grid = (bp // bb, T // tc)

    in_specs = [
        pl.BlockSpec((tc, bb, din0p), lambda bi, ti: (ti, bi, 0)),          # streamed
        _const_block_spec((nlayers, bb, hp), lambda bi, ti: (0, bi, 0)),    # resident
        _const_block_spec((nlayers, bb, hp), lambda bi, ti: (0, bi, 0)),    # resident
    ]
    w_args = []
    for lp in layers:
        for name in ("wih", "whh", "b"):
            w = lp[name]
            # Resident weights: constant index_map -> single buffer.
            in_specs.append(_const_block_spec(w.shape, lambda bi, ti: (0, 0)))
            w_args.append(w)

    out_specs = (
        pl.BlockSpec((tc, bb, hp), lambda bi, ti: (ti, bi, 0)),
        pl.BlockSpec((nlayers, bb, hp), lambda bi, ti: (0, bi, 0)),
        pl.BlockSpec((nlayers, bb, hp), lambda bi, ti: (0, bi, 0)),
    )
    out_shape = (
        jax.ShapeDtypeStruct((T, bp, hp), jnp.bfloat16),      # y in bf16 (halves writeback)
        jax.ShapeDtypeStruct((nlayers, bp, hp), jnp.float32),
        jax.ShapeDtypeStruct((nlayers, bp, hp), jnp.float32),
    )
    scratch_shapes = [
        pltpu.VMEM((tc, bb, 4 * hp), jnp.bfloat16),   # per-chunk gate slab (bf16)
        pltpu.VMEM((tc, bb, hp), jnp.bfloat16),       # inter-layer activations (VMEM only)
        pltpu.VMEM((nlayers, bb, hp), jnp.float32),   # h carry across time chunks
        pltpu.VMEM((nlayers, bb, hp), jnp.float32),   # c carry across time chunks
    ]

    # VMEM accounting: streamed x + y/hT/cT are double-buffered by Pallas,
    # h0/c0 and all weights are single-buffered (Buffered(1)), plus scratch.
    din_list = [layers[0]["wih"].shape[0]] + [hp] * (nlayers - 1)
    est = 0
    est += 2 * (tc * bb * din0p * 2)                                  # x (bf16, x2 buf)
    est += 2 * (nlayers * bb * hp * 4)                                # h0 + c0 (x1 buf)
    est += sum(d * 4 * hp * 2 + hp * 4 * hp * 2 + 4 * hp * 4          # weights (x1 buf)
               for d in din_list)
    est += 2 * (tc * bb * hp * 2)                                     # y out (bf16, x2 buf)
    est += 2 * 2 * (nlayers * bb * hp * 4)                            # hT + cT out (x2 buf)
    est += tc * bb * 4 * hp * 2                                       # g_sc (bf16)
    est += tc * bb * hp * 2                                           # a_sc (bf16)
    est += 2 * nlayers * bb * hp * 4                                  # h/c carry (f32)

    budget = _vmem_budget_bytes()                                     # generation-aware cap
    vmem_limit = int(min(max(1.5 * est, 32 * 1024 * 1024), budget))

    kernel = functools.partial(_stacked_lstm_kernel, nlayers=nlayers)
    return pl.pallas_call(
        kernel,
        out_shape=out_shape,
        grid_spec=pltpu.PrefetchScalarGridSpec(
            num_scalar_prefetch=0,
            grid=grid,
            in_specs=in_specs,
            out_specs=out_specs,
            scratch_shapes=scratch_shapes,
        ),
        compiler_params=pltpu.CompilerParams(
            dimension_semantics=("parallel", "arbitrary"),
            vmem_limit_bytes=vmem_limit,
        ),
    )(x, h0, c0, *w_args)


# ----------------------------------------------------------------------------
# Parameters (mirrors PyTorch __init__ / init_weights); kernel-packed + raw.
# ----------------------------------------------------------------------------
def make_params(key, ntoken, ninp, nhid, nlayers):
    hp = _round_up(nhid, 128)
    din0p = _round_up(ninp, 128)
    keys = jax.random.split(key, 1 + 4 * nlayers)
    encoder = jax.random.uniform(keys[0], (ntoken, ninp), jnp.float32, -0.1, 0.1)
    # Pre-pad / pre-cast the embedding table once so the per-call layer-0 input
    # needs no feature-dim pad and no f32 intermediate in HBM.
    encoder_packed = jnp.zeros((ntoken, din0p), jnp.bfloat16)
    encoder_packed = encoder_packed.at[:, :ninp].set(encoder.astype(jnp.bfloat16))
    rnns, rnns_raw = [], []
    for l in range(nlayers):
        din = ninp if l == 0 else nhid
        dinp = din0p if l == 0 else hp
        bound = 1.0 / float(nhid) ** 0.5
        k = keys[1 + 4 * l: 5 + 4 * l]
        w_ih = jax.random.uniform(k[0], (4 * nhid, din), jnp.float32, -bound, bound)
        w_hh = jax.random.uniform(k[1], (4 * nhid, nhid), jnp.float32, -bound, bound)
        b_ih = jax.random.uniform(k[2], (4 * nhid,), jnp.float32, -bound, bound)
        b_hh = jax.random.uniform(k[3], (4 * nhid,), jnp.float32, -bound, bound)
        rnns_raw.append({"w_ih": w_ih, "w_hh": w_hh, "bias": b_ih + b_hh})
        rnns.append({
            "wih": _pack_gate_weight(w_ih, hp, dinp, jnp.bfloat16),   # (Din_p, 4Hp) bf16
            "whh": _pack_gate_weight(w_hh, hp, hp, jnp.bfloat16),     # (Hp, 4Hp)    bf16
            "b": _pack_gate_bias(b_ih + b_hh, hp),                    # (1, 4Hp)     f32
        })
    return {"encoder": encoder, "encoder_packed": encoder_packed,
            "rnns": rnns, "rnns_raw": rnns_raw,
            "ninp": ninp, "nhid": nhid, "hp": hp, "din0p": din0p}


def init_hidden(bsz, nhid, nlayers):
    return [(jnp.zeros((1, bsz, nhid), jnp.float32),
             jnp.zeros((1, bsz, nhid), jnp.float32)) for _ in range(nlayers)]


# ----------------------------------------------------------------------------
# Forward pass (eval mode: every dropout / locked dropout / weight-drop is identity).
# ----------------------------------------------------------------------------
def weight_drop_lstm_forward(params, tokens, hidden, *, time_chunk=16, block_b=None):
    B, T = tokens.shape
    nlayers = len(params["rnns"])
    nhid = params["nhid"]
    hp = params["hp"]

    bp = _round_up(B, 16)
    if block_b is None:
        bb = bp // _num_batch_chunks(bp)     # full batch on v5e/v6e, 2 chunks on v7x
    else:
        bb = _round_up(max(block_b, 16), 16)
        bp = _round_up(B, bb)

    # Embedding lookup (embedded_dropout / lockdrop(dropouti) are identity in eval).
    # The pre-padded bf16 table + tokens.T gather produces the time-major,
    # feature-padded layer-0 input directly: only the batch dim needs padding.
    x = jnp.take(params["encoder_packed"], tokens.T, axis=0)      # (T, B, Din0p) bf16
    x = jnp.pad(x, ((0, 0), (0, bp - B), (0, 0)))                 # (T, Bp, Din0p) bf16

    h0 = jnp.pad(jnp.stack([hidden[l][0][0] for l in range(nlayers)]),
                 ((0, 0), (0, bp - B), (0, hp - nhid)))           # (L, Bp, Hp) f32
    c0 = jnp.pad(jnp.stack([hidden[l][1][0] for l in range(nlayers)]),
                 ((0, 0), (0, bp - B), (0, hp - nhid)))

    y, h_t, c_t = stacked_lstm(x, h0, c0, params["rnns"],
                               time_chunk=time_chunk, block_b=bb)

    # Back to batch_first, drop padding; lockdrop(dropout) is identity in eval.
    output = jnp.transpose(y[:, :B, :nhid], (1, 0, 2)).astype(jnp.float32)  # (B, T, nhid)
    new_hidden = [(h_t[l, :B, :nhid][None], c_t[l, :B, :nhid][None])
                  for l in range(nlayers)]
    return output, new_hidden


# ----------------------------------------------------------------------------
# Pure-JAX f32 reference (PyTorch eval-mode semantics) for a sanity check.
# ----------------------------------------------------------------------------
def _reference_forward(params, tokens, hidden):
    nhid = params["nhid"]
    emb = jnp.take(params["encoder"], tokens, axis=0)              # (B, T, ninp)
    x = jnp.transpose(emb, (1, 0, 2))                              # (T, B, ninp)
    new_hidden = []
    for l, raw in enumerate(params["rnns_raw"]):
        w_ih, w_hh, b = raw["w_ih"], raw["w_hh"], raw["bias"]
        h = hidden[l][0][0]
        c = hidden[l][1][0]
        ys = []
        for t in range(x.shape[0]):
            gates = x[t] @ w_ih.T + h @ w_hh.T + b
            i_g = jax.nn.sigmoid(gates[:, :nhid])
            f_g = jax.nn.sigmoid(gates[:, nhid:2 * nhid])
            g_g = jnp.tanh(gates[:, 2 * nhid:3 * nhid])
            o_g = jax.nn.sigmoid(gates[:, 3 * nhid:])
            c = f_g * c + i_g * g_g
            h = o_g * jnp.tanh(c)
            ys.append(h)
        x = jnp.stack(ys)
        new_hidden.append((h[None], c[None]))
    return jnp.transpose(x, (1, 0, 2)), new_hidden


if __name__ == "__main__":
    ntoken, ninp, nhid, nlayers = 50, 32, 32, 2
    batch, seq = 2, 8

    key = jax.random.PRNGKey(0)
    k_params, k_tokens = jax.random.split(key)
    params = make_params(k_params, ntoken, ninp, nhid, nlayers)
    tokens = jax.random.randint(k_tokens, (batch, seq), 0, ntoken, dtype=jnp.int32)
    hidden = init_hidden(batch, nhid, nlayers)

    fwd = jax.jit(functools.partial(weight_drop_lstm_forward, params, time_chunk=8))
    output, new_hidden = fwd(tokens, hidden)
    jax.block_until_ready(output)
    jax.block_until_ready(new_hidden)

    # Sanity check against a pure-JAX f32 reference (bf16 weights/activations ->
    # loose tolerance; the bf16 embedding table + bf16 gate slab add ~1e-3 drift).
    ref_out, ref_hidden = _reference_forward(params, tokens, hidden)
    assert output.shape == (batch, seq, nhid)
    assert len(new_hidden) == nlayers
    assert new_hidden[0][0].shape == (1, batch, nhid)
    assert jnp.allclose(output, ref_out, atol=2e-2, rtol=2e-2)
    for l in range(nlayers):
        assert jnp.allclose(new_hidden[l][0], ref_hidden[l][0], atol=2e-2, rtol=2e-2)
        assert jnp.allclose(new_hidden[l][1], ref_hidden[l][1], atol=2e-2, rtol=2e-2)
    print("KERNEL_OK")
</pallas_src>

<mosaic_0001>
module attributes {stable_mosaic.version = 11 : i64} {
  func.func @_stacked_lstm_kernel(%arg0: i32, %arg1: i32, %arg2: memref<8x16x128xbf16, #tpu.memory_space<vmem>>, %arg3: memref<2x16x128xf32, #tpu.memory_space<vmem>>, %arg4: memref<2x16x128xf32, #tpu.memory_space<vmem>>, %arg5: memref<128x512xbf16, #tpu.memory_space<vmem>>, %arg6: memref<128x512xbf16, #tpu.memory_space<vmem>>, %arg7: memref<1x512xf32, #tpu.memory_space<vmem>>, %arg8: memref<128x512xbf16, #tpu.memory_space<vmem>>, %arg9: memref<128x512xbf16, #tpu.memory_space<vmem>>, %arg10: memref<1x512xf32, #tpu.memory_space<vmem>>, %arg11: memref<8x16x128xbf16, #tpu.memory_space<vmem>>, %arg12: memref<2x16x128xf32, #tpu.memory_space<vmem>>, %arg13: memref<2x16x128xf32, #tpu.memory_space<vmem>>, %arg14: memref<8x16x512xbf16, #tpu.memory_space<vmem>>, %arg15: memref<8x16x128xbf16, #tpu.memory_space<vmem>>, %arg16: memref<2x16x128xf32, #tpu.memory_space<vmem>>, %arg17: memref<2x16x128xf32, #tpu.memory_space<vmem>>) attributes {dimension_semantics = [#tpu.dimension_semantics<parallel>, #tpu.dimension_semantics<arbitrary>], iteration_bounds = array<i64: 1, 1>, scalar_prefetch = 0 : i64, scratch_operands = 4 : i64, tpu.core_type = #tpu.core_type<tc>, window_params = [{transform_indices = @transform_0, window_bounds = array<i64: 8, 16, 128>}, {pipeline_mode = #tpu.pipeline_mode<synchronous>, transform_indices = @transform_1, window_bounds = array<i64: 2, 16, 128>}, {pipeline_mode = #tpu.pipeline_mode<synchronous>, transform_indices = @transform_2, window_bounds = array<i64: 2, 16, 128>}, {pipeline_mode = #tpu.pipeline_mode<synchronous>, transform_indices = @transform_3, window_bounds = array<i64: 128, 512>}, {pipeline_mode = #tpu.pipeline_mode<synchronous>, transform_indices = @transform_4, window_bounds = array<i64: 128, 512>}, {pipeline_mode = #tpu.pipeline_mode<synchronous>, transform_indices = @transform_5, window_bounds = array<i64: 1, 512>}, {pipeline_mode = #tpu.pipeline_mode<synchronous>, transform_indices = @transform_6, window_bounds = array<i64: 128, 512>}, {pipeline_mode = #tpu.pipeline_mode<synchronous>, transform_indices = @transform_7, window_bounds = array<i64: 128, 512>}, {pipeline_mode = #tpu.pipeline_mode<synchronous>, transform_indices = @transform_8, window_bounds = array<i64: 1, 512>}, {transform_indices = @transform_9, window_bounds = array<i64: 8, 16, 128>}, {transform_indices = @transform_10, window_bounds = array<i64: 2, 16, 128>}, {transform_indices = @transform_11, window_bounds = array<i64: 2, 16, 128>}]} {
    %c0_i32 = arith.constant 0 : i32
    %0 = arith.cmpi eq, %arg1, %c0_i32 : i32
    %1 = arith.extui %0 : i1 to i32
    %c0_i32_0 = arith.constant 0 : i32
    %2 = arith.cmpi ne, %1, %c0_i32_0 : i32
    scf.if %2 {
      %c0_184 = arith.constant 0 : index
      %c0_185 = arith.constant 0 : index
      %c0_186 = arith.constant 0 : index
      %510 = vector.load %arg3[%c0_184, %c0_185, %c0_186] : memref<2x16x128xf32, #tpu.memory_space<vmem>>, vector<2x16x128xf32>
      %c0_187 = arith.constant 0 : index
      %c0_188 = arith.constant 0 : index
      %c0_189 = arith.constant 0 : index
      %511 = vector.load %arg16[%c0_187, %c0_188, %c0_189] : memref<2x16x128xf32, #tpu.memory_space<vmem>>, vector<2x16x128xf32>
      tpu.vector_store %arg16[%c0_187, %c0_188, %c0_189], %510 {strides = array<i32>} : memref<2x16x128xf32, #tpu.memory_space<vmem>>, vector<2x16x128xf32>,
      %c0_190 = arith.constant 0 : index
      %c0_191 = arith.constant 0 : index
      %c0_192 = arith.constant 0 : index
      %512 = vector.load %arg4[%c0_190, %c0_191, %c0_192] : memref<2x16x128xf32, #tpu.memory_space<vmem>>, vector<2x16x128xf32>
      %c0_193 = arith.constant 0 : index
      %c0_194 = arith.constant 0 : index
      %c0_195 = arith.constant 0 : index
      %513 = vector.load %arg17[%c0_193, %c0_194, %c0_195] : memref<2x16x128xf32, #tpu.memory_space<vmem>>, vector<2x16x128xf32>
      tpu.vector_store %arg17[%c0_193, %c0_194, %c0_195], %512 {strides = array<i32>} : memref<2x16x128xf32, #tpu.memory_space<vmem>>, vector<2x16x128xf32>,
    } else {
    }
    %c0 = arith.constant 0 : index
    %c0_1 = arith.constant 0 : index
    %c0_2 = arith.constant 0 : index
    %3 = vector.load %arg2[%c0, %c0_1, %c0_2] : memref<8x16x128xbf16, #tpu.memory_space<vmem>>, vector<8x16x128xbf16>
    %4 = vector.shape_cast %3 : vector<8x16x128xbf16> to vector<128x128xbf16>
    %c0_3 = arith.constant 0 : index
    %c0_4 = arith.constant 0 : index
    %5 = vector.load %arg5[%c0_3, %c0_4] : memref<128x512xbf16, #tpu.memory_space<vmem>>, vector<128x512xbf16>
    %cst = arith.constant dense<0.000000e+00> : vector<128x512xf32>
    %6 = tpu.matmul %4, %5, %cst {dimension_numbers = #tpu.dot_dimension_numbers<[1], [0], [0], [1], [0, 0, 1, 1], [], []>} : vector<128x128xbf16>, vector<128x512xbf16>, vector<128x512xf32> -> vector<128x512xf32>
    %c0_5 = arith.constant 0 : index
    %c0_6 = arith.constant 0 : index
    %7 = vector.load %arg7[%c0_5, %c0_6] : memref<1x512xf32, #tpu.memory_space<vmem>>, vector<1x512xf32>
    %8 = vector.broadcast %7 : vector<1x512xf32> to vector<128x512xf32>
    %9 = arith.addf %6, %8 : vector<128x512xf32>
    %10 = vector.shape_cast %9 : vector<128x512xf32> to vector<8x16x512xf32>
    %11 = arith.truncf %10 : vector<8x16x512xf32> to vector<8x16x512xbf16>
    %c0_7 = arith.constant 0 : index
    %c0_8 = arith.constant 0 : index
    %c0_9 = arith.constant 0 : index
    %12 = vector.load %arg14[%c0_7, %c0_8, %c0_9] : memref<8x16x512xbf16, #tpu.memory_space<vmem>>, vector<8x16x512xbf16>
    tpu.vector_store %arg14[%c0_7, %c0_8, %c0_9], %11 {strides = array<i32>} : memref<8x16x512xbf16, #tpu.memory_space<vmem>>, vector<8x16x512xbf16>,
    %c0_10 = arith.constant 0 : index
    %c0_11 = arith.constant 0 : index
    %c0_12 = arith.constant 0 : index
    %13 = vector.load %arg16[%c0_10, %c0_11, %c0_12] : memref<2x16x128xf32, #tpu.memory_space<vmem>>, vector<1x16x128xf32>
    %14 = vector.shape_cast %13 : vector<1x16x128xf32> to vector<16x128xf32>
    %c0_13 = arith.constant 0 : index
    %c0_14 = arith.constant 0 : index
    %c0_15 = arith.constant 0 : index
    %15 = vector.load %arg17[%c0_13, %c0_14, %c0_15] : memref<2x16x128xf32, #tpu.memory_space<vmem>>, vector<1x16x128xf32>
    %16 = vector.shape_cast %15 : vector<1x16x128xf32> to vector<16x128xf32>
    %c0_i32_16 = arith.constant 0 : i32
    %17 = arith.index_cast %c0_i32_16 : i32 to index
    %c0_17 = arith.constant 0 : index
    %c0_18 = arith.constant 0 : index
    %18 = vector.load %arg14[%17, %c0_17, %c0_18] : memref<8x16x512xbf16, #tpu.memory_space<vmem>>, vector<1x16x512xbf16>
    %19 = vector.shape_cast %18 : vector<1x16x512xbf16> to vector<16x512xbf16>
    %20 = arith.extf %19 : vector<16x512xbf16> to vector<16x512xf32>
    %21 = arith.truncf %14 : vector<16x128xf32> to vector<16x128xbf16>
    %c0_19 = arith.constant 0 : index
    %c0_20 = arith.constant 0 : index
    %22 = vector.load %arg6[%c0_19, %c0_20] : memref<128x512xbf16, #tpu.memory_space<vmem>>, vector<128x512xbf16>
    %cst_21 = arith.constant dense<0.000000e+00> : vector<16x512xf32>
    %23 = tpu.matmul %21, %22, %cst_21 {dimension_numbers = #tpu.dot_dimension_numbers<[1], [0], [0], [1], [0, 0, 1, 1], [], []>} : vector<16x128xbf16>, vector<128x512xbf16>, vector<16x512xf32> -> vector<16x512xf32>
    %24 = arith.addf %20, %23 : vector<16x512xf32>
    %25 = vector.extract_strided_slice %24 {offsets = [0, 0], sizes = [16, 384], strides = [1, 1]} : vector<16x512xf32> to vector<16x384xf32>
    %26 = arith.negf %25 : vector<16x384xf32>
    %27 = math.exp %26 : vector<16x384xf32>
    %cst_22 = arith.constant 1.000000e+00 : f32
    %28 = vector.broadcast %cst_22 : f32 to vector<16x384xf32>
    %29 = arith.addf %28, %27 : vector<16x384xf32>
    %30 = arith.divf %28, %29 : vector<16x384xf32>
    %31 = vector.extract_strided_slice %30 {offsets = [0, 0], sizes = [16, 128], strides = [1, 1]} : vector<16x384xf32> to vector<16x128xf32>
    %32 = vector.extract_strided_slice %30 {offsets = [0, 128], sizes = [16, 128], strides = [1, 1]} : vector<16x384xf32> to vector<16x128xf32>
    %33 = vector.extract_strided_slice %30 {offsets = [0, 256], sizes = [16, 128], strides = [1, 1]} : vector<16x384xf32> to vector<16x128xf32>
    %34 = vector.extract_strided_slice %24 {offsets = [0, 384], sizes = [16, 128], strides = [1, 1]} : vector<16x512xf32> to vector<16x128xf32>
    %35 = math.tanh %34 : vector<16x128xf32>
    %36 = arith.mulf %32, %16 : vector<16x128xf32>
    %37 = arith.mulf %31, %35 : vector<16x128xf32>
    %38 = arith.addf %36, %37 : vector<16x128xf32>
    %39 = math.tanh %38 : vector<16x128xf32>
    %40 = arith.mulf %33, %39 : vector<16x128xf32>
    %41 = arith.truncf %40 : vector<16x128xf32> to vector<16x128xbf16>
    %42 = arith.index_cast %c0_i32_16 : i32 to index
    %c0_23 = arith.constant 0 : index
    %c0_24 = arith.constant 0 : index
    %43 = vector.load %arg15[%42, %c0_23, %c0_24] : memref<8x16x128xbf16, #tpu.memory_space<vmem>>, vector<1x16x128xbf16>
    %44 = vector.shape_cast %43 : vector<1x16x128xbf16> to vector<16x128xbf16>
    %45 = vector.shape_cast %41 : vector<16x128xbf16> to vector<1x16x128xbf16>
    tpu.vector_store %arg15[%42, %c0_23, %c0_24], %45 {strides = array<i32>} : memref<8x16x128xbf16, #tpu.memory_space<vmem>>, vector<1x16x128xbf16>,
    %c1_i32 = arith.constant 1 : i32
    %46 = arith.index_cast %c1_i32 : i32 to index
    %c0_25 = arith.constant 0 : index
    %c0_26 = arith.constant 0 : index
    %47 = vector.load %arg14[%46, %c0_25, %c0_26] : memref<8x16x512xbf16, #tpu.memory_space<vmem>>, vector<1x16x512xbf16>
    %48 = vector.shape_cast %47 : vector<1x16x512xbf16> to vector<16x512xbf16>
    %49 = arith.extf %48 : vector<16x512xbf16> to vector<16x512xf32>
    %50 = arith.truncf %40 : vector<16x128xf32> to vector<16x128xbf16>
    %c0_27 = arith.constant 0 : index
    %c0_28 = arith.constant 0 : index
    %51 = vector.load %arg6[%c0_27, %c0_28] : memref<128x512xbf16, #tpu.memory_space<vmem>>, vector<128x512xbf16>
    %cst_29 = arith.constant dense<0.000000e+00> : vector<16x512xf32>
    %52 = tpu.matmul %50, %51, %cst_29 {dimension_numbers = #tpu.dot_dimension_numbers<[1], [0], [0], [1], [0, 0, 1, 1], [], []>} : vector<16x128xbf16>, vector<128x512xbf16>, vector<16x512xf32> -> vector<16x512xf32>
    %53 = arith.addf %49, %52 : vector<16x512xf32>
    %54 = vector.extract_strided_slice %53 {offsets = [0, 0], sizes = [16, 384], strides = [1, 1]} : vector<16x512xf32> to vector<16x384xf32>
    %55 = arith.negf %54 : vector<16x384xf32>
    %56 = math.exp %55 : vector<16x384xf32>
    %cst_30 = arith.constant 1.000000e+00 : f32
    %57 = vector.broadcast %cst_30 : f32 to vector<16x384xf32>
    %58 = arith.addf %57, %56 : vector<16x384xf32>
    %59 = arith.divf %57, %58 : vector<16x384xf32>
    %60 = vector.extract_strided_slice %59 {offsets = [0, 0], sizes = [16, 128], strides = [1, 1]} : vector<16x384xf32> to vector<16x128xf32>
    %61 = vector.extract_strided_slice %59 {offsets = [0, 128], sizes = [16, 128], strides = [1, 1]} : vector<16x384xf32> to vector<16x128xf32>
    %62 = vector.extract_strided_slice %59 {offsets = [0, 256], sizes = [16, 128], strides = [1, 1]} : vector<16x384xf32> to vector<16x128xf32>
    %63 = vector.extract_strided_slice %53 {offsets = [0, 384], sizes = [16, 128], strides = [1, 1]} : vector<16x512xf32> to vector<16x128xf32>
    %64 = math.tanh %63 : vector<16x128xf32>
    %65 = arith.mulf %61, %38 : vector<16x128xf32>
    %66 = arith.mulf %60, %64 : vector<16x128xf32>
    %67 = arith.addf %65, %66 : vector<16x128xf32>
    %68 = math.tanh %67 : vector<16x128xf32>
    %69 = arith.mulf %62, %68 : vector<16x128xf32>
    %70 = arith.truncf %69 : vector<16x128xf32> to vector<16x128xbf16>
    %71 = arith.index_cast %c1_i32 : i32 to index
    %c0_31 = arith.constant 0 : index
    %c0_32 = arith.constant 0 : index
    %72 = vector.load %arg15[%71, %c0_31, %c0_32] : memref<8x16x128xbf16, #tpu.memory_space<vmem>>, vector<1x16x128xbf16>
    %73 = vector.shape_cast %72 : vector<1x16x128xbf16> to vector<16x128xbf16>
    %74 = vector.shape_cast %70 : vector<16x128xbf16> to vector<1x16x128xbf16>
    tpu.vector_store %arg15[%71, %c0_31, %c0_32], %74 {strides = array<i32>} : memref<8x16x128xbf16, #tpu.memory_space<vmem>>, vector<1x16x128xbf16>,
    %c2_i32 = arith.constant 2 : i32
    %75 = arith.index_cast %c2_i32 : i32 to index
    %c0_33 = arith.constant 0 : index
    %c0_34 = arith.constant 0 : index
    %76 = vector.load %arg14[%75, %c0_33, %c0_34] : memref<8x16x512xbf16, #tpu.memory_space<vmem>>, vector<1x16x512xbf16>
    %77 = vector.shape_cast %76 : vector<1x16x512xbf16> to vector<16x512xbf16>
    %78 = arith.extf %77 : vector<16x512xbf16> to vector<16x512xf32>
    %79 = arith.truncf %69 : vector<16x128xf32> to vector<16x128xbf16>
    %c0_35 = arith.constant 0 : index
    %c0_36 = arith.constant 0 : index
    %80 = vector.load %arg6[%c0_35, %c0_36] : memref<128x512xbf16, #tpu.memory_space<vmem>>, vector<128x512xbf16>
    %cst_37 = arith.constant dense<0.000000e+00> : vector<16x512xf32>
    %81 = tpu.matmul %79, %80, %cst_37 {dimension_numbers = #tpu.dot_dimension_numbers<[1], [0], [0], [1], [0, 0, 1, 1], [], []>} : vector<16x128xbf16>, vector<128x512xbf16>, vector<16x512xf32> -> vector<16x512xf32>
    %82 = arith.addf %78, %81 : vector<16x512xf32>
    %83 = vector.extract_strided_slice %82 {offsets = [0, 0], sizes = [16, 384], strides = [1, 1]} : vector<16x512xf32> to vector<16x384xf32>
    %84 = arith.negf %83 : vector<16x384xf32>
    %85 = math.exp %84 : vector<16x384xf32>
    %cst_38 = arith.constant 1.000000e+00 : f32
    %86 = vector.broadcast %cst_38 : f32 to vector<16x384xf32>
    %87 = arith.addf %86, %85 : vector<16x384xf32>
    %88 = arith.divf %86, %87 : vector<16x384xf32>
    %89 = vector.extract_strided_slice %88 {offsets = [0, 0], sizes = [16, 128], strides = [1, 1]} : vector<16x384xf32> to vector<16x128xf32>
    %90 = vector.extract_strided_slice %88 {offsets = [0, 128], sizes = [16, 128], strides = [1, 1]} : vector<16x384xf32> to vector<16x128xf32>
    %91 = vector.extract_strided_slice %88 {offsets = [0, 256], sizes = [16, 128], strides = [1, 1]} : vector<16x384xf32> to vector<16x128xf32>
    %92 = vector.extract_strided_slice %82 {offsets = [0, 384], sizes = [16, 128], strides = [1, 1]} : vector<16x512xf32> to vector<16x128xf32>
    %93 = math.tanh %92 : vector<16x128xf32>
    %94 = arith.mulf %90, %67 : vector<16x128xf32>
    %95 = arith.mulf %89, %93 : vector<16x128xf32>
    %96 = arith.addf %94, %95 : vector<16x128xf32>
    %97 = math.tanh %96 : vector<16x128xf32>
    %98 = arith.mulf %91, %97 : vector<16x128xf32>
    %99 = arith.truncf %98 : vector<16x128xf32> to vector<16x128xbf16>
    %100 = arith.index_cast %c2_i32 : i32 to index
    %c0_39 = arith.constant 0 : index
    %c0_40 = arith.constant 0 : index
    %101 = vector.load %arg15[%100, %c0_39, %c0_40] : memref<8x16x128xbf16, #tpu.memory_space<vmem>>, vector<1x16x128xbf16>
    %102 = vector.shape_cast %101 : vector<1x16x128xbf16> to vector<16x128xbf16>
    %103 = vector.shape_cast %99 : vector<16x128xbf16> to vector<1x16x128xbf16>
    tpu.vector_store %arg15[%100, %c0_39, %c0_40], %103 {strides = array<i32>} : memref<8x16x128xbf16, #tpu.memory_space<vmem>>, vector<1x16x128xbf16>,
    %c3_i32 = arith.constant 3 : i32
    %104 = arith.index_cast %c3_i32 : i32 to index
    %c0_41 = arith.constant 0 : index
    %c0_42 = arith.constant 0 : index
    %105 = vector.load %arg14[%104, %c0_41, %c0_42] : memref<8x16x512xbf16, #tpu.memory_space<vmem>>, vector<1x16x512xbf16>
    %106 = vector.shape_cast %105 : vector<1x16x512xbf16> to vector<16x512xbf16>
    %107 = arith.extf %106 : vector<16x512xbf16> to vector<16x512xf32>
    %108 = arith.truncf %98 : vector<16x128xf32> to vector<16x128xbf16>
    %c0_43 = arith.constant 0 : index
    %c0_44 = arith.constant 0 : index
    %109 = vector.load %arg6[%c0_43, %c0_44] : memref<128x512xbf16, #tpu.memory_space<vmem>>, vector<128x512xbf16>
    %cst_45 = arith.constant dense<0.000000e+00> : vector<16x512xf32>
    %110 = tpu.matmul %108, %109, %cst_45 {dimension_numbers = #tpu.dot_dimension_numbers<[1], [0], [0], [1], [0, 0, 1, 1], [], []>} : vector<16x128xbf16>, vector<128x512xbf16>, vector<16x512xf32> -> vector<16x512xf32>
    %111 = arith.addf %107, %110 : vector<16x512xf32>
    %112 = vector.extract_strided_slice %111 {offsets = [0, 0], sizes = [16, 384], strides = [1, 1]} : vector<16x512xf32> to vector<16x384xf32>
    %113 = arith.negf %112 : vector<16x384xf32>
    %114 = math.exp %113 : vector<16x384xf32>
    %cst_46 = arith.constant 1.000000e+00 : f32
    %115 = vector.broadcast %cst_46 : f32 to vector<16x384xf32>
    %116 = arith.addf %115, %114 : vector<16x384xf32>
    %117 = arith.divf %115, %116 : vector<16x384xf32>
    %118 = vector.extract_strided_slice %117 {offsets = [0, 0], sizes = [16, 128], strides = [1, 1]} : vector<16x384xf32> to vector<16x128xf32>
    %119 = vector.extract_strided_slice %117 {offsets = [0, 128], sizes = [16, 128], strides = [1, 1]} : vector<16x384xf32> to vector<16x128xf32>
    %120 = vector.extract_strided_slice %117 {offsets = [0, 256], sizes = [16, 128], strides = [1, 1]} : vector<16x384xf32> to vector<16x128xf32>
    %121 = vector.extract_strided_slice %111 {offsets = [0, 384], sizes = [16, 128], strides = [1, 1]} : vector<16x512xf32> to vector<16x128xf32>
    %122 = math.tanh %121 : vector<16x128xf32>
    %123 = arith.mulf %119, %96 : vector<16x128xf32>
    %124 = arith.mulf %118, %122 : vector<16x128xf32>
    %125 = arith.addf %123, %124 : vector<16x128xf32>
    %126 = math.tanh %125 : vector<16x128xf32>
    %127 = arith.mulf %120, %126 : vector<16x128xf32>
    %128 = arith.truncf %127 : vector<16x128xf32> to vector<16x128xbf16>
    %129 = arith.index_cast %c3_i32 : i32 to index
    %c0_47 = arith.constant 0 : index
    %c0_48 = arith.constant 0 : index
    %130 = vector.load %arg15[%129, %c0_47, %c0_48] : memref<8x16x128xbf16, #tpu.memory_space<vmem>>, vector<1x16x128xbf16>
    %131 = vector.shape_cast %130 : vector<1x16x128xbf16> to vector<16x128xbf16>
    %132 = vector.shape_cast %128 : vector<16x128xbf16> to vector<1x16x128xbf16>
    tpu.vector_store %arg15[%129, %c0_47, %c0_48], %132 {strides = array<i32>} : memref<8x16x128xbf16, #tpu.memory_space<vmem>>, vector<1x16x128xbf16>,
    %c4_i32 = arith.constant 4 : i32
    %133 = arith.index_cast %c4_i32 : i32 to index
    %c0_49 = arith.constant 0 : index
    %c0_50 = arith.constant 0 : index
    %134 = vector.load %arg14[%133, %c0_49, %c0_50] : memref<8x16x512xbf16, #tpu.memory_space<vmem>>, vector<1x16x512xbf16>
    %135 = vector.shape_cast %134 : vector<1x16x512xbf16> to vector<16x512xbf16>
    %136 = arith.extf %135 : vector<16x512xbf16> to vector<16x512xf32>
    %137 = arith.truncf %127 : vector<16x128xf32> to vector<16x128xbf16>
    %c0_51 = arith.constant 0 : index
    %c0_52 = arith.constant 0 : index
    %138 = vector.load %arg6[%c0_51, %c0_52] : memref<128x512xbf16, #tpu.memory_space<vmem>>, vector<128x512xbf16>
    %cst_53 = arith.constant dense<0.000000e+00> : vector<16x512xf32>
    %139 = tpu.matmul %137, %138, %cst_53 {dimension_numbers = #tpu.dot_dimension_numbers<[1], [0], [0], [1], [0, 0, 1, 1], [], []>} : vector<16x128xbf16>, vector<128x512xbf16>, vector<16x512xf32> -> vector<16x512xf32>
    %140 = arith.addf %136, %139 : vector<16x512xf32>
    %141 = vector.extract_strided_slice %140 {offsets = [0, 0], sizes = [16, 384], strides = [1, 1]} : vector<16x512xf32> to vector<16x384xf32>
    %142 = arith.negf %141 : vector<16x384xf32>
    %143 = math.exp %142 : vector<16x384xf32>
    %cst_54 = arith.constant 1.000000e+00 : f32
    %144 = vector.broadcast %cst_54 : f32 to vector<16x384xf32>
    %145 = arith.addf %144, %143 : vector<16x384xf32>
    %146 = arith.divf %144, %145 : vector<16x384xf32>
    %147 = vector.extract_strided_slice %146 {offsets = [0, 0], sizes = [16, 128], strides = [1, 1]} : vector<16x384xf32> to vector<16x128xf32>
    %148 = vector.extract_strided_slice %146 {offsets = [0, 128], sizes = [16, 128], strides = [1, 1]} : vector<16x384xf32> to vector<16x128xf32>
    %149 = vector.extract_strided_slice %146 {offsets = [0, 256], sizes = [16, 128], strides = [1, 1]} : vector<16x384xf32> to vector<16x128xf32>
    %150 = vector.extract_strided_slice %140 {offsets = [0, 384], sizes = [16, 128], strides = [1, 1]} : vector<16x512xf32> to vector<16x128xf32>
    %151 = math.tanh %150 : vector<16x128xf32>
    %152 = arith.mulf %148, %125 : vector<16x128xf32>
    %153 = arith.mulf %147, %151 : vector<16x128xf32>
    %154 = arith.addf %152, %153 : vector<16x128xf32>
    %155 = math.tanh %154 : vector<16x128xf32>
    %156 = arith.mulf %149, %155 : vector<16x128xf32>
    %157 = arith.truncf %156 : vector<16x128xf32> to vector<16x128xbf16>
    %158 = arith.index_cast %c4_i32 : i32 to index
    %c0_55 = arith.constant 0 : index
    %c0_56 = arith.constant 0 : index
    %159 = vector.load %arg15[%158, %c0_55, %c0_56] : memref<8x16x128xbf16, #tpu.memory_space<vmem>>, vector<1x16x128xbf16>
    %160 = vector.shape_cast %159 : vector<1x16x128xbf16> to vector<16x128xbf16>
    %161 = vector.shape_cast %157 : vector<16x128xbf16> to vector<1x16x128xbf16>
    tpu.vector_store %arg15[%158, %c0_55, %c0_56], %161 {strides = array<i32>} : memref<8x16x128xbf16, #tpu.memory_space<vmem>>, vector<1x16x128xbf16>,
    %c5_i32 = arith.constant 5 : i32
    %162 = arith.index_cast %c5_i32 : i32 to index
    %c0_57 = arith.constant 0 : index
    %c0_58 = arith.constant 0 : index
    %163 = vector.load %arg14[%162, %c0_57, %c0_58] : memref<8x16x512xbf16, #tpu.memory_space<vmem>>, vector<1x16x512xbf16>
    %164 = vector.shape_cast %163 : vector<1x16x512xbf16> to vector<16x512xbf16>
    %165 = arith.extf %164 : vector<16x512xbf16> to vector<16x512xf32>
    %166 = arith.truncf %156 : vector<16x128xf32> to vector<16x128xbf16>
    %c0_59 = arith.constant 0 : index
    %c0_60 = arith.constant 0 : index
    %167 = vector.load %arg6[%c0_59, %c0_60] : memref<128x512xbf16, #tpu.memory_space<vmem>>, vector<128x512xbf16>
    %cst_61 = arith.constant dense<0.000000e+00> : vector<16x512xf32>
    %168 = tpu.matmul %166, %167, %cst_61 {dimension_numbers = #tpu.dot_dimension_numbers<[1], [0], [0], [1], [0, 0, 1, 1], [], []>} : vector<16x128xbf16>, vector<128x512xbf16>, vector<16x512xf32> -> vector<16x512xf32>
    %169 = arith.addf %165, %168 : vector<16x512xf32>
    %170 = vector.extract_strided_slice %169 {offsets = [0, 0], sizes = [16, 384], strides = [1, 1]} : vector<16x512xf32> to vector<16x384xf32>
    %171 = arith.negf %170 : vector<16x384xf32>
    %172 = math.exp %171 : vector<16x384xf32>
    %cst_62 = arith.constant 1.000000e+00 : f32
    %173 = vector.broadcast %cst_62 : f32 to vector<16x384xf32>
    %174 = arith.addf %173, %172 : vector<16x384xf32>
    %175 = arith.divf %173, %174 : vector<16x384xf32>
    %176 = vector.extract_strided_slice %175 {offsets = [0, 0], sizes = [16, 128], strides = [1, 1]} : vector<16x384xf32> to vector<16x128xf32>
    %177 = vector.extract_strided_slice %175 {offsets = [0, 128], sizes = [16, 128], strides = [1, 1]} : vector<16x384xf32> to vector<16x128xf32>
    %178 = vector.extract_strided_slice %175 {offsets = [0, 256], sizes = [16, 128], strides = [1, 1]} : vector<16x384xf32> to vector<16x128xf32>
    %179 = vector.extract_strided_slice %169 {offsets = [0, 384], sizes = [16, 128], strides = [1, 1]} : vector<16x512xf32> to vector<16x128xf32>
    %180 = math.tanh %179 : vector<16x128xf32>
    %181 = arith.mulf %177, %154 : vector<16x128xf32>
    %182 = arith.mulf %176, %180 : vector<16x128xf32>
    %183 = arith.addf %181, %182 : vector<16x128xf32>
    %184 = math.tanh %183 : vector<16x128xf32>
    %185 = arith.mulf %178, %184 : vector<16x128xf32>
    %186 = arith.truncf %185 : vector<16x128xf32> to vector<16x128xbf16>
    %187 = arith.index_cast %c5_i32 : i32 to index
    %c0_63 = arith.constant 0 : index
    %c0_64 = arith.constant 0 : index
    %188 = vector.load %arg15[%187, %c0_63, %c0_64] : memref<8x16x128xbf16, #tpu.memory_space<vmem>>, vector<1x16x128xbf16>
    %189 = vector.shape_cast %188 : vector<1x16x128xbf16> to vector<16x128xbf16>
    %190 = vector.shape_cast %186 : vector<16x128xbf16> to vector<1x16x128xbf16>
    tpu.vector_store %arg15[%187, %c0_63, %c0_64], %190 {strides = array<i32>} : memref<8x16x128xbf16, #tpu.memory_space<vmem>>, vector<1x16x128xbf16>,
    %c6_i32 = arith.constant 6 : i32
    %191 = arith.index_cast %c6_i32 : i32 to index
    %c0_65 = arith.constant 0 : index
    %c0_66 = arith.constant 0 : index
    %192 = vector.load %arg14[%191, %c0_65, %c0_66] : memref<8x16x512xbf16, #tpu.memory_space<vmem>>, vector<1x16x512xbf16>
    %193 = vector.shape_cast %192 : vector<1x16x512xbf16> to vector<16x512xbf16>
    %194 = arith.extf %193 : vector<16x512xbf16> to vector<16x512xf32>
    %195 = arith.truncf %185 : vector<16x128xf32> to vector<16x128xbf16>
    %c0_67 = arith.constant 0 : index
    %c0_68 = arith.constant 0 : index
    %196 = vector.load %arg6[%c0_67, %c0_68] : memref<128x512xbf16, #tpu.memory_space<vmem>>, vector<128x512xbf16>
    %cst_69 = arith.constant dense<0.000000e+00> : vector<16x512xf32>
    %197 = tpu.matmul %195, %196, %cst_69 {dimension_numbers = #tpu.dot_dimension_numbers<[1], [0], [0], [1], [0, 0, 1, 1], [], []>} : vector<16x128xbf16>, vector<128x512xbf16>, vector<16x512xf32> -> vector<16x512xf32>
    %198 = arith.addf %194, %197 : vector<16x512xf32>
    %199 = vector.extract_strided_slice %198 {offsets = [0, 0], sizes = [16, 384], strides = [1, 1]} : vector<16x512xf32> to vector<16x384xf32>
    %200 = arith.negf %199 : vector<16x384xf32>
    %201 = math.exp %200 : vector<16x384xf32>
    %cst_70 = arith.constant 1.000000e+00 : f32
    %202 = vector.broadcast %cst_70 : f32 to vector<16x384xf32>
    %203 = arith.addf %202, %201 : vector<16x384xf32>
    %204 = arith.divf %202, %203 : vector<16x384xf32>
    %205 = vector.extract_strided_slice %204 {offsets = [0, 0], sizes = [16, 128], strides = [1, 1]} : vector<16x384xf32> to vector<16x128xf32>
    %206 = vector.extract_strided_slice %204 {offsets = [0, 128], sizes = [16, 128], strides = [1, 1]} : vector<16x384xf32> to vector<16x128xf32>
    %207 = vector.extract_strided_slice %204 {offsets = [0, 256], sizes = [16, 128], strides = [1, 1]} : vector<16x384xf32> to vector<16x128xf32>
    %208 = vector.extract_strided_slice %198 {offsets = [0, 384], sizes = [16, 128], strides = [1, 1]} : vector<16x512xf32> to vector<16x128xf32>
    %209 = math.tanh %208 : vector<16x128xf32>
    %210 = arith.mulf %206, %183 : vector<16x128xf32>
    %211 = arith.mulf %205, %209 : vector<16x128xf32>
    %212 = arith.addf %210, %211 : vector<16x128xf32>
    %213 = math.tanh %212 : vector<16x128xf32>
    %214 = arith.mulf %207, %213 : vector<16x128xf32>
    %215 = arith.truncf %214 : vector<16x128xf32> to vector<16x128xbf16>
    %216 = arith.index_cast %c6_i32 : i32 to index
    %c0_71 = arith.constant 0 : index
    %c0_72 = arith.constant 0 : index
    %217 = vector.load %arg15[%216, %c0_71, %c0_72] : memref<8x16x128xbf16, #tpu.memory_space<vmem>>, vector<1x16x128xbf16>
    %218 = vector.shape_cast %217 : vector<1x16x128xbf16> to vector<16x128xbf16>
    %219 = vector.shape_cast %215 : vector<16x128xbf16> to vector<1x16x128xbf16>
    tpu.vector_store %arg15[%216, %c0_71, %c0_72], %219 {strides = array<i32>} : memref<8x16x128xbf16, #tpu.memory_space<vmem>>, vector<1x16x128xbf16>,
    %c7_i32 = arith.constant 7 : i32
    %220 = arith.index_cast %c7_i32 : i32 to index
    %c0_73 = arith.constant 0 : index
    %c0_74 = arith.constant 0 : index
    %221 = vector.load %arg14[%220, %c0_73, %c0_74] : memref<8x16x512xbf16, #tpu.memory_space<vmem>>, vector<1x16x512xbf16>
    %222 = vector.shape_cast %221 : vector<1x16x512xbf16> to vector<16x512xbf16>
    %223 = arith.extf %222 : vector<16x512xbf16> to vector<16x512xf32>
    %224 = arith.truncf %214 : vector<16x128xf32> to vector<16x128xbf16>
    %c0_75 = arith.constant 0 : index
    %c0_76 = arith.constant 0 : index
    %225 = vector.load %arg6[%c0_75, %c0_76] : memref<128x512xbf16, #tpu.memory_space<vmem>>, vector<128x512xbf16>
    %cst_77 = arith.constant dense<0.000000e+00> : vector<16x512xf32>
    %226 = tpu.matmul %224, %225, %cst_77 {dimension_numbers = #tpu.dot_dimension_numbers<[1], [0], [0], [1], [0, 0, 1, 1], [], []>} : vector<16x128xbf16>, vector<128x512xbf16>, vector<16x512xf32> -> vector<16x512xf32>
    %227 = arith.addf %223, %226 : vector<16x512xf32>
    %228 = vector.extract_strided_slice %227 {offsets = [0, 0], sizes = [16, 384], strides = [1, 1]} : vector<16x512xf32> to vector<16x384xf32>
    %229 = arith.negf %228 : vector<16x384xf32>
    %230 = math.exp %229 : vector<16x384xf32>
    %cst_78 = arith.constant 1.000000e+00 : f32
    %231 = vector.broadcast %cst_78 : f32 to vector<16x384xf32>
    %232 = arith.addf %231, %230 : vector<16x384xf32>
    %233 = arith.divf %231, %232 : vector<16x384xf32>
    %234 = vector.extract_strided_slice %233 {offsets = [0, 0], sizes = [16, 128], strides = [1, 1]} : vector<16x384xf32> to vector<16x128xf32>
    %235 = vector.extract_strided_slice %233 {offsets = [0, 128], sizes = [16, 128], strides = [1, 1]} : vector<16x384xf32> to vector<16x128xf32>
    %236 = vector.extract_strided_slice %233 {offsets = [0, 256], sizes = [16, 128], strides = [1, 1]} : vector<16x384xf32> to vector<16x128xf32>
    %237 = vector.extract_strided_slice %227 {offsets = [0, 384], sizes = [16, 128], strides = [1, 1]} : vector<16x512xf32> to vector<16x128xf32>
    %238 = math.tanh %237 : vector<16x128xf32>
    %239 = arith.mulf %235, %212 : vector<16x128xf32>
    %240 = arith.mulf %234, %238 : vector<16x128xf32>
    %241 = arith.addf %239, %240 : vector<16x128xf32>
    %242 = math.tanh %241 : vector<16x128xf32>
    %243 = arith.mulf %236, %242 : vector<16x128xf32>
    %244 = arith.truncf %243 : vector<16x128xf32> to vector<16x128xbf16>
    %245 = arith.index_cast %c7_i32 : i32 to index
    %c0_79 = arith.constant 0 : index
    %c0_80 = arith.constant 0 : index
    %246 = vector.load %arg15[%245, %c0_79, %c0_80] : memref<8x16x128xbf16, #tpu.memory_space<vmem>>, vector<1x16x128xbf16>
    %247 = vector.shape_cast %246 : vector<1x16x128xbf16> to vector<16x128xbf16>
    %248 = vector.shape_cast %244 : vector<16x128xbf16> to vector<1x16x128xbf16>
    tpu.vector_store %arg15[%245, %c0_79, %c0_80], %248 {strides = array<i32>} : memref<8x16x128xbf16, #tpu.memory_space<vmem>>, vector<1x16x128xbf16>,
    %c8_i32 = arith.constant 8 : i32
    %c0_81 = arith.constant 0 : index
    %c0_82 = arith.constant 0 : index
    %c0_83 = arith.constant 0 : index
    %249 = vector.load %arg16[%c0_81, %c0_82, %c0_83] : memref<2x16x128xf32, #tpu.memory_space<vmem>>, vector<1x16x128xf32>
    %250 = vector.shape_cast %249 : vector<1x16x128xf32> to vector<16x128xf32>
    %251 = vector.shape_cast %243 : vector<16x128xf32> to vector<1x16x128xf32>
    tpu.vector_store %arg16[%c0_81, %c0_82, %c0_83], %251 {strides = array<i32>} : memref<2x16x128xf32, #tpu.memory_space<vmem>>, vector<1x16x128xf32>,
    %c0_84 = arith.constant 0 : index
    %c0_85 = arith.constant 0 : index
    %c0_86 = arith.constant 0 : index
    %252 = vector.load %arg17[%c0_84, %c0_85, %c0_86] : memref<2x16x128xf32, #tpu.memory_space<vmem>>, vector<1x16x128xf32>
    %253 = vector.shape_cast %252 : vector<1x16x128xf32> to vector<16x128xf32>
    %254 = vector.shape_cast %241 : vector<16x128xf32> to vector<1x16x128xf32>
    tpu.vector_store %arg17[%c0_84, %c0_85, %c0_86], %254 {strides = array<i32>} : memref<2x16x128xf32, #tpu.memory_space<vmem>>, vector<1x16x128xf32>,
    %c0_87 = arith.constant 0 : index
    %c0_88 = arith.constant 0 : index
    %c0_89 = arith.constant 0 : index
    %255 = vector.load %arg15[%c0_87, %c0_88, %c0_89] : memref<8x16x128xbf16, #tpu.memory_space<vmem>>, vector<8x16x128xbf16>
    %256 = vector.shape_cast %255 : vector<8x16x128xbf16> to vector<128x128xbf16>
    %c0_90 = arith.constant 0 : index
    %c0_91 = arith.constant 0 : index
    %257 = vector.load %arg8[%c0_90, %c0_91] : memref<128x512xbf16, #tpu.memory_space<vmem>>, vector<128x512xbf16>
    %cst_92 = arith.constant dense<0.000000e+00> : vector<128x512xf32>
    %258 = tpu.matmul %256, %257, %cst_92 {dimension_numbers = #tpu.dot_dimension_numbers<[1], [0], [0], [1], [0, 0, 1, 1], [], []>} : vector<128x128xbf16>, vector<128x512xbf16>, vector<128x512xf32> -> vector<128x512xf32>
    %c0_93 = arith.constant 0 : index
    %c0_94 = arith.constant 0 : index
    %259 = vector.load %arg10[%c0_93, %c0_94] : memref<1x512xf32, #tpu.memory_space<vmem>>, vector<1x512xf32>
    %260 = vector.broadcast %259 : vector<1x512xf32> to vector<128x512xf32>
    %261 = arith.addf %258, %260 : vector<128x512xf32>
    %262 = vector.shape_cast %261 : vector<128x512xf32> to vector<8x16x512xf32>
    %263 = arith.truncf %262 : vector<8x16x512xf32> to vector<8x16x512xbf16>
    %c0_95 = arith.constant 0 : index
    %c0_96 = arith.constant 0 : index
    %c0_97 = arith.constant 0 : index
    %264 = vector.load %arg14[%c0_95, %c0_96, %c0_97] : memref<8x16x512xbf16, #tpu.memory_space<vmem>>, vector<8x16x512xbf16>
    tpu.vector_store %arg14[%c0_95, %c0_96, %c0_97], %263 {strides = array<i32>} : memref<8x16x512xbf16, #tpu.memory_space<vmem>>, vector<8x16x512xbf16>,
    %c1 = arith.constant 1 : index
    %c0_98 = arith.constant 0 : index
    %c0_99 = arith.constant 0 : index
    %265 = vector.load %arg16[%c1, %c0_98, %c0_99] : memref<2x16x128xf32, #tpu.memory_space<vmem>>, vector<1x16x128xf32>
    %266 = vector.shape_cast %265 : vector<1x16x128xf32> to vector<16x128xf32>
    %c1_100 = arith.constant 1 : index
    %c0_101 = arith.constant 0 : index
    %c0_102 = arith.constant 0 : index
    %267 = vector.load %arg17[%c1_100, %c0_101, %c0_102] : memref<2x16x128xf32, #tpu.memory_space<vmem>>, vector<1x16x128xf32>
    %268 = vector.shape_cast %267 : vector<1x16x128xf32> to vector<16x128xf32>
    %c0_i32_103 = arith.constant 0 : i32
    %269 = arith.index_cast %c0_i32_103 : i32 to index
    %c0_104 = arith.constant 0 : index
    %c0_105 = arith.constant 0 : index
    %270 = vector.load %arg14[%269, %c0_104, %c0_105] : memref<8x16x512xbf16, #tpu.memory_space<vmem>>, vector<1x16x512xbf16>
    %271 = vector.shape_cast %270 : vector<1x16x512xbf16> to vector<16x512xbf16>
    %272 = arith.extf %271 : vector<16x512xbf16> to vector<16x512xf32>
    %273 = arith.truncf %266 : vector<16x128xf32> to vector<16x128xbf16>
    %c0_106 = arith.constant 0 : index
    %c0_107 = arith.constant 0 : index
    %274 = vector.load %arg9[%c0_106, %c0_107] : memref<128x512xbf16, #tpu.memory_space<vmem>>, vector<128x512xbf16>
    %cst_108 = arith.constant dense<0.000000e+00> : vector<16x512xf32>
    %275 = tpu.matmul %273, %274, %cst_108 {dimension_numbers = #tpu.dot_dimension_numbers<[1], [0], [0], [1], [0, 0, 1, 1], [], []>} : vector<16x128xbf16>, vector<128x512xbf16>, vector<16x512xf32> -> vector<16x512xf32>
    %276 = arith.addf %272, %275 : vector<16x512xf32>
    %277 = vector.extract_strided_slice %276 {offsets = [0, 0], sizes = [16, 384], strides = [1, 1]} : vector<16x512xf32> to vector<16x384xf32>
    %278 = arith.negf %277 : vector<16x384xf32>
    %279 = math.exp %278 : vector<16x384xf32>
    %cst_109 = arith.constant 1.000000e+00 : f32
    %280 = vector.broadcast %cst_109 : f32 to vector<16x384xf32>
    %281 = arith.addf %280, %279 : vector<16x384xf32>
    %282 = arith.divf %280, %281 : vector<16x384xf32>
    %283 = vector.extract_strided_slice %282 {offsets = [0, 0], sizes = [16, 128], strides = [1, 1]} : vector<16x384xf32> to vector<16x128xf32>
    %284 = vector.extract_strided_slice %282 {offsets = [0, 128], sizes = [16, 128], strides = [1, 1]} : vector<16x384xf32> to vector<16x128xf32>
    %285 = vector.extract_strided_slice %282 {offsets = [0, 256], sizes = [16, 128], strides = [1, 1]} : vector<16x384xf32> to vector<16x128xf32>
    %286 = vector.extract_strided_slice %276 {offsets = [0, 384], sizes = [16, 128], strides = [1, 1]} : vector<16x512xf32> to vector<16x128xf32>
    %287 = math.tanh %286 : vector<16x128xf32>
    %288 = arith.mulf %284, %268 : vector<16x128xf32>
    %289 = arith.mulf %283, %287 : vector<16x128xf32>
    %290 = arith.addf %288, %289 : vector<16x128xf32>
    %291 = math.tanh %290 : vector<16x128xf32>
    %292 = arith.mulf %285, %291 : vector<16x128xf32>
    %293 = arith.truncf %292 : vector<16x128xf32> to vector<16x128xbf16>
    %294 = arith.index_cast %c0_i32_103 : i32 to index
    %c0_110 = arith.constant 0 : index
    %c0_111 = arith.constant 0 : index
    %295 = vector.load %arg11[%294, %c0_110, %c0_111] : memref<8x16x128xbf16, #tpu.memory_space<vmem>>, vector<1x16x128xbf16>
    %296 = vector.shape_cast %295 : vector<1x16x128xbf16> to vector<16x128xbf16>
    %297 = vector.shape_cast %293 : vector<16x128xbf16> to vector<1x16x128xbf16>
    tpu.vector_store %arg11[%294, %c0_110, %c0_111], %297 {strides = array<i32>} : memref<8x16x128xbf16, #tpu.memory_space<vmem>>, vector<1x16x128xbf16>,
    %c1_i32_112 = arith.constant 1 : i32
    %298 = arith.index_cast %c1_i32_112 : i32 to index
    %c0_113 = arith.constant 0 : index
    %c0_114 = arith.constant 0 : index
    %299 = vector.load %arg14[%298, %c0_113, %c0_114] : memref<8x16x512xbf16, #tpu.memory_space<vmem>>, vector<1x16x512xbf16>
    %300 = vector.shape_cast %299 : vector<1x16x512xbf16> to vector<16x512xbf16>
    %301 = arith.extf %300 : vector<16x512xbf16> to vector<16x512xf32>
    %302 = arith.truncf %292 : vector<16x128xf32> to vector<16x128xbf16>
    %c0_115 = arith.constant 0 : index
    %c0_116 = arith.constant 0 : index
    %303 = vector.load %arg9[%c0_115, %c0_116] : memref<128x512xbf16, #tpu.memory_space<vmem>>, vector<128x512xbf16>
    %cst_117 = arith.constant dense<0.000000e+00> : vector<16x512xf32>
    %304 = tpu.matmul %302, %303, %cst_117 {dimension_numbers = #tpu.dot_dimension_numbers<[1], [0], [0], [1], [0, 0, 1, 1], [], []>} : vector<16x128xbf16>, vector<128x512xbf16>, vector<16x512xf32> -> vector<16x512xf32>
    %305 = arith.addf %301, %304 : vector<16x512xf32>
    %306 = vector.extract_strided_slice %305 {offsets = [0, 0], sizes = [16, 384], strides = [1, 1]} : vector<16x512xf32> to vector<16x384xf32>
    %307 = arith.negf %306 : vector<16x384xf32>
    %308 = math.exp %307 : vector<16x384xf32>
    %cst_118 = arith.constant 1.000000e+00 : f32
    %309 = vector.broadcast %cst_118 : f32 to vector<16x384xf32>
    %310 = arith.addf %309, %308 : vector<16x384xf32>
    %311 = arith.divf %309, %310 : vector<16x384xf32>
    %312 = vector.extract_strided_slice %311 {offsets = [0, 0], sizes = [16, 128], strides = [1, 1]} : vector<16x384xf32> to vector<16x128xf32>
    %313 = vector.extract_strided_slice %311 {offsets = [0, 128], sizes = [16, 128], strides = [1, 1]} : vector<16x384xf32> to vector<16x128xf32>
    %314 = vector.extract_strided_slice %311 {offsets = [0, 256], sizes = [16, 128], strides = [1, 1]} : vector<16x384xf32> to vector<16x128xf32>
    %315 = vector.extract_strided_slice %305 {offsets = [0, 384], sizes = [16, 128], strides = [1, 1]} : vector<16x512xf32> to vector<16x128xf32>
    %316 = math.tanh %315 : vector<16x128xf32>
    %317 = arith.mulf %313, %290 : vector<16x128xf32>
    %318 = arith.mulf %312, %316 : vector<16x128xf32>
    %319 = arith.addf %317, %318 : vector<16x128xf32>
    %320 = math.tanh %319 : vector<16x128xf32>
    %321 = arith.mulf %314, %320 : vector<16x128xf32>
    %322 = arith.truncf %321 : vector<16x128xf32> to vector<16x128xbf16>
    %323 = arith.index_cast %c1_i32_112 : i32 to index
    %c0_119 = arith.constant 0 : index
    %c0_120 = arith.constant 0 : index
    %324 = vector.load %arg11[%323, %c0_119, %c0_120] : memref<8x16x128xbf16, #tpu.memory_space<vmem>>, vector<1x16x128xbf16>
    %325 = vector.shape_cast %324 : vector<1x16x128xbf16> to vector<16x128xbf16>
    %326 = vector.shape_cast %322 : vector<16x128xbf16> to vector<1x16x128xbf16>
    tpu.vector_store %arg11[%323, %c0_119, %c0_120], %326 {strides = array<i32>} : memref<8x16x128xbf16, #tpu.memory_space<vmem>>, vector<1x16x128xbf16>,
    %c2_i32_121 = arith.constant 2 : i32
    %327 = arith.index_cast %c2_i32_121 : i32 to index
    %c0_122 = arith.constant 0 : index
    %c0_123 = arith.constant 0 : index
    %328 = vector.load %arg14[%327, %c0_122, %c0_123] : memref<8x16x512xbf16, #tpu.memory_space<vmem>>, vector<1x16x512xbf16>
    %329 = vector.shape_cast %328 : vector<1x16x512xbf16> to vector<16x512xbf16>
    %330 = arith.extf %329 : vector<16x512xbf16> to vector<16x512xf32>
    %331 = arith.truncf %321 : vector<16x128xf32> to vector<16x128xbf16>
    %c0_124 = arith.constant 0 : index
    %c0_125 = arith.constant 0 : index
    %332 = vector.load %arg9[%c0_124, %c0_125] : memref<128x512xbf16, #tpu.memory_space<vmem>>, vector<128x512xbf16>
    %cst_126 = arith.constant dense<0.000000e+00> : vector<16x512xf32>
    %333 = tpu.matmul %331, %332, %cst_126 {dimension_numbers = #tpu.dot_dimension_numbers<[1], [0], [0], [1], [0, 0, 1, 1], [], []>} : vector<16x128xbf16>, vector<128x512xbf16>, vector<16x512xf32> -> vector<16x512xf32>
    %334 = arith.addf %330, %333 : vector<16x512xf32>
    %335 = vector.extract_strided_slice %334 {offsets = [0, 0], sizes = [16, 384], strides = [1, 1]} : vector<16x512xf32> to vector<16x384xf32>
    %336 = arith.negf %335 : vector<16x384xf32>
    %337 = math.exp %336 : vector<16x384xf32>
    %cst_127 = arith.constant 1.000000e+00 : f32
    %338 = vector.broadcast %cst_127 : f32 to vector<16x384xf32>
    %339 = arith.addf %338, %337 : vector<16x384xf32>
    %340 = arith.divf %338, %339 : vector<16x384xf32>
    %341 = vector.extract_strided_slice %340 {offsets = [0, 0], sizes = [16, 128], strides = [1, 1]} : vector<16x384xf32> to vector<16x128xf32>
    %342 = vector.extract_strided_slice %340 {offsets = [0, 128], sizes = [16, 128], strides = [1, 1]} : vector<16x384xf32> to vector<16x128xf32>
    %343 = vector.extract_strided_slice %340 {offsets = [0, 256], sizes = [16, 128], strides = [1, 1]} : vector<16x384xf32> to vector<16x128xf32>
    %344 = vector.extract_strided_slice %334 {offsets = [0, 384], sizes = [16, 128], strides = [1, 1]} : vector<16x512xf32> to vector<16x128xf32>
    %345 = math.tanh %344 : vector<16x128xf32>
    %346 = arith.mulf %342, %319 : vector<16x128xf32>
    %347 = arith.mulf %341, %345 : vector<16x128xf32>
    %348 = arith.addf %346, %347 : vector<16x128xf32>
    %349 = math.tanh %348 : vector<16x128xf32>
    %350 = arith.mulf %343, %349 : vector<16x128xf32>
    %351 = arith.truncf %350 : vector<16x128xf32> to vector<16x128xbf16>
    %352 = arith.index_cast %c2_i32_121 : i32 to index
    %c0_128 = arith.constant 0 : index
    %c0_129 = arith.constant 0 : index
    %353 = vector.load %arg11[%352, %c0_128, %c0_129] : memref<8x16x128xbf16, #tpu.memory_space<vmem>>, vector<1x16x128xbf16>
    %354 = vector.shape_cast %353 : vector<1x16x128xbf16> to vector<16x128xbf16>
    %355 = vector.shape_cast %351 : vector<16x128xbf16> to vector<1x16x128xbf16>
    tpu.vector_store %arg11[%352, %c0_128, %c0_129], %355 {strides = array<i32>} : memref<8x16x128xbf16, #tpu.memory_space<vmem>>, vector<1x16x128xbf16>,
    %c3_i32_130 = arith.constant 3 : i32
    %356 = arith.index_cast %c3_i32_130 : i32 to index
    %c0_131 = arith.constant 0 : index
    %c0_132 = arith.constant 0 : index
    %357 = vector.load %arg14[%356, %c0_131, %c0_132] : memref<8x16x512xbf16, #tpu.memory_space<vmem>>, vector<1x16x512xbf16>
    %358 = vector.shape_cast %357 : vector<1x16x512xbf16> to vector<16x512xbf16>
    %359 = arith.extf %358 : vector<16x512xbf16> to vector<16x512xf32>
    %360 = arith.truncf %350 : vector<16x128xf32> to vector<16x128xbf16>
    %c0_133 = arith.constant 0 : index
    %c0_134 = arith.constant 0 : index
    %361 = vector.load %arg9[%c0_133, %c0_134] : memref<128x512xbf16, #tpu.memory_space<vmem>>, vector<128x512xbf16>
    %cst_135 = arith.constant dense<0.000000e+00> : vector<16x512xf32>
    %362 = tpu.matmul %360, %361, %cst_135 {dimension_numbers = #tpu.dot_dimension_numbers<[1], [0], [0], [1], [0, 0, 1, 1], [], []>} : vector<16x128xbf16>, vector<128x512xbf16>, vector<16x512xf32> -> vector<16x512xf32>
    %363 = arith.addf %359, %362 : vector<16x512xf32>
    %364 = vector.extract_strided_slice %363 {offsets = [0, 0], sizes = [16, 384], strides = [1, 1]} : vector<16x512xf32> to vector<16x384xf32>
    %365 = arith.negf %364 : vector<16x384xf32>
    %366 = math.exp %365 : vector<16x384xf32>
    %cst_136 = arith.constant 1.000000e+00 : f32
    %367 = vector.broadcast %cst_136 : f32 to vector<16x384xf32>
    %368 = arith.addf %367, %366 : vector<16x384xf32>
    %369 = arith.divf %367, %368 : vector<16x384xf32>
    %370 = vector.extract_strided_slice %369 {offsets = [0, 0], sizes = [16, 128], strides = [1, 1]} : vector<16x384xf32> to vector<16x128xf32>
    %371 = vector.extract_strided_slice %369 {offsets = [0, 128], sizes = [16, 128], strides = [1, 1]} : vector<16x384xf32> to vector<16x128xf32>
    %372 = vector.extract_strided_slice %369 {offsets = [0, 256], sizes = [16, 128], strides = [1, 1]} : vector<16x384xf32> to vector<16x128xf32>
    %373 = vector.extract_strided_slice %363 {offsets = [0, 384], sizes = [16, 128], strides = [1, 1]} : vector<16x512xf32> to vector<16x128xf32>
    %374 = math.tanh %373 : vector<16x128xf32>
    %375 = arith.mulf %371, %348 : vector<16x128xf32>
    %376 = arith.mulf %370, %374 : vector<16x128xf32>
    %377 = arith.addf %375, %376 : vector<16x128xf32>
    %378 = math.tanh %377 : vector<16x128xf32>
    %379 = arith.mulf %372, %378 : vector<16x128xf32>
    %380 = arith.truncf %379 : vector<16x128xf32> to vector<16x128xbf16>
    %381 = arith.index_cast %c3_i32_130 : i32 to index
    %c0_137 = arith.constant 0 : index
    %c0_138 = arith.constant 0 : index
    %382 = vector.load %arg11[%381, %c0_137, %c0_138] : memref<8x16x128xbf16, #tpu.memory_space<vmem>>, vector<1x16x128xbf16>
    %383 = vector.shape_cast %382 : vector<1x16x128xbf16> to vector<16x128xbf16>
    %384 = vector.shape_cast %380 : vector<16x128xbf16> to vector<1x16x128xbf16>
    tpu.vector_store %arg11[%381, %c0_137, %c0_138], %384 {strides = array<i32>} : memref<8x16x128xbf16, #tpu.memory_space<vmem>>, vector<1x16x128xbf16>,
    %c4_i32_139 = arith.constant 4 : i32
    %385 = arith.index_cast %c4_i32_139 : i32 to index
    %c0_140 = arith.constant 0 : index
    %c0_141 = arith.constant 0 : index
    %386 = vector.load %arg14[%385, %c0_140, %c0_141] : memref<8x16x512xbf16, #tpu.memory_space<vmem>>, vector<1x16x512xbf16>
    %387 = vector.shape_cast %386 : vector<1x16x512xbf16> to vector<16x512xbf16>
    %388 = arith.extf %387 : vector<16x512xbf16> to vector<16x512xf32>
    %389 = arith.truncf %379 : vector<16x128xf32> to vector<16x128xbf16>
    %c0_142 = arith.constant 0 : index
    %c0_143 = arith.constant 0 : index
    %390 = vector.load %arg9[%c0_142, %c0_143] : memref<128x512xbf16, #tpu.memory_space<vmem>>, vector<128x512xbf16>
    %cst_144 = arith.constant dense<0.000000e+00> : vector<16x512xf32>
    %391 = tpu.matmul %389, %390, %cst_144 {dimension_numbers = #tpu.dot_dimension_numbers<[1], [0], [0], [1], [0, 0, 1, 1], [], []>} : vector<16x128xbf16>, vector<128x512xbf16>, vector<16x512xf32> -> vector<16x512xf32>
    %392 = arith.addf %388, %391 : vector<16x512xf32>
    %393 = vector.extract_strided_slice %392 {offsets = [0, 0], sizes = [16, 384], strides = [1, 1]} : vector<16x512xf32> to vector<16x384xf32>
    %394 = arith.negf %393 : vector<16x384xf32>
    %395 = math.exp %394 : vector<16x384xf32>
    %cst_145 = arith.constant 1.000000e+00 : f32
    %396 = vector.broadcast %cst_145 : f32 to vector<16x384xf32>
    %397 = arith.addf %396, %395 : vector<16x384xf32>
    %398 = arith.divf %396, %397 : vector<16x384xf32>
    %399 = vector.extract_strided_slice %398 {offsets = [0, 0], sizes = [16, 128], strides = [1, 1]} : vector<16x384xf32> to vector<16x128xf32>
    %400 = vector.extract_strided_slice %398 {offsets = [0, 128], sizes = [16, 128], strides = [1, 1]} : vector<16x384xf32> to vector<16x128xf32>
    %401 = vector.extract_strided_slice %398 {offsets = [0, 256], sizes = [16, 128], strides = [1, 1]} : vector<16x384xf32> to vector<16x128xf32>
    %402 = vector.extract_strided_slice %392 {offsets = [0, 384], sizes = [16, 128], strides = [1, 1]} : vector<16x512xf32> to vector<16x128xf32>
    %403 = math.tanh %402 : vector<16x128xf32>
    %404 = arith.mulf %400, %377 : vector<16x128xf32>
    %405 = arith.mulf %399, %403 : vector<16x128xf32>
    %406 = arith.addf %404, %405 : vector<16x128xf32>
    %407 = math.tanh %406 : vector<16x128xf32>
    %408 = arith.mulf %401, %407 : vector<16x128xf32>
    %409 = arith.truncf %408 : vector<16x128xf32> to vector<16x128xbf16>
    %410 = arith.index_cast %c4_i32_139 : i32 to index
    %c0_146 = arith.constant 0 : index
    %c0_147 = arith.constant 0 : index
    %411 = vector.load %arg11[%410, %c0_146, %c0_147] : memref<8x16x128xbf16, #tpu.memory_space<vmem>>, vector<1x16x128xbf16>
    %412 = vector.shape_cast %411 : vector<1x16x128xbf16> to vector<16x128xbf16>
    %413 = vector.shape_cast %409 : vector<16x128xbf16> to vector<1x16x128xbf16>
    tpu.vector_store %arg11[%410, %c0_146, %c0_147], %413 {strides = array<i32>} : memref<8x16x128xbf16, #tpu.memory_space<vmem>>, vector<1x16x128xbf16>,
    %c5_i32_148 = arith.constant 5 : i32
    %414 = arith.index_cast %c5_i32_148 : i32 to index
    %c0_149 = arith.constant 0 : index
    %c0_150 = arith.constant 0 : index
    %415 = vector.load %arg14[%414, %c0_149, %c0_150] : memref<8x16x512xbf16, #tpu.memory_space<vmem>>, vector<1x16x512xbf16>
    %416 = vector.shape_cast %415 : vector<1x16x512xbf16> to vector<16x512xbf16>
    %417 = arith.extf %416 : vector<16x512xbf16> to vector<16x512xf32>
    %418 = arith.truncf %408 : vector<16x128xf32> to vector<16x128xbf16>
    %c0_151 = arith.constant 0 : index
    %c0_152 = arith.constant 0 : index
    %419 = vector.load %arg9[%c0_151, %c0_152] : memref<128x512xbf16, #tpu.memory_space<vmem>>, vector<128x512xbf16>
    %cst_153 = arith.constant dense<0.000000e+00> : vector<16x512xf32>
    %420 = tpu.matmul %418, %419, %cst_153 {dimension_numbers = #tpu.dot_dimension_numbers<[1], [0], [0], [1], [0, 0, 1, 1], [], []>} : vector<16x128xbf16>, vector<128x512xbf16>, vector<16x512xf32> -> vector<16x512xf32>
    %421 = arith.addf %417, %420 : vector<16x512xf32>
    %422 = vector.extract_strided_slice %421 {offsets = [0, 0], sizes = [16, 384], strides = [1, 1]} : vector<16x512xf32> to vector<16x384xf32>
    %423 = arith.negf %422 : vector<16x384xf32>
    %424 = math.exp %423 : vector<16x384xf32>
    %cst_154 = arith.constant 1.000000e+00 : f32
    %425 = vector.broadcast %cst_154 : f32 to vector<16x384xf32>
    %426 = arith.addf %425, %424 : vector<16x384xf32>
    %427 = arith.divf %425, %426 : vector<16x384xf32>
    %428 = vector.extract_strided_slice %427 {offsets = [0, 0], sizes = [16, 128], strides = [1, 1]} : vector<16x384xf32> to vector<16x128xf32>
    %429 = vector.extract_strided_slice %427 {offsets = [0, 128], sizes = [16, 128], strides = [1, 1]} : vector<16x384xf32> to vector<16x128xf32>
    %430 = vector.extract_strided_slice %427 {offsets = [0, 256], sizes = [16, 128], strides = [1, 1]} : vector<16x384xf32> to vector<16x128xf32>
    %431 = vector.extract_strided_slice %421 {offsets = [0, 384], sizes = [16, 128], strides = [1, 1]} : vector<16x512xf32> to vector<16x128xf32>
    %432 = math.tanh %431 : vector<16x128xf32>
    %433 = arith.mulf %429, %406 : vector<16x128xf32>
    %434 = arith.mulf %428, %432 : vector<16x128xf32>
    %435 = arith.addf %433, %434 : vector<16x128xf32>
    %436 = math.tanh %435 : vector<16x128xf32>
    %437 = arith.mulf %430, %436 : vector<16x128xf32>
    %438 = arith.truncf %437 : vector<16x128xf32> to vector<16x128xbf16>
    %439 = arith.index_cast %c5_i32_148 : i32 to index
    %c0_155 = arith.constant 0 : index
    %c0_156 = arith.constant 0 : index
    %440 = vector.load %arg11[%439, %c0_155, %c0_156] : memref<8x16x128xbf16, #tpu.memory_space<vmem>>, vector<1x16x128xbf16>
    %441 = vector.shape_cast %440 : vector<1x16x128xbf16> to vector<16x128xbf16>
    %442 = vector.shape_cast %438 : vector<16x128xbf16> to vector<1x16x128xbf16>
    tpu.vector_store %arg11[%439, %c0_155, %c0_156], %442 {strides = array<i32>} : memref<8x16x128xbf16, #tpu.memory_space<vmem>>, vector<1x16x128xbf16>,
    %c6_i32_157 = arith.constant 6 : i32
    %443 = arith.index_cast %c6_i32_157 : i32 to index
    %c0_158 = arith.constant 0 : index
    %c0_159 = arith.constant 0 : index
    %444 = vector.load %arg14[%443, %c0_158, %c0_159] : memref<8x16x512xbf16, #tpu.memory_space<vmem>>, vector<1x16x512xbf16>
    %445 = vector.shape_cast %444 : vector<1x16x512xbf16> to vector<16x512xbf16>
    %446 = arith.extf %445 : vector<16x512xbf16> to vector<16x512xf32>
    %447 = arith.truncf %437 : vector<16x128xf32> to vector<16x128xbf16>
    %c0_160 = arith.constant 0 : index
    %c0_161 = arith.constant 0 : index
    %448 = vector.load %arg9[%c0_160, %c0_161] : memref<128x512xbf16, #tpu.memory_space<vmem>>, vector<128x512xbf16>
    %cst_162 = arith.constant dense<0.000000e+00> : vector<16x512xf32>
    %449 = tpu.matmul %447, %448, %cst_162 {dimension_numbers = #tpu.dot_dimension_numbers<[1], [0], [0], [1], [0, 0, 1, 1], [], []>} : vector<16x128xbf16>, vector<128x512xbf16>, vector<16x512xf32> -> vector<16x512xf32>
    %450 = arith.addf %446, %449 : vector<16x512xf32>
    %451 = vector.extract_strided_slice %450 {offsets = [0, 0], sizes = [16, 384], strides = [1, 1]} : vector<16x512xf32> to vector<16x384xf32>
    %452 = arith.negf %451 : vector<16x384xf32>
    %453 = math.exp %452 : vector<16x384xf32>
    %cst_163 = arith.constant 1.000000e+00 : f32
    %454 = vector.broadcast %cst_163 : f32 to vector<16x384xf32>
    %455 = arith.addf %454, %453 : vector<16x384xf32>
    %456 = arith.divf %454, %455 : vector<16x384xf32>
    %457 = vector.extract_strided_slice %456 {offsets = [0, 0], sizes = [16, 128], strides = [1, 1]} : vector<16x384xf32> to vector<16x128xf32>
    %458 = vector.extract_strided_slice %456 {offsets = [0, 128], sizes = [16, 128], strides = [1, 1]} : vector<16x384xf32> to vector<16x128xf32>
    %459 = vector.extract_strided_slice %456 {offsets = [0, 256], sizes = [16, 128], strides = [1, 1]} : vector<16x384xf32> to vector<16x128xf32>
    %460 = vector.extract_strided_slice %450 {offsets = [0, 384], sizes = [16, 128], strides = [1, 1]} : vector<16x512xf32> to vector<16x128xf32>
    %461 = math.tanh %460 : vector<16x128xf32>
    %462 = arith.mulf %458, %435 : vector<16x128xf32>
    %463 = arith.mulf %457, %461 : vector<16x128xf32>
    %464 = arith.addf %462, %463 : vector<16x128xf32>
    %465 = math.tanh %464 : vector<16x128xf32>
    %466 = arith.mulf %459, %465 : vector<16x128xf32>
    %467 = arith.truncf %466 : vector<16x128xf32> to vector<16x128xbf16>
    %468 = arith.index_cast %c6_i32_157 : i32 to index
    %c0_164 = arith.constant 0 : index
    %c0_165 = arith.constant 0 : index
    %469 = vector.load %arg11[%468, %c0_164, %c0_165] : memref<8x16x128xbf16, #tpu.memory_space<vmem>>, vector<1x16x128xbf16>
    %470 = vector.shape_cast %469 : vector<1x16x128xbf16> to vector<16x128xbf16>
    %471 = vector.shape_cast %467 : vector<16x128xbf16> to vector<1x16x128xbf16>
    tpu.vector_store %arg11[%468, %c0_164, %c0_165], %471 {strides = array<i32>} : memref<8x16x128xbf16, #tpu.memory_space<vmem>>, vector<1x16x128xbf16>,
    %c7_i32_166 = arith.constant 7 : i32
    %472 = arith.index_cast %c7_i32_166 : i32 to index
    %c0_167 = arith.constant 0 : index
    %c0_168 = arith.constant 0 : index
    %473 = vector.load %arg14[%472, %c0_167, %c0_168] : memref<8x16x512xbf16, #tpu.memory_space<vmem>>, vector<1x16x512xbf16>
    %474 = vector.shape_cast %473 : vector<1x16x512xbf16> to vector<16x512xbf16>
    %475 = arith.extf %474 : vector<16x512xbf16> to vector<16x512xf32>
    %476 = arith.truncf %466 : vector<16x128xf32> to vector<16x128xbf16>
    %c0_169 = arith.constant 0 : index
    %c0_170 = arith.constant 0 : index
    %477 = vector.load %arg9[%c0_169, %c0_170] : memref<128x512xbf16, #tpu.memory_space<vmem>>, vector<128x512xbf16>
    %cst_171 = arith.constant dense<0.000000e+00> : vector<16x512xf32>
    %478 = tpu.matmul %476, %477, %cst_171 {dimension_numbers = #tpu.dot_dimension_numbers<[1], [0], [0], [1], [0, 0, 1, 1], [], []>} : vector<16x128xbf16>, vector<128x512xbf16>, vector<16x512xf32> -> vector<16x512xf32>
    %479 = arith.addf %475, %478 : vector<16x512xf32>
    %480 = vector.extract_strided_slice %479 {offsets = [0, 0], sizes = [16, 384], strides = [1, 1]} : vector<16x512xf32> to vector<16x384xf32>
    %481 = arith.negf %480 : vector<16x384xf32>
    %482 = math.exp %481 : vector<16x384xf32>
    %cst_172 = arith.constant 1.000000e+00 : f32
    %483 = vector.broadcast %cst_172 : f32 to vector<16x384xf32>
    %484 = arith.addf %483, %482 : vector<16x384xf32>
    %485 = arith.divf %483, %484 : vector<16x384xf32>
    %486 = vector.extract_strided_slice %485 {offsets = [0, 0], sizes = [16, 128], strides = [1, 1]} : vector<16x384xf32> to vector<16x128xf32>
    %487 = vector.extract_strided_slice %485 {offsets = [0, 128], sizes = [16, 128], strides = [1, 1]} : vector<16x384xf32> to vector<16x128xf32>
    %488 = vector.extract_strided_slice %485 {offsets = [0, 256], sizes = [16, 128], strides = [1, 1]} : vector<16x384xf32> to vector<16x128xf32>
    %489 = vector.extract_strided_slice %479 {offsets = [0, 384], sizes = [16, 128], strides = [1, 1]} : vector<16x512xf32> to vector<16x128xf32>
    %490 = math.tanh %489 : vector<16x128xf32>
    %491 = arith.mulf %487, %464 : vector<16x128xf32>
    %492 = arith.mulf %486, %490 : vector<16x128xf32>
    %493 = arith.addf %491, %492 : vector<16x128xf32>
    %494 = math.tanh %493 : vector<16x128xf32>
    %495 = arith.mulf %488, %494 : vector<16x128xf32>
    %496 = arith.truncf %495 : vector<16x128xf32> to vector<16x128xbf16>
    %497 = arith.index_cast %c7_i32_166 : i32 to index
    %c0_173 = arith.constant 0 : index
    %c0_174 = arith.constant 0 : index
    %498 = vector.load %arg11[%497, %c0_173, %c0_174] : memref<8x16x128xbf16, #tpu.memory_space<vmem>>, vector<1x16x128xbf16>
    %499 = vector.shape_cast %498 : vector<1x16x128xbf16> to vector<16x128xbf16>
    %500 = vector.shape_cast %496 : vector<16x128xbf16> to vector<1x16x128xbf16>
    tpu.vector_store %arg11[%497, %c0_173, %c0_174], %500 {strides = array<i32>} : memref<8x16x128xbf16, #tpu.memory_space<vmem>>, vector<1x16x128xbf16>,
    %c8_i32_175 = arith.constant 8 : i32
    %c1_176 = arith.constant 1 : index
    %c0_177 = arith.constant 0 : index
    %c0_178 = arith.constant 0 : index
    %501 = vector.load %arg16[%c1_176, %c0_177, %c0_178] : memref<2x16x128xf32, #tpu.memory_space<vmem>>, vector<1x16x128xf32>
    %502 = vector.shape_cast %501 : vector<1x16x128xf32> to vector<16x128xf32>
    %503 = vector.shape_cast %495 : vector<16x128xf32> to vector<1x16x128xf32>
    tpu.vector_store %arg16[%c1_176, %c0_177, %c0_178], %503 {strides = array<i32>} : memref<2x16x128xf32, #tpu.memory_space<vmem>>, vector<1x16x128xf32>,
    %c1_179 = arith.constant 1 : index
    %c0_180 = arith.constant 0 : index
    %c0_181 = arith.constant 0 : index
    %504 = vector.load %arg17[%c1_179, %c0_180, %c0_181] : memref<2x16x128xf32, #tpu.memory_space<vmem>>, vector<1x16x128xf32>
    %505 = vector.shape_cast %504 : vector<1x16x128xf32> to vector<16x128xf32>
    %506 = vector.shape_cast %493 : vector<16x128xf32> to vector<1x16x128xf32>
    tpu.vector_store %arg17[%c1_179, %c0_180, %c0_181], %506 {strides = array<i32>} : memref<2x16x128xf32, #tpu.memory_space<vmem>>, vector<1x16x128xf32>,
    %c0_i32_182 = arith.constant 0 : i32
    %507 = arith.cmpi eq, %arg1, %c0_i32_182 : i32
    %508 = arith.extui %507 : i1 to i32
    %c0_i32_183 = arith.constant 0 : i32
    %509 = arith.cmpi ne, %508, %c0_i32_183 : i32
    scf.if %509 {
      %c0_184 = arith.constant 0 : index
      %c0_185 = arith.constant 0 : index
      %c0_186 = arith.constant 0 : index
      %510 = vector.load %arg16[%c0_184, %c0_185, %c0_186] : memref<2x16x128xf32, #tpu.memory_space<vmem>>, vector<2x16x128xf32>
      %c0_187 = arith.constant 0 : index
      %c0_188 = arith.constant 0 : index
      %c0_189 = arith.constant 0 : index
      %511 = vector.load %arg12[%c0_187, %c0_188, %c0_189] : memref<2x16x128xf32, #tpu.memory_space<vmem>>, vector<2x16x128xf32>
      tpu.vector_store %arg12[%c0_187, %c0_188, %c0_189], %510 {strides = array<i32>} : memref<2x16x128xf32, #tpu.memory_space<vmem>>, vector<2x16x128xf32>,
      %c0_190 = arith.constant 0 : index
      %c0_191 = arith.constant 0 : index
      %c0_192 = arith.constant 0 : index
      %512 = vector.load %arg17[%c0_190, %c0_191, %c0_192] : memref<2x16x128xf32, #tpu.memory_space<vmem>>, vector<2x16x128xf32>
      %c0_193 = arith.constant 0 : index
      %c0_194 = arith.constant 0 : index
      %c0_195 = arith.constant 0 : index
      %513 = vector.load %arg13[%c0_193, %c0_194, %c0_195] : memref<2x16x128xf32, #tpu.memory_space<vmem>>, vector<2x16x128xf32>
      tpu.vector_store %arg13[%c0_193, %c0_194, %c0_195], %512 {strides = array<i32>} : memref<2x16x128xf32, #tpu.memory_space<vmem>>, vector<2x16x128xf32>,
    } else {
    }
    return
  }
  func.func @transform_0(%arg0: i32, %arg1: i32) -> (i32, i32, i32) {
    %c0_i32 = arith.constant 0 : i32
    %c0_i32_0 = arith.constant 0 : i32
    return %arg1, %arg0, %c0_i32 : i32, i32, i32
  }
  func.func @transform_1(%arg0: i32, %arg1: i32) -> (i32, i32, i32) {
    %c0_i32 = arith.constant 0 : i32
    %c0_i32_0 = arith.constant 0 : i32
    %c0_i32_1 = arith.constant 0 : i32
    return %c0_i32, %arg0, %c0_i32_0 : i32, i32, i32
  }
  func.func @transform_2(%arg0: i32, %arg1: i32) -> (i32, i32, i32) {
    %c0_i32 = arith.constant 0 : i32
    %c0_i32_0 = arith.constant 0 : i32
    %c0_i32_1 = arith.constant 0 : i32
    return %c0_i32, %arg0, %c0_i32_0 : i32, i32, i32
  }
  func.func @transform_3(%arg0: i32, %arg1: i32) -> (i32, i32) {
    %c0_i32 = arith.constant 0 : i32
    %c0_i32_0 = arith.constant 0 : i32
    %c0_i32_1 = arith.constant 0 : i32
    return %c0_i32, %c0_i32_0 : i32, i32
  }
  func.func @transform_4(%arg0: i32, %arg1: i32) -> (i32, i32) {
    %c0_i32 = arith.constant 0 : i32
    %c0_i32_0 = arith.constant 0 : i32
    %c0_i32_1 = arith.constant 0 : i32
    return %c0_i32, %c0_i32_0 : i32, i32
  }
  func.func @transform_5(%arg0: i32, %arg1: i32) -> (i32, i32) {
    %c0_i32 = arith.constant 0 : i32
    %c0_i32_0 = arith.constant 0 : i32
    %c0_i32_1 = arith.constant 0 : i32
    return %c0_i32, %c0_i32_0 : i32, i32
  }
  func.func @transform_6(%arg0: i32, %arg1: i32) -> (i32, i32) {
    %c0_i32 = arith.constant 0 : i32
    %c0_i32_0 = arith.constant 0 : i32
    %c0_i32_1 = arith.constant 0 : i32
    return %c0_i32, %c0_i32_0 : i32, i32
  }
  func.func @transform_7(%arg0: i32, %arg1: i32) -> (i32, i32) {
    %c0_i32 = arith.constant 0 : i32
    %c0_i32_0 = arith.constant 0 : i32
    %c0_i32_1 = arith.constant 0 : i32
    return %c0_i32, %c0_i32_0 : i32, i32
  }
  func.func @transform_8(%arg0: i32, %arg1: i32) -> (i32, i32) {
    %c0_i32 = arith.constant 0 : i32
    %c0_i32_0 = arith.constant 0 : i32
    %c0_i32_1 = arith.constant 0 : i32
    return %c0_i32, %c0_i32_0 : i32, i32
  }
  func.func @transform_9(%arg0: i32, %arg1: i32) -> (i32, i32, i32) {
    %c0_i32 = arith.constant 0 : i32
    %c0_i32_0 = arith.constant 0 : i32
    return %arg1, %arg0, %c0_i32 : i32, i32, i32
  }
  func.func @transform_10(%arg0: i32, %arg1: i32) -> (i32, i32, i32) {
    %c0_i32 = arith.constant 0 : i32
    %c0_i32_0 = arith.constant 0 : i32
    %c0_i32_1 = arith.constant 0 : i32
    return %c0_i32, %arg0, %c0_i32_0 : i32, i32, i32
  }
  func.func @transform_11(%arg0: i32, %arg1: i32) -> (i32, i32, i32) {
    %c0_i32 = arith.constant 0 : i32
    %c0_i32_0 = arith.constant 0 : i32
    %c0_i32_1 = arith.constant 0 : i32
    return %c0_i32, %arg0, %c0_i32_0 : i32, i32, i32
  }
}

</mosaic_0001>

<bundles_post_ra>
// kernel: weight_drop_lstm_forward.1
= control target key start
LH: loop header
LB: loop body
LE: loop exit
PB: predicated region body
PF: predicated region fallthrough
CT: control target
= control target key end

     0   :  { %17 = vsyncpa [#allocation7], 0  ;;  %s14421_s0 = inlined_call_operand.vmem [shape: bf16[8,16,128], index: 0, kind: input, shape index: {}]   ;;  %s14422_s1 = inlined_call_operand.vmem [shape: f32[2,16,128], index: 1, kind: input, shape index: {}]   ;;  %s14423_s2 = inlined_call_operand.vmem [shape: f32[2,16,128], index: 2, kind: input, shape index: {}]   ;;  %s14424_s3 = inlined_call_operand.hbm [shape: bf16[128,512], index: 3, kind: input, shape index: {}]   ;;  %s14425_s4 = inlined_call_operand.hbm [shape: bf16[128,512], index: 4, kind: input, shape index: {}]   ;;  %s14426_s5 = inlined_call_operand.vmem [shape: f32[1,512], index: 5, kind: input, shape index: {}]   ;;  %s14427_s6 = inlined_call_operand.hbm [shape: bf16[128,512], index: 6, kind: input, shape index: {}]   ;;  %s14428_s7 = inlined_call_operand.hbm [shape: bf16[128,512], index: 7, kind: input, shape index: {}]   ;;  %s14429_s8 = inlined_call_operand.vmem [shape: f32[1,512], index: 8, kind: input, shape index: {}]   ;;  %s14430_s9 = inlined_call_operand.vmem [shape: bf16[8,16,128], index: 9, kind: output, shape index: {0}]   ;;  %s14431_s10 = inlined_call_operand.vmem [shape: f32[2,16,128], index: 10, kind: output, shape index: {1}]   ;;  %s14432_s11 = inlined_call_operand.vmem [shape: f32[2,16,128], index: 11, kind: output, shape index: {2}]  }
   0x1   :  { %18 = vsyncpa [#allocation9], 0 }
   0x2   :  { %19 = vsyncpa [#allocation12], 0  ;;  %s43_s19 = sshll.u32 %s14425_s4, 4  ;;  %s11474_s20 = smov [#allocation8]   ;;  %s44_s19 = int_to_ptr.hbm [resolvable:$true] %s43_s19 }
   0x3   :  { %s45_s21 = sshll.u32 %s11474_s20, 4  ;;  %s30_s24 = sshll.u32 %s14424_s3, 4  ;;  %s46_s21 = int_to_ptr.vmem [resolvable:$true] %s45_s21  ;;  %s31_s24 = int_to_ptr.hbm [resolvable:$true] %s30_s24 }
   0x4   :  { %s11475_s25 = smov 256   ;;  %s11476_s26 = smov 16  }
   0x5   :  { %51 = dma.hbm_to_vmem [thread:$0]  %s44_s19, 4096, %s46_s21, [#allocation9], %s11475_s25, %s11475_s25, %s11476_s26  }
   0x6   :  { %s11477_s27 = smov [#allocation6]   ;;  %s58_s12 = sshll.u32 %s14427_s6, 4  ;;  %s59_s12 = int_to_ptr.hbm [resolvable:$true] %s58_s12 }
   0x7   :  { %s32_s28 = sshll.u32 %s11477_s27, 4  ;;  %s71_s14 = sshll.u32 %s14428_s7, 4  ;;  %s33_s28 = int_to_ptr.vmem [resolvable:$true] %s32_s28  ;;  %s72_s14 = int_to_ptr.hbm [resolvable:$true] %s71_s14 }
   0x8   :  { %38 = dma.hbm_to_vmem [thread:$0]  %s31_s24, 4096, %s33_s28, [#allocation7], %s11475_s25, %s11475_s25, %s11476_s26  }
   0x9   :  { %s11478_s15 = smov [#allocation10]   ;;  %s11479_s3 = smov [#allocation11]  }
   0xa   :  { %s60_s16 = sshll.u32 %s11478_s15, 4  ;;  %s73_s17 = sshll.u32 %s11479_s3, 4  ;;  %s61_s16 = int_to_ptr.vmem [resolvable:$true] %s60_s16  ;;  %s74_s17 = int_to_ptr.vmem [resolvable:$true] %s73_s17 }
   0xb   :  { %66 = dma.hbm_to_vmem [thread:$0]  %s59_s12, 4096, %s61_s16, [#allocation9], %s11475_s25, %s11475_s25, %s11476_s26  }
   0xc   :  { %79 = dma.hbm_to_vmem [thread:$0]  %s72_s14, 4096, %s74_s17, [#allocation12], %s11475_s25, %s11475_s25, %s11476_s26  }
   0xd   :  { %11468 = dma.done.wait [#allocation7], 4096  }
   0xe   :  { %11469 = vsyncadd [#allocation7], 4294963200 }
   0xf   :  { %11470 = dma.done.wait [#allocation9], 8192  }
  0x10   :  { %11471 = vsyncadd [#allocation9], 4294959104 }
  0x11   :  { %11472 = dma.done.wait [#allocation12], 4096  }
  0x12   :  { %11473 = vsyncadd [#allocation12], 4294963200  ;;  %v7843_v0 = vld [vmem:[#allocation6 + $0xe0] sm:$0xf]  ;;  %v10213_v1 = vld [vmem:[#allocation6 + $0xec] sm:$0xf0] }
  0x13   :  { %v10211_v2 = vld [vmem:[#allocation6 + $0xe4] sm:$0xf]  ;;  %v7844_v3 = vor.u32 %v10213_v1, %v7843_v0  ;;  %v7845_v4 = vld [vmem:[#allocation6 + $0xf0] sm:$0xf0]  ;;  %v7851_v5 = vld [vmem:[#allocation6 + $0xe8] sm:$0xf] }
  0x14   :  { %v10214_v6 = vld [vmem:[#allocation6 + $0xf4] sm:$0xf0]  ;;  %v7848_v7 = vor.u32 %v10211_v2, %v7845_v4  ;;  %v10212_v9 = vld [vmem:[#allocation6 + $0xec] sm:$0xf]  ;;  %v7853_v10 = vld [vmem:[#allocation6 + $0xf8] sm:$0xf0] }
  0x15   :  { %v7852_v8 = vor.u32 %v10214_v6, %v7851_v5  ;;  %v7827_v11 = vld [vmem:[#allocation6 + $0xc0] sm:$0xf]  ;;  %384 = vmatpush.bf16.msra.mxu0 %v7844_v3  ;;  %v7856_v12 = vor.u32 %v10212_v9, %v7853_v10  ;;  %v10209_v13 = vld [vmem:[#allocation6 + $0xcc] sm:$0xf0]  ;;  %v10207_v14 = vld [vmem:[#allocation6 + $0xc4] sm:$0xf] }
  0x16   :  { %v7829_v15 = vld [vmem:[#allocation6 + $0xd0] sm:$0xf0]  ;;  %433 = vmatpush.bf16.msra.mxu1 %v7848_v7  ;;  %v7828_v16 = vor.u32 %v10209_v13, %v7827_v11  ;;  %v7835_v18 = vld [vmem:[#allocation6 + $0xc8] sm:$0xf]  ;;  %v10210_v19 = vld [vmem:[#allocation6 + $0xd4] sm:$0xf0] }
  0x17   :  { %482 = vmatpush.bf16.msra.mxu2 %v7852_v8  ;;  %v7832_v17 = vor.u32 %v10207_v14, %v7829_v15  ;;  %v10208_v20 = vld [vmem:[#allocation6 + $0xcc] sm:$0xf]  ;;  %531 = vmatpush.bf16.msra.mxu3 %v7856_v12  ;;  %v7836_v21 = vor.u32 %v10210_v19, %v7835_v18  ;;  %v7837_v22 = vld [vmem:[#allocation6 + $0xd8] sm:$0xf0]  ;;  %v7811_v23 = vld [vmem:[#allocation6 + $0xa0] sm:$0xf] }
  0x18   :  { %v10205_v24 = vld [vmem:[#allocation6 + $0xac] sm:$0xf0]  ;;  %v7840_v25 = vor.u32 %v10208_v20, %v7837_v22  ;;  %v10203_v26 = vld [vmem:[#allocation6 + $0xa4] sm:$0xf]  ;;  %v7813_v27 = vld [vmem:[#allocation6 + $0xb0] sm:$0xf0] }
  0x19   :  { %v7819_v28 = vld [vmem:[#allocation6 + $0xa8] sm:$0xf]  ;;  %385 = vmatpush.bf16.msra.mxu0 %v7828_v16  ;;  %v7812_v29 = vor.u32 %v10205_v24, %v7811_v23  ;;  %v10206_v30 = vld [vmem:[#allocation6 + $0xb4] sm:$0xf0]  ;;  %v10204_v31 = vld [vmem:[#allocation6 + $0xac] sm:$0xf]  ;;  %v7816_v33 = vor.u32 %v10203_v26, %v7813_v27 }
  0x1a   :  { %v7821_v32 = vld [vmem:[#allocation6 + $0xb8] sm:$0xf0]  ;;  %434 = vmatpush.bf16.msra.mxu1 %v7832_v17  ;;  %v7820_v34 = vor.u32 %v10206_v30, %v7819_v28  ;;  %v7795_v35 = vld [vmem:[#allocation6 + $0x80] sm:$0xf]  ;;  %v10201_v36 = vld [vmem:[#allocation6 + $0x8c] sm:$0xf0] }
  0x1b   :  { %483 = vmatpush.bf16.msra.mxu2 %v7836_v21  ;;  %v10199_v37 = vld [vmem:[#allocation6 + $0x84] sm:$0xf]  ;;  %532 = vmatpush.bf16.msra.mxu3 %v7840_v25  ;;  %v7824_v38 = vor.u32 %v10204_v31, %v7821_v32  ;;  %v7797_v39 = vld [vmem:[#allocation6 + $0x90] sm:$0xf0]  ;;  %v7803_v40 = vld [vmem:[#allocation6 + $0x88] sm:$0xf]  ;;  %v7796_v44 = vor.u32 %v10201_v36, %v7795_v35 }
  0x1c   :  { %v10202_v41 = vld [vmem:[#allocation6 + $0x94] sm:$0xf0]  ;;  %v10200_v42 = vld [vmem:[#allocation6 + $0x8c] sm:$0xf]  ;;  %v7805_v43 = vld [vmem:[#allocation6 + $0x98] sm:$0xf0]  ;;  %v7800_v45 = vor.u32 %v10199_v37, %v7797_v39 }
  0x1d   :  { %386 = vmatpush.bf16.msra.mxu0 %v7812_v29  ;;  %v7804_v46 = vor.u32 %v10202_v41, %v7803_v40  ;;  %v7779_v47 = vld [vmem:[#allocation6 + $0x60] sm:$0xf]  ;;  %v10197_v48 = vld [vmem:[#allocation6 + $0x6c] sm:$0xf0]  ;;  %v10195_v49 = vld [vmem:[#allocation6 + $0x64] sm:$0xf]  ;;  %v7808_v50 = vor.u32 %v10200_v42, %v7805_v43 }
  0x1e   :  { %435 = vmatpush.bf16.msra.mxu1 %v7816_v33  ;;  %v7781_v51 = vld [vmem:[#allocation6 + $0x70] sm:$0xf0]  ;;  %v7787_v52 = vld [vmem:[#allocation6 + $0x68] sm:$0xf]  ;;  %v10198_v53 = vld [vmem:[#allocation6 + $0x74] sm:$0xf0]  ;;  %v7780_v56 = vor.u32 %v10197_v48, %v7779_v47 }
  0x1f   :  { %484 = vmatpush.bf16.msra.mxu2 %v7820_v34  ;;  %533 = vmatpush.bf16.msra.mxu3 %v7824_v38  ;;  %v10196_v54 = vld [vmem:[#allocation6 + $0x6c] sm:$0xf]  ;;  %v7789_v55 = vld [vmem:[#allocation6 + $0x78] sm:$0xf0]  ;;  %v7784_v57 = vor.u32 %v10195_v49, %v7781_v51  ;;  %v7788_v58 = vor.u32 %v10198_v53, %v7787_v52  ;;  %v7763_v59 = vld [vmem:[#allocation6 + $0x40] sm:$0xf] }
  0x20   :  { %v10193_v60 = vld [vmem:[#allocation6 + $0x4c] sm:$0xf0]  ;;  %v10191_v61 = vld [vmem:[#allocation6 + $0x44] sm:$0xf]  ;;  %v7792_v62 = vor.u32 %v10196_v54, %v7789_v55  ;;  %v7765_v63 = vld [vmem:[#allocation6 + $0x50] sm:$0xf0] }
  0x21   :  { %387 = vmatpush.bf16.msra.mxu0 %v7796_v44  ;;  %v7771_v0 = vld [vmem:[#allocation6 + $0x48] sm:$0xf]  ;;  %v10194_v1 = vld [vmem:[#allocation6 + $0x54] sm:$0xf0]  ;;  %v10192_v2 = vld [vmem:[#allocation6 + $0x4c] sm:$0xf]  ;;  %v7764_v4 = vor.u32 %v10193_v60, %v7763_v59  ;;  %v7768_v5 = vor.u32 %v10191_v61, %v7765_v63 }
  0x22   :  { %436 = vmatpush.bf16.msra.mxu1 %v7800_v45  ;;  %v7773_v3 = vld [vmem:[#allocation6 + $0x58] sm:$0xf0]  ;;  %v7772_v6 = vor.u32 %v10194_v1, %v7771_v0  ;;  %v7747_v7 = vld [vmem:[#allocation6 + $0x20] sm:$0xf]  ;;  %v10189_v8 = vld [vmem:[#allocation6 + $0x2c] sm:$0xf0] }
  0x23   :  { %485 = vmatpush.bf16.msra.mxu2 %v7804_v46  ;;  %534 = vmatpush.bf16.msra.mxu3 %v7808_v50  ;;  %v10187_v9 = vld [vmem:[#allocation6 + $0x24] sm:$0xf]  ;;  %v7776_v10 = vor.u32 %v10192_v2, %v7773_v3  ;;  %v7749_v11 = vld [vmem:[#allocation6 + $0x30] sm:$0xf0]  ;;  %v7755_v12 = vld [vmem:[#allocation6 + $0x28] sm:$0xf]  ;;  %v7748_v16 = vor.u32 %v10189_v8, %v7747_v7 }
  0x24   :  { %v10190_v13 = vld [vmem:[#allocation6 + $0x34] sm:$0xf0]  ;;  %v10188_v14 = vld [vmem:[#allocation6 + $0x2c] sm:$0xf]  ;;  %v7757_v15 = vld [vmem:[#allocation6 + $0x38] sm:$0xf0]  ;;  %v7752_v18 = vor.u32 %v10187_v9, %v7749_v11 }
  0x25   :  { %388 = vmatpush.bf16.msra.mxu0 %v7780_v56  ;;  %v7731_v17 = vld [vmem:[#allocation6] sm:$0xf]  ;;  %v7756_v19 = vor.u32 %v10190_v13, %v7755_v12  ;;  %v10185_v20 = vld [vmem:[#allocation6 + $0xc] sm:$0xf0]  ;;  %v10183_v21 = vld [vmem:[#allocation6 + $0x4] sm:$0xf]  ;;  %v7760_v23 = vor.u32 %v10188_v14, %v7757_v15 }
  0x26   :  { %437 = vmatpush.bf16.msra.mxu1 %v7784_v57  ;;  %v7733_v22 = vld [vmem:[#allocation6 + $0x10] sm:$0xf0]  ;;  %v7739_v24 = vld [vmem:[#allocation6 + $0x8] sm:$0xf]  ;;  %v10186_v25 = vld [vmem:[#allocation6 + $0x14] sm:$0xf0]  ;;  %v7732_v30 = vor.u32 %v10185_v20, %v7731_v17 }
  0x27   :  { %486 = vmatpush.bf16.msra.mxu2 %v7788_v58  ;;  %535 = vmatpush.bf16.msra.mxu3 %v7792_v62  ;;  %v10184_v26 = vld [vmem:[#allocation6 + $0xc] sm:$0xf]  ;;  %v7741_v27 = vld [vmem:[#allocation6 + $0x18] sm:$0xf0]  ;;  %v7971_v28 = vld [vmem:[#allocation8 + $0xe0] sm:$0xf]  ;;  %v7736_v33 = vor.u32 %v10183_v21, %v7733_v22  ;;  %v7740_v34 = vor.u32 %v10186_v25, %v7739_v24 }
  0x28   :  { %v10245_v29 = vld [vmem:[#allocation8 + $0xec] sm:$0xf0]  ;;  %v10243_v31 = vld [vmem:[#allocation8 + $0xe4] sm:$0xf]  ;;  %v7973_v32 = vld [vmem:[#allocation8 + $0xf0] sm:$0xf0]  ;;  %v7744_v36 = vor.u32 %v10184_v26, %v7741_v27 }
  0x29   :  { %389 = vmatpush.bf16.msra.mxu0 %v7764_v4  ;;  %v10175_v35 = vld [vmem:[%s14421_s0] sm:$0xff]  ;;  %v7972_v37 = vor.u32 %v10245_v29, %v7971_v28  ;;  %v7979_v38 = vld [vmem:[#allocation8 + $0xe8] sm:$0xf]  ;;  %v10246_v39 = vld [vmem:[#allocation8 + $0xf4] sm:$0xf0]  ;;  %v7976_v41 = vor.u32 %v10243_v31, %v7973_v32 }
  0x2a   :  { %438 = vmatpush.bf16.msra.mxu1 %v7768_v5  ;;  %v10244_v40 = vld [vmem:[#allocation8 + $0xec] sm:$0xf]  ;;  %v7981_v42 = vld [vmem:[#allocation8 + $0xf8] sm:$0xf0]  ;;  %v7955_v43 = vld [vmem:[#allocation8 + $0xc0] sm:$0xf]  ;;  %v7980_v47 = vor.u32 %v10246_v39, %v7979_v38 }
  0x2b   :  { %487 = vmatpush.bf16.msra.mxu2 %v7772_v6  ;;  %536 = vmatpush.bf16.msra.mxu3 %v7776_v10  ;;  %v10241_v44 = vld [vmem:[#allocation8 + $0xcc] sm:$0xf0]  ;;  %v10239_v45 = vld [vmem:[#allocation8 + $0xc4] sm:$0xf]  ;;  %v7957_v46 = vld [vmem:[#allocation8 + $0xd0] sm:$0xf0]  ;;  %v7984_v48 = vor.u32 %v10244_v40, %v7981_v42 }
  0x2c   :  { %v7956_v49 = vor.u32 %v10241_v44, %v7955_v43  ;;  %v7963_v50 = vld [vmem:[#allocation8 + $0xc8] sm:$0xf]  ;;  %v10242_v51 = vld [vmem:[#allocation8 + $0xd4] sm:$0xf0]  ;;  %v7960_v52 = vor.u32 %v10239_v45, %v7957_v46  ;;  %v10240_v53 = vld [vmem:[#allocation8 + $0xcc] sm:$0xf] }
  0x2d   :  { %390 = vmatpush.bf16.msra.mxu0 %v7748_v16  ;;  %v7965_v54 = vld [vmem:[#allocation8 + $0xd8] sm:$0xf0]  ;;  %v7964_v55 = vor.u32 %v10242_v51, %v7963_v50  ;;  %v7939_v56 = vld [vmem:[#allocation8 + $0xa0] sm:$0xf]  ;;  %v10237_v57 = vld [vmem:[#allocation8 + $0xac] sm:$0xf0] }
  0x2e   :  { %439 = vmatpush.bf16.msra.mxu1 %v7752_v18  ;;  %v10235_v58 = vld [vmem:[#allocation8 + $0xa4] sm:$0xf]  ;;  %v7968_v59 = vor.u32 %v10240_v53, %v7965_v54  ;;  %v7940_v60 = vor.u32 %v10237_v57, %v7939_v56  ;;  %v7941_v61 = vld [vmem:[#allocation8 + $0xb0] sm:$0xf0]  ;;  %v7947_v62 = vld [vmem:[#allocation8 + $0xa8] sm:$0xf] }
  0x2f   :  { %488 = vmatpush.bf16.msra.mxu2 %v7756_v19  ;;  %537 = vmatpush.bf16.msra.mxu3 %v7760_v23  ;;  %v10238_v63 = vld [vmem:[#allocation8 + $0xb4] sm:$0xf0]  ;;  %v7944_v0 = vor.u32 %v10235_v58, %v7941_v61  ;;  %v10236_v1 = vld [vmem:[#allocation8 + $0xac] sm:$0xf]  ;;  %v7949_v2 = vld [vmem:[#allocation8 + $0xb8] sm:$0xf0] }
  0x30   :  { %v7948_v3 = vor.u32 %v10238_v63, %v7947_v62  ;;  %v7952_v4 = vor.u32 %v10236_v1, %v7949_v2  ;;  %v10176_v5 = vld [vmem:[%s14421_s0 + $0x8] sm:$0xff]  ;;  %v7923_v6 = vld [vmem:[#allocation8 + $0x80] sm:$0xf]  ;;  %v10233_v7 = vld [vmem:[#allocation8 + $0x8c] sm:$0xf0] }
  0x31   :  { %391 = vmatpush.bf16.msra.mxu0 %v7732_v30  ;;  %v10231_v8 = vld [vmem:[#allocation8 + $0x84] sm:$0xf]  ;;  %v7924_v9 = vor.u32 %v10233_v7, %v7923_v6  ;;  %v7925_v10 = vld [vmem:[#allocation8 + $0x90] sm:$0xf0]  ;;  %v7931_v11 = vld [vmem:[#allocation8 + $0x88] sm:$0xf] }
  0x32   :  { %440 = vmatpush.bf16.msra.mxu1 %v7736_v33  ;;  %v10234_v12 = vld [vmem:[#allocation8 + $0x94] sm:$0xf0]  ;;  %v7928_v13 = vor.u32 %v10231_v8, %v7925_v10  ;;  %v10232_v15 = vld [vmem:[#allocation8 + $0x8c] sm:$0xf]  ;;  %v7933_v16 = vld [vmem:[#allocation8 + $0x98] sm:$0xf0] }
  0x33   :  { %489 = vmatpush.bf16.msra.mxu2 %v7740_v34  ;;  %538 = vmatpush.bf16.msra.mxu3 %v7744_v36  ;;  %v7932_v14 = vor.u32 %v10234_v12, %v7931_v11  ;;  %v7936_v17 = vor.u32 %v10232_v15, %v7933_v16  ;;  %v10177_v18 = vld [vmem:[%s14421_s0 + $0x10] sm:$0xff]  ;;  %v7907_v19 = vld [vmem:[#allocation8 + $0x60] sm:$0xf]  ;;  %v10227_v21 = vld [vmem:[#allocation8 + $0x64] sm:$0xf] }
  0x34   :  { %392 = vmatmul.bf16.vlgmr.msra.gmra.mxu0 %v10175_v35  ;;  %v10229_v20 = vld [vmem:[#allocation8 + $0x6c] sm:$0xf0]  ;;  %v7909_v23 = vld [vmem:[#allocation8 + $0x70] sm:$0xf0]  ;;  %v7915_v24 = vld [vmem:[#allocation8 + $0x68] sm:$0xf] }
  0x35   :  { %853 = vmatpush.bf16.msrb.mxu0 %v7972_v37  ;;  %441 = vmatmul.bf16.vlgmr.msra.gmra.mxu1 %v10175_v35  ;;  %v7908_v22 = vor.u32 %v10229_v20, %v7907_v19  ;;  %v10230_v25 = vld [vmem:[#allocation8 + $0x74] sm:$0xf0]  ;;  %v7912_v26 = vor.u32 %v10227_v21, %v7909_v23  ;;  %v10228_v28 = vld [vmem:[#allocation8 + $0x6c] sm:$0xf]  ;;  %v7917_v29 = vld [vmem:[#allocation8 + $0x78] sm:$0xf0] }
  0x36   :  { %867 = vmatpush.bf16.msrb.mxu1 %v7976_v41  ;;  %490 = vmatmul.bf16.vlgmr.msra.gmra.mxu2 %v10175_v35  ;;  %v7916_v27 = vor.u32 %v10230_v25, %v7915_v24  ;;  %v7920_v30 = vor.u32 %v10228_v28, %v7917_v29  ;;  %v10178_v31 = vld [vmem:[%s14421_s0 + $0x18] sm:$0xff]  ;;  %v7891_v32 = vld [vmem:[#allocation8 + $0x40] sm:$0xf]  ;;  %v10225_v33 = vld [vmem:[#allocation8 + $0x4c] sm:$0xf0] }
  0x37   :  { %539 = vmatmul.bf16.vlgmr.msra.gmra.mxu3 %v10175_v35  ;;  %881 = vmatpush.bf16.msrb.mxu2 %v7980_v47  ;;  %v10223_v34 = vld [vmem:[#allocation8 + $0x44] sm:$0xf]  ;;  %v7892_v35 = vor.u32 %v10225_v33, %v7891_v32  ;;  %v7893_v36 = vld [vmem:[#allocation8 + $0x50] sm:$0xf0]  ;;  %v7899_v37 = vld [vmem:[#allocation8 + $0x48] sm:$0xf] }
  0x38   :  { %895 = vmatpush.bf16.msrb.mxu3 %v7984_v48  ;;  %v10226_v38 = vld [vmem:[#allocation8 + $0x54] sm:$0xf0]  ;;  %v7896_v39 = vor.u32 %v10223_v34, %v7893_v36  ;;  %v10224_v41 = vld [vmem:[#allocation8 + $0x4c] sm:$0xf]  ;;  %v7901_v42 = vld [vmem:[#allocation8 + $0x58] sm:$0xf0] }
  0x39   :  { %854 = vmatpush.bf16.msrb.mxu0 %v7956_v49  ;;  %v7900_v40 = vor.u32 %v10226_v38, %v7899_v37  ;;  %v7904_v43 = vor.u32 %v10224_v41, %v7901_v42  ;;  %v10179_v44 = vld [vmem:[%s14421_s0 + $0x20] sm:$0xff]  ;;  %v10221_v46 = vld [vmem:[#allocation8 + $0x2c] sm:$0xf0]  ;;  %v7877_v49 = vld [vmem:[#allocation8 + $0x30] sm:$0xf0] }
  0x3a   :  { %868 = vmatpush.bf16.msrb.mxu1 %v7960_v52  ;;  %v7875_v45 = vld [vmem:[#allocation8 + $0x20] sm:$0xf]  ;;  %v10219_v47 = vld [vmem:[#allocation8 + $0x24] sm:$0xf]  ;;  %v7883_v50 = vld [vmem:[#allocation8 + $0x28] sm:$0xf] }
  0x3b   :  { %882 = vmatpush.bf16.msrb.mxu2 %v7964_v55  ;;  %v7876_v48 = vor.u32 %v10221_v46, %v7875_v45  ;;  %v10222_v51 = vld [vmem:[#allocation8 + $0x34] sm:$0xf0]  ;;  %v7880_v52 = vor.u32 %v10219_v47, %v7877_v49  ;;  %v10220_v54 = vld [vmem:[#allocation8 + $0x2c] sm:$0xf]  ;;  %v7885_v55 = vld [vmem:[#allocation8 + $0x38] sm:$0xf0] }
  0x3c   :  { %896 = vmatpush.bf16.msrb.mxu3 %v7968_v59  ;;  %v7884_v53 = vor.u32 %v10222_v51, %v7883_v50  ;;  %v7888_v56 = vor.u32 %v10220_v54, %v7885_v55  ;;  %v10180_v57 = vld [vmem:[%s14421_s0 + $0x28] sm:$0xff]  ;;  %v7859_v58 = vld [vmem:[#allocation8] sm:$0xf]  ;;  %v10217_v59 = vld [vmem:[#allocation8 + $0xc] sm:$0xf0] }
  0x3d   :  { %855 = vmatpush.bf16.msrb.mxu0 %v7940_v60  ;;  %v10215_v60 = vld [vmem:[#allocation8 + $0x4] sm:$0xf]  ;;  %v7860_v61 = vor.u32 %v10217_v59, %v7859_v58  ;;  %v7861_v62 = vld [vmem:[#allocation8 + $0x10] sm:$0xf0]  ;;  %v7867_v63 = vld [vmem:[#allocation8 + $0x8] sm:$0xf] }
  0x3e   :  { %869 = vmatpush.bf16.msrb.mxu1 %v7944_v0  ;;  %v10218_v0 = vld [vmem:[#allocation8 + $0x14] sm:$0xf0]  ;;  %v7864_v1 = vor.u32 %v10215_v60, %v7861_v62  ;;  %v166_v8 = vld [vmem:[%s14426_s5] sm:$0xf]  ;;  %v103_v10 = vld [vmem:[%s14422_s1 + $0x8] sm:$0xff] }
  0x3f   :  { %883 = vmatpush.bf16.msrb.mxu2 %v7948_v3  ;;  %v7868_v2 = vor.u32 %v10218_v0, %v7867_v63  ;;  %v10181_v3 = vld [vmem:[%s14421_s0 + $0x30] sm:$0xff]  ;;  %v10182_v7 = vld [vmem:[%s14421_s0 + $0x38] sm:$0xff]  ;;  %v11585_v11 = vperm.slane %v166_v8, 0  ;;  %v11587_v12 = vperm.slane %v166_v8, 1  ;;  %v11593_v19 = vperm.slane %v166_v8, 2 }
  0x40   :  { %897 = vmatpush.bf16.msrb.mxu3 %v7952_v4  ;;  %v10216_v4 = vld [vmem:[#allocation8 + $0xc] sm:$0xf]  ;;  %v11595_v20 = vperm.slane %v166_v8, 3 }
  0x41   :  { %856 = vmatpush.bf16.msrb.mxu0 %v7924_v9  ;;  %v102_v9 = vld [vmem:[%s14422_s1] sm:$0xff] }
  0x42   :  { %870 = vmatpush.bf16.msrb.mxu1 %v7928_v13  ;;  %v660_v13 = vpack.c.bf16 %v103_v10, %v102_v9 }
  0x43   :  { %884 = vmatpush.bf16.msrb.mxu2 %v7932_v14 }
  0x44   :  { %397 = vmatmul.bf16.gmra.mxu0 %v10176_v5  ;;  %898 = vmatpush.bf16.msrb.mxu3 %v7936_v17 }
  0x45   :  { %446 = vmatmul.bf16.gmra.mxu1 %v10176_v5  ;;  %857 = vmatpush.bf16.msrb.mxu0 %v7908_v22 }
  0x46   :  { %495 = vmatmul.bf16.gmra.mxu2 %v10176_v5  ;;  %871 = vmatpush.bf16.msrb.mxu1 %v7912_v26 }
  0x47   :  { %544 = vmatmul.bf16.gmra.mxu3 %v10176_v5  ;;  %885 = vmatpush.bf16.msrb.mxu2 %v7916_v27  ;;  %v7869_v5 = vld [vmem:[#allocation8 + $0x18] sm:$0xf0] }
  0x48   :  { %899 = vmatpush.bf16.msrb.mxu3 %v7920_v30  ;;  %v7872_v6 = vor.u32 %v10216_v4, %v7869_v5 }
  0x49   :  { %858 = vmatpush.bf16.msrb.mxu0 %v7892_v35 }
  0x4a   :  { %872 = vmatpush.bf16.msrb.mxu1 %v7896_v39 }
  0x4b   :  { %886 = vmatpush.bf16.msrb.mxu2 %v7900_v40 }
  0x4c   :  { %900 = vmatpush.bf16.msrb.mxu3 %v7904_v43 }
  0x4d   :  { %859 = vmatpush.bf16.msrb.mxu0 %v7876_v48 }
  0x4e   :  { %873 = vmatpush.bf16.msrb.mxu1 %v7880_v52 }
  0x4f   :  { %887 = vmatpush.bf16.msrb.mxu2 %v7884_v53 }
  0x50   :  { %901 = vmatpush.bf16.msrb.mxu3 %v7888_v56 }
  0x51   :  { %860 = vmatpush.bf16.msrb.mxu0 %v7860_v61 }
  0x52   :  { %874 = vmatpush.bf16.msrb.mxu1 %v7864_v1 }
  0x53   :  { %888 = vmatpush.bf16.msrb.mxu2 %v7868_v2 }
  0x54   :  { %402 = vmatmul.bf16.gmra.mxu0 %v10177_v18  ;;  %902 = vmatpush.bf16.msrb.mxu3 %v7872_v6 }
  0x55   :  { %451 = vmatmul.bf16.gmra.mxu1 %v10177_v18 }
  0x56   :  { %500 = vmatmul.bf16.gmra.mxu2 %v10177_v18 }
  0x57   :  { %549 = vmatmul.bf16.gmra.mxu3 %v10177_v18 }
  0x64   :  { %407 = vmatmul.bf16.gmra.mxu0 %v10178_v31 }
  0x65   :  { %456 = vmatmul.bf16.gmra.mxu1 %v10178_v31 }
  0x66   :  { %505 = vmatmul.bf16.gmra.mxu2 %v10178_v31 }
  0x67   :  { %554 = vmatmul.bf16.gmra.mxu3 %v10178_v31 }
  0x74   :  { %412 = vmatmul.bf16.gmra.mxu0 %v10179_v44 }
  0x75   :  { %461 = vmatmul.bf16.gmra.mxu1 %v10179_v44 }
  0x76   :  { %510 = vmatmul.bf16.gmra.mxu2 %v10179_v44 }
  0x77   :  { %559 = vmatmul.bf16.gmra.mxu3 %v10179_v44 }
  0x84   :  { %417 = vmatmul.bf16.gmra.mxu0 %v10180_v57 }
  0x85   :  { %466 = vmatmul.bf16.gmra.mxu1 %v10180_v57 }
  0x86   :  { %515 = vmatmul.bf16.gmra.mxu2 %v10180_v57 }
  0x87   :  { %564 = vmatmul.bf16.gmra.mxu3 %v10180_v57 }
  0x94   :  { %422 = vmatmul.bf16.gmra.mxu0 %v10181_v3 }
  0x95   :  { %471 = vmatmul.bf16.gmra.mxu1 %v10181_v3 }
  0x96   :  { %520 = vmatmul.bf16.gmra.mxu2 %v10181_v3 }
  0x97   :  { %569 = vmatmul.bf16.gmra.mxu3 %v10181_v3 }
  0xa4   :  { %427 = vmatmul.bf16.gmra.mxu0 %v10182_v7 }
  0xa5   :  { %476 = vmatmul.bf16.gmra.mxu1 %v10182_v7 }
  0xa6   :  { %525 = vmatmul.bf16.gmra.mxu2 %v10182_v7 }
  0xa7   :  { %574 = vmatmul.bf16.gmra.mxu3 %v10182_v7 }
  0xb1   :  { %v393_v14 = vpop.f32.mrf.mxu0 }
  0xb2   :  { %v394_v15 = vadd.f32 %v393_v14, %v11585_v11  ;;  %v442_v16 = vpop.f32.mrf.mxu1 }
  0xb3   :  { %v443_v17 = vadd.f32 %v442_v16, %v11587_v12 }
  0xb4   :  { %861 = vmatmul.bf16.vlgmr.msrb.gmra.mxu0 %v660_v13 }
  0xb5   :  { %v11591_v18 = vpack.c.bf16 %v443_v17, %v394_v15  ;;  %875 = vmatmul.bf16.vlgmr.msrb.gmra.mxu1 %v660_v13 }
  0xb6   :  { %889 = vmatmul.bf16.vlgmr.msrb.gmra.mxu2 %v660_v13 }
  0xb7   :  { %903 = vmatmul.bf16.vlgmr.msrb.gmra.mxu3 %v660_v13 }
  0xb9   :  { %v491_v21 = vpop.f32.mrf.mxu2  ;;  %v11598_v24 = vpop.f32.mrf.mxu0 }
  0xba   :  { %v492_v22 = vadd.f32 %v491_v21, %v11593_v19  ;;  %v540_v23 = vpop.f32.mrf.mxu3  ;;  %v11601_v26 = vpop.f32.mrf.mxu1 }
  0xbb   :  { %v541_v25 = vadd.f32 %v540_v23, %v11595_v20 }
  0xbd   :  { %v11603_v27 = vpack.c.bf16 %v541_v25, %v492_v22 }
  0xc1   :  { %v11605_v28 = vpop.f32.mrf.mxu2  ;;  %v398_v30 = vpop.f32.mrf.mxu0 }
  0xc2   :  { %v11607_v29 = vpop.f32.mrf.mxu3  ;;  %v399_v31 = vadd.f32 %v398_v30, %v11585_v11  ;;  %v447_v32 = vpop.f32.mrf.mxu1 }
  0xc3   :  { %v448_v33 = vadd.f32 %v447_v32, %v11587_v12 }
  0xc5   :  { %v11611_v34 = vpack.c.bf16 %v448_v33, %v399_v31 }
  0xc9   :  { %v496_v35 = vpop.f32.mrf.mxu2  ;;  %v11614_v38 = vpop.f32.mrf.mxu0 }
  0xca   :  { %v497_v36 = vadd.f32 %v496_v35, %v11593_v19  ;;  %v545_v37 = vpop.f32.mrf.mxu3  ;;  %v11617_v40 = vpop.f32.mrf.mxu1 }
  0xcb   :  { %v546_v39 = vadd.f32 %v545_v37, %v11595_v20 }
  0xcd   :  { %v11619_v41 = vpack.c.bf16 %v546_v39, %v497_v36 }
  0xd1   :  { %v11621_v42 = vpop.f32.mrf.mxu2  ;;  %v403_v44 = vpop.f32.mrf.mxu0 }
  0xd2   :  { %v11623_v43 = vpop.f32.mrf.mxu3  ;;  %v404_v45 = vadd.f32 %v403_v44, %v11585_v11  ;;  %v452_v46 = vpop.f32.mrf.mxu1 }
  0xd3   :  { %v453_v47 = vadd.f32 %v452_v46, %v11587_v12 }
  0xd5   :  { %v11627_v48 = vpack.c.bf16 %v453_v47, %v404_v45 }
  0xd9   :  { %v501_v49 = vpop.f32.mrf.mxu2  ;;  %v11630_v52 = vpop.f32.mrf.mxu0 }
  0xda   :  { %v502_v50 = vadd.f32 %v501_v49, %v11593_v19  ;;  %v550_v51 = vpop.f32.mrf.mxu3  ;;  %v11633_v54 = vpop.f32.mrf.mxu1 }
  0xdb   :  { %v551_v53 = vadd.f32 %v550_v51, %v11595_v20 }
  0xdd   :  { %v11635_v55 = vpack.c.bf16 %v551_v53, %v502_v50 }
  0xe1   :  { %v11637_v56 = vpop.f32.mrf.mxu2  ;;  %v408_v58 = vpop.f32.mrf.mxu0 }
  0xe2   :  { %v11639_v57 = vpop.f32.mrf.mxu3  ;;  %v409_v59 = vadd.f32 %v408_v58, %v11585_v11  ;;  %v457_v60 = vpop.f32.mrf.mxu1 }
  0xe3   :  { %v458_v61 = vadd.f32 %v457_v60, %v11587_v12 }
  0xe5   :  { %v11643_v62 = vpack.c.bf16 %v458_v61, %v409_v59 }
  0xe9   :  { %v506_v63 = vpop.f32.mrf.mxu2  ;;  %v11646_v2 = vpop.f32.mrf.mxu0 }
  0xea   :  { %v507_v0 = vadd.f32 %v506_v63, %v11593_v19  ;;  %v555_v1 = vpop.f32.mrf.mxu3  ;;  %v11649_v4 = vpop.f32.mrf.mxu1 }
  0xeb   :  { %v556_v3 = vadd.f32 %v555_v1, %v11595_v20 }
  0xed   :  { %v11651_v5 = vpack.c.bf16 %v556_v3, %v507_v0 }
  0xef   :  { %14456 = vst [vmem:[#allocation16_spill] sm:$0xff] %v11651_v5 }
  0xf1   :  { %v11653_v6 = vpop.f32.mrf.mxu2  ;;  %v413_v8 = vpop.f32.mrf.mxu0 }
  0xf2   :  { %v11655_v7 = vpop.f32.mrf.mxu3  ;;  %v414_v9 = vadd.f32 %v413_v8, %v11585_v11  ;;  %v462_v10 = vpop.f32.mrf.mxu1 }
  0xf3   :  { %v463_v13 = vadd.f32 %v462_v10, %v11587_v12 }
  0xf5   :  { %v11659_v14 = vpack.c.bf16 %v463_v13, %v414_v9 }
  0xf7   :  { %14457 = vst [vmem:[#allocation17_spill] sm:$0xff] %v11659_v14 }
  0xf9   :  { %v511_v15 = vpop.f32.mrf.mxu2  ;;  %v11662_v21 = vpop.f32.mrf.mxu0 }
  0xfa   :  { %v512_v16 = vadd.f32 %v511_v15, %v11593_v19  ;;  %v560_v17 = vpop.f32.mrf.mxu3  ;;  %14458 = vst [vmem:[#allocation18_spill] sm:$0xff] %v11662_v21  ;;  %v11665_v23 = vpop.f32.mrf.mxu1 }
  0xfb   :  { %v561_v22 = vadd.f32 %v560_v17, %v11595_v20  ;;  %14459 = vst [vmem:[#allocation19_spill] sm:$0xff] %v11665_v23 }
  0xfd   :  { %v11667_v25 = vpack.c.bf16 %v561_v22, %v512_v16 }
  0xff   :  { %14460 = vst [vmem:[#allocation20_spill] sm:$0xff] %v11667_v25 }
 0x101   :  { %v11669_v30 = vpop.f32.mrf.mxu2  ;;  %v418_v32 = vpop.f32.mrf.mxu0 }
 0x102   :  { %14461 = vst [vmem:[#allocation21_spill] sm:$0xff] %v11669_v30  ;;  %v11671_v31 = vpop.f32.mrf.mxu3  ;;  %v419_v33 = vadd.f32 %v418_v32, %v11585_v11  ;;  %v467_v35 = vpop.f32.mrf.mxu1  ;;  %v10247_v30 = vld [vmem:[#allocation8 + $0x4] sm:$0xf] }
 0x103   :  { %14462 = vst [vmem:[#allocation22_spill] sm:$0xff] %v11671_v31  ;;  %v468_v36 = vadd.f32 %v467_v35, %v11587_v12 }
 0x105   :  { %v11675_v37 = vpack.c.bf16 %v468_v36, %v419_v33 }
 0x107   :  { %14463 = vst [vmem:[#allocation23_spill] sm:$0xff] %v11675_v37 }
 0x109   :  { %v516_v39 = vpop.f32.mrf.mxu2  ;;  %v11678_v46 = vpop.f32.mrf.mxu0 }
 0x10a   :  { %v517_v44 = vadd.f32 %v516_v39, %v11593_v19  ;;  %v565_v45 = vpop.f32.mrf.mxu3  ;;  %14464 = vst [vmem:[#allocation24_spill] sm:$0xff] %v11678_v46  ;;  %v11681_v49 = vpop.f32.mrf.mxu1 }
 0x10b   :  { %v566_v47 = vadd.f32 %v565_v45, %v11595_v20  ;;  %14465 = vst [vmem:[#allocation25_spill] sm:$0xff] %v11681_v49 }
 0x10d   :  { %v11683_v50 = vpack.c.bf16 %v566_v47, %v517_v44 }
 0x10f   :  { %14466 = vst [vmem:[#allocation26_spill] sm:$0xff] %v11683_v50 }
 0x111   :  { %v11685_v51 = vpop.f32.mrf.mxu2  ;;  %v423_v58 = vpop.f32.mrf.mxu0 }
 0x112   :  { %14467 = vst [vmem:[#allocation27_spill] sm:$0xff] %v11685_v51  ;;  %v11687_v53 = vpop.f32.mrf.mxu3  ;;  %v424_v59 = vadd.f32 %v423_v58, %v11585_v11  ;;  %v472_v60 = vpop.f32.mrf.mxu1  ;;  %v10252_v51 = vld [vmem:[#allocation8 + $0x2c] sm:$0xf] }
 0x113   :  { %14468 = vst [vmem:[#allocation28_spill] sm:$0xff] %v11687_v53  ;;  %v473_v61 = vadd.f32 %v472_v60, %v11587_v12  ;;  %v8105_v60 = vld [vmem:[#allocation8 + $0xe0] sm:$0xf]  ;;  %v10254_v53 = vld [vmem:[#allocation8 + $0x34] sm:$0xf0] }
 0x115   :  { %v11691_v63 = vpack.c.bf16 %v473_v61, %v424_v59  ;;  %v10277_v61 = vld [vmem:[#allocation8 + $0xec] sm:$0xf0] }
 0x117   :  { %14469 = vst [vmem:[#allocation29_spill] sm:$0xff] %v11691_v63 }
 0x119   :  { %v521_v0 = vpop.f32.mrf.mxu2  ;;  %v11694_v8 = vpop.f32.mrf.mxu0 }
 0x11a   :  { %v522_v1 = vadd.f32 %v521_v0, %v11593_v19  ;;  %v570_v3 = vpop.f32.mrf.mxu3  ;;  %14470 = vst [vmem:[#allocation30_spill] sm:$0xff] %v11694_v8  ;;  %v11697_v10 = vpop.f32.mrf.mxu1  ;;  %v10275_v0 = vld [vmem:[#allocation8 + $0xe4] sm:$0xf] }
 0x11b   :  { %v571_v9 = vadd.f32 %v570_v3, %v11595_v20  ;;  %14471 = vst [vmem:[#allocation31_spill] sm:$0xff] %v11697_v10  ;;  %v8107_v3 = vld [vmem:[#allocation8 + $0xf0] sm:$0xf0] }
 0x11d   :  { %v11699_v13 = vpack.c.bf16 %v571_v9, %v522_v1  ;;  %v8106_v1 = vor.u32 %v10277_v61, %v8105_v60  ;;  %v8113_v9 = vld [vmem:[#allocation8 + $0xe8] sm:$0xf]  ;;  %v653_v61 = vunpack.c.h.bf16 %v11591_v18 }
 0x11f   :  { %14472 = vst [vmem:[#allocation32_spill] sm:$0xff] %v11699_v13  ;;  %1258 = vmatpush.bf16.msra.mxu0 %v8106_v1  ;;  %v10274_v13 = vld [vmem:[#allocation8 + $0xd4] sm:$0xf0]  ;;  %v8099_v1 = vld [vmem:[#allocation8 + $0xd8] sm:$0xf0] }
 0x121   :  { %v11701_v15 = vpop.f32.mrf.mxu2  ;;  %v428_v17 = vpop.f32.mrf.mxu0 }
 0x122   :  { %14473 = vst [vmem:[#allocation33_spill] sm:$0xff] %v11701_v15  ;;  %v11703_v16 = vpop.f32.mrf.mxu3  ;;  %v429_v22 = vadd.f32 %v428_v17, %v11585_v11  ;;  %v477_v32 = vpop.f32.mrf.mxu1  ;;  %v10278_v17 = vld [vmem:[#allocation8 + $0xf4] sm:$0xf0]  ;;  %v10272_v15 = vld [vmem:[#allocation8 + $0xcc] sm:$0xf] }
 0x123   :  { %14474 = vst [vmem:[#allocation34_spill] sm:$0xff] %v11703_v16  ;;  %v478_v33 = vadd.f32 %v477_v32, %v11587_v12  ;;  %v8114_v32 = vor.u32 %v10278_v17, %v8113_v9 }
 0x125   :  { %v11707_v35 = vpack.c.bf16 %v478_v33, %v429_v22  ;;  %v8110_v22 = vor.u32 %v10275_v0, %v8107_v3  ;;  %v10276_v33 = vld [vmem:[#allocation8 + $0xec] sm:$0xf]  ;;  %1286 = vmatpush.bf16.msra.mxu2 %v8114_v32  ;;  %v8089_v0 = vld [vmem:[#allocation8 + $0xc0] sm:$0xf]  ;;  %v10273_v3 = vld [vmem:[#allocation8 + $0xcc] sm:$0xf0]  ;;  %v8102_v32 = vor.u32 %v10272_v15, %v8099_v1 }
 0x127   :  { %14475 = vst [vmem:[#allocation35_spill] sm:$0xff] %v11707_v35  ;;  %v396_v35 = vadd.f32 %v11598_v24, %v11585_v11  ;;  %1272 = vmatpush.bf16.msra.mxu1 %v8110_v22  ;;  %v8090_v24 = vor.u32 %v10273_v3, %v8089_v0  ;;  %v8081_v0 = vld [vmem:[#allocation8 + $0xa8] sm:$0xf] }
 0x129   :  { %v526_v36 = vpop.f32.mrf.mxu2  ;;  %v11710_v45 = vpop.f32.mrf.mxu0  ;;  %1259 = vmatpush.bf16.msra.mxu0 %v8090_v24 }
 0x12a   :  { %v527_v39 = vadd.f32 %v526_v36, %v11593_v19  ;;  %v575_v44 = vpop.f32.mrf.mxu3  ;;  %14476 = vst [vmem:[#allocation36_spill] sm:$0xff] %v11710_v45  ;;  %v11713_v58 = vpop.f32.mrf.mxu1  ;;  %v8115_v36 = vld [vmem:[#allocation8 + $0xf8] sm:$0xf0]  ;;  %v8091_v45 = vld [vmem:[#allocation8 + $0xd0] sm:$0xf0] }
 0x12b   :  { %v576_v47 = vadd.f32 %v575_v44, %v11595_v20  ;;  %14477 = vst [vmem:[#allocation37_spill] sm:$0xff] %v11713_v58  ;;  %v445_v44 = vadd.f32 %v11601_v26, %v11587_v12  ;;  %v8097_v26 = vld [vmem:[#allocation8 + $0xc8] sm:$0xf] }
 0x12c   :  { %v8098_v22 = vor.u32 %v10274_v13, %v8097_v26  ;;  %v543_v13 = vadd.f32 %v11607_v29, %v11595_v20 }
 0x12d   :  { %v11715_v59 = vpack.c.bf16 %v576_v47, %v527_v39  ;;  %v652_v39 = vunpack.c.l.bf16 %v11591_v18  ;;  %v8118_v47 = vor.u32 %v10276_v33, %v8115_v36  ;;  %v582_v33 = vpack.c.bf16 %v445_v44, %v396_v35  ;;  %v8083_v44 = vld [vmem:[#allocation8 + $0xb8] sm:$0xf0] }
 0x12e   :  { %1287 = vmatpush.bf16.msra.mxu2 %v8098_v22  ;;  %v494_v35 = vadd.f32 %v11605_v28, %v11593_v19  ;;  %v8057_v22 = vld [vmem:[#allocation8 + $0x80] sm:$0xf] }
 0x12f   :  { %14478 = vst [vmem:[#allocation38_spill] sm:$0xff] %v11715_v59  ;;  %1300 = vmatpush.bf16.msra.mxu3 %v8118_v47  ;;  %v10271_v59 = vld [vmem:[#allocation8 + $0xc4] sm:$0xf]  ;;  %v10269_v47 = vld [vmem:[#allocation8 + $0xac] sm:$0xf0] }
 0x131   :  { %v11721_v58 = vpop.f32.mrf.mxu2  ;;  %v862_v60 = vpop.f32.mrf.mxu0 }
 0x132   :  { %14479 = vst [vmem:[#allocation39_spill] sm:$0xff] %v11721_v58  ;;  %v909_v9 = vadd.f32 %v862_v60, %v652_v39  ;;  %v876_v17 = vpop.f32.mrf.mxu1  ;;  %v8094_v58 = vor.u32 %v10271_v59, %v8091_v45  ;;  %v11725_v36 = vpop.f32.mrf.mxu3  ;;  %v8073_v39 = vld [vmem:[#allocation8 + $0xa0] sm:$0xf]  ;;  %v654_v60 = vunpack.c.l.bf16 %v11603_v27  ;;  %v10267_v59 = vld [vmem:[#allocation8 + $0xa4] sm:$0xf] }
 0x133   :  { %v910_v16 = vadd.f32 %v876_v17, %v653_v61  ;;  %14480 = vst [vmem:[#allocation40_spill] sm:$0xff] %v11725_v36  ;;  %1301 = vmatpush.bf16.msra.mxu3 %v8102_v32  ;;  %v8074_v45 = vor.u32 %v10269_v47, %v8073_v39  ;;  %v8075_v61 = vld [vmem:[#allocation8 + $0xb0] sm:$0xf0]  ;;  %v10265_v32 = vld [vmem:[#allocation8 + $0x8c] sm:$0xf0] }
 0x134   :  { %v7985_v18 = vmul.f32 -1.442695, %v909_v9  ;;  %1273 = vmatpush.bf16.msra.mxu1 %v8094_v58  ;;  %v8078_v15 = vor.u32 %v10267_v59, %v8075_v61  ;;  %v10268_v58 = vld [vmem:[#allocation8 + $0xac] sm:$0xf]  ;;  %v656_v9 = vunpack.c.l.bf16 %v582_v33  ;;  %v8058_v29 = vor.u32 %v10265_v32, %v8057_v22  ;;  %v8059_v47 = vld [vmem:[#allocation8 + $0x90] sm:$0xf0] }
 0x135   :  { %v7986_v10 = vmul.f32 -1.442695, %v910_v16  ;;  %v10270_v16 = vld [vmem:[#allocation8 + $0xb4] sm:$0xf0]  ;;  %1260 = vmatpush.bf16.msra.mxu0 %v8074_v45  ;;  %v8086_v24 = vor.u32 %v10268_v58, %v8083_v44  ;;  %v8065_v59 = vld [vmem:[#allocation8 + $0x88] sm:$0xf]  ;;  %v11732_v61 = vpack.c.bf16 %v543_v13, %v494_v35 }
 0x136   :  { %10860 = vpow2.f32 %v7985_v18  ;;  %v8082_v17 = vor.u32 %v10270_v16, %v8081_v0  ;;  %v657_v18 = vunpack.c.h.bf16 %v582_v33  ;;  %v10266_v16 = vld [vmem:[#allocation8 + $0x94] sm:$0xf0]  ;;  %v8067_v44 = vld [vmem:[#allocation8 + $0x98] sm:$0xf0]  ;;  %v10259_v32 = vld [vmem:[#allocation8 + $0x64] sm:$0xf] }
 0x137   :  { %10862 = vpow2.f32 %v7986_v10  ;;  %1302 = vmatpush.bf16.msra.mxu3 %v8086_v24  ;;  %v10263_v10 = vld [vmem:[#allocation8 + $0x84] sm:$0xf]  ;;  %v658_v13 = vunpack.c.l.bf16 %v11732_v61 }
 0x138   :  { %1274 = vmatpush.bf16.msra.mxu1 %v8078_v15  ;;  %1288 = vmatpush.bf16.msra.mxu2 %v8082_v17  ;;  %v8062_v0 = vor.u32 %v10263_v10, %v8059_v47  ;;  %v8066_v15 = vor.u32 %v10266_v16, %v8065_v59  ;;  %v10260_v10 = vld [vmem:[#allocation8 + $0x6c] sm:$0xf]  ;;  %v655_v47 = vunpack.c.h.bf16 %v11603_v27 }
 0x139   :  { %v890_v3 = vpop.f32.mrf.mxu2  ;;  %v864_v1 = vpop.f32.mrf.mxu0  ;;  %1261 = vmatpush.bf16.msra.mxu0 %v8058_v29  ;;  %v10262_v29 = vld [vmem:[#allocation8 + $0x74] sm:$0xf0] }
 0x13a   :  { %v911_v26 = vadd.f32 %v890_v3, %v654_v60  ;;  %v913_v28 = vadd.f32 %v864_v1, %v656_v9  ;;  %v878_v39 = vpop.f32.mrf.mxu1  ;;  %v10264_v60 = vld [vmem:[#allocation8 + $0x8c] sm:$0xf]  ;;  %v904_v35 = vpop.f32.mrf.mxu3 }
 0x13b   :  { %v914_v45 = vadd.f32 %v878_v39, %v657_v18  ;;  %v8070_v24 = vor.u32 %v10264_v60, %v8067_v44  ;;  %v10261_v18 = vld [vmem:[#allocation8 + $0x6c] sm:$0xf0]  ;;  %v912_v63 = vadd.f32 %v904_v35, %v655_v47 }
 0x13c   :  { %v7987_v36 = vmul.f32 -1.442695, %v911_v26  ;;  %v10861_v58 = vpop.eup %10860  ;;  %v7988_v33 = vmul.f32 -1.442695, %v913_v28  ;;  %1275 = vmatpush.bf16.msra.mxu1 %v8062_v0  ;;  %1289 = vmatpush.bf16.msra.mxu2 %v8066_v15  ;;  %v8041_v26 = vld [vmem:[#allocation8 + $0x60] sm:$0xf] }
 0x13d   :  { %v10863_v3 = vpop.eup %10862  ;;  %v11734_v9 = vadd.f32 1.0, %v10861_v58  ;;  %v7989_v17 = vmul.f32 -1.442695, %v914_v45  ;;  %1303 = vmatpush.bf16.msra.mxu3 %v8070_v24  ;;  %v8049_v28 = vld [vmem:[#allocation8 + $0x68] sm:$0xf]  ;;  %v8042_v59 = vor.u32 %v10261_v18, %v8041_v26 }
 0x13e   :  { %10864 = vpow2.f32 %v7987_v36  ;;  %v11736_v1 = vadd.f32 1.0, %v10863_v3  ;;  %v8043_v36 = vld [vmem:[#allocation8 + $0x70] sm:$0xf0]  ;;  %v8051_v45 = vld [vmem:[#allocation8 + $0x78] sm:$0xf0] }
 0x13f   :  { %10866 = vpow2.f32 %v7988_v33  ;;  %v8025_v0 = vld [vmem:[#allocation8 + $0x40] sm:$0xf]  ;;  %v8046_v58 = vor.u32 %v10259_v32, %v8043_v36  ;;  %v8050_v33 = vor.u32 %v10262_v29, %v8049_v28  ;;  %v8054_v15 = vor.u32 %v10260_v10, %v8051_v45  ;;  %v10257_v44 = vld [vmem:[#allocation8 + $0x4c] sm:$0xf0]  ;;  %v10255_v3 = vld [vmem:[#allocation8 + $0x44] sm:$0xf]  ;;  %1262 = vmatpush.bf16.msra.mxu0 %v8042_v59 }
 0x140   :  { %10868 = vrcp.f32 %v11734_v9  ;;  %v952_v26 = vand.u32 2147483648, %v11734_v9  ;;  %v967_v28 = vand.u32 2147483648, %v11736_v1  ;;  %v10258_v29 = vld [vmem:[#allocation8 + $0x54] sm:$0xf0]  ;;  %v965_v59 = vand.u32 2147483647, %v11736_v1 }
 0x141   :  { %10870 = vrcp.f32 %v11736_v1  ;;  %v892_v22 = vpop.f32.mrf.mxu2  ;;  %1276 = vmatpush.bf16.msra.mxu1 %v8046_v58  ;;  %1290 = vmatpush.bf16.msra.mxu2 %v8050_v33  ;;  %v659_v45 = vunpack.c.h.bf16 %v11732_v61  ;;  %vm946_vm1 = vweird.f32 %v11734_v9  ;;  %vm961_vm5 = vweird.f32 %v11736_v1 }
 0x142   :  { %10872 = vpow2.f32 %v7989_v17  ;;  %v915_v39 = vadd.f32 %v892_v22, %v658_v13  ;;  %v950_v17 = vand.u32 2147483647, %v11734_v9  ;;  %v8026_v13 = vor.u32 %v10257_v44, %v8025_v0  ;;  %v8027_v22 = vld [vmem:[#allocation8 + $0x50] sm:$0xf0]  ;;  %1304 = vmatpush.bf16.msra.mxu3 %v8054_v15  ;;  %v906_v58 = vpop.f32.mrf.mxu3 }
 0x143   :  { %v8030_v32 = vor.u32 %v10255_v3, %v8027_v22  ;;  %v953_v15 = vor.u32 1.1754944e-38, %v952_v26  ;;  %v10256_v3 = vld [vmem:[#allocation8 + $0x4c] sm:$0xf]  ;;  %v968_v22 = vor.u32 1.1754944e-38, %v967_v28  ;;  %vm11773_vm4 = vcmp.eq.f32.partialorder %v965_v59, 8.507059e+37 }
 0x144   :  { %v10865_v16 = vpop.eup %10864  ;;  %v7990_v60 = vmul.f32 -1.442695, %v915_v39  ;;  %v8033_v39 = vld [vmem:[#allocation8 + $0x48] sm:$0xf]  ;;  %vm11761_vm0 = vcmp.eq.f32.partialorder %v950_v17, 8.507059e+37  ;;  %1263 = vmatpush.bf16.msra.mxu0 %v8026_v13  ;;  %v916_v26 = vadd.f32 %v906_v58, %v659_v45 }
 0x145   :  { %v10867_v24 = vpop.eup %10866  ;;  %v11742_v8 = vadd.f32 1.0, %v10865_v16  ;;  %1277 = vmatpush.bf16.msra.mxu1 %v8030_v32  ;;  %v8034_v44 = vor.u32 %v10258_v29, %v8033_v39  ;;  %v10249_v45 = vld [vmem:[#allocation8 + $0xc] sm:$0xf0]  ;;  %v7995_v16 = vld [vmem:[#allocation8 + $0x10] sm:$0xf0] }
 0x146   :  { %v11745_v27 = vpop.eup %10868  ;;  %v11748_v18 = vadd.f32 1.0, %v10867_v24  ;;  %10874 = vpow2.f32 %v7990_v60  ;;  %v8035_v24 = vld [vmem:[#allocation8 + $0x58] sm:$0xf0]  ;;  %v7998_v21 = vor.u32 %v10247_v30, %v7995_v16 }
 0x147   :  { %v11750_v36 = vpop.eup %10870  ;;  %v942_v35 = vmul.f32 %v11745_v27, %v11734_v9  ;;  %10876 = vrcp.f32 %v11742_v8  ;;  %vm947_vm2 = vweird.f32 %v11745_v27  ;;  %1291 = vmatpush.bf16.msra.mxu2 %v8034_v44  ;;  %v10253_v44 = vld [vmem:[#allocation8 + $0x2c] sm:$0xf0] }
 0x148   :  { %v10873_v10 = vpop.eup %10872  ;;  %v957_v47 = vmul.f32 %v11750_v36, %v11736_v1  ;;  %10878 = vrcp.f32 %v11748_v18  ;;  %vm962_vm3 = vweird.f32 %v11750_v36  ;;  %v997_v29 = vand.u32 2147483648, %v11748_v18  ;;  %vm11797_vm6 = vmor %vm946_vm1, %vm947_vm2  ;;  %v8011_v1 = vld [vmem:[#allocation8 + $0x30] sm:$0xf0] }
 0x149   :  { %v943_v0 = vsub.f32 1.0, %v942_v35  ;;  %10880 = vtanh.f32 %v912_v63  ;;  %v11765_v60 = vadd.f32 1.0, %v10873_v10  ;;  %v110_v35 = vld [vmem:[%s14423_s2] sm:$0xff]  ;;  %v8038_v10 = vor.u32 %v10256_v3, %v8035_v24  ;;  %v8017_v24 = vld [vmem:[#allocation8 + $0x28] sm:$0xf]  ;;  %vm11805_vm7 = vmor %vm961_vm5, %vm962_vm3 }
 0x14a   :  { %v958_v33 = vsub.f32 1.0, %v957_v47  ;;  %v10251_v3 = vld [vmem:[#allocation8 + $0x24] sm:$0xf]  ;;  %vm991_vm8 = vweird.f32 %v11748_v18  ;;  %v998_v31 = vor.u32 1.1754944e-38, %v997_v29  ;;  %v8018_v13 = vor.u32 %v10254_v53, %v8017_v24 }
 0x14b   :  { %v944_v61 = vmul.f32 %v11745_v27, %v943_v0  ;;  %10882 = vrcp.f32 %v11765_v60  ;;  %v1012_v58 = vand.u32 2147483648, %v11765_v60  ;;  %1305 = vmatpush.bf16.msra.mxu3 %v8038_v10  ;;  %v8014_v23 = vor.u32 %v10251_v3, %v8011_v1 }
 0x14c   :  { %v10875_v63 = vpop.eup %10874  ;;  %v959_v17 = vmul.f32 %v11750_v36, %v958_v33  ;;  %v8009_v33 = vld [vmem:[#allocation8 + $0x20] sm:$0xf]  ;;  %1292 = vmatpush.bf16.msra.mxu2 %v8018_v13  ;;  %vm1006_vm13 = vweird.f32 %v11765_v60  ;;  %vm976_vm1 = vweird.f32 %v11742_v8 }
 0x14d   :  { %v11777_v32 = vpop.eup %10876  ;;  %v945_v28 = vadd.f32 %v11745_v27, %v944_v61  ;;  %v11783_v39 = vadd.f32 1.0, %v10875_v63  ;;  %v8010_v14 = vor.u32 %v10253_v44, %v8009_v33  ;;  %1278 = vmatpush.bf16.msra.mxu1 %v8014_v23  ;;  %v14489_v23 = vand.u32 2147483647, %v11748_v18 }
 0x14e   :  { %v11786_v47 = vpop.eup %10878  ;;  %v11791_v59 = vmul.f32 %v11777_v32, %v11742_v8  ;;  %v960_v0 = vadd.f32 %v11750_v36, %v959_v17  ;;  %v1013_v24 = vor.u32 1.1754944e-38, %v1012_v58  ;;  %v982_v58 = vand.u32 2147483648, %v11742_v8 }
 0x14f   :  { %v10881_v61 = vpop.eup %10880  ;;  %v949_v9 = vsel %vm11797_vm6, %v11745_v27, %v945_v28  ;;  %v987_v17 = vmul.f32 %v11786_v47, %v11748_v18  ;;  %10884 = vrcp.f32 %v11783_v39  ;;  %v8019_v27 = vld [vmem:[#allocation8 + $0x38] sm:$0xf0]  ;;  %v7993_v28 = vld [vmem:[#allocation8] sm:$0xf]  ;;  %vm992_vm9 = vweird.f32 %v11786_v47  ;;  %1264 = vmatpush.bf16.msra.mxu0 %v8010_v14 }
 0x150   :  { %v954_v50 = vsel %vm11761_vm0, %v953_v15, %v949_v9  ;;  %v964_v37 = vsel %vm11805_vm7, %v11750_v36, %v960_v0  ;;  %10886 = vtanh.f32 %v916_v26  ;;  %v973_v15 = vsub.f32 1.0, %v11791_v59  ;;  %v8001_v26 = vld [vmem:[#allocation8 + $0x8] sm:$0xf]  ;;  %v10250_v0 = vld [vmem:[#allocation8 + $0x14] sm:$0xf0]  ;;  %vm993_vm11 = vmor %vm991_vm8, %vm992_vm9 }
 0x151   :  { %v10883_v49 = vpop.eup %10882  ;;  %v969_v46 = vsel %vm11773_vm4, %v968_v22, %v964_v37  ;;  %v1035_v10 = vmul.f32 %v10881_v61, %v954_v50  ;;  %v988_v25 = vsub.f32 1.0, %v987_v17  ;;  %v10248_v37 = vld [vmem:[#allocation8 + $0xc] sm:$0xf]  ;;  %v8003_v50 = vld [vmem:[#allocation8 + $0x18] sm:$0xf0]  ;;  %v8022_v61 = vor.u32 %v10252_v51, %v8019_v27  ;;  %1279 = vmatpush.bf16.msra.mxu1 %v7998_v21 }
 0x152   :  { %v1033_v9 = vmul.f32 %v969_v46, %v110_v35  ;;  %v1002_v36 = vmul.f32 %v10883_v49, %v11765_v60  ;;  %v7994_v17 = vor.u32 %v10249_v45, %v7993_v28  ;;  %v1010_v35 = vand.u32 2147483647, %v11765_v60  ;;  %v111_v27 = vld [vmem:[%s14423_s2 + $0x8] sm:$0xff] }
 0x153   :  { %v989_v63 = vmul.f32 %v11786_v47, %v988_v25  ;;  %v8002_v5 = vor.u32 %v10250_v0, %v8001_v26  ;;  %vm1007_vm10 = vweird.f32 %v10883_v49  ;;  %1306 = vmatpush.bf16.msra.mxu3 %v8022_v61  ;;  %v8006_v51 = vor.u32 %v10248_v37, %v8003_v50 }
 0x154   :  { %v11828_v22 = vadd.f32 %v1035_v10, %v1033_v9  ;;  %v1003_v29 = vsub.f32 1.0, %v1002_v36  ;;  %v974_v44 = vmul.f32 %v11777_v32, %v973_v15  ;;  %vm996_vm12 = vcmp.eq.f32.partialorder %v14489_v23, 8.507059e+37  ;;  %vm1008_vm14 = vmor %vm1006_vm13, %vm1007_vm10  ;;  %1265 = vmatpush.bf16.msra.mxu0 %v7994_v17 }
 0x155   :  { %v10885_v59 = vpop.eup %10884  ;;  %v990_v46 = vadd.f32 %v11786_v47, %v989_v63  ;;  %vm1011_vm15 = vcmp.eq.f32.partialorder %v1010_v35, 8.507059e+37  ;;  %1293 = vmatpush.bf16.msra.mxu2 %v8002_v5  ;;  %vm977_vm0 = vweird.f32 %v11777_v32  ;;  %v980_v21 = vand.u32 2147483647, %v11742_v8 }
 0x156   :  { %v10887_v25 = vpop.eup %10886  ;;  %v1004_v33 = vmul.f32 %v10883_v49, %v1003_v29  ;;  %v1017_v53 = vmul.f32 %v10885_v59, %v11783_v39  ;;  %10888 = vtanh.f32 %v11828_v22  ;;  %v975_v60 = vadd.f32 %v11777_v32, %v974_v44  ;;  %vm978_vm2 = vmor %vm976_vm1, %vm977_vm0 }
 0x157   :  { %v994_v14 = vsel %vm993_vm11, %v11786_v47, %v990_v46  ;;  %1307 = vmatpush.bf16.msra.mxu3 %v8006_v51  ;;  %vm1022_vm3 = vweird.f32 %v10885_v59  ;;  %v983_v15 = vor.u32 1.1754944e-38, %v982_v58  ;;  %v1027_v9 = vand.u32 2147483648, %v11783_v39 }
 0x158   :  { %v1018_v30 = vsub.f32 1.0, %v1017_v53  ;;  %v999_v3 = vsel %vm996_vm12, %v998_v31, %v994_v14  ;;  %v1005_v1 = vadd.f32 %v10883_v49, %v1004_v33  ;;  %vm1021_vm4 = vweird.f32 %v11783_v39 }
 0x159   :  { %v1036_v47 = vmul.f32 %v10887_v25, %v999_v3  ;;  %vm981_vm5 = vcmp.eq.f32.partialorder %v980_v21, 8.507059e+37  ;;  %v1025_v36 = vand.u32 2147483647, %v11783_v39  ;;  %vm1023_vm6 = vmor %vm1021_vm4, %vm1022_vm3  ;;  %v1028_v63 = vor.u32 1.1754944e-38, %v1027_v9  ;;  %v8249_v21 = vld [vmem:[#allocation8 + $0xf8] sm:$0xf0] }
 0x15a   :  { %v1009_v28 = vsel %vm1008_vm14, %v10883_v49, %v1005_v1  ;;  %v1019_v18 = vmul.f32 %v10885_v59, %v1018_v30  ;;  %v979_v49 = vsel %vm978_vm2, %v11777_v32, %v975_v60  ;;  %v401_v39 = vadd.f32 %v11614_v38, %v11585_v11  ;;  %v8239_v1 = vld [vmem:[#allocation8 + $0xe0] sm:$0xf] }
 0x15b   :  { %v1014_v31 = vsel %vm1011_vm15, %v1013_v24, %v1009_v28  ;;  %v984_v26 = vsel %vm981_vm5, %v983_v15, %v979_v49  ;;  %vm1026_vm7 = vcmp.eq.f32.partialorder %v1025_v36, 8.507059e+37  ;;  %v1052_v25 = vunpack.c.l.bf16 %v11611_v34  ;;  %v10309_v24 = vld [vmem:[#allocation8 + $0xec] sm:$0xf0] }
 0x15c   :  { %v1034_v45 = vmul.f32 %v1014_v31, %v111_v27  ;;  %v1020_v5 = vadd.f32 %v10885_v59, %v1019_v18  ;;  %v10889_v16 = vpop.eup %10888  ;;  %v1053_v33 = vunpack.c.h.bf16 %v11611_v34  ;;  %v10307_v27 = vld [vmem:[#allocation8 + $0xe4] sm:$0xf]  ;;  %v499_v38 = vadd.f32 %v11621_v42, %v11593_v19  ;;  %v8247_v18 = vld [vmem:[#allocation8 + $0xe8] sm:$0xf]  ;;  %v10310_v34 = vld [vmem:[#allocation8 + $0xf4] sm:$0xf0] }
 0x15d   :  { %v1041_v0 = vmul.f32 %v10889_v16, %v984_v26  ;;  %v8240_v28 = vor.u32 %v10309_v24, %v8239_v1  ;;  %v548_v31 = vadd.f32 %v11623_v43, %v11595_v20  ;;  %v8248_v58 = vor.u32 %v10310_v34, %v8247_v18  ;;  %v8223_v26 = vld [vmem:[#allocation8 + $0xc0] sm:$0xf]  ;;  %v10300_v34 = vld [vmem:[#allocation8 + $0xac] sm:$0xf] }
 0x15e   :  { %v11851_v10 = vadd.f32 %v1036_v47, %v1034_v45  ;;  %v1024_v8 = vsel %vm1023_vm6, %v10885_v59, %v1020_v5  ;;  %v450_v59 = vadd.f32 %v11617_v40, %v11587_v12  ;;  %v1054_v40 = vunpack.c.l.bf16 %v11619_v41  ;;  %v8241_v47 = vld [vmem:[#allocation8 + $0xf0] sm:$0xf0]  ;;  %v10308_v45 = vld [vmem:[#allocation8 + $0xec] sm:$0xf] }
 0x15f   :  { %v1029_v13 = vsel %vm1026_vm7, %v1028_v63, %v1024_v8  ;;  %v1043_v50 = vpack.c.bf16 %v1041_v0, %v1041_v0  ;;  %v8244_v60 = vor.u32 %v10307_v27, %v8241_v47  ;;  %1664 = vmatpush.bf16.msrb.mxu0 %v8240_v28  ;;  %v8252_v42 = vor.u32 %v10308_v45, %v8249_v21  ;;  %v10305_v8 = vld [vmem:[#allocation8 + $0xcc] sm:$0xf0]  ;;  %v10299_v27 = vld [vmem:[#allocation8 + $0xa4] sm:$0xf]  ;;  %v8215_v28 = vld [vmem:[#allocation8 + $0xa8] sm:$0xf] }
 0x160   :  { %10890 = vtanh.f32 %v11851_v10  ;;  %v586_v23 = vpack.c.bf16 %v450_v59, %v401_v39  ;;  %1692 = vmatpush.bf16.msrb.mxu2 %v8248_v58  ;;  %v8233_v39 = vld [vmem:[#allocation8 + $0xd8] sm:$0xf0]  ;;  %v10302_v47 = vld [vmem:[#allocation8 + $0xb4] sm:$0xf0]  ;;  %v8191_v21 = vld [vmem:[#allocation8 + $0x80] sm:$0xf] }
 0x161   :  { %v1094_v17 = vunpack.c.l.b16 %v1043_v50  ;;  %1678 = vmatpush.bf16.msrb.mxu1 %v8244_v60  ;;  %1706 = vmatpush.bf16.msrb.mxu3 %v8252_v42  ;;  %v10306_v50 = vld [vmem:[#allocation8 + $0xd4] sm:$0xf0]  ;;  %v1055_v60 = vunpack.c.h.bf16 %v11619_v41  ;;  %v8216_v42 = vor.u32 %v10302_v47, %v8215_v28  ;;  %v10293_v28 = vld [vmem:[#allocation8 + $0x6c] sm:$0xf0] }
 0x162   :  { %v1056_v5 = vunpack.c.l.bf16 %v586_v23  ;;  %v1057_v16 = vunpack.c.h.bf16 %v586_v23  ;;  %v10301_v23 = vld [vmem:[#allocation8 + $0xac] sm:$0xf0]  ;;  %v10298_v41 = vld [vmem:[#allocation8 + $0x94] sm:$0xf0] }
 0x166   :  { %v10891_v32 = vpop.eup %10890 }
 0x167   :  { %v1042_v37 = vmul.f32 %v10891_v32, %v1029_v13  ;;  %v8224_v32 = vor.u32 %v10305_v8, %v8223_v26  ;;  %v8225_v13 = vld [vmem:[#allocation8 + $0xd0] sm:$0xf0] }
 0x168   :  { %v8193_v26 = vld [vmem:[#allocation8 + $0x90] sm:$0xf0] }
 0x169   :  { %v1044_v29 = vpack.c.bf16 %v1042_v37, %v1042_v37  ;;  %v10770_v61 = vpack.c.bf16 %v1042_v37, %v1041_v0  ;;  %v10303_v0 = vld [vmem:[#allocation8 + $0xc4] sm:$0xf]  ;;  %v8231_v37 = vld [vmem:[#allocation8 + $0xc8] sm:$0xf]  ;;  %1665 = vmatpush.bf16.msrb.mxu0 %v8224_v32 }
 0x16a   :  { %v8199_v32 = vld [vmem:[#allocation8 + $0x88] sm:$0xf] }
 0x16b   :  { %10771 = vst [vmem:[#allocation3 + $0x30] sm:$0xff] %v10770_v61   ;;  %v1095_v46 = vunpack.c.l.b16 %v1044_v29  ;;  %v11869_v29 = vpack.c.bf16 %v548_v31, %v499_v38  ;;  %v8209_v38 = vld [vmem:[#allocation8 + $0xb0] sm:$0xf0]  ;;  %v8217_v31 = vld [vmem:[#allocation8 + $0xb8] sm:$0xf0] }
 0x16c   :  { %v8212_v45 = vor.u32 %v10299_v27, %v8209_v38 }
 0x16d   :  { %v1096_v35 = vpack.c.b16 %v1095_v46, %v1094_v17  ;;  %v8228_v17 = vor.u32 %v10303_v0, %v8225_v13  ;;  %v8232_v46 = vor.u32 %v10306_v50, %v8231_v37  ;;  %v1058_v24 = vunpack.c.l.bf16 %v11869_v29 }
 0x16f   :  { %1266 = vmatmul.bf16.vlgmr.msra.gmra.mxu0 %v1096_v35  ;;  %1280 = vmatmul.bf16.vlgmr.msra.gmra.mxu1 %v1096_v35 }
 0x170   :  { %1294 = vmatmul.bf16.vlgmr.msra.gmra.mxu2 %v1096_v35  ;;  %1308 = vmatmul.bf16.vlgmr.msra.gmra.mxu3 %v1096_v35  ;;  %v10304_v35 = vld [vmem:[#allocation8 + $0xcc] sm:$0xf] }
 0x171   :  { %1679 = vmatpush.bf16.msrb.mxu1 %v8228_v17  ;;  %1693 = vmatpush.bf16.msrb.mxu2 %v8232_v46 }
 0x175   :  { %1680 = vmatpush.bf16.msrb.mxu1 %v8212_v45  ;;  %1694 = vmatpush.bf16.msrb.mxu2 %v8216_v42 }
 0x1ec   :  { %v1267_v53 = vpop.f32.mrf.mxu0  ;;  %v1281_v51 = vpop.f32.mrf.mxu1 }
 0x1ed   :  { %v1314_v44 = vadd.f32 %v1267_v53, %v1052_v25  ;;  %v1315_v14 = vadd.f32 %v1281_v51, %v1053_v33  ;;  %v8236_v53 = vor.u32 %v10304_v35, %v8233_v39  ;;  %v10296_v39 = vld [vmem:[#allocation8 + $0x8c] sm:$0xf] }
 0x1ef   :  { %v8119_v30 = vmul.f32 -1.442695, %v1314_v44  ;;  %v8120_v3 = vmul.f32 -1.442695, %v1315_v14  ;;  %v8207_v14 = vld [vmem:[#allocation8 + $0xa0] sm:$0xf]  ;;  %1707 = vmatpush.bf16.msrb.mxu3 %v8236_v53 }
 0x1f0   :  { %v8208_v1 = vor.u32 %v10301_v23, %v8207_v14  ;;  %v8167_v23 = vld [vmem:[#allocation8 + $0x48] sm:$0xf] }
 0x1f1   :  { %10892 = vpow2.f32 %v8119_v30 }
 0x1f2   :  { %10894 = vpow2.f32 %v8120_v3  ;;  %1666 = vmatpush.bf16.msrb.mxu0 %v8208_v1 }
 0x1f3   :  { %v1295_v49 = vpop.f32.mrf.mxu2  ;;  %v1309_v3 = vpop.f32.mrf.mxu3 }
 0x1f4   :  { %v1316_v15 = vadd.f32 %v1295_v49, %v1054_v40  ;;  %v1269_v9 = vpop.f32.mrf.mxu0  ;;  %v1283_v36 = vpop.f32.mrf.mxu1  ;;  %v10297_v49 = vld [vmem:[#allocation8 + $0x8c] sm:$0xf0] }
 0x1f5   :  { %v1318_v63 = vadd.f32 %v1269_v9, %v1056_v5  ;;  %v1319_v43 = vadd.f32 %v1283_v36, %v1057_v16  ;;  %v8192_v9 = vor.u32 %v10297_v49, %v8191_v21  ;;  %v10295_v36 = vld [vmem:[#allocation8 + $0x84] sm:$0xf] }
 0x1f6   :  { %v8121_v61 = vmul.f32 -1.442695, %v1316_v15  ;;  %v8220_v15 = vor.u32 %v10300_v34, %v8217_v31 }
 0x1f7   :  { %v10893_v59 = vpop.eup %10892  ;;  %v8122_v25 = vmul.f32 -1.442695, %v1318_v63  ;;  %v8123_v33 = vmul.f32 -1.442695, %v1319_v43  ;;  %v1317_v63 = vadd.f32 %v1309_v3, %v1055_v60  ;;  %v8196_v43 = vor.u32 %v10295_v36, %v8193_v26  ;;  %1667 = vmatpush.bf16.msrb.mxu0 %v8192_v9  ;;  %v10291_v26 = vld [vmem:[#allocation8 + $0x64] sm:$0xf] }
 0x1f8   :  { %v10895_v51 = vpop.eup %10894  ;;  %v11871_v44 = vadd.f32 1.0, %v10893_v59  ;;  %10896 = vpow2.f32 %v8121_v61  ;;  %1708 = vmatpush.bf16.msrb.mxu3 %v8220_v15  ;;  %v8200_v61 = vor.u32 %v10298_v41, %v8199_v32  ;;  %v8201_v59 = vld [vmem:[#allocation8 + $0x98] sm:$0xf0]  ;;  %v8151_v41 = vld [vmem:[#allocation8 + $0x28] sm:$0xf] }
 0x1f9   :  { %v11873_v30 = vadd.f32 1.0, %v10895_v51  ;;  %10898 = vpow2.f32 %v8122_v25  ;;  %v1059_v51 = vunpack.c.h.bf16 %v11869_v29  ;;  %1681 = vmatpush.bf16.msrb.mxu1 %v8196_v43  ;;  %v8204_v38 = vor.u32 %v10296_v39, %v8201_v59  ;;  %v10292_v43 = vld [vmem:[#allocation8 + $0x6c] sm:$0xf] }
 0x1fa   :  { %10900 = vrcp.f32 %v11871_v44  ;;  %v1355_v58 = vand.u32 2147483647, %v11871_v44  ;;  %v1357_v37 = vand.u32 2147483648, %v11871_v44  ;;  %vm1351_vm9 = vweird.f32 %v11871_v44  ;;  %1695 = vmatpush.bf16.msrb.mxu2 %v8200_v61 }
 0x1fb   :  { %10902 = vrcp.f32 %v11873_v30  ;;  %v1297_v40 = vpop.f32.mrf.mxu2  ;;  %v1372_v35 = vand.u32 2147483648, %v11873_v30  ;;  %v1370_v53 = vand.u32 2147483647, %v11873_v30  ;;  %v1311_v1 = vpop.f32.mrf.mxu3  ;;  %vm1366_vm13 = vweird.f32 %v11873_v30 }
 0x1fc   :  { %10904 = vpow2.f32 %v8123_v33  ;;  %v1320_v18 = vadd.f32 %v1297_v40, %v1058_v24  ;;  %vm11898_vm8 = vcmp.eq.f32.partialorder %v1355_v58, 8.507059e+37  ;;  %v1358_v27 = vor.u32 1.1754944e-38, %v1357_v37  ;;  %v8175_v40 = vld [vmem:[#allocation8 + $0x60] sm:$0xf]  ;;  %1709 = vmatpush.bf16.msrb.mxu3 %v8204_v38 }
 0x1fd   :  { %v1373_v47 = vor.u32 1.1754944e-38, %v1372_v35  ;;  %vm11910_vm12 = vcmp.eq.f32.partialorder %v1370_v53, 8.507059e+37  ;;  %v1321_v60 = vadd.f32 %v1311_v1, %v1059_v51  ;;  %v8159_v35 = vld [vmem:[#allocation8 + $0x40] sm:$0xf] }
 0x1fe   :  { %v10897_v5 = vpop.eup %10896  ;;  %v8124_v16 = vmul.f32 -1.442695, %v1320_v18 }
 0x1ff   :  { %v10899_v8 = vpop.eup %10898  ;;  %v11880_v0 = vadd.f32 1.0, %v10897_v5  ;;  %v8176_v5 = vor.u32 %v10293_v28, %v8175_v40  ;;  %v10288_v28 = vld [vmem:[#allocation8 + $0x4c] sm:$0xf] }
 0x200   :  { %v11882_v13 = vpop.eup %10900  ;;  %v11885_v50 = vadd.f32 1.0, %v10899_v8  ;;  %10906 = vpow2.f32 %v8124_v16  ;;  %v8177_v8 = vld [vmem:[#allocation8 + $0x70] sm:$0xf0] }
 0x201   :  { %v11887_v17 = vpop.eup %10902  ;;  %v1347_v46 = vmul.f32 %v11882_v13, %v11871_v44  ;;  %10908 = vrcp.f32 %v11880_v0  ;;  %vm1352_vm10 = vweird.f32 %v11882_v13  ;;  %1668 = vmatpush.bf16.msrb.mxu0 %v8176_v5 }
 0x202   :  { %v10905_v25 = vpop.eup %10904  ;;  %v1362_v33 = vmul.f32 %v11887_v17, %v11873_v30  ;;  %10910 = vrcp.f32 %v11885_v50  ;;  %vm1367_vm11 = vweird.f32 %v11887_v17  ;;  %v1402_v49 = vand.u32 2147483648, %v11885_v50  ;;  %vm11931_vm14 = vmor %vm1351_vm9, %vm1352_vm10  ;;  %v10294_v30 = vld [vmem:[#allocation8 + $0x74] sm:$0xf0] }
 0x203   :  { %v1348_v14 = vsub.f32 1.0, %v1347_v46  ;;  %10912 = vtanh.f32 %v1317_v63  ;;  %v11902_v3 = vadd.f32 1.0, %v10905_v25  ;;  %v1400_v36 = vand.u32 2147483647, %v11885_v50  ;;  %v8183_v63 = vld [vmem:[#allocation8 + $0x68] sm:$0xf]  ;;  %vm11939_vm15 = vmor %vm1366_vm13, %vm1367_vm11 }
 0x204   :  { %v1363_v24 = vsub.f32 1.0, %v1362_v33  ;;  %v8185_v46 = vld [vmem:[#allocation8 + $0x78] sm:$0xf0]  ;;  %vm1396_vm0 = vweird.f32 %v11885_v50  ;;  %v10287_v25 = vld [vmem:[#allocation8 + $0x44] sm:$0xf]  ;;  %vm1381_vm9 = vweird.f32 %v11880_v0 }
 0x205   :  { %v1349_v29 = vmul.f32 %v11882_v13, %v1348_v14  ;;  %10914 = vrcp.f32 %v11902_v3  ;;  %v1417_v61 = vand.u32 2147483648, %v11902_v3  ;;  %v8161_v33 = vld [vmem:[#allocation8 + $0x50] sm:$0xf0]  ;;  %v8188_v31 = vor.u32 %v10292_v43, %v8185_v46 }
 0x206   :  { %v10907_v18 = vpop.eup %10906  ;;  %v1364_v34 = vmul.f32 %v11887_v17, %v1363_v24  ;;  %v1403_v24 = vor.u32 1.1754944e-38, %v1402_v49  ;;  %v8164_v15 = vor.u32 %v10287_v25, %v8161_v33  ;;  %v8145_v43 = vld [vmem:[#allocation8 + $0x30] sm:$0xf0]  ;;  %vm1411_vm4 = vweird.f32 %v11902_v3 }
 0x207   :  { %v11914_v58 = vpop.eup %10908  ;;  %v1350_v45 = vadd.f32 %v11882_v13, %v1349_v29  ;;  %v11917_v21 = vadd.f32 1.0, %v10907_v18  ;;  %v8169_v29 = vld [vmem:[#allocation8 + $0x58] sm:$0xf0]  ;;  %1710 = vmatpush.bf16.msrb.mxu3 %v8188_v31  ;;  %vm1401_vm5 = vcmp.eq.f32.partialorder %v1400_v36, 8.507059e+37 }
 0x208   :  { %v11920_v16 = vpop.eup %10910  ;;  %v11925_v42 = vmul.f32 %v11914_v58, %v11880_v0  ;;  %v1365_v9 = vadd.f32 %v11887_v17, %v1364_v34  ;;  %v8180_v34 = vor.u32 %v10291_v26, %v8177_v8  ;;  %v1415_v8 = vand.u32 2147483647, %v11902_v3 }
 0x209   :  { %v10913_v32 = vpop.eup %10912  ;;  %v1354_v44 = vsel %vm11931_vm14, %v11882_v13, %v1350_v45  ;;  %v1392_v37 = vmul.f32 %v11920_v16, %v11885_v50  ;;  %10916 = vrcp.f32 %v11917_v21  ;;  %v10289_v13 = vld [vmem:[#allocation8 + $0x4c] sm:$0xf0]  ;;  %vm1397_vm1 = vweird.f32 %v11920_v16 }
 0x20a   :  { %v1359_v39 = vsel %vm11898_vm8, %v1358_v27, %v1354_v44  ;;  %v1369_v59 = vsel %vm11939_vm15, %v11887_v17, %v1365_v9  ;;  %10918 = vtanh.f32 %v1321_v60  ;;  %v10290_v27 = vld [vmem:[#allocation8 + $0x54] sm:$0xf0]  ;;  %v1378_v38 = vsub.f32 1.0, %v11925_v42  ;;  %v8143_v60 = vld [vmem:[#allocation8 + $0x20] sm:$0xf]  ;;  %vm11975_vm2 = vmor %vm1396_vm0, %vm1397_vm1  ;;  %1682 = vmatpush.bf16.msrb.mxu1 %v8180_v34 }
 0x20b   :  { %v11956_v53 = vpop.eup %10914  ;;  %v1374_v51 = vsel %vm11910_vm12, %v1373_v47, %v1369_v59  ;;  %v1440_v14 = vmul.f32 %v10913_v32, %v1359_v39  ;;  %v1393_v1 = vsub.f32 1.0, %v1392_v37  ;;  %v8184_v47 = vor.u32 %v10294_v30, %v8183_v63  ;;  %v10285_v45 = vld [vmem:[#allocation8 + $0x2c] sm:$0xf0]  ;;  %v10286_v39 = vld [vmem:[#allocation8 + $0x34] sm:$0xf0] }
 0x20c   :  { %v1438_v17 = vmul.f32 %v1374_v51, %v11828_v22  ;;  %v1407_v40 = vmul.f32 %v11956_v53, %v11902_v3  ;;  %v8160_v42 = vor.u32 %v10289_v13, %v8159_v35  ;;  %v10283_v22 = vld [vmem:[#allocation8 + $0x24] sm:$0xf]  ;;  %v8168_v63 = vor.u32 %v10290_v27, %v8167_v23  ;;  %v10284_v59 = vld [vmem:[#allocation8 + $0x2c] sm:$0xf]  ;;  %v8153_v13 = vld [vmem:[#allocation8 + $0x38] sm:$0xf0] }
 0x20d   :  { %v1394_v18 = vmul.f32 %v11920_v16, %v1393_v1  ;;  %1696 = vmatpush.bf16.msrb.mxu2 %v8184_v47  ;;  %v8172_v30 = vor.u32 %v10288_v28, %v8169_v29  ;;  %vm1412_vm3 = vweird.f32 %v11956_v53  ;;  %v8144_v35 = vor.u32 %v10285_v45, %v8143_v60  ;;  %v8127_v51 = vld [vmem:[#allocation8] sm:$0xf]  ;;  %v8129_v29 = vld [vmem:[#allocation8 + $0x10] sm:$0xf0]  ;;  %v10282_v34 = vld [vmem:[#allocation8 + $0x14] sm:$0xf0] }
 0x20e   :  { %v11966_v49 = vadd.f32 %v1440_v14, %v1438_v17  ;;  %v1408_v5 = vsub.f32 1.0, %v1407_v40  ;;  %1669 = vmatpush.bf16.msrb.mxu0 %v8160_v42  ;;  %v1379_v25 = vmul.f32 %v11914_v58, %v1378_v38  ;;  %v10281_v14 = vld [vmem:[#allocation8 + $0xc] sm:$0xf0]  ;;  %v1418_v1 = vor.u32 1.1754944e-38, %v1417_v61  ;;  %vm11994_vm6 = vmor %vm1411_vm4, %vm1412_vm3  ;;  %1683 = vmatpush.bf16.msrb.mxu1 %v8164_v15  ;;  %v10279_v61 = vld [vmem:[#allocation8 + $0x4] sm:$0xf] }
 0x20f   :  { %v11968_v9 = vpop.eup %10916  ;;  %v1395_v32 = vadd.f32 %v11920_v16, %v1394_v18  ;;  %vm11998_vm7 = vcmp.eq.f32.partialorder %v1415_v8, 8.507059e+37  ;;  %v8148_v50 = vor.u32 %v10283_v22, %v8145_v43  ;;  %v8156_v36 = vor.u32 %v10284_v59, %v8153_v13  ;;  %1711 = vmatpush.bf16.msrb.mxu3 %v8172_v30  ;;  %v8135_v18 = vld [vmem:[#allocation8 + $0x8] sm:$0xf]  ;;  %v10280_v60 = vld [vmem:[#allocation8 + $0xc] sm:$0xf] }
 0x210   :  { %v10919_v44 = vpop.eup %10918  ;;  %v1409_v37 = vmul.f32 %v11956_v53, %v1408_v5  ;;  %v1422_v46 = vmul.f32 %v11968_v9, %v11917_v21  ;;  %10920 = vtanh.f32 %v11966_v49  ;;  %v8128_v28 = vor.u32 %v10281_v14, %v8127_v51  ;;  %v8137_v45 = vld [vmem:[#allocation8 + $0x18] sm:$0xf0] }
 0x211   :  { %v1399_v33 = vsel %vm11975_vm2, %v11920_v16, %v1395_v32  ;;  %1697 = vmatpush.bf16.msrb.mxu2 %v8168_v63  ;;  %v8152_v16 = vor.u32 %v10286_v39, %v8151_v41  ;;  %vm1382_vm8 = vweird.f32 %v11914_v58  ;;  %v1380_v5 = vadd.f32 %v11914_v58, %v1379_v25 }
 0x212   :  { %v1423_v23 = vsub.f32 1.0, %v1422_v46  ;;  %v1404_v27 = vsel %vm1401_vm5, %v1403_v24, %v1399_v33  ;;  %v1410_v17 = vadd.f32 %v11956_v53, %v1409_v37  ;;  %1670 = vmatpush.bf16.msrb.mxu0 %v8144_v35  ;;  %1684 = vmatpush.bf16.msrb.mxu1 %v8148_v50  ;;  %v8132_v15 = vor.u32 %v10279_v61, %v8129_v29  ;;  %vm12015_vm10 = vmor %vm1381_vm9, %vm1382_vm8 }
 0x213   :  { %v1441_v40 = vmul.f32 %v10919_v44, %v1404_v27  ;;  %v8136_v22 = vor.u32 %v10282_v34, %v8135_v18  ;;  %v1385_v32 = vand.u32 2147483647, %v11880_v0  ;;  %1712 = vmatpush.bf16.msrb.mxu3 %v8156_v36  ;;  %v8140_v63 = vor.u32 %v10280_v60, %v8137_v45  ;;  %v10341_v60 = vld [vmem:[#allocation8 + $0xec] sm:$0xf0]  ;;  %v10339_v45 = vld [vmem:[#allocation8 + $0xe4] sm:$0xf] }
 0x214   :  { %v1414_v24 = vsel %vm11994_vm6, %v11956_v53, %v1410_v17  ;;  %v1424_v47 = vmul.f32 %v11968_v9, %v1423_v23  ;;  %v1387_v53 = vand.u32 2147483648, %v11880_v0  ;;  %vm1427_vm11 = vweird.f32 %v11968_v9 }
 0x215   :  { %v1419_v31 = vsel %vm11998_vm7, %v1418_v1, %v1414_v24  ;;  %1698 = vmatpush.bf16.msrb.mxu2 %v8152_v16  ;;  %v1432_v0 = vand.u32 2147483648, %v11917_v21  ;;  %vm1426_vm12 = vweird.f32 %v11917_v21  ;;  %vm1386_vm13 = vcmp.eq.f32.partialorder %v1385_v32, 8.507059e+37 }
 0x216   :  { %v1439_v42 = vmul.f32 %v1419_v31, %v11851_v10  ;;  %1671 = vmatpush.bf16.msrb.mxu0 %v8128_v28  ;;  %v1384_v10 = vsel %vm12015_vm10, %v11914_v58, %v1380_v5  ;;  %v1425_v30 = vadd.f32 %v11968_v9, %v1424_v47  ;;  %v10921_v43 = vpop.eup %10920  ;;  %v1388_v41 = vor.u32 1.1754944e-38, %v1387_v53  ;;  %1685 = vmatpush.bf16.msrb.mxu1 %v8132_v15  ;;  %vm1428_vm14 = vmor %vm1426_vm12, %vm1427_vm11  ;;  %v8373_v31 = vld [vmem:[#allocation8 + $0xe0] sm:$0xf]  ;;  %v8375_v15 = vld [vmem:[#allocation8 + $0xf0] sm:$0xf0] }
 0x217   :  { %v1430_v44 = vand.u32 2147483647, %v11917_v21  ;;  %1713 = vmatpush.bf16.msrb.mxu3 %v8140_v63  ;;  %v1433_v35 = vor.u32 1.1754944e-38, %v1432_v0  ;;  %v406_v21 = vadd.f32 %v11630_v52, %v11585_v11  ;;  %v1458_v27 = vunpack.c.l.bf16 %v11627_v48 }
 0x218   :  { %v12019_v8 = vadd.f32 %v1441_v40, %v1439_v42  ;;  %v1389_v37 = vsel %vm1386_vm13, %v1388_v41, %v1384_v10  ;;  %v1429_v58 = vsel %vm1428_vm14, %v11968_v9, %v1425_v30  ;;  %v455_v9 = vadd.f32 %v11633_v54, %v11587_v12  ;;  %v10340_v10 = vld [vmem:[#allocation8 + $0xec] sm:$0xf]  ;;  %v8383_v30 = vld [vmem:[#allocation8 + $0xf8] sm:$0xf0] }
 0x219   :  { %1699 = vmatpush.bf16.msrb.mxu2 %v8136_v22  ;;  %v1446_v46 = vmul.f32 %v10921_v43, %v1389_v37  ;;  %vm1431_vm15 = vcmp.eq.f32.partialorder %v1430_v44, 8.507059e+37  ;;  %v1459_v17 = vunpack.c.h.bf16 %v11627_v48  ;;  %v504_v40 = vadd.f32 %v11637_v56, %v11593_v19  ;;  %v8381_v56 = vld [vmem:[#allocation8 + $0xe8] sm:$0xf]  ;;  %v10342_v22 = vld [vmem:[#allocation8 + $0xf4] sm:$0xf0] }
 0x21a   :  { %10922 = vtanh.f32 %v12019_v8  ;;  %v1434_v59 = vsel %vm1431_vm15, %v1433_v35, %v1429_v58  ;;  %v590_v36 = vpack.c.bf16 %v455_v9, %v406_v21  ;;  %v553_v52 = vadd.f32 %v11639_v57, %v11595_v20  ;;  %v8357_v35 = vld [vmem:[#allocation8 + $0xc0] sm:$0xf]  ;;  %v8365_v21 = vld [vmem:[#allocation8 + $0xc8] sm:$0xf]  ;;  %v10338_v9 = vld [vmem:[#allocation8 + $0xd4] sm:$0xf0] }
 0x21b   :  { %v1448_v25 = vpack.c.bf16 %v1446_v46, %v1446_v46  ;;  %v1460_v54 = vunpack.c.l.bf16 %v11635_v55  ;;  %v8374_v42 = vor.u32 %v10341_v60, %v8373_v31  ;;  %v8378_v26 = vor.u32 %v10339_v45, %v8375_v15 }
 0x21c   :  { %v1462_v29 = vunpack.c.l.bf16 %v590_v36  ;;  %v1463_v48 = vunpack.c.h.bf16 %v590_v36  ;;  %v12042_v32 = vpack.c.bf16 %v553_v52, %v504_v40  ;;  %v8382_v63 = vor.u32 %v10342_v22, %v8381_v56  ;;  %v10331_v52 = vld [vmem:[#allocation8 + $0xa4] sm:$0xf]  ;;  %v10332_v22 = vld [vmem:[#allocation8 + $0xac] sm:$0xf] }
 0x21d   :  { %v1500_v14 = vunpack.c.l.b16 %v1448_v25  ;;  %2070 = vmatpush.bf16.msra.mxu0 %v8374_v42  ;;  %v8386_v37 = vor.u32 %v10340_v10, %v8383_v30  ;;  %2084 = vmatpush.bf16.msra.mxu1 %v8378_v26 }
 0x21e   :  { %2098 = vmatpush.bf16.msra.mxu2 %v8382_v63  ;;  %v1465_v15 = vunpack.c.h.bf16 %v12042_v32 }
 0x21f   :  { %2112 = vmatpush.bf16.msra.mxu3 %v8386_v37 }
 0x220   :  { %v10923_v39 = vpop.eup %10922 }
 0x221   :  { %v1447_v13 = vmul.f32 %v10923_v39, %v1434_v59  ;;  %v10337_v39 = vld [vmem:[#allocation8 + $0xcc] sm:$0xf0] }
 0x222   :  { %v8358_v25 = vor.u32 %v10337_v39, %v8357_v35  ;;  %v10329_v35 = vld [vmem:[#allocation8 + $0x8c] sm:$0xf0] }
 0x223   :  { %v1449_v33 = vpack.c.bf16 %v1447_v13, %v1447_v13  ;;  %v10775_v51 = vpack.c.bf16 %v1447_v13, %v1446_v46  ;;  %v1461_v13 = vunpack.c.h.bf16 %v11635_v55  ;;  %v8367_v55 = vld [vmem:[#allocation8 + $0xd8] sm:$0xf0] }
 0x224   :  { %2071 = vmatpush.bf16.msra.mxu0 %v8358_v25 }
 0x225   :  { %10776 = vst [vmem:[#allocation3] sm:$0xff] %v10775_v51   ;;  %v1501_v1 = vunpack.c.l.b16 %v1449_v33  ;;  %v1464_v33 = vunpack.c.l.bf16 %v12042_v32  ;;  %v10335_v51 = vld [vmem:[#allocation8 + $0xc4] sm:$0xf] }
 0x227   :  { %v1502_v23 = vpack.c.b16 %v1501_v1, %v1500_v14  ;;  %v8359_v14 = vld [vmem:[#allocation8 + $0xd0] sm:$0xf0] }
 0x229   :  { %1672 = vmatmul.bf16.vlgmr.msrb.gmra.mxu0 %v1502_v23  ;;  %1686 = vmatmul.bf16.vlgmr.msrb.gmra.mxu1 %v1502_v23 }
 0x22a   :  { %1700 = vmatmul.bf16.vlgmr.msrb.gmra.mxu2 %v1502_v23  ;;  %1714 = vmatmul.bf16.vlgmr.msrb.gmra.mxu3 %v1502_v23 }
 0x2a6   :  { %v1673_v38 = vpop.f32.mrf.mxu0  ;;  %v1687_v3 = vpop.f32.mrf.mxu1 }
 0x2a7   :  { %v1720_v50 = vadd.f32 %v1673_v38, %v1458_v27  ;;  %v1721_v16 = vadd.f32 %v1687_v3, %v1459_v17  ;;  %v10336_v17 = vld [vmem:[#allocation8 + $0xcc] sm:$0xf]  ;;  %v8362_v38 = vor.u32 %v10335_v51, %v8359_v14  ;;  %v8341_v3 = vld [vmem:[#allocation8 + $0xa0] sm:$0xf] }
 0x2a9   :  { %v8253_v61 = vmul.f32 -1.442695, %v1720_v50  ;;  %v8254_v24 = vmul.f32 -1.442695, %v1721_v16  ;;  %v10333_v50 = vld [vmem:[#allocation8 + $0xac] sm:$0xf0]  ;;  %2085 = vmatpush.bf16.msra.mxu1 %v8362_v38 }
 0x2aa   :  { %v8342_v40 = vor.u32 %v10333_v50, %v8341_v3 }
 0x2ab   :  { %10924 = vpow2.f32 %v8253_v61  ;;  %v8366_v61 = vor.u32 %v10338_v9, %v8365_v21 }
 0x2ac   :  { %10926 = vpow2.f32 %v8254_v24  ;;  %v8370_v24 = vor.u32 %v10336_v17, %v8367_v55  ;;  %2072 = vmatpush.bf16.msra.mxu0 %v8342_v40  ;;  %v10330_v40 = vld [vmem:[#allocation8 + $0x94] sm:$0xf0] }
 0x2ad   :  { %v1701_v28 = vpop.f32.mrf.mxu2  ;;  %v1715_v41 = vpop.f32.mrf.mxu3  ;;  %2099 = vmatpush.bf16.msra.mxu2 %v8366_v61  ;;  %v8327_v61 = vld [vmem:[#allocation8 + $0x90] sm:$0xf0] }
 0x2ae   :  { %v1722_v18 = vadd.f32 %v1701_v28, %v1460_v54  ;;  %v1675_v34 = vpop.f32.mrf.mxu0  ;;  %v1689_v47 = vpop.f32.mrf.mxu1  ;;  %v1723_v1 = vadd.f32 %v1715_v41, %v1461_v13  ;;  %v8343_v54 = vld [vmem:[#allocation8 + $0xb0] sm:$0xf0]  ;;  %2113 = vmatpush.bf16.msra.mxu3 %v8370_v24  ;;  %v8333_v24 = vld [vmem:[#allocation8 + $0x88] sm:$0xf] }
 0x2af   :  { %v1724_v5 = vadd.f32 %v1675_v34, %v1462_v29  ;;  %v1725_v53 = vadd.f32 %v1689_v47, %v1463_v48  ;;  %v8346_v48 = vor.u32 %v10331_v52, %v8343_v54  ;;  %v10334_v34 = vld [vmem:[#allocation8 + $0xb4] sm:$0xf0]  ;;  %v10328_v52 = vld [vmem:[#allocation8 + $0x8c] sm:$0xf] }
 0x2b0   :  { %v8255_v57 = vmul.f32 -1.442695, %v1722_v18  ;;  %v8349_v18 = vld [vmem:[#allocation8 + $0xa8] sm:$0xf] }
 0x2b1   :  { %v10925_v43 = vpop.eup %10924  ;;  %v8256_v0 = vmul.f32 -1.442695, %v1724_v5  ;;  %v8257_v44 = vmul.f32 -1.442695, %v1725_v53  ;;  %v8350_v45 = vor.u32 %v10334_v34, %v8349_v18  ;;  %2086 = vmatpush.bf16.msra.mxu1 %v8346_v48  ;;  %v8335_v18 = vld [vmem:[#allocation8 + $0x98] sm:$0xf0] }
 0x2b2   :  { %v10927_v58 = vpop.eup %10926  ;;  %v12044_v46 = vadd.f32 1.0, %v10925_v43  ;;  %10928 = vpow2.f32 %v8255_v57  ;;  %v8351_v57 = vld [vmem:[#allocation8 + $0xb8] sm:$0xf0]  ;;  %v8309_v34 = vld [vmem:[#allocation8 + $0x60] sm:$0xf] }
 0x2b3   :  { %v12046_v59 = vadd.f32 1.0, %v10927_v58  ;;  %10930 = vpow2.f32 %v8256_v0  ;;  %2100 = vmatpush.bf16.msra.mxu2 %v8350_v45  ;;  %v8354_v37 = vor.u32 %v10332_v22, %v8351_v57  ;;  %v8325_v58 = vld [vmem:[#allocation8 + $0x80] sm:$0xf]  ;;  %v10323_v45 = vld [vmem:[#allocation8 + $0x64] sm:$0xf] }
 0x2b4   :  { %10932 = vrcp.f32 %v12044_v46  ;;  %v1761_v31 = vand.u32 2147483647, %v12044_v46  ;;  %v1763_v42 = vand.u32 2147483648, %v12044_v46  ;;  %vm1757_vm1 = vweird.f32 %v12044_v46 }
 0x2b5   :  { %10934 = vrcp.f32 %v12046_v59  ;;  %v1703_v23 = vpop.f32.mrf.mxu2  ;;  %v1717_v56 = vpop.f32.mrf.mxu3  ;;  %v1778_v10 = vand.u32 2147483648, %v12046_v59  ;;  %v1776_v30 = vand.u32 2147483647, %v12046_v59  ;;  %vm1772_vm0 = vweird.f32 %v12046_v59  ;;  %2114 = vmatpush.bf16.msra.mxu3 %v8354_v37 }
 0x2b6   :  { %10936 = vpow2.f32 %v8257_v44  ;;  %v1726_v27 = vadd.f32 %v1703_v23, %v1464_v33  ;;  %vm12075_vm2 = vcmp.eq.f32.partialorder %v1761_v31, 8.507059e+37  ;;  %v1727_v44 = vadd.f32 %v1717_v56, %v1465_v15 }
 0x2b7   :  { %10938 = vtanh.f32 %v1723_v1  ;;  %v1764_v25 = vor.u32 1.1754944e-38, %v1763_v42  ;;  %v1779_v14 = vor.u32 1.1754944e-38, %v1778_v10  ;;  %vm12084_vm5 = vcmp.eq.f32.partialorder %v1776_v30, 8.507059e+37 }
 0x2b8   :  { %v10929_v16 = vpop.eup %10928  ;;  %v8258_v36 = vmul.f32 -1.442695, %v1726_v27  ;;  %v8326_v17 = vor.u32 %v10329_v35, %v8325_v58  ;;  %v8334_v37 = vor.u32 %v10330_v40, %v8333_v24  ;;  %v8338_v58 = vor.u32 %v10328_v52, %v8335_v18  ;;  %v8293_v35 = vld [vmem:[#allocation8 + $0x40] sm:$0xf]  ;;  %v10322_v52 = vld [vmem:[#allocation8 + $0x54] sm:$0xf0] }
 0x2b9   :  { %v10931_v28 = vpop.eup %10930  ;;  %v12052_v29 = vadd.f32 1.0, %v10929_v16 }
 0x2ba   :  { %v12054_v47 = vpop.eup %10932  ;;  %v12057_v60 = vadd.f32 1.0, %v10931_v28  ;;  %10940 = vpow2.f32 %v8258_v36  ;;  %v10327_v36 = vld [vmem:[#allocation8 + $0x84] sm:$0xf]  ;;  %2073 = vmatpush.bf16.msra.mxu0 %v8326_v17  ;;  %2101 = vmatpush.bf16.msra.mxu2 %v8334_v37 }
 0x2bb   :  { %v12059_v5 = vpop.eup %10934  ;;  %v1753_v53 = vmul.f32 %v12054_v47, %v12044_v46  ;;  %10942 = vrcp.f32 %v12052_v29  ;;  %vm1758_vm3 = vweird.f32 %v12054_v47  ;;  %2115 = vmatpush.bf16.msra.mxu3 %v8338_v58  ;;  %v10320_v46 = vld [vmem:[#allocation8 + $0x4c] sm:$0xf]  ;;  %v1793_v37 = vand.u32 2147483648, %v12052_v29 }
 0x2bc   :  { %v10937_v26 = vpop.eup %10936  ;;  %v1768_v63 = vmul.f32 %v12059_v5, %v12046_v59  ;;  %10944 = vrcp.f32 %v12057_v60  ;;  %vm1773_vm4 = vweird.f32 %v12059_v5  ;;  %v1808_v27 = vand.u32 2147483648, %v12057_v60  ;;  %vm12104_vm6 = vmor %vm1757_vm1, %vm1758_vm3 }
 0x2bd   :  { %v1754_v43 = vsub.f32 1.0, %v1753_v53  ;;  %v12073_v32 = vadd.f32 1.0, %v10937_v26  ;;  %v10939_v39 = vpop.eup %10938  ;;  %v1806_v16 = vand.u32 2147483647, %v12057_v60  ;;  %vm12114_vm7 = vmor %vm1772_vm0, %vm1773_vm4  ;;  %vm1802_vm9 = vweird.f32 %v12057_v60  ;;  %v8311_v53 = vld [vmem:[#allocation8 + $0x70] sm:$0xf0] }
 0x2be   :  { %v1769_v41 = vsub.f32 1.0, %v1768_v63  ;;  %v1809_v57 = vor.u32 1.1754944e-38, %v1808_v27  ;;  %v8317_v26 = vld [vmem:[#allocation8 + $0x68] sm:$0xf]  ;;  %v10326_v63 = vld [vmem:[#allocation8 + $0x74] sm:$0xf0]  ;;  %vm1787_vm1 = vweird.f32 %v12052_v29 }
 0x2bf   :  { %v1755_v13 = vmul.f32 %v12054_v47, %v1754_v43  ;;  %10946 = vrcp.f32 %v12073_v32  ;;  %v1823_v48 = vand.u32 2147483648, %v12073_v32  ;;  %vm1817_vm8 = vweird.f32 %v12073_v32  ;;  %v10324_v43 = vld [vmem:[#allocation8 + $0x6c] sm:$0xf]  ;;  %v8269_v27 = vld [vmem:[#allocation8 + $0x8] sm:$0xf] }
 0x2c0   :  { %v10941_v33 = vpop.eup %10940  ;;  %v1770_v51 = vmul.f32 %v12059_v5, %v1769_v41  ;;  %10948 = vtanh.f32 %v1727_v44  ;;  %v8319_v41 = vld [vmem:[#allocation8 + $0x78] sm:$0xf0]  ;;  %v8330_v44 = vor.u32 %v10327_v36, %v8327_v61  ;;  %v1821_v17 = vand.u32 2147483647, %v12073_v32  ;;  %v8301_v36 = vld [vmem:[#allocation8 + $0x48] sm:$0xf] }
 0x2c1   :  { %v12088_v23 = vpop.eup %10942  ;;  %v1756_v21 = vadd.f32 %v12054_v47, %v1755_v13  ;;  %v12091_v9 = vadd.f32 1.0, %v10941_v33  ;;  %v8322_v3 = vor.u32 %v10324_v43, %v8319_v41  ;;  %vm1807_vm14 = vcmp.eq.f32.partialorder %v1806_v16, 8.507059e+37  ;;  %v8287_v41 = vld [vmem:[#allocation8 + $0x38] sm:$0xf0] }
 0x2c2   :  { %v12094_v55 = vpop.eup %10944  ;;  %v12098_v38 = vmul.f32 %v12088_v23, %v12052_v29  ;;  %v1771_v50 = vadd.f32 %v12059_v5, %v1770_v51  ;;  %2087 = vmatpush.bf16.msra.mxu1 %v8330_v44  ;;  %vm1788_vm13 = vweird.f32 %v12088_v23  ;;  %vm12176_vm0 = vcmp.eq.f32.partialorder %v1821_v17, 8.507059e+37  ;;  %v10313_v44 = vld [vmem:[#allocation8 + $0xc] sm:$0xf0]  ;;  %v10314_v17 = vld [vmem:[#allocation8 + $0x14] sm:$0xf0] }
 0x2c3   :  { %v1760_v54 = vsel %vm12104_vm6, %v12054_v47, %v1756_v21  ;;  %v1798_v28 = vmul.f32 %v12094_v55, %v12057_v60  ;;  %10950 = vrcp.f32 %v12091_v9  ;;  %v10325_v47 = vld [vmem:[#allocation8 + $0x6c] sm:$0xf0]  ;;  %vm1803_vm10 = vweird.f32 %v12094_v55  ;;  %2116 = vmatpush.bf16.msra.mxu3 %v8322_v3  ;;  %v8271_v3 = vld [vmem:[#allocation8 + $0x18] sm:$0xf0] }
 0x2c4   :  { %v1765_v59 = vsel %vm12075_vm2, %v1764_v25, %v1760_v54  ;;  %v1775_v31 = vsel %vm12114_vm7, %v12059_v5, %v1771_v50  ;;  %v1784_v10 = vsub.f32 1.0, %v12098_v38  ;;  %v8310_v51 = vor.u32 %v10325_v47, %v8309_v34  ;;  %vm12151_vm11 = vmor %vm1802_vm9, %vm1803_vm10  ;;  %v8295_v50 = vld [vmem:[#allocation8 + $0x50] sm:$0xf0]  ;;  %v8303_v54 = vld [vmem:[#allocation8 + $0x58] sm:$0xf0] }
 0x2c5   :  { %v12132_v42 = vpop.eup %10946  ;;  %v1780_v15 = vsel %vm12084_vm5, %v1779_v14, %v1775_v31  ;;  %v1846_v56 = vmul.f32 %v10939_v39, %v1765_v59  ;;  %v1799_v22 = vsub.f32 1.0, %v1798_v28  ;;  %v10321_v39 = vld [vmem:[#allocation8 + $0x4c] sm:$0xf0]  ;;  %v10319_v14 = vld [vmem:[#allocation8 + $0x44] sm:$0xf]  ;;  %v8318_v38 = vor.u32 %v10326_v63, %v8317_v26  ;;  %vm12193_vm2 = vmor %vm1787_vm1, %vm1788_vm13 }
 0x2c6   :  { %v1844_v5 = vmul.f32 %v1780_v15, %v11966_v49  ;;  %v1813_v30 = vmul.f32 %v12132_v42, %v12073_v32  ;;  %v10949_v13 = vpop.eup %10948  ;;  %v8314_v49 = vor.u32 %v10323_v45, %v8311_v53  ;;  %vm1818_vm12 = vweird.f32 %v12132_v42  ;;  %2074 = vmatpush.bf16.msra.mxu0 %v8310_v51  ;;  %v8277_v34 = vld [vmem:[#allocation8 + $0x20] sm:$0xf]  ;;  %v10317_v59 = vld [vmem:[#allocation8 + $0x2c] sm:$0xf0]  ;;  %v8285_v63 = vld [vmem:[#allocation8 + $0x28] sm:$0xf] }
 0x2c7   :  { %v1800_v0 = vmul.f32 %v12094_v55, %v1799_v22  ;;  %v8294_v40 = vor.u32 %v10321_v39, %v8293_v35  ;;  %v1824_v28 = vor.u32 1.1754944e-38, %v1823_v48  ;;  %v1785_v31 = vmul.f32 %v12088_v23, %v1784_v10  ;;  %vm12172_vm15 = vmor %vm1817_vm8, %vm1818_vm12  ;;  %2102 = vmatpush.bf16.msra.mxu2 %v8318_v38  ;;  %v8279_v22 = vld [vmem:[#allocation8 + $0x30] sm:$0xf0]  ;;  %v10318_v10 = vld [vmem:[#allocation8 + $0x34] sm:$0xf0] }
 0x2c8   :  { %v12142_v25 = vadd.f32 %v1846_v56, %v1844_v5  ;;  %v1814_v33 = vsub.f32 1.0, %v1813_v30  ;;  %2088 = vmatpush.bf16.msra.mxu1 %v8314_v49  ;;  %v8298_v60 = vor.u32 %v10319_v14, %v8295_v50  ;;  %v8302_v16 = vor.u32 %v10322_v52, %v8301_v36  ;;  %v10315_v56 = vld [vmem:[#allocation8 + $0x24] sm:$0xf]  ;;  %v10316_v5 = vld [vmem:[#allocation8 + $0x2c] sm:$0xf] }
 0x2c9   :  { %v12144_v1 = vpop.eup %10950  ;;  %v1801_v21 = vadd.f32 %v12094_v55, %v1800_v0  ;;  %v8306_v15 = vor.u32 %v10320_v46, %v8303_v54  ;;  %v8278_v26 = vor.u32 %v10317_v59, %v8277_v34  ;;  %v8261_v0 = vld [vmem:[#allocation8] sm:$0xf]  ;;  %v1786_v58 = vadd.f32 %v12088_v23, %v1785_v31  ;;  %v10312_v38 = vld [vmem:[#allocation8 + $0xc] sm:$0xf] }
 0x2ca   :  { %v1815_v61 = vmul.f32 %v12132_v42, %v1814_v33  ;;  %v1828_v24 = vmul.f32 %v12144_v1, %v12091_v9  ;;  %10952 = vtanh.f32 %v12142_v25  ;;  %2075 = vmatpush.bf16.msra.mxu0 %v8294_v40  ;;  %v8282_v39 = vor.u32 %v10315_v56, %v8279_v22  ;;  %v10311_v33 = vld [vmem:[#allocation8 + $0x4] sm:$0xf] }
 0x2cb   :  { %v1805_v18 = vsel %vm12151_vm11, %v12094_v55, %v1801_v21  ;;  %2103 = vmatpush.bf16.msra.mxu2 %v8302_v16  ;;  %v1791_v51 = vand.u32 2147483647, %v12052_v29  ;;  %2117 = vmatpush.bf16.msra.mxu3 %v8306_v15  ;;  %v8262_v14 = vor.u32 %v10313_v44, %v8261_v0  ;;  %v8263_v21 = vld [vmem:[#allocation8 + $0x10] sm:$0xf0]  ;;  %v1790_v50 = vsel %vm12193_vm2, %v12088_v23, %v1786_v58 }
 0x2cc   :  { %v1829_v47 = vsub.f32 1.0, %v1828_v24  ;;  %v1810_v45 = vsel %vm1807_vm14, %v1809_v57, %v1805_v18  ;;  %v1816_v53 = vadd.f32 %v12132_v42, %v1815_v61  ;;  %2089 = vmatpush.bf16.msra.mxu1 %v8298_v60  ;;  %vm1833_vm3 = vweird.f32 %v12144_v1 }
 0x2cd   :  { %v1847_v57 = vmul.f32 %v10949_v13, %v1810_v45  ;;  %v8286_v13 = vor.u32 %v10318_v10, %v8285_v63  ;;  %v1794_v61 = vor.u32 1.1754944e-38, %v1793_v37  ;;  %vm1832_vm4 = vweird.f32 %v12091_v9 }
 0x2ce   :  { %v1820_v32 = vsel %vm12172_vm15, %v12132_v42, %v1816_v53  ;;  %v1830_v30 = vmul.f32 %v12144_v1, %v1829_v47  ;;  %2076 = vmatpush.bf16.msra.mxu0 %v8278_v26  ;;  %v1838_v24 = vand.u32 2147483648, %v12091_v9  ;;  %v8266_v40 = vor.u32 %v10311_v33, %v8263_v21  ;;  %vm1834_vm6 = vmor %vm1832_vm4, %vm1833_vm3  ;;  %v10371_v33 = vld [vmem:[#allocation8 + $0xe4] sm:$0xf]  ;;  %v8515_v21 = vld [vmem:[#allocation8 + $0xe8] sm:$0xf] }
 0x2cf   :  { %v1825_v43 = vsel %vm12176_vm0, %v1824_v28, %v1820_v32  ;;  %2104 = vmatpush.bf16.msra.mxu2 %v8286_v13  ;;  %v8270_v52 = vor.u32 %v10314_v17, %v8269_v27  ;;  %vm1792_vm5 = vcmp.eq.f32.partialorder %v1791_v51, 8.507059e+37  ;;  %v1836_v46 = vand.u32 2147483647, %v12091_v9  ;;  %v10373_v13 = vld [vmem:[#allocation8 + $0xec] sm:$0xf0] }
 0x2d0   :  { %v1845_v42 = vmul.f32 %v1825_v43, %v12019_v8  ;;  %v8290_v8 = vor.u32 %v10316_v5, %v8287_v41  ;;  %v1831_v36 = vadd.f32 %v12144_v1, %v1830_v30  ;;  %v10953_v29 = vpop.eup %10952  ;;  %2090 = vmatpush.bf16.msra.mxu1 %v8282_v39  ;;  %v8274_v23 = vor.u32 %v10312_v38, %v8271_v3  ;;  %v8507_v39 = vld [vmem:[#allocation8 + $0xe0] sm:$0xf] }
 0x2d1   :  { %v1795_v54 = vsel %vm1792_vm5, %v1794_v61, %v1790_v50  ;;  %v1839_v34 = vor.u32 1.1754944e-38, %v1838_v24  ;;  %vm1837_vm7 = vcmp.eq.f32.partialorder %v1836_v46, 8.507059e+37  ;;  %v460_v16 = vadd.f32 %v11649_v4, %v11587_v12  ;;  %v14522_v4 = vld [vmem:[#allocation16_spill] sm:$0xff]  ;;  %v10374_v50 = vld [vmem:[#allocation8 + $0xf4] sm:$0xf0] }
 0x2d2   :  { %v12198_v49 = vadd.f32 %v1847_v57, %v1845_v42  ;;  %2118 = vmatpush.bf16.msra.mxu3 %v8290_v8  ;;  %2077 = vmatpush.bf16.msra.mxu0 %v8262_v14  ;;  %v1835_v28 = vsel %vm1834_vm6, %v12144_v1, %v1831_v36  ;;  %v1852_v18 = vmul.f32 %v10953_v29, %v1795_v54  ;;  %v1864_v15 = vunpack.c.l.bf16 %v11643_v62  ;;  %v10372_v24 = vld [vmem:[#allocation8 + $0xec] sm:$0xf]  ;;  %v8491_v54 = vld [vmem:[#allocation8 + $0xc0] sm:$0xf] }
 0x2d3   :  { %2105 = vmatpush.bf16.msra.mxu2 %v8270_v52  ;;  %v1840_v31 = vsel %vm1837_vm7, %v1839_v34, %v1835_v28  ;;  %v411_v1 = vadd.f32 %v11646_v2, %v11585_v11  ;;  %v1865_v56 = vunpack.c.h.bf16 %v11643_v62  ;;  %v509_v30 = vadd.f32 %v11653_v6, %v11593_v19  ;;  %v10369_v28 = vld [vmem:[#allocation8 + $0xcc] sm:$0xf0] }
 0x2d4   :  { %10954 = vtanh.f32 %v12198_v49  ;;  %2091 = vmatpush.bf16.msra.mxu1 %v8266_v40  ;;  %v1854_v45 = vpack.c.bf16 %v1852_v18, %v1852_v18  ;;  %v558_v2 = vadd.f32 %v11655_v7, %v11595_v20  ;;  %v1866_v43 = vunpack.c.l.bf16 %v14522_v4  ;;  %v8509_v7 = vld [vmem:[#allocation8 + $0xf0] sm:$0xf0]  ;;  %v8517_v40 = vld [vmem:[#allocation8 + $0xf8] sm:$0xf0] }
 0x2d5   :  { %v594_v63 = vpack.c.bf16 %v460_v16, %v411_v1  ;;  %v8508_v14 = vor.u32 %v10373_v13, %v8507_v39  ;;  %v8512_v3 = vor.u32 %v10371_v33, %v8509_v7  ;;  %v8516_v61 = vor.u32 %v10374_v50, %v8515_v21  ;;  %v8483_v7 = vld [vmem:[#allocation8 + $0xa8] sm:$0xf]  ;;  %v10366_v21 = vld [vmem:[#allocation8 + $0xb4] sm:$0xf0] }
 0x2d6   :  { %2119 = vmatpush.bf16.msra.mxu3 %v8274_v23  ;;  %v1906_v48 = vunpack.c.l.b16 %v1854_v45  ;;  %v12223_v51 = vpack.c.bf16 %v558_v2, %v509_v30  ;;  %v8520_v46 = vor.u32 %v10372_v24, %v8517_v40  ;;  %v8499_v45 = vld [vmem:[#allocation8 + $0xc8] sm:$0xf]  ;;  %v8477_v30 = vld [vmem:[#allocation8 + $0xb0] sm:$0xf0] }
 0x2d7   :  { %v1868_v0 = vunpack.c.l.bf16 %v594_v63  ;;  %v1869_v62 = vunpack.c.h.bf16 %v594_v63  ;;  %2476 = vmatpush.bf16.msrb.mxu0 %v8508_v14  ;;  %2504 = vmatpush.bf16.msrb.mxu2 %v8516_v61 }
 0x2d8   :  { %2490 = vmatpush.bf16.msrb.mxu1 %v8512_v3  ;;  %v1870_v23 = vunpack.c.l.bf16 %v12223_v51 }
 0x2da   :  { %v10955_v59 = vpop.eup %10954  ;;  %2518 = vmatpush.bf16.msrb.mxu3 %v8520_v46  ;;  %v8484_v46 = vor.u32 %v10366_v21, %v8483_v7 }
 0x2db   :  { %v1853_v47 = vmul.f32 %v10955_v59, %v1840_v31  ;;  %v10367_v59 = vld [vmem:[#allocation8 + $0xc4] sm:$0xf]  ;;  %v8493_v31 = vld [vmem:[#allocation8 + $0xd0] sm:$0xf0] }
 0x2dd   :  { %v1855_v9 = vpack.c.bf16 %v1853_v47, %v1853_v47  ;;  %v10780_v53 = vpack.c.bf16 %v1853_v47, %v1852_v18  ;;  %v1867_v18 = vunpack.c.h.bf16 %v14522_v4 }
 0x2df   :  { %10781 = vst [vmem:[#allocation3 + $0x18] sm:$0xff] %v10780_v53   ;;  %v1907_v55 = vunpack.c.l.b16 %v1855_v9  ;;  %v10370_v9 = vld [vmem:[#allocation8 + $0xd4] sm:$0xf0] }
 0x2e1   :  { %v1908_v60 = vpack.c.b16 %v1907_v55, %v1906_v48  ;;  %v8492_v48 = vor.u32 %v10369_v28, %v8491_v54  ;;  %v10368_v55 = vld [vmem:[#allocation8 + $0xcc] sm:$0xf] }
 0x2e3   :  { %2078 = vmatmul.bf16.vlgmr.msra.gmra.mxu0 %v1908_v60  ;;  %2092 = vmatmul.bf16.vlgmr.msra.gmra.mxu1 %v1908_v60 }
 0x2e4   :  { %2106 = vmatmul.bf16.vlgmr.msra.gmra.mxu2 %v1908_v60  ;;  %2120 = vmatmul.bf16.vlgmr.msra.gmra.mxu3 %v1908_v60  ;;  %v8501_v60 = vld [vmem:[#allocation8 + $0xd8] sm:$0xf0] }
 0x2e5   :  { %2477 = vmatpush.bf16.msrb.mxu0 %v8492_v48 }
 0x360   :  { %v2079_v22 = vpop.f32.mrf.mxu0  ;;  %v2093_v32 = vpop.f32.mrf.mxu1 }
 0x361   :  { %v2126_v57 = vadd.f32 %v2079_v22, %v1864_v15  ;;  %v2127_v26 = vadd.f32 %v2093_v32, %v1865_v56  ;;  %v8496_v15 = vor.u32 %v10367_v59, %v8493_v31  ;;  %v8500_v56 = vor.u32 %v10370_v9, %v8499_v45  ;;  %v8475_v32 = vld [vmem:[#allocation8 + $0xa0] sm:$0xf]  ;;  %v8453_v31 = vld [vmem:[#allocation8 + $0x78] sm:$0xf0] }
 0x362   :  { %v8504_v22 = vor.u32 %v10368_v55, %v8501_v60  ;;  %v10364_v55 = vld [vmem:[#allocation8 + $0xac] sm:$0xf]  ;;  %v8485_v60 = vld [vmem:[#allocation8 + $0xb8] sm:$0xf0] }
 0x363   :  { %v8387_v10 = vmul.f32 -1.442695, %v2126_v57  ;;  %v8388_v5 = vmul.f32 -1.442695, %v2127_v26  ;;  %v10365_v57 = vld [vmem:[#allocation8 + $0xac] sm:$0xf0]  ;;  %2491 = vmatpush.bf16.msrb.mxu1 %v8496_v15  ;;  %2505 = vmatpush.bf16.msrb.mxu2 %v8500_v56 }
 0x364   :  { %2519 = vmatpush.bf16.msrb.mxu3 %v8504_v22  ;;  %v10359_v15 = vld [vmem:[#allocation8 + $0x84] sm:$0xf]  ;;  %v8461_v56 = vld [vmem:[#allocation8 + $0x90] sm:$0xf0] }
 0x365   :  { %10956 = vpow2.f32 %v8387_v10  ;;  %v8476_v10 = vor.u32 %v10365_v57, %v8475_v32  ;;  %v8464_v21 = vor.u32 %v10359_v15, %v8461_v56  ;;  %v8435_v15 = vld [vmem:[#allocation8 + $0x48] sm:$0xf]  ;;  %v10354_v56 = vld [vmem:[#allocation8 + $0x54] sm:$0xf0] }
 0x366   :  { %10958 = vpow2.f32 %v8388_v5  ;;  %v10363_v5 = vld [vmem:[#allocation8 + $0xa4] sm:$0xf] }
 0x367   :  { %v2107_v41 = vpop.f32.mrf.mxu2  ;;  %v2121_v8 = vpop.f32.mrf.mxu3  ;;  %2478 = vmatpush.bf16.msrb.mxu0 %v8476_v10  ;;  %2506 = vmatpush.bf16.msrb.mxu2 %v8484_v46  ;;  %v8467_v10 = vld [vmem:[#allocation8 + $0x88] sm:$0xf]  ;;  %v10356_v46 = vld [vmem:[#allocation8 + $0x6c] sm:$0xf] }
 0x368   :  { %v2128_v44 = vadd.f32 %v2107_v41, %v1866_v43  ;;  %v2081_v37 = vpop.f32.mrf.mxu0  ;;  %v2095_v42 = vpop.f32.mrf.mxu1  ;;  %v2129_v53 = vadd.f32 %v2121_v8, %v1867_v18 }
 0x369   :  { %v2130_v58 = vadd.f32 %v2081_v37, %v1868_v0  ;;  %v2131_v35 = vadd.f32 %v2095_v42, %v1869_v62  ;;  %v8480_v0 = vor.u32 %v10363_v5, %v8477_v30  ;;  %v1871_v42 = vunpack.c.h.bf16 %v12223_v51  ;;  %v10362_v5 = vld [vmem:[#allocation8 + $0x94] sm:$0xf0] }
 0x36a   :  { %v8389_v6 = vmul.f32 -1.442695, %v2128_v44  ;;  %v8488_v51 = vor.u32 %v10364_v55, %v8485_v60  ;;  %v10351_v55 = vld [vmem:[#allocation8 + $0x44] sm:$0xf]  ;;  %v8429_v60 = vld [vmem:[#allocation8 + $0x50] sm:$0xf0] }
 0x36b   :  { %v10957_v27 = vpop.eup %10956  ;;  %v8390_v17 = vmul.f32 -1.442695, %v2130_v58  ;;  %v8391_v38 = vmul.f32 -1.442695, %v2131_v35  ;;  %2492 = vmatpush.bf16.msrb.mxu1 %v8480_v0  ;;  %v10360_v0 = vld [vmem:[#allocation8 + $0x8c] sm:$0xf] }
 0x36c   :  { %v10959_v36 = vpop.eup %10958  ;;  %v12225_v29 = vadd.f32 1.0, %v10957_v27  ;;  %10960 = vpow2.f32 %v8389_v6  ;;  %2520 = vmatpush.bf16.msrb.mxu3 %v8488_v51 }
 0x36d   :  { %v12227_v52 = vadd.f32 1.0, %v10959_v36  ;;  %10962 = vpow2.f32 %v8390_v17 }
 0x36e   :  { %10964 = vrcp.f32 %v12225_v29  ;;  %v2167_v4 = vand.u32 2147483647, %v12225_v29  ;;  %v2169_v37 = vand.u32 2147483648, %v12225_v29  ;;  %vm2163_vm9 = vweird.f32 %v12225_v29 }
 0x36f   :  { %10966 = vrcp.f32 %v12227_v52  ;;  %v2109_v34 = vpop.f32.mrf.mxu2  ;;  %v2123_v41 = vpop.f32.mrf.mxu3  ;;  %v2184_v39 = vand.u32 2147483648, %v12227_v52  ;;  %v2182_v13 = vand.u32 2147483647, %v12227_v52  ;;  %vm2178_vm8 = vweird.f32 %v12227_v52  ;;  %2493 = vmatpush.bf16.msrb.mxu1 %v8464_v21  ;;  %v8421_v21 = vld [vmem:[#allocation8 + $0x38] sm:$0xf0] }
 0x370   :  { %10968 = vpow2.f32 %v8391_v38  ;;  %v2132_v47 = vadd.f32 %v2109_v34, %v1870_v23  ;;  %v2133_v8 = vadd.f32 %v2123_v41, %v1871_v42  ;;  %vm12253_vm10 = vcmp.eq.f32.partialorder %v2167_v4, 8.507059e+37  ;;  %v10349_v42 = vld [vmem:[#allocation8 + $0x2c] sm:$0xf0] }
 0x371   :  { %v2170_v17 = vor.u32 1.1754944e-38, %v2169_v37  ;;  %v2185_v50 = vor.u32 1.1754944e-38, %v2184_v39  ;;  %vm12260_vm13 = vcmp.eq.f32.partialorder %v2182_v13, 8.507059e+37 }
 0x372   :  { %v10961_v1 = vpop.eup %10960  ;;  %v8392_v16 = vmul.f32 -1.442695, %v2132_v47 }
 0x373   :  { %v10963_v26 = vpop.eup %10962  ;;  %v12233_v63 = vadd.f32 1.0, %v10961_v1  ;;  %v8459_v1 = vld [vmem:[#allocation8 + $0x80] sm:$0xf] }
 0x374   :  { %v10965_v2 = vpop.eup %10964  ;;  %v12236_v43 = vadd.f32 1.0, %v10963_v26  ;;  %10970 = vpow2.f32 %v8392_v16  ;;  %v10361_v16 = vld [vmem:[#allocation8 + $0x8c] sm:$0xf0] }
 0x375   :  { %v12238_v62 = vpop.eup %10966  ;;  %v2159_v44 = vmul.f32 %v10965_v2, %v12225_v29  ;;  %10972 = vrcp.f32 %v12233_v63  ;;  %vm2164_vm11 = vweird.f32 %v10965_v2  ;;  %v2197_v28 = vand.u32 2147483647, %v12233_v63 }
 0x376   :  { %v10969_v58 = vpop.eup %10968  ;;  %v2174_v35 = vmul.f32 %v12238_v62, %v12227_v52  ;;  %10974 = vtanh.f32 %v2129_v53  ;;  %vm2179_vm12 = vweird.f32 %v12238_v62  ;;  %v2199_v18 = vand.u32 2147483648, %v12233_v63  ;;  %vm2165_vm14 = vmor %vm2163_vm9, %vm2164_vm11 }
 0x377   :  { %v2160_v33 = vsub.f32 1.0, %v2159_v44  ;;  %10976 = vrcp.f32 %v12236_v43  ;;  %v12249_v6 = vadd.f32 1.0, %v10969_v58  ;;  %vm12282_vm15 = vmor %vm2178_vm8, %vm2179_vm12  ;;  %v2212_v29 = vand.u32 2147483647, %v12236_v43  ;;  %v8469_v58 = vld [vmem:[#allocation8 + $0x98] sm:$0xf0] }
 0x378   :  { %v2175_v14 = vsub.f32 1.0, %v2174_v35  ;;  %vm2208_vm0 = vweird.f32 %v12236_v43  ;;  %v2214_v26 = vand.u32 2147483648, %v12236_v43  ;;  %vm2193_vm1 = vweird.f32 %v12233_v63  ;;  %v8443_v35 = vld [vmem:[#allocation8 + $0x60] sm:$0xf] }
 0x379   :  { %v2161_v27 = vmul.f32 %v10965_v2, %v2160_v33  ;;  %10978 = vrcp.f32 %v12249_v6  ;;  %v2229_v45 = vand.u32 2147483648, %v12249_v6  ;;  %v2227_v41 = vand.u32 2147483647, %v12249_v6  ;;  %v10357_v33 = vld [vmem:[#allocation8 + $0x6c] sm:$0xf0] }
 0x37a   :  { %v10971_v38 = vpop.eup %10970  ;;  %v2176_v3 = vmul.f32 %v12238_v62, %v2175_v14  ;;  %10980 = vtanh.f32 %v2133_v8  ;;  %vm2223_vm2 = vweird.f32 %v12249_v6  ;;  %vm12309_vm3 = vcmp.eq.f32.partialorder %v2212_v29, 8.507059e+37  ;;  %v10355_v8 = vld [vmem:[#allocation8 + $0x64] sm:$0xf] }
 0x37b   :  { %v12264_v61 = vpop.eup %10972  ;;  %v2162_v24 = vadd.f32 %v10965_v2, %v2161_v27  ;;  %v12266_v40 = vadd.f32 1.0, %v10971_v38  ;;  %v2230_v37 = vor.u32 1.1754944e-38, %v2229_v45  ;;  %v8460_v7 = vor.u32 %v10361_v16, %v8459_v1  ;;  %v8451_v38 = vld [vmem:[#allocation8 + $0x68] sm:$0xf]  ;;  %v10353_v45 = vld [vmem:[#allocation8 + $0x4c] sm:$0xf0] }
 0x37c   :  { %v10975_v23 = vpop.eup %10974  ;;  %v2189_v54 = vmul.f32 %v12264_v61, %v12233_v63  ;;  %v2177_v34 = vadd.f32 %v12238_v62, %v2176_v3  ;;  %v8468_v27 = vor.u32 %v10362_v5, %v8467_v10  ;;  %v10358_v3 = vld [vmem:[#allocation8 + $0x74] sm:$0xf0]  ;;  %vm2194_vm6 = vweird.f32 %v12264_v61  ;;  %v8419_v63 = vld [vmem:[#allocation8 + $0x28] sm:$0xf] }
 0x37d   :  { %v12276_v59 = vpop.eup %10976  ;;  %v2166_v47 = vsel %vm2165_vm14, %v10965_v2, %v2162_v24  ;;  %10982 = vrcp.f32 %v12266_v40  ;;  %v2215_v24 = vor.u32 1.1754944e-38, %v2214_v26  ;;  %2479 = vmatpush.bf16.msrb.mxu0 %v8460_v7  ;;  %vm12337_vm8 = vcmp.eq.f32.partialorder %v2197_v28, 8.507059e+37  ;;  %vm12356_vm11 = vmor %vm2193_vm1, %vm2194_vm6  ;;  %v10348_v7 = vld [vmem:[#allocation8 + $0x2c] sm:$0xf] }
 0x37e   :  { %v2190_v9 = vsub.f32 1.0, %v2189_v54  ;;  %v2171_v53 = vsel %vm12253_vm10, %v2170_v17, %v2166_v47  ;;  %v2181_v52 = vsel %vm12282_vm15, %v12238_v62, %v2177_v34  ;;  %v2204_v48 = vmul.f32 %v12276_v59, %v12236_v43  ;;  %v8445_v17 = vld [vmem:[#allocation8 + $0x70] sm:$0xf0]  ;;  %v8427_v47 = vld [vmem:[#allocation8 + $0x40] sm:$0xf]  ;;  %2507 = vmatpush.bf16.msrb.mxu2 %v8468_v27 }
 0x37f   :  { %v12296_v22 = vpop.eup %10978  ;;  %v2186_v32 = vsel %vm12260_vm13, %v2185_v50, %v2181_v52  ;;  %v2252_v57 = vmul.f32 %v10975_v23, %v2171_v53  ;;  %vm2209_vm4 = vweird.f32 %v12276_v59  ;;  %v8472_v54 = vor.u32 %v10360_v0, %v8469_v58  ;;  %v10347_v58 = vld [vmem:[#allocation8 + $0x24] sm:$0xf] }
 0x380   :  { %v2250_v30 = vmul.f32 %v2186_v32, %v12142_v25  ;;  %v2205_v2 = vsub.f32 1.0, %v2204_v48  ;;  %v2219_v4 = vmul.f32 %v12296_v22, %v12249_v6  ;;  %v10981_v62 = vpop.eup %10980  ;;  %v2191_v44 = vmul.f32 %v12264_v61, %v2190_v9  ;;  %vm12329_vm7 = vmor %vm2208_vm0, %vm2209_vm4  ;;  %v10344_v9 = vld [vmem:[#allocation8 + $0xc] sm:$0xf] }
 0x381   :  { %vm2224_vm5 = vweird.f32 %v12296_v22  ;;  %v8444_v34 = vor.u32 %v10357_v33, %v8443_v35  ;;  %v8448_v52 = vor.u32 %v10355_v8, %v8445_v17  ;;  %v8452_v48 = vor.u32 %v10358_v3, %v8451_v38  ;;  %2521 = vmatpush.bf16.msrb.mxu3 %v8472_v54  ;;  %v8413_v35 = vld [vmem:[#allocation8 + $0x30] sm:$0xf0]  ;;  %v8395_v17 = vld [vmem:[#allocation8] sm:$0xf]  ;;  %v10345_v38 = vld [vmem:[#allocation8 + $0xc] sm:$0xf0] }
 0x382   :  { %v12313_v25 = vadd.f32 %v2252_v57, %v2250_v30  ;;  %v2220_v39 = vsub.f32 1.0, %v2219_v4  ;;  %v2206_v13 = vmul.f32 %v12276_v59, %v2205_v2  ;;  %v2192_v1 = vadd.f32 %v12264_v61, %v2191_v44  ;;  %vm2225_vm9 = vmor %vm2223_vm2, %vm2224_vm5  ;;  %v8437_v2 = vld [vmem:[#allocation8 + $0x58] sm:$0xf0]  ;;  %v8411_v44 = vld [vmem:[#allocation8 + $0x20] sm:$0xf] }
 0x383   :  { %v12317_v14 = vpop.eup %10982  ;;  %vm2228_vm10 = vcmp.eq.f32.partialorder %v2227_v41, 8.507059e+37  ;;  %v8456_v57 = vor.u32 %v10356_v46, %v8453_v31  ;;  %v8428_v26 = vor.u32 %v10353_v45, %v8427_v47  ;;  %2480 = vmatpush.bf16.msrb.mxu0 %v8444_v34  ;;  %2494 = vmatpush.bf16.msrb.mxu1 %v8448_v52  ;;  %v8432_v41 = vor.u32 %v10351_v55, %v8429_v60  ;;  %v10343_v3 = vld [vmem:[#allocation8 + $0x4] sm:$0xf]  ;;  %v14541_v6 = vld [vmem:[#allocation17_spill] sm:$0xff] }
 0x384   :  { %v2221_v50 = vmul.f32 %v12296_v22, %v2220_v39  ;;  %v2234_v36 = vmul.f32 %v12317_v14, %v12266_v40  ;;  %v2207_v23 = vadd.f32 %v12276_v59, %v2206_v13  ;;  %10984 = vtanh.f32 %v12313_v25  ;;  %2508 = vmatpush.bf16.msrb.mxu2 %v8452_v48 }
 0x385   :  { %v8436_v0 = vor.u32 %v10354_v56, %v8435_v15  ;;  %v2244_v39 = vand.u32 2147483648, %v12266_v40  ;;  %vm2239_vm12 = vweird.f32 %v12317_v14  ;;  %2522 = vmatpush.bf16.msrb.mxu3 %v8456_v57  ;;  %v8412_v51 = vor.u32 %v10349_v42, %v8411_v44  ;;  %v14540_v57 = vld [vmem:[#allocation19_spill] sm:$0xff]  ;;  %v14542_v44 = vld [vmem:[#allocation21_spill] sm:$0xff] }
 0x386   :  { %v2235_v29 = vsub.f32 1.0, %v2234_v36  ;;  %v2222_v53 = vadd.f32 %v12296_v22, %v2221_v50  ;;  %v2211_v43 = vsel %vm12329_vm7, %v12276_v59, %v2207_v23  ;;  %v2200_v59 = vor.u32 1.1754944e-38, %v2199_v18  ;;  %v10350_v18 = vld [vmem:[#allocation8 + $0x34] sm:$0xf0]  ;;  %v8397_v50 = vld [vmem:[#allocation8 + $0x10] sm:$0xf0] }
 0x387   :  { %v2216_v28 = vsel %vm12309_vm3, %v2215_v24, %v2211_v43  ;;  %2481 = vmatpush.bf16.msrb.mxu0 %v8428_v26  ;;  %2495 = vmatpush.bf16.msrb.mxu1 %v8432_v41  ;;  %v8420_v27 = vor.u32 %v10350_v18, %v8419_v63  ;;  %vm2238_vm13 = vweird.f32 %v12266_v40  ;;  %v8403_v36 = vld [vmem:[#allocation8 + $0x8] sm:$0xf]  ;;  %v10346_v24 = vld [vmem:[#allocation8 + $0x14] sm:$0xf0]  ;;  %v8424_v23 = vor.u32 %v10348_v7, %v8421_v21  ;;  %v14544_v63 = vld [vmem:[#allocation20_spill] sm:$0xff] }
 0x388   :  { %v2226_v32 = vsel %vm2225_vm9, %v12296_v22, %v2222_v53  ;;  %v2236_v10 = vmul.f32 %v12317_v14, %v2235_v29  ;;  %v2253_v30 = vmul.f32 %v10981_v62, %v2216_v28  ;;  %v10352_v22 = vld [vmem:[#allocation8 + $0x4c] sm:$0xf]  ;;  %v2196_v62 = vsel %vm12356_vm11, %v12264_v61, %v2192_v1  ;;  %2509 = vmatpush.bf16.msrb.mxu2 %v8436_v0  ;;  %vm12377_vm14 = vmor %vm2238_vm13, %vm2239_vm12  ;;  %v8405_v53 = vld [vmem:[#allocation8 + $0x18] sm:$0xf0] }
 0x389   :  { %v2231_v5 = vsel %vm2228_vm10, %v2230_v37, %v2226_v32  ;;  %v2242_v37 = vand.u32 2147483647, %v12266_v40  ;;  %v8440_v8 = vor.u32 %v10352_v22, %v8437_v2  ;;  %v8416_v61 = vor.u32 %v10347_v58, %v8413_v35  ;;  %v14539_v28 = vld [vmem:[#allocation18_spill] sm:$0xff]  ;;  %v8649_v21 = vld [vmem:[#allocation8 + $0xe8] sm:$0xf] }
 0x38a   :  { %v2251_v4 = vmul.f32 %v2231_v5, %v12198_v49  ;;  %v10985_v49 = vpop.eup %10984  ;;  %v2237_v33 = vadd.f32 %v12317_v14, %v2236_v10  ;;  %v2201_v54 = vsel %vm12337_vm8, %v2200_v59, %v2196_v62  ;;  %v8396_v34 = vor.u32 %v10345_v38, %v8395_v17  ;;  %v14543_v58 = vld [vmem:[#allocation22_spill] sm:$0xff]  ;;  %v8641_v62 = vld [vmem:[#allocation8 + $0xe0] sm:$0xf] }
 0x38b   :  { %2523 = vmatpush.bf16.msrb.mxu3 %v8440_v8  ;;  %2482 = vmatpush.bf16.msrb.mxu0 %v8412_v51  ;;  %v2258_v31 = vmul.f32 %v10985_v49, %v2201_v54  ;;  %v2245_v47 = vor.u32 1.1754944e-38, %v2244_v39  ;;  %v8400_v45 = vor.u32 %v10343_v3, %v8397_v50  ;;  %v8404_v29 = vor.u32 %v10346_v24, %v8403_v36  ;;  %v10403_v39 = vld [vmem:[#allocation8 + $0xe4] sm:$0xf]  ;;  %v8643_v7 = vld [vmem:[#allocation8 + $0xf0] sm:$0xf0] }
 0x38c   :  { %v12369_v13 = vadd.f32 %v2253_v30, %v2251_v4  ;;  %v2241_v40 = vsel %vm12377_vm14, %v12317_v14, %v2237_v33  ;;  %2496 = vmatpush.bf16.msrb.mxu1 %v8416_v61  ;;  %2510 = vmatpush.bf16.msrb.mxu2 %v8420_v27  ;;  %vm2243_vm15 = vcmp.eq.f32.partialorder %v2242_v37, 8.507059e+37  ;;  %v8408_v55 = vor.u32 %v10344_v9, %v8405_v53  ;;  %v10405_v37 = vld [vmem:[#allocation8 + $0xec] sm:$0xf0]  ;;  %v10406_v61 = vld [vmem:[#allocation8 + $0xf4] sm:$0xf0] }
 0x38d   :  { %v2246_v48 = vsel %vm2243_vm15, %v2245_v47, %v2241_v40  ;;  %v2260_v1 = vpack.c.bf16 %v2258_v31, %v2258_v31  ;;  %v416_v32 = vadd.f32 %v14539_v28, %v11585_v11  ;;  %v465_v26 = vadd.f32 %v14540_v57, %v11587_v12  ;;  %v10404_v36 = vld [vmem:[#allocation8 + $0xec] sm:$0xf]  ;;  %v8651_v24 = vld [vmem:[#allocation8 + $0xf8] sm:$0xf0]  ;;  %v8625_v47 = vld [vmem:[#allocation8 + $0xc0] sm:$0xf] }
 0x38e   :  { %10986 = vtanh.f32 %v12369_v13  ;;  %v2270_v59 = vunpack.c.l.bf16 %v14541_v6  ;;  %v2271_v10 = vunpack.c.h.bf16 %v14541_v6  ;;  %v514_v42 = vadd.f32 %v14542_v44, %v11593_v19  ;;  %v10400_v57 = vld [vmem:[#allocation8 + $0xcc] sm:$0xf]  ;;  %v8609_v6 = vld [vmem:[#allocation8 + $0xa0] sm:$0xf] }
 0x38f   :  { %2524 = vmatpush.bf16.msrb.mxu3 %v8424_v23  ;;  %2483 = vmatpush.bf16.msrb.mxu0 %v8396_v34  ;;  %v2312_v43 = vunpack.c.l.b16 %v2260_v1  ;;  %v598_v4 = vpack.c.bf16 %v465_v26, %v416_v32  ;;  %v563_v35 = vadd.f32 %v14543_v58, %v11595_v20  ;;  %v2272_v18 = vunpack.c.l.bf16 %v14544_v63  ;;  %v8627_v1 = vld [vmem:[#allocation8 + $0xd0] sm:$0xf0]  ;;  %v8635_v26 = vld [vmem:[#allocation8 + $0xd8] sm:$0xf0] }
 0x390   :  { %2497 = vmatpush.bf16.msrb.mxu1 %v8400_v45  ;;  %2511 = vmatpush.bf16.msrb.mxu2 %v8404_v29  ;;  %v8642_v51 = vor.u32 %v10405_v37, %v8641_v62  ;;  %v8646_v3 = vor.u32 %v10403_v39, %v8643_v7  ;;  %v8650_v50 = vor.u32 %v10406_v61, %v8649_v21  ;;  %v10401_v45 = vld [vmem:[#allocation8 + $0xcc] sm:$0xf0]  ;;  %v2273_v28 = vunpack.c.h.bf16 %v14544_v63  ;;  %v10396_v63 = vld [vmem:[#allocation8 + $0xac] sm:$0xf]  ;;  %v8619_v39 = vld [vmem:[#allocation8 + $0xb8] sm:$0xf0] }
 0x391   :  { %v2274_v33 = vunpack.c.l.bf16 %v598_v4  ;;  %v2275_v8 = vunpack.c.h.bf16 %v598_v4  ;;  %v8654_v54 = vor.u32 %v10404_v36, %v8651_v24  ;;  %v12397_v34 = vpack.c.bf16 %v563_v35, %v514_v42  ;;  %v8617_v4 = vld [vmem:[#allocation8 + $0xa8] sm:$0xf]  ;;  %v10398_v35 = vld [vmem:[#allocation8 + $0xb4] sm:$0xf0] }
 0x392   :  { %v8626_v53 = vor.u32 %v10401_v45, %v8625_v47  ;;  %v8638_v44 = vor.u32 %v10400_v57, %v8635_v26  ;;  %v8618_v37 = vor.u32 %v10398_v35, %v8617_v4  ;;  %v8622_v7 = vor.u32 %v10396_v63, %v8619_v39  ;;  %v8601_v4 = vld [vmem:[#allocation8 + $0x88] sm:$0xf]  ;;  %v8563_v26 = vld [vmem:[#allocation8 + $0x50] sm:$0xf0] }
 0x393   :  { %2525 = vmatpush.bf16.msrb.mxu3 %v8408_v55  ;;  %2882 = vmatpush.bf16.msra.mxu0 %v8642_v51 }
 0x394   :  { %v10987_v52 = vpop.eup %10986  ;;  %2896 = vmatpush.bf16.msra.mxu1 %v8646_v3  ;;  %2910 = vmatpush.bf16.msra.mxu2 %v8650_v50 }
 0x395   :  { %v2259_v60 = vmul.f32 %v10987_v52, %v2246_v48  ;;  %v10399_v52 = vld [vmem:[#allocation8 + $0xc4] sm:$0xf] }
 0x397   :  { %v2261_v16 = vpack.c.bf16 %v2259_v60, %v2259_v60  ;;  %v10785_v14 = vpack.c.bf16 %v2259_v60, %v2258_v31  ;;  %2924 = vmatpush.bf16.msra.mxu3 %v8654_v54  ;;  %2883 = vmatpush.bf16.msra.mxu0 %v8626_v53 }
 0x399   :  { %10786 = vst [vmem:[#allocation3 + $0x10] sm:$0xff] %v10785_v14   ;;  %v2313_v15 = vunpack.c.l.b16 %v2261_v16  ;;  %v8630_v14 = vor.u32 %v10399_v52, %v8627_v1 }
 0x39b   :  { %v2314_v56 = vpack.c.b16 %v2313_v15, %v2312_v43  ;;  %v2276_v43 = vunpack.c.l.bf16 %v12397_v34  ;;  %v8633_v15 = vld [vmem:[#allocation8 + $0xc8] sm:$0xf]  ;;  %2897 = vmatpush.bf16.msra.mxu1 %v8630_v14  ;;  %2925 = vmatpush.bf16.msra.mxu3 %v8638_v44  ;;  %v8603_v44 = vld [vmem:[#allocation8 + $0x98] sm:$0xf0] }
 0x39d   :  { %2484 = vmatmul.bf16.vlgmr.msrb.gmra.mxu0 %v2314_v56  ;;  %2498 = vmatmul.bf16.vlgmr.msrb.gmra.mxu1 %v2314_v56 }
 0x39e   :  { %2512 = vmatmul.bf16.vlgmr.msrb.gmra.mxu2 %v2314_v56  ;;  %2526 = vmatmul.bf16.vlgmr.msrb.gmra.mxu3 %v2314_v56  ;;  %v10402_v56 = vld [vmem:[#allocation8 + $0xd4] sm:$0xf0] }
 0x39f   :  { %2926 = vmatpush.bf16.msra.mxu3 %v8622_v7  ;;  %v10387_v7 = vld [vmem:[#allocation8 + $0x64] sm:$0xf] }
 0x41a   :  { %v2485_v5 = vpop.f32.mrf.mxu0  ;;  %v2499_v30 = vpop.f32.mrf.mxu1 }
 0x41b   :  { %v2532_v22 = vadd.f32 %v2485_v5, %v2270_v59  ;;  %v2533_v2 = vadd.f32 %v2499_v30, %v2271_v10  ;;  %v10397_v10 = vld [vmem:[#allocation8 + $0xac] sm:$0xf0]  ;;  %v10395_v5 = vld [vmem:[#allocation8 + $0xa4] sm:$0xf] }
 0x41c   :  { %v8610_v42 = vor.u32 %v10397_v10, %v8609_v6 }
 0x41d   :  { %v8521_v41 = vmul.f32 -1.442695, %v2532_v22  ;;  %v8522_v0 = vmul.f32 -1.442695, %v2533_v2  ;;  %v8634_v22 = vor.u32 %v10402_v56, %v8633_v15  ;;  %v8611_v2 = vld [vmem:[#allocation8 + $0xb0] sm:$0xf0] }
 0x41e   :  { %v8614_v58 = vor.u32 %v10395_v5, %v8611_v2  ;;  %2884 = vmatpush.bf16.msra.mxu0 %v8610_v42  ;;  %v8595_v2 = vld [vmem:[#allocation8 + $0x90] sm:$0xf0] }
 0x41f   :  { %10988 = vpow2.f32 %v8521_v41  ;;  %2911 = vmatpush.bf16.msra.mxu2 %v8634_v22  ;;  %v10391_v22 = vld [vmem:[#allocation8 + $0x84] sm:$0xf] }
 0x420   :  { %10990 = vpow2.f32 %v8522_v0  ;;  %2898 = vmatpush.bf16.msra.mxu1 %v8614_v58 }
 0x421   :  { %v2513_v49 = vpop.f32.mrf.mxu2  ;;  %v2527_v31 = vpop.f32.mrf.mxu3 }
 0x422   :  { %v2534_v27 = vadd.f32 %v2513_v49, %v2272_v18  ;;  %v2487_v17 = vpop.f32.mrf.mxu0  ;;  %v2501_v38 = vpop.f32.mrf.mxu1  ;;  %v2535_v30 = vadd.f32 %v2527_v31, %v2273_v28  ;;  %v10393_v31 = vld [vmem:[#allocation8 + $0x8c] sm:$0xf0] }
 0x423   :  { %v2536_v46 = vadd.f32 %v2487_v17, %v2274_v33  ;;  %v2537_v23 = vadd.f32 %v2501_v38, %v2275_v8  ;;  %v2277_v17 = vunpack.c.h.bf16 %v12397_v34  ;;  %2912 = vmatpush.bf16.msra.mxu2 %v8618_v37  ;;  %v10389_v37 = vld [vmem:[#allocation8 + $0x6c] sm:$0xf0]  ;;  %v8598_v34 = vor.u32 %v10391_v22, %v8595_v2  ;;  %v10384_v22 = vld [vmem:[#allocation8 + $0x4c] sm:$0xf]  ;;  %v8571_v2 = vld [vmem:[#allocation8 + $0x58] sm:$0xf0] }
 0x424   :  { %v8523_v40 = vmul.f32 -1.442695, %v2534_v27 }
 0x425   :  { %v10989_v29 = vpop.eup %10988  ;;  %v8524_v9 = vmul.f32 -1.442695, %v2536_v46  ;;  %v8525_v60 = vmul.f32 -1.442695, %v2537_v23  ;;  %2899 = vmatpush.bf16.msra.mxu1 %v8598_v34 }
 0x426   :  { %v10991_v48 = vpop.eup %10990  ;;  %v12399_v55 = vadd.f32 1.0, %v10989_v29  ;;  %10992 = vpow2.f32 %v8523_v40  ;;  %v8593_v40 = vld [vmem:[#allocation8 + $0x80] sm:$0xf] }
 0x427   :  { %v12401_v16 = vadd.f32 1.0, %v10991_v48  ;;  %10994 = vpow2.f32 %v8524_v9  ;;  %v8594_v14 = vor.u32 %v10393_v31, %v8593_v40 }
 0x428   :  { %10996 = vrcp.f32 %v12399_v55  ;;  %v2573_v33 = vand.u32 2147483647, %v12399_v55  ;;  %v2575_v27 = vand.u32 2147483648, %v12399_v55  ;;  %vm2569_vm1 = vweird.f32 %v12399_v55 }
 0x429   :  { %10998 = vrcp.f32 %v12401_v16  ;;  %v2515_v32 = vpop.f32.mrf.mxu2  ;;  %v2529_v51 = vpop.f32.mrf.mxu3  ;;  %v2590_v50 = vand.u32 2147483648, %v12401_v16  ;;  %v2588_v36 = vand.u32 2147483647, %v12401_v16  ;;  %vm2584_vm0 = vweird.f32 %v12401_v16  ;;  %2885 = vmatpush.bf16.msra.mxu0 %v8594_v14  ;;  %v10383_v14 = vld [vmem:[#allocation8 + $0x44] sm:$0xf] }
 0x42a   :  { %11000 = vpow2.f32 %v8525_v60  ;;  %v2538_v59 = vadd.f32 %v2515_v32, %v2276_v43  ;;  %v2539_v23 = vadd.f32 %v2529_v51, %v2277_v17  ;;  %vm12427_vm2 = vcmp.eq.f32.partialorder %v2573_v33, 8.507059e+37  ;;  %v10380_v17 = vld [vmem:[#allocation8 + $0x2c] sm:$0xf] }
 0x42b   :  { %v2576_v45 = vor.u32 1.1754944e-38, %v2575_v27  ;;  %v2591_v53 = vor.u32 1.1754944e-38, %v2590_v50  ;;  %vm12434_vm5 = vcmp.eq.f32.partialorder %v2588_v36, 8.507059e+37 }
 0x42c   :  { %v10993_v41 = vpop.eup %10992  ;;  %v8526_v0 = vmul.f32 -1.442695, %v2538_v59 }
 0x42d   :  { %v10995_v18 = vpop.eup %10994  ;;  %v12407_v62 = vadd.f32 1.0, %v10993_v41  ;;  %v10394_v41 = vld [vmem:[#allocation8 + $0x94] sm:$0xf0] }
 0x42e   :  { %v10997_v49 = vpop.eup %10996  ;;  %v12410_v8 = vadd.f32 1.0, %v10995_v18  ;;  %11002 = vpow2.f32 %v8526_v0  ;;  %v10392_v0 = vld [vmem:[#allocation8 + $0x8c] sm:$0xf]  ;;  %v8577_v18 = vld [vmem:[#allocation8 + $0x60] sm:$0xf]  ;;  %v8602_v40 = vor.u32 %v10394_v41, %v8601_v4 }
 0x42f   :  { %v12412_v21 = vpop.eup %10998  ;;  %v2565_v61 = vmul.f32 %v10997_v49, %v12399_v55  ;;  %11004 = vrcp.f32 %v12407_v62  ;;  %vm2570_vm3 = vweird.f32 %v10997_v49  ;;  %v2603_v56 = vand.u32 2147483647, %v12407_v62  ;;  %v8545_v41 = vld [vmem:[#allocation8 + $0x20] sm:$0xf] }
 0x430   :  { %v11001_v38 = vpop.eup %11000  ;;  %v2580_v3 = vmul.f32 %v12412_v21, %v12401_v16  ;;  %11006 = vtanh.f32 %v2535_v30  ;;  %vm2585_vm4 = vweird.f32 %v12412_v21  ;;  %v2605_v28 = vand.u32 2147483648, %v12407_v62  ;;  %vm2571_vm6 = vmor %vm2569_vm1, %vm2570_vm3  ;;  %2913 = vmatpush.bf16.msra.mxu2 %v8602_v40  ;;  %v10375_v40 = vld [vmem:[#allocation8 + $0x4] sm:$0xf] }
 0x431   :  { %v2566_v24 = vsub.f32 1.0, %v2565_v61  ;;  %11008 = vrcp.f32 %v12410_v8  ;;  %v12423_v46 = vadd.f32 1.0, %v11001_v38  ;;  %vm12456_vm7 = vmor %vm2584_vm0, %vm2585_vm4  ;;  %v2618_v55 = vand.u32 2147483647, %v12410_v8  ;;  %v8579_v38 = vld [vmem:[#allocation8 + $0x70] sm:$0xf0] }
 0x432   :  { %v2581_v54 = vsub.f32 1.0, %v2580_v3  ;;  %vm2614_vm8 = vweird.f32 %v12410_v8  ;;  %v2620_v63 = vand.u32 2147483648, %v12410_v8  ;;  %vm2599_vm9 = vweird.f32 %v12407_v62  ;;  %v8585_v3 = vld [vmem:[#allocation8 + $0x68] sm:$0xf] }
 0x433   :  { %v2567_v47 = vmul.f32 %v10997_v49, %v2566_v24  ;;  %11010 = vrcp.f32 %v12423_v46  ;;  %v2635_v59 = vand.u32 2147483648, %v12423_v46  ;;  %v2633_v51 = vand.u32 2147483647, %v12423_v46  ;;  %v10390_v24 = vld [vmem:[#allocation8 + $0x74] sm:$0xf0] }
 0x434   :  { %v11003_v29 = vpop.eup %11002  ;;  %v2582_v9 = vmul.f32 %v12412_v21, %v2581_v54  ;;  %11012 = vtanh.f32 %v2539_v23  ;;  %vm2629_vm10 = vweird.f32 %v12423_v46  ;;  %vm12483_vm11 = vcmp.eq.f32.partialorder %v2618_v55, 8.507059e+37  ;;  %v10388_v23 = vld [vmem:[#allocation8 + $0x6c] sm:$0xf] }
 0x435   :  { %v12438_v48 = vpop.eup %11004  ;;  %v2568_v60 = vadd.f32 %v10997_v49, %v2567_v47  ;;  %v12440_v1 = vadd.f32 1.0, %v11003_v29  ;;  %v2636_v27 = vor.u32 1.1754944e-38, %v2635_v59  ;;  %v8606_v31 = vor.u32 %v10392_v0, %v8603_v44  ;;  %v8561_v29 = vld [vmem:[#allocation8 + $0x40] sm:$0xf]  ;;  %v10386_v59 = vld [vmem:[#allocation8 + $0x54] sm:$0xf0] }
 0x436   :  { %v11007_v43 = vpop.eup %11006  ;;  %v2595_v15 = vmul.f32 %v12438_v48, %v12407_v62  ;;  %v2583_v32 = vadd.f32 %v12412_v21, %v2582_v9  ;;  %v8578_v47 = vor.u32 %v10389_v37, %v8577_v18  ;;  %v10385_v9 = vld [vmem:[#allocation8 + $0x4c] sm:$0xf0]  ;;  %vm2600_vm14 = vweird.f32 %v12438_v48 }
 0x437   :  { %v12450_v57 = vpop.eup %11008  ;;  %v2572_v6 = vsel %vm2571_vm6, %v10997_v49, %v2568_v60  ;;  %11014 = vrcp.f32 %v12440_v1  ;;  %v2621_v60 = vor.u32 1.1754944e-38, %v2620_v63  ;;  %2927 = vmatpush.bf16.msra.mxu3 %v8606_v31  ;;  %vm2634_vm1 = vcmp.eq.f32.partialorder %v2633_v51, 8.507059e+37  ;;  %v10381_v0 = vld [vmem:[#allocation8 + $0x2c] sm:$0xf0]  ;;  %v8531_v31 = vld [vmem:[#allocation8 + $0x10] sm:$0xf0] }
 0x438   :  { %v2596_v10 = vsub.f32 1.0, %v2595_v15  ;;  %v2577_v5 = vsel %vm12427_vm2, %v2576_v45, %v2572_v6  ;;  %v2587_v16 = vsel %vm12456_vm7, %v12412_v21, %v2583_v32  ;;  %v2610_v30 = vmul.f32 %v12450_v57, %v12410_v8  ;;  %v8587_v45 = vld [vmem:[#allocation8 + $0x78] sm:$0xf0]  ;;  %v8569_v6 = vld [vmem:[#allocation8 + $0x48] sm:$0xf]  ;;  %2886 = vmatpush.bf16.msra.mxu0 %v8578_v47  ;;  %vm12524_vm2 = vmor %vm2599_vm9, %vm2600_vm14 }
 0x439   :  { %v12470_v42 = vpop.eup %11010  ;;  %v2592_v58 = vsel %vm12434_vm5, %v2591_v53, %v2587_v16  ;;  %v2658_v35 = vmul.f32 %v11007_v43, %v2577_v5  ;;  %vm2615_vm12 = vweird.f32 %v12450_v57  ;;  %v8582_v15 = vor.u32 %v10387_v7, %v8579_v38  ;;  %v8553_v7 = vld [vmem:[#allocation8 + $0x28] sm:$0xf]  ;;  %v8555_v38 = vld [vmem:[#allocation8 + $0x38] sm:$0xf0] }
 0x43a   :  { %v2656_v39 = vmul.f32 %v2592_v58, %v12313_v25  ;;  %v2611_v49 = vsub.f32 1.0, %v2610_v30  ;;  %v2625_v33 = vmul.f32 %v12470_v42, %v12423_v46  ;;  %v11013_v21 = vpop.eup %11012  ;;  %v2597_v61 = vmul.f32 %v12438_v48, %v2596_v10  ;;  %vm12503_vm15 = vmor %vm2614_vm8, %vm2615_vm12  ;;  %v8537_v47 = vld [vmem:[#allocation8 + $0x8] sm:$0xf] }
 0x43b   :  { %vm2630_vm13 = vweird.f32 %v12470_v42  ;;  %v8586_v32 = vor.u32 %v10390_v24, %v8585_v3  ;;  %v8590_v16 = vor.u32 %v10388_v23, %v8587_v45  ;;  %v8562_v30 = vor.u32 %v10385_v9, %v8561_v29  ;;  %2900 = vmatpush.bf16.msra.mxu1 %v8582_v15  ;;  %v8529_v3 = vld [vmem:[#allocation8] sm:$0xf]  ;;  %v10378_v45 = vld [vmem:[#allocation8 + $0x14] sm:$0xf0]  ;;  %v10376_v9 = vld [vmem:[#allocation8 + $0xc] sm:$0xf] }
 0x43c   :  { %v12487_v25 = vadd.f32 %v2658_v35, %v2656_v39  ;;  %v2626_v50 = vsub.f32 1.0, %v2625_v33  ;;  %v2612_v36 = vmul.f32 %v12450_v57, %v2611_v49  ;;  %v2598_v4 = vadd.f32 %v12438_v48, %v2597_v61  ;;  %vm2631_vm0 = vmor %vm2629_vm10, %vm2630_vm13  ;;  %v10379_v39 = vld [vmem:[#allocation8 + $0x24] sm:$0xf]  ;;  %v8547_v49 = vld [vmem:[#allocation8 + $0x30] sm:$0xf0] }
 0x43d   :  { %v12491_v54 = vpop.eup %11014  ;;  %v8566_v35 = vor.u32 %v10383_v14, %v8563_v26  ;;  %v8570_v63 = vor.u32 %v10386_v59, %v8569_v6  ;;  %2914 = vmatpush.bf16.msra.mxu2 %v8586_v32  ;;  %2928 = vmatpush.bf16.msra.mxu3 %v8590_v16  ;;  %v8574_v33 = vor.u32 %v10384_v22, %v8571_v2  ;;  %v10382_v61 = vld [vmem:[#allocation8 + $0x34] sm:$0xf0]  ;;  %vm12535_vm3 = vcmp.eq.f32.partialorder %v2603_v56, 8.507059e+37 }
 0x43e   :  { %v2627_v53 = vmul.f32 %v12470_v42, %v2626_v50  ;;  %v2640_v52 = vmul.f32 %v12491_v54, %v12440_v1  ;;  %v2613_v43 = vadd.f32 %v12450_v57, %v2612_v36  ;;  %11016 = vtanh.f32 %v12487_v25  ;;  %2887 = vmatpush.bf16.msra.mxu0 %v8562_v30  ;;  %v10377_v50 = vld [vmem:[#allocation8 + $0xc] sm:$0xf0] }
 0x43f   :  { %v8546_v51 = vor.u32 %v10381_v0, %v8545_v41  ;;  %vm2645_vm4 = vweird.f32 %v12491_v54  ;;  %2901 = vmatpush.bf16.msra.mxu1 %v8566_v35  ;;  %v8550_v34 = vor.u32 %v10379_v39, %v8547_v49  ;;  %v2650_v56 = vand.u32 2147483648, %v12440_v1  ;;  %v14561_v41 = vld [vmem:[#allocation23_spill] sm:$0xff]  ;;  %v8775_v39 = vld [vmem:[#allocation8 + $0xe0] sm:$0xf]  ;;  %v10437_v49 = vld [vmem:[#allocation8 + $0xec] sm:$0xf0] }
 0x440   :  { %v2641_v55 = vsub.f32 1.0, %v2640_v52  ;;  %v2628_v5 = vadd.f32 %v12470_v42, %v2627_v53  ;;  %v2617_v8 = vsel %vm12503_vm15, %v12450_v57, %v2613_v43  ;;  %v8558_v62 = vor.u32 %v10380_v17, %v8555_v38  ;;  %v8539_v53 = vld [vmem:[#allocation8 + $0x18] sm:$0xf0]  ;;  %v8783_v38 = vld [vmem:[#allocation8 + $0xe8] sm:$0xf] }
 0x441   :  { %v2622_v44 = vsel %vm12483_vm11, %v2621_v60, %v2617_v8  ;;  %2915 = vmatpush.bf16.msra.mxu2 %v8570_v63  ;;  %2929 = vmatpush.bf16.msra.mxu3 %v8574_v33  ;;  %vm2644_vm5 = vweird.f32 %v12440_v1  ;;  %v2648_v29 = vand.u32 2147483647, %v12440_v1  ;;  %v8534_v52 = vor.u32 %v10375_v40, %v8531_v31  ;;  %v8777_v33 = vld [vmem:[#allocation8 + $0xf0] sm:$0xf0] }
 0x442   :  { %v2632_v58 = vsel %vm2631_vm0, %v12470_v42, %v2628_v5  ;;  %v2642_v57 = vmul.f32 %v12491_v54, %v2641_v55  ;;  %v2659_v37 = vmul.f32 %v11013_v21, %v2622_v44  ;;  %v2602_v21 = vsel %vm12524_vm2, %v12438_v48, %v2598_v4  ;;  %2888 = vmatpush.bf16.msra.mxu0 %v8546_v51  ;;  %vm2646_vm6 = vmor %vm2644_vm5, %vm2645_vm4  ;;  %v14560_v4 = vld [vmem:[#allocation25_spill] sm:$0xff]  ;;  %v14562_v51 = vld [vmem:[#allocation26_spill] sm:$0xff] }
 0x443   :  { %v2637_v18 = vsel %vm2634_vm1, %v2636_v27, %v2632_v58  ;;  %v8554_v48 = vor.u32 %v10382_v61, %v8553_v7  ;;  %2902 = vmatpush.bf16.msra.mxu1 %v8550_v34  ;;  %v8538_v14 = vor.u32 %v10378_v45, %v8537_v47  ;;  %v2651_v32 = vor.u32 1.1754944e-38, %v2650_v56  ;;  %v8785_v34 = vld [vmem:[#allocation8 + $0xf8] sm:$0xf0]  ;;  %v10431_v47 = vld [vmem:[#allocation8 + $0xc4] sm:$0xf] }
 0x444   :  { %v2657_v42 = vmul.f32 %v2637_v18, %v12369_v13  ;;  %v2606_v13 = vor.u32 1.1754944e-38, %v2605_v28  ;;  %v11017_v24 = vpop.eup %11016  ;;  %v2643_v23 = vadd.f32 %v12491_v54, %v2642_v57  ;;  %v8530_v28 = vor.u32 %v10377_v50, %v8529_v3  ;;  %v10438_v3 = vld [vmem:[#allocation8 + $0xf4] sm:$0xf0]  ;;  %v10436_v50 = vld [vmem:[#allocation8 + $0xec] sm:$0xf] }
 0x445   :  { %2916 = vmatpush.bf16.msra.mxu2 %v8554_v48  ;;  %2930 = vmatpush.bf16.msra.mxu3 %v8558_v62  ;;  %v8542_v26 = vor.u32 %v10376_v9, %v8539_v53  ;;  %vm2649_vm7 = vcmp.eq.f32.partialorder %v2648_v29, 8.507059e+37  ;;  %v470_v8 = vadd.f32 %v14560_v4, %v11587_v12  ;;  %v2676_v0 = vunpack.c.l.bf16 %v14561_v41  ;;  %v8759_v62 = vld [vmem:[#allocation8 + $0xc0] sm:$0xf] }
 0x446   :  { %v12541_v36 = vadd.f32 %v2659_v37, %v2657_v42  ;;  %v2607_v60 = vsel %vm12535_vm3, %v2606_v13, %v2602_v21  ;;  %v2647_v43 = vsel %vm2646_vm6, %v12491_v54, %v2643_v23  ;;  %2889 = vmatpush.bf16.msra.mxu0 %v8530_v28  ;;  %v14559_v54 = vld [vmem:[#allocation24_spill] sm:$0xff]  ;;  %v2677_v44 = vunpack.c.h.bf16 %v14561_v41  ;;  %v14563_v21 = vld [vmem:[#allocation27_spill] sm:$0xff]  ;;  %v10433_v28 = vld [vmem:[#allocation8 + $0xcc] sm:$0xf0] }
 0x447   :  { %v2664_v15 = vmul.f32 %v11017_v24, %v2607_v60  ;;  %v2652_v6 = vsel %vm2649_vm7, %v2651_v32, %v2647_v43  ;;  %2903 = vmatpush.bf16.msra.mxu1 %v8534_v52  ;;  %v421_v2 = vadd.f32 %v14559_v54, %v11585_v11  ;;  %v10435_v42 = vld [vmem:[#allocation8 + $0xe4] sm:$0xf]  ;;  %v2678_v7 = vunpack.c.l.bf16 %v14562_v51  ;;  %v8761_v52 = vld [vmem:[#allocation8 + $0xd0] sm:$0xf0]  ;;  %v8767_v60 = vld [vmem:[#allocation8 + $0xc8] sm:$0xf] }
 0x448   :  { %11018 = vtanh.f32 %v12541_v36  ;;  %v8776_v61 = vor.u32 %v10437_v49, %v8775_v39  ;;  %v8780_v17 = vor.u32 %v10435_v42, %v8777_v33  ;;  %v519_v27 = vadd.f32 %v14563_v21, %v11593_v19  ;;  %v14564_v13 = vld [vmem:[#allocation28_spill] sm:$0xff]  ;;  %v8753_v49 = vld [vmem:[#allocation8 + $0xb8] sm:$0xf0] }
 0x449   :  { %2917 = vmatpush.bf16.msra.mxu2 %v8538_v14  ;;  %v2666_v55 = vpack.c.bf16 %v2664_v15, %v2664_v15  ;;  %2931 = vmatpush.bf16.msra.mxu3 %v8542_v26  ;;  %v602_v57 = vpack.c.bf16 %v470_v8, %v421_v2  ;;  %v568_v24 = vadd.f32 %v14564_v13, %v11595_v20  ;;  %v10434_v14 = vld [vmem:[#allocation8 + $0xd4] sm:$0xf0]  ;;  %v10429_v8 = vld [vmem:[#allocation8 + $0xac] sm:$0xf0]  ;;  %v8727_v42 = vld [vmem:[#allocation8 + $0x80] sm:$0xf] }
 0x44a   :  { %v8784_v23 = vor.u32 %v10438_v3, %v8783_v38  ;;  %3288 = vmatpush.bf16.msrb.mxu0 %v8776_v61  ;;  %v8788_v56 = vor.u32 %v10436_v50, %v8785_v34  ;;  %v8760_v53 = vor.u32 %v10433_v28, %v8759_v62  ;;  %v8764_v32 = vor.u32 %v10431_v47, %v8761_v52  ;;  %v10425_v61 = vld [vmem:[#allocation8 + $0x8c] sm:$0xf0]  ;;  %v8729_v13 = vld [vmem:[#allocation8 + $0x90] sm:$0xf0] }
 0x44b   :  { %v2718_v16 = vunpack.c.l.b16 %v2666_v55  ;;  %v2680_v40 = vunpack.c.l.bf16 %v602_v57  ;;  %v2681_v31 = vunpack.c.h.bf16 %v602_v57  ;;  %3302 = vmatpush.bf16.msrb.mxu1 %v8780_v17  ;;  %v8768_v26 = vor.u32 %v10434_v14, %v8767_v60  ;;  %v8751_v57 = vld [vmem:[#allocation8 + $0xa8] sm:$0xf]  ;;  %v10423_v17 = vld [vmem:[#allocation8 + $0x84] sm:$0xf] }
 0x44c   :  { %v8732_v34 = vor.u32 %v10423_v17, %v8729_v13  ;;  %v8713_v17 = vld [vmem:[#allocation8 + $0x70] sm:$0xf0] }
 0x44d   :  { %3316 = vmatpush.bf16.msrb.mxu2 %v8784_v23  ;;  %3330 = vmatpush.bf16.msrb.mxu3 %v8788_v56 }
 0x44e   :  { %v11019_v1 = vpop.eup %11018  ;;  %3289 = vmatpush.bf16.msrb.mxu0 %v8760_v53 }
 0x44f   :  { %v2665_v59 = vmul.f32 %v11019_v1, %v2652_v6  ;;  %v10432_v1 = vld [vmem:[#allocation8 + $0xcc] sm:$0xf]  ;;  %v8769_v6 = vld [vmem:[#allocation8 + $0xd8] sm:$0xf0]  ;;  %3303 = vmatpush.bf16.msrb.mxu1 %v8764_v32 }
 0x451   :  { %v2667_v10 = vpack.c.bf16 %v2665_v59, %v2665_v59  ;;  %v10790_v5 = vpack.c.bf16 %v2665_v59, %v2664_v15  ;;  %v12565_v59 = vpack.c.bf16 %v568_v24, %v519_v27  ;;  %3317 = vmatpush.bf16.msrb.mxu2 %v8768_v26  ;;  %v8728_v27 = vor.u32 %v10425_v61, %v8727_v42  ;;  %v10419_v61 = vld [vmem:[#allocation8 + $0x64] sm:$0xf] }
 0x453   :  { %10791 = vst [vmem:[#allocation3 + $0x8] sm:$0xff] %v10790_v5   ;;  %v2719_v30 = vunpack.c.l.b16 %v2667_v10  ;;  %v8772_v10 = vor.u32 %v10432_v1, %v8769_v6  ;;  %v10424_v1 = vld [vmem:[#allocation8 + $0x8c] sm:$0xf]  ;;  %v8737_v6 = vld [vmem:[#allocation8 + $0x98] sm:$0xf0] }
 0x455   :  { %v2720_v22 = vpack.c.b16 %v2719_v30, %v2718_v16  ;;  %3331 = vmatpush.bf16.msrb.mxu3 %v8772_v10 }
 0x457   :  { %2890 = vmatmul.bf16.vlgmr.msra.gmra.mxu0 %v2720_v22  ;;  %2904 = vmatmul.bf16.vlgmr.msra.gmra.mxu1 %v2720_v22 }
 0x458   :  { %2918 = vmatmul.bf16.vlgmr.msra.gmra.mxu2 %v2720_v22  ;;  %2932 = vmatmul.bf16.vlgmr.msra.gmra.mxu3 %v2720_v22  ;;  %v8743_v22 = vld [vmem:[#allocation8 + $0xa0] sm:$0xf] }
 0x4d4   :  { %v2891_v58 = vpop.f32.mrf.mxu0  ;;  %v2905_v35 = vpop.f32.mrf.mxu1 }
 0x4d5   :  { %v2938_v63 = vadd.f32 %v2891_v58, %v2676_v0  ;;  %v2939_v46 = vadd.f32 %v2905_v35, %v2677_v44  ;;  %v8744_v0 = vor.u32 %v10429_v8, %v8743_v22  ;;  %v2682_v44 = vunpack.c.l.bf16 %v12565_v59  ;;  %v10427_v58 = vld [vmem:[#allocation8 + $0xa4] sm:$0xf]  ;;  %v8745_v35 = vld [vmem:[#allocation8 + $0xb0] sm:$0xf0] }
 0x4d7   :  { %v8655_v18 = vmul.f32 -1.442695, %v2938_v63  ;;  %v8656_v37 = vmul.f32 -1.442695, %v2939_v46  ;;  %v2679_v63 = vunpack.c.h.bf16 %v14562_v51  ;;  %3290 = vmatpush.bf16.msrb.mxu0 %v8744_v0  ;;  %v8735_v51 = vld [vmem:[#allocation8 + $0x88] sm:$0xf]  ;;  %v8740_v0 = vor.u32 %v10424_v1, %v8737_v6 }
 0x4d8   :  { %v8716_v1 = vor.u32 %v10419_v61, %v8713_v17  ;;  %v10412_v61 = vld [vmem:[#allocation8 + $0x2c] sm:$0xf]  ;;  %v8689_v17 = vld [vmem:[#allocation8 + $0x38] sm:$0xf0] }
 0x4d9   :  { %11020 = vpow2.f32 %v8655_v18  ;;  %v10430_v18 = vld [vmem:[#allocation8 + $0xb4] sm:$0xf0] }
 0x4da   :  { %11022 = vpow2.f32 %v8656_v37  ;;  %v10428_v37 = vld [vmem:[#allocation8 + $0xac] sm:$0xf]  ;;  %v8752_v50 = vor.u32 %v10430_v18, %v8751_v57  ;;  %v10411_v57 = vld [vmem:[#allocation8 + $0x24] sm:$0xf] }
 0x4db   :  { %v2919_v48 = vpop.f32.mrf.mxu2  ;;  %v2933_v16 = vpop.f32.mrf.mxu3  ;;  %v8756_v21 = vor.u32 %v10428_v37, %v8753_v49  ;;  %3291 = vmatpush.bf16.msrb.mxu0 %v8728_v27 }
 0x4dc   :  { %v2940_v45 = vadd.f32 %v2919_v48, %v2678_v7  ;;  %v2893_v29 = vpop.f32.mrf.mxu0  ;;  %v2907_v9 = vpop.f32.mrf.mxu1  ;;  %v2941_v33 = vadd.f32 %v2933_v16, %v2679_v63  ;;  %v8748_v7 = vor.u32 %v10427_v58, %v8745_v35  ;;  %v10426_v48 = vld [vmem:[#allocation8 + $0x94] sm:$0xf0]  ;;  %3318 = vmatpush.bf16.msrb.mxu2 %v8752_v50 }
 0x4dd   :  { %v2942_v43 = vadd.f32 %v2893_v29, %v2680_v40  ;;  %v2943_v15 = vadd.f32 %v2907_v9, %v2681_v31  ;;  %3332 = vmatpush.bf16.msrb.mxu3 %v8756_v21  ;;  %v8736_v56 = vor.u32 %v10426_v48, %v8735_v51  ;;  %v10420_v51 = vld [vmem:[#allocation8 + $0x6c] sm:$0xf] }
 0x4de   :  { %v8657_v55 = vmul.f32 -1.442695, %v2940_v45  ;;  %3304 = vmatpush.bf16.msrb.mxu1 %v8748_v7  ;;  %v2683_v45 = vunpack.c.h.bf16 %v12565_v59  ;;  %v10421_v7 = vld [vmem:[#allocation8 + $0x6c] sm:$0xf0] }
 0x4df   :  { %v11021_v5 = vpop.eup %11020  ;;  %v8658_v30 = vmul.f32 -1.442695, %v2942_v43  ;;  %v8659_v4 = vmul.f32 -1.442695, %v2943_v15 }
 0x4e0   :  { %v11023_v54 = vpop.eup %11022  ;;  %v12567_v2 = vadd.f32 1.0, %v11021_v5  ;;  %11024 = vpow2.f32 %v8657_v55  ;;  %3319 = vmatpush.bf16.msrb.mxu2 %v8736_v56  ;;  %v10418_v55 = vld [vmem:[#allocation8 + $0x54] sm:$0xf0] }
 0x4e1   :  { %v12569_v41 = vadd.f32 1.0, %v11023_v54  ;;  %11026 = vpow2.f32 %v8658_v30  ;;  %3333 = vmatpush.bf16.msrb.mxu3 %v8740_v0 }
 0x4e2   :  { %11028 = vrcp.f32 %v12567_v2  ;;  %v2979_v47 = vand.u32 2147483647, %v12567_v2  ;;  %v2981_v60 = vand.u32 2147483648, %v12567_v2  ;;  %3305 = vmatpush.bf16.msrb.mxu1 %v8732_v34  ;;  %vm2975_vm9 = vweird.f32 %v12567_v2 }
 0x4e3   :  { %11030 = vrcp.f32 %v12569_v41  ;;  %v2921_v46 = vpop.f32.mrf.mxu2  ;;  %v2935_v29 = vpop.f32.mrf.mxu3  ;;  %v2996_v52 = vand.u32 2147483648, %v12569_v41  ;;  %v2994_v43 = vand.u32 2147483647, %v12569_v41  ;;  %vm2990_vm8 = vweird.f32 %v12569_v41 }
 0x4e4   :  { %11032 = vpow2.f32 %v8659_v4  ;;  %v2944_v39 = vadd.f32 %v2921_v46, %v2682_v44  ;;  %v2945_v26 = vadd.f32 %v2935_v29, %v2683_v45  ;;  %vm12595_vm11 = vcmp.eq.f32.partialorder %v2979_v47, 8.507059e+37  ;;  %v10417_v29 = vld [vmem:[#allocation8 + $0x4c] sm:$0xf0]  ;;  %v8679_v4 = vld [vmem:[#allocation8 + $0x20] sm:$0xf] }
 0x4e5   :  { %v2997_v16 = vor.u32 1.1754944e-38, %v2996_v52  ;;  %v2982_v30 = vor.u32 1.1754944e-38, %v2981_v60  ;;  %vm12604_vm13 = vcmp.eq.f32.partialorder %v2994_v43, 8.507059e+37  ;;  %v8703_v43 = vld [vmem:[#allocation8 + $0x48] sm:$0xf] }
 0x4e6   :  { %v11025_v38 = vpop.eup %11024  ;;  %v8660_v3 = vmul.f32 -1.442695, %v2944_v39  ;;  %3306 = vmatpush.bf16.msrb.mxu1 %v8716_v1  ;;  %v8671_v45 = vld [vmem:[#allocation8 + $0x8] sm:$0xf] }
 0x4e7   :  { %v11027_v24 = vpop.eup %11026  ;;  %v12575_v23 = vadd.f32 1.0, %v11025_v38  ;;  %v8719_v38 = vld [vmem:[#allocation8 + $0x68] sm:$0xf] }
 0x4e8   :  { %v11029_v40 = vpop.eup %11028  ;;  %v12577_v31 = vadd.f32 1.0, %v11027_v24  ;;  %11034 = vpow2.f32 %v8660_v3  ;;  %v10422_v3 = vld [vmem:[#allocation8 + $0x74] sm:$0xf0]  ;;  %v8721_v24 = vld [vmem:[#allocation8 + $0x78] sm:$0xf0] }
 0x4e9   :  { %v12579_v62 = vpop.eup %11030  ;;  %v2971_v28 = vmul.f32 %v11029_v40, %v12567_v2  ;;  %11036 = vrcp.f32 %v12575_v23  ;;  %vm2976_vm10 = vweird.f32 %v11029_v40  ;;  %v3011_v35 = vand.u32 2147483648, %v12575_v23 }
 0x4ea   :  { %v11033_v9 = vpop.eup %11032  ;;  %v2986_v53 = vmul.f32 %v12579_v62, %v12569_v41  ;;  %11038 = vtanh.f32 %v2941_v33  ;;  %vm2991_vm12 = vweird.f32 %v12579_v62  ;;  %vm2977_vm14 = vmor %vm2975_vm9, %vm2976_vm10  ;;  %v3024_v2 = vand.u32 2147483647, %v12577_v31  ;;  %v8711_v33 = vld [vmem:[#allocation8 + $0x60] sm:$0xf] }
 0x4eb   :  { %v2972_v14 = vsub.f32 1.0, %v2971_v28  ;;  %11040 = vrcp.f32 %v12577_v31  ;;  %v12591_v15 = vadd.f32 1.0, %v11033_v9  ;;  %vm12623_vm15 = vmor %vm2990_vm8, %vm2991_vm12  ;;  %vm3020_vm0 = vweird.f32 %v12577_v31  ;;  %v10415_v9 = vld [vmem:[#allocation8 + $0x44] sm:$0xf] }
 0x4ec   :  { %v2987_v32 = vsub.f32 1.0, %v2986_v53  ;;  %v3026_v13 = vand.u32 2147483648, %v12577_v31  ;;  %vm3005_vm1 = vweird.f32 %v12575_v23  ;;  %vm12650_vm3 = vcmp.eq.f32.partialorder %v3024_v2, 8.507059e+37  ;;  %v8917_v2 = vld [vmem:[#allocation8 + $0xe8] sm:$0xf] }
 0x4ed   :  { %v2973_v59 = vmul.f32 %v11029_v40, %v2972_v14  ;;  %11042 = vrcp.f32 %v12591_v15  ;;  %v3041_v37 = vand.u32 2147483648, %v12591_v15  ;;  %v3039_v56 = vand.u32 2147483647, %v12591_v15  ;;  %v8697_v14 = vld [vmem:[#allocation8 + $0x50] sm:$0xf0] }
 0x4ee   :  { %v11035_v10 = vpop.eup %11034  ;;  %v2988_v5 = vmul.f32 %v12579_v62, %v2987_v32  ;;  %11044 = vtanh.f32 %v2945_v26  ;;  %vm3035_vm2 = vweird.f32 %v12591_v15  ;;  %v8712_v26 = vor.u32 %v10421_v7, %v8711_v33  ;;  %v10414_v33 = vld [vmem:[#allocation8 + $0x34] sm:$0xf0] }
 0x4ef   :  { %v12602_v22 = vpop.eup %11036  ;;  %v2974_v54 = vadd.f32 %v11029_v40, %v2973_v59  ;;  %v12608_v8 = vadd.f32 1.0, %v11035_v10  ;;  %v3042_v47 = vor.u32 1.1754944e-38, %v3041_v37  ;;  %v8720_v6 = vor.u32 %v10422_v3, %v8719_v38  ;;  %v10416_v10 = vld [vmem:[#allocation8 + $0x4c] sm:$0xf] }
 0x4f0   :  { %v11039_v44 = vpop.eup %11038  ;;  %v3001_v58 = vmul.f32 %v12602_v22, %v12575_v23  ;;  %v2989_v63 = vadd.f32 %v12579_v62, %v2988_v5  ;;  %v8724_v59 = vor.u32 %v10420_v51, %v8721_v24  ;;  %v8705_v5 = vld [vmem:[#allocation8 + $0x58] sm:$0xf0]  ;;  %vm3006_vm6 = vweird.f32 %v12602_v22  ;;  %3292 = vmatpush.bf16.msrb.mxu0 %v8712_v26 }
 0x4f1   :  { %v12617_v46 = vpop.eup %11040  ;;  %v2978_v18 = vsel %vm2977_vm14, %v11029_v40, %v2974_v54  ;;  %11046 = vrcp.f32 %v12608_v8  ;;  %v3027_v54 = vor.u32 1.1754944e-38, %v3026_v13  ;;  %3320 = vmatpush.bf16.msrb.mxu2 %v8720_v6  ;;  %vm3040_vm9 = vcmp.eq.f32.partialorder %v3039_v56, 8.507059e+37  ;;  %vm12691_vm10 = vmor %vm3005_vm1, %vm3006_vm6 }
 0x4f2   :  { %v3002_v39 = vsub.f32 1.0, %v3001_v58  ;;  %v2983_v49 = vsel %vm12595_vm11, %v2982_v30, %v2978_v18  ;;  %v2993_v41 = vsel %vm12623_vm15, %v12579_v62, %v2989_v63  ;;  %v3016_v42 = vmul.f32 %v12617_v46, %v12577_v31  ;;  %v8695_v62 = vld [vmem:[#allocation8 + $0x40] sm:$0xf]  ;;  %v10413_v63 = vld [vmem:[#allocation8 + $0x2c] sm:$0xf0]  ;;  %3334 = vmatpush.bf16.msrb.mxu3 %v8724_v59 }
 0x4f3   :  { %v12637_v50 = vpop.eup %11042  ;;  %v2998_v21 = vsel %vm12604_vm13, %v2997_v16, %v2993_v41  ;;  %v3064_v27 = vmul.f32 %v11039_v44, %v2983_v49  ;;  %vm3021_vm4 = vweird.f32 %v12617_v46  ;;  %v8696_v44 = vor.u32 %v10417_v29, %v8695_v62  ;;  %v8681_v18 = vld [vmem:[#allocation8 + $0x30] sm:$0xf0]  ;;  %v10407_v62 = vld [vmem:[#allocation8 + $0x4] sm:$0xf]  ;;  %v10410_v29 = vld [vmem:[#allocation8 + $0x14] sm:$0xf0] }
 0x4f4   :  { %v3062_v34 = vmul.f32 %v2998_v21, %v12487_v25  ;;  %v3017_v48 = vsub.f32 1.0, %v3016_v42  ;;  %v3031_v40 = vmul.f32 %v12637_v50, %v12591_v15  ;;  %v3003_v28 = vmul.f32 %v12602_v22, %v3002_v39  ;;  %v11045_v53 = vpop.eup %11044  ;;  %vm12670_vm7 = vmor %vm3020_vm0, %vm3021_vm4  ;;  %v8687_v42 = vld [vmem:[#allocation8 + $0x28] sm:$0xf] }
 0x4f5   :  { %vm3036_vm5 = vweird.f32 %v12637_v50  ;;  %v8700_v58 = vor.u32 %v10415_v9, %v8697_v14  ;;  %v8704_v49 = vor.u32 %v10418_v55, %v8703_v43  ;;  %v8708_v41 = vor.u32 %v10416_v10, %v8705_v5  ;;  %3293 = vmatpush.bf16.msrb.mxu0 %v8696_v44  ;;  %v10408_v9 = vld [vmem:[#allocation8 + $0xc] sm:$0xf] }
 0x4f6   :  { %v12654_v25 = vadd.f32 %v3064_v27, %v3062_v34  ;;  %v3032_v52 = vsub.f32 1.0, %v3031_v40  ;;  %v3018_v60 = vmul.f32 %v12617_v46, %v3017_v48  ;;  %v3004_v7 = vadd.f32 %v12602_v22, %v3003_v28  ;;  %vm3037_vm8 = vmor %vm3035_vm2, %vm3036_vm5  ;;  %v8663_v34 = vld [vmem:[#allocation8] sm:$0xf]  ;;  %v8665_v28 = vld [vmem:[#allocation8 + $0x10] sm:$0xf0] }
 0x4f7   :  { %v12658_v32 = vpop.eup %11046  ;;  %v8680_v21 = vor.u32 %v10413_v63, %v8679_v4  ;;  %v8684_v27 = vor.u32 %v10411_v57, %v8681_v18  ;;  %3307 = vmatpush.bf16.msrb.mxu1 %v8700_v58  ;;  %3321 = vmatpush.bf16.msrb.mxu2 %v8704_v49  ;;  %v8688_v40 = vor.u32 %v10414_v33, %v8687_v42  ;;  %v3056_v1 = vand.u32 2147483648, %v12608_v8  ;;  %v10469_v63 = vld [vmem:[#allocation8 + $0xec] sm:$0xf0]  ;;  %v10467_v57 = vld [vmem:[#allocation8 + $0xe4] sm:$0xf] }
 0x4f8   :  { %v3033_v16 = vmul.f32 %v12637_v50, %v3032_v52  ;;  %v3046_v30 = vmul.f32 %v12658_v32, %v12608_v8  ;;  %v3019_v0 = vadd.f32 %v12617_v46, %v3018_v60  ;;  %11048 = vtanh.f32 %v12654_v25  ;;  %3335 = vmatpush.bf16.msrb.mxu3 %v8708_v41  ;;  %v8673_v52 = vld [vmem:[#allocation8 + $0x18] sm:$0xf0]  ;;  %v10468_v42 = vld [vmem:[#allocation8 + $0xec] sm:$0xf] }
 0x4f9   :  { %v8692_v56 = vor.u32 %v10412_v61, %v8689_v17  ;;  %vm3051_vm11 = vweird.f32 %v12658_v32  ;;  %3294 = vmatpush.bf16.msrb.mxu0 %v8680_v21  ;;  %v8668_v26 = vor.u32 %v10407_v62, %v8665_v28  ;;  %vm3050_vm13 = vweird.f32 %v12608_v8  ;;  %v8919_v33 = vld [vmem:[#allocation8 + $0xf8] sm:$0xf0]  ;;  %v10465_v61 = vld [vmem:[#allocation8 + $0xcc] sm:$0xf0]  ;;  %v10463_v17 = vld [vmem:[#allocation8 + $0xc4] sm:$0xf] }
 0x4fa   :  { %v3047_v37 = vsub.f32 1.0, %v3046_v30  ;;  %v3034_v39 = vadd.f32 %v12637_v50, %v3033_v16  ;;  %v3023_v31 = vsel %vm12670_vm7, %v12617_v46, %v3019_v0  ;;  %v3009_v46 = vand.u32 2147483647, %v12575_v23  ;;  %vm3052_vm14 = vmor %vm3050_vm13, %vm3051_vm11  ;;  %v8901_v21 = vld [vmem:[#allocation8 + $0xc8] sm:$0xf] }
 0x4fb   :  { %v3028_v38 = vsel %vm12650_vm3, %v3027_v54, %v3023_v31  ;;  %3308 = vmatpush.bf16.msrb.mxu1 %v8684_v27  ;;  %3322 = vmatpush.bf16.msrb.mxu2 %v8688_v40  ;;  %v8676_v23 = vor.u32 %v10408_v9, %v8673_v52  ;;  %v3057_v10 = vor.u32 1.1754944e-38, %v3056_v1  ;;  %v8893_v31 = vld [vmem:[#allocation8 + $0xc0] sm:$0xf]  ;;  %v10466_v27 = vld [vmem:[#allocation8 + $0xd4] sm:$0xf0] }
 0x4fc   :  { %v3038_v3 = vsel %vm3037_vm8, %v12637_v50, %v3034_v39  ;;  %v3048_v13 = vmul.f32 %v12658_v32, %v3047_v37  ;;  %v3065_v24 = vmul.f32 %v11045_v53, %v3028_v38  ;;  %v10409_v50 = vld [vmem:[#allocation8 + $0xc] sm:$0xf0]  ;;  %v3012_v53 = vor.u32 1.1754944e-38, %v3011_v35  ;;  %3336 = vmatpush.bf16.msrb.mxu3 %v8692_v56  ;;  %v8911_v37 = vld [vmem:[#allocation8 + $0xf0] sm:$0xf0] }
 0x4fd   :  { %v3043_v51 = vsel %vm3040_vm9, %v3042_v47, %v3038_v3  ;;  %v3008_v47 = vsel %vm12691_vm10, %v12602_v22, %v3004_v7  ;;  %v8664_v43 = vor.u32 %v10409_v50, %v8663_v34  ;;  %v8672_v22 = vor.u32 %v10410_v29, %v8671_v45  ;;  %v10470_v39 = vld [vmem:[#allocation8 + $0xf4] sm:$0xf0]  ;;  %v8895_v3 = vld [vmem:[#allocation8 + $0xd0] sm:$0xf0]  ;;  %v8877_v34 = vld [vmem:[#allocation8 + $0xa0] sm:$0xf] }
 0x4fe   :  { %v3063_v48 = vmul.f32 %v3043_v51, %v12541_v36  ;;  %v11049_v36 = vpop.eup %11048  ;;  %v3049_v14 = vadd.f32 %v12658_v32, %v3048_v13  ;;  %vm3010_vm12 = vcmp.eq.f32.partialorder %v3009_v46, 8.507059e+37  ;;  %v3054_v35 = vand.u32 2147483647, %v12608_v8  ;;  %v10464_v13 = vld [vmem:[#allocation8 + $0xcc] sm:$0xf] }
 0x4ff   :  { %v3013_v6 = vsel %vm3010_vm12, %v3012_v53, %v3008_v47  ;;  %3295 = vmatpush.bf16.msrb.mxu0 %v8664_v43  ;;  %3309 = vmatpush.bf16.msrb.mxu1 %v8668_v26  ;;  %v8914_v49 = vor.u32 %v10467_v57, %v8911_v37  ;;  %v8918_v41 = vor.u32 %v10470_v39, %v8917_v2  ;;  %v8903_v51 = vld [vmem:[#allocation8 + $0xd8] sm:$0xf0]  ;;  %v10461_v50 = vld [vmem:[#allocation8 + $0xac] sm:$0xf0]  ;;  %v8879_v56 = vld [vmem:[#allocation8 + $0xb0] sm:$0xf0] }
 0x500   :  { %v12703_v60 = vadd.f32 %v3065_v24, %v3063_v48  ;;  %v3053_v59 = vsel %vm3052_vm14, %v12658_v32, %v3049_v14  ;;  %v3070_v55 = vmul.f32 %v11049_v36, %v3013_v6  ;;  %3323 = vmatpush.bf16.msrb.mxu2 %v8672_v22  ;;  %3337 = vmatpush.bf16.msrb.mxu3 %v8676_v23  ;;  %vm3055_vm15 = vcmp.eq.f32.partialorder %v3054_v35, 8.507059e+37  ;;  %v8909_v32 = vld [vmem:[#allocation8 + $0xe0] sm:$0xf]  ;;  %v10459_v48 = vld [vmem:[#allocation8 + $0xa4] sm:$0xf]  ;;  %v14577_v45 = vld [vmem:[#allocation29_spill] sm:$0xff] }
 0x501   :  { %v3058_v16 = vsel %vm3055_vm15, %v3057_v10, %v3053_v59  ;;  %v8910_v18 = vor.u32 %v10469_v63, %v8909_v32  ;;  %v8922_v7 = vor.u32 %v10468_v42, %v8919_v33  ;;  %v8894_v38 = vor.u32 %v10465_v61, %v8893_v31  ;;  %v8885_v62 = vld [vmem:[#allocation8 + $0xa8] sm:$0xf]  ;;  %v10462_v28 = vld [vmem:[#allocation8 + $0xb4] sm:$0xf0]  ;;  %v10460_v47 = vld [vmem:[#allocation8 + $0xac] sm:$0xf] }
 0x502   :  { %11050 = vtanh.f32 %v12703_v60  ;;  %v3072_v54 = vpack.c.bf16 %v3070_v55, %v3070_v55  ;;  %v8898_v15 = vor.u32 %v10463_v17, %v8895_v3  ;;  %v8902_v46 = vor.u32 %v10466_v27, %v8901_v21  ;;  %v8887_v53 = vld [vmem:[#allocation8 + $0xb8] sm:$0xf0]  ;;  %v14578_v36 = vld [vmem:[#allocation30_spill] sm:$0xff]  ;;  %v8861_v6 = vld [vmem:[#allocation8 + $0x80] sm:$0xf] }
 0x503   :  { %3694 = vmatpush.bf16.msra.mxu0 %v8910_v18  ;;  %3708 = vmatpush.bf16.msra.mxu1 %v8914_v49  ;;  %v8906_v24 = vor.u32 %v10464_v13, %v8903_v51  ;;  %v8878_v40 = vor.u32 %v10461_v50, %v8877_v34  ;;  %v3082_v29 = vunpack.c.l.bf16 %v14577_v45  ;;  %v8882_v9 = vor.u32 %v10459_v48, %v8879_v56  ;;  %v14579_v43 = vld [vmem:[#allocation31_spill] sm:$0xff]  ;;  %v10457_v59 = vld [vmem:[#allocation8 + $0x8c] sm:$0xf0]  ;;  %v8845_v37 = vld [vmem:[#allocation8 + $0x60] sm:$0xf] }
 0x504   :  { %v3124_v44 = vunpack.c.l.b16 %v3072_v54  ;;  %3722 = vmatpush.bf16.msra.mxu2 %v8918_v41  ;;  %3736 = vmatpush.bf16.msra.mxu3 %v8922_v7  ;;  %v8886_v52 = vor.u32 %v10462_v28, %v8885_v62  ;;  %v426_v14 = vadd.f32 %v14578_v36, %v11585_v11  ;;  %v475_v26 = vadd.f32 %v14579_v43, %v11587_v12  ;;  %v8869_v54 = vld [vmem:[#allocation8 + $0x88] sm:$0xf]  ;;  %v10453_v2 = vld [vmem:[#allocation8 + $0x6c] sm:$0xf0]  ;;  %v10451_v39 = vld [vmem:[#allocation8 + $0x64] sm:$0xf] }
 0x505   :  { %v3083_v1 = vunpack.c.h.bf16 %v14577_v45  ;;  %v8890_v22 = vor.u32 %v10460_v47, %v8887_v53  ;;  %v14580_v49 = vld [vmem:[#allocation33_spill] sm:$0xff]  ;;  %v14581_v42 = vld [vmem:[#allocation32_spill] sm:$0xff]  ;;  %v8846_v7 = vor.u32 %v10453_v2, %v8845_v37  ;;  %v8847_v31 = vld [vmem:[#allocation8 + $0x70] sm:$0xf0] }
 0x506   :  { %v606_v32 = vpack.c.bf16 %v475_v26, %v426_v14  ;;  %v524_v41 = vadd.f32 %v14580_v49, %v11593_v19  ;;  %v3084_v33 = vunpack.c.l.bf16 %v14581_v42  ;;  %v8853_v61 = vld [vmem:[#allocation8 + $0x68] sm:$0xf]  ;;  %v10454_v17 = vld [vmem:[#allocation8 + $0x74] sm:$0xf0]  ;;  %v8850_v21 = vor.u32 %v10451_v39, %v8847_v31  ;;  %v8829_v56 = vld [vmem:[#allocation8 + $0x40] sm:$0xf] }
 0x507   :  { %3695 = vmatpush.bf16.msra.mxu0 %v8894_v38  ;;  %3709 = vmatpush.bf16.msra.mxu1 %v8898_v15  ;;  %v14582_v38 = vld [vmem:[#allocation34_spill] sm:$0xff]  ;;  %v8854_v27 = vor.u32 %v10454_v17, %v8853_v61  ;;  %v10452_v15 = vld [vmem:[#allocation8 + $0x6c] sm:$0xf]  ;;  %v10447_v28 = vld [vmem:[#allocation8 + $0x44] sm:$0xf] }
 0x508   :  { %v11051_v5 = vpop.eup %11050  ;;  %3723 = vmatpush.bf16.msra.mxu2 %v8902_v46  ;;  %3737 = vmatpush.bf16.msra.mxu3 %v8906_v24  ;;  %v573_v3 = vadd.f32 %v14582_v38, %v11595_v20  ;;  %v8855_v46 = vld [vmem:[#allocation8 + $0x78] sm:$0xf0]  ;;  %v3086_v51 = vunpack.c.l.bf16 %v606_v32  ;;  %v3087_v24 = vunpack.c.h.bf16 %v606_v32  ;;  %v10449_v62 = vld [vmem:[#allocation8 + $0x4c] sm:$0xf0]  ;;  %v8837_v47 = vld [vmem:[#allocation8 + $0x48] sm:$0xf] }
 0x509   :  { %v3071_v30 = vmul.f32 %v11051_v5, %v3058_v16  ;;  %v8862_v16 = vor.u32 %v10457_v59, %v8861_v6  ;;  %v8858_v34 = vor.u32 %v10452_v15, %v8855_v46  ;;  %v10450_v53 = vld [vmem:[#allocation8 + $0x54] sm:$0xf0]  ;;  %v10444_v37 = vld [vmem:[#allocation8 + $0x2c] sm:$0xf]  ;;  %v8823_v2 = vld [vmem:[#allocation8 + $0x38] sm:$0xf0] }
 0x50a   :  { %v12723_v36 = vpack.c.bf16 %v573_v3, %v524_v41  ;;  %v8797_v41 = vld [vmem:[#allocation8] sm:$0xf]  ;;  %v8826_v17 = vor.u32 %v10444_v37, %v8823_v2  ;;  %v10439_v3 = vld [vmem:[#allocation8 + $0x4] sm:$0xf]  ;;  %v8805_v46 = vld [vmem:[#allocation8 + $0x8] sm:$0xf] }
 0x50b   :  { %v3073_v4 = vpack.c.bf16 %v3071_v30, %v3071_v30  ;;  %v10795_v0 = vpack.c.bf16 %v3071_v30, %v3070_v55  ;;  %3696 = vmatpush.bf16.msra.mxu0 %v8878_v40  ;;  %3710 = vmatpush.bf16.msra.mxu1 %v8882_v9  ;;  %v10455_v55 = vld [vmem:[#allocation8 + $0x84] sm:$0xf]  ;;  %v8863_v30 = vld [vmem:[#allocation8 + $0x90] sm:$0xf0]  ;;  %v8830_v9 = vor.u32 %v10449_v62, %v8829_v56 }
 0x50c   :  { %3724 = vmatpush.bf16.msra.mxu2 %v8886_v52  ;;  %3738 = vmatpush.bf16.msra.mxu3 %v8890_v22  ;;  %v8831_v52 = vld [vmem:[#allocation8 + $0x50] sm:$0xf0]  ;;  %v10448_v22 = vld [vmem:[#allocation8 + $0x4c] sm:$0xf] }
 0x50d   :  { %10796 = vst [vmem:[#allocation3 + $0x20] sm:$0xff] %v10795_v0   ;;  %v3125_v8 = vunpack.c.l.b16 %v3073_v4  ;;  %v10458_v4 = vld [vmem:[#allocation8 + $0x94] sm:$0xf0]  ;;  %v8866_v0 = vor.u32 %v10455_v55, %v8863_v30  ;;  %v8834_v26 = vor.u32 %v10447_v28, %v8831_v52  ;;  %v10445_v30 = vld [vmem:[#allocation8 + $0x2c] sm:$0xf0]  ;;  %v3089_v28 = vunpack.c.h.bf16 %v12723_v36 }
 0x50f   :  { %v3126_v58 = vpack.c.b16 %v3125_v8, %v3124_v44  ;;  %v8870_v44 = vor.u32 %v10458_v4, %v8869_v54  ;;  %v10456_v8 = vld [vmem:[#allocation8 + $0x8c] sm:$0xf]  ;;  %3697 = vmatpush.bf16.msra.mxu0 %v8862_v16  ;;  %3711 = vmatpush.bf16.msra.mxu1 %v8866_v0  ;;  %v8813_v16 = vld [vmem:[#allocation8 + $0x20] sm:$0xf]  ;;  %v3088_v0 = vunpack.c.l.bf16 %v12723_v36 }
 0x510   :  { %v8814_v4 = vor.u32 %v10445_v30, %v8813_v16 }
 0x511   :  { %3296 = vmatmul.bf16.vlgmr.msrb.gmra.mxu0 %v3126_v58  ;;  %3310 = vmatmul.bf16.vlgmr.msrb.gmra.mxu1 %v3126_v58 }
 0x512   :  { %3324 = vmatmul.bf16.vlgmr.msrb.gmra.mxu2 %v3126_v58  ;;  %3338 = vmatmul.bf16.vlgmr.msrb.gmra.mxu3 %v3126_v58  ;;  %v8871_v58 = vld [vmem:[#allocation8 + $0x98] sm:$0xf0] }
 0x513   :  { %v8874_v18 = vor.u32 %v10456_v8, %v8871_v58  ;;  %3725 = vmatpush.bf16.msra.mxu2 %v8870_v44  ;;  %3698 = vmatpush.bf16.msra.mxu0 %v8846_v7  ;;  %v10443_v44 = vld [vmem:[#allocation8 + $0x24] sm:$0xf]  ;;  %v8815_v8 = vld [vmem:[#allocation8 + $0x30] sm:$0xf0]  ;;  %v3085_v58 = vunpack.c.h.bf16 %v14581_v42 }
 0x514   :  { %3712 = vmatpush.bf16.msra.mxu1 %v8850_v21  ;;  %v8818_v49 = vor.u32 %v10443_v44, %v8815_v8  ;;  %v8799_v21 = vld [vmem:[#allocation8 + $0x10] sm:$0xf0] }
 0x515   :  { %3739 = vmatpush.bf16.msra.mxu3 %v8874_v18  ;;  %v8802_v15 = vor.u32 %v10439_v3, %v8799_v21 }
 0x517   :  { %3726 = vmatpush.bf16.msra.mxu2 %v8854_v27  ;;  %3699 = vmatpush.bf16.msra.mxu0 %v8830_v9 }
 0x518   :  { %3713 = vmatpush.bf16.msra.mxu1 %v8834_v26  ;;  %v10440_v26 = vld [vmem:[#allocation8 + $0xc] sm:$0xf] }
 0x519   :  { %3740 = vmatpush.bf16.msra.mxu3 %v8858_v34 }
 0x51b   :  { %3700 = vmatpush.bf16.msra.mxu0 %v8814_v4 }
 0x51c   :  { %3714 = vmatpush.bf16.msra.mxu1 %v8818_v49 }
 0x520   :  { %3715 = vmatpush.bf16.msra.mxu1 %v8802_v15  ;;  %v10508_v15 = vld [vmem:[#allocation10 + $0xec] sm:$0xf] }
 0x58e   :  { %v3297_v23 = vpop.f32.mrf.mxu0  ;;  %v3311_v35 = vpop.f32.mrf.mxu1 }
 0x58f   :  { %v3344_v10 = vadd.f32 %v3297_v23, %v3082_v29  ;;  %v3345_v5 = vadd.f32 %v3311_v35, %v3083_v1  ;;  %v8838_v1 = vor.u32 %v10450_v53, %v8837_v47  ;;  %v8839_v23 = vld [vmem:[#allocation8 + $0x58] sm:$0xf0] }
 0x590   :  { %v8842_v55 = vor.u32 %v10448_v22, %v8839_v23 }
 0x591   :  { %v8789_v63 = vmul.f32 -1.442695, %v3344_v10  ;;  %v8790_v57 = vmul.f32 -1.442695, %v3345_v5  ;;  %3727 = vmatpush.bf16.msra.mxu2 %v8838_v1  ;;  %v8807_v1 = vld [vmem:[#allocation8 + $0x18] sm:$0xf0] }
 0x592   :  { %3741 = vmatpush.bf16.msra.mxu3 %v8842_v55  ;;  %v8810_v4 = vor.u32 %v10440_v26, %v8807_v1 }
 0x593   :  { %11052 = vpow2.f32 %v8789_v63  ;;  %v8821_v63 = vld [vmem:[#allocation8 + $0x28] sm:$0xf] }
 0x594   :  { %11054 = vpow2.f32 %v8790_v57  ;;  %v10446_v57 = vld [vmem:[#allocation8 + $0x34] sm:$0xf0] }
 0x595   :  { %v3325_v13 = vpop.f32.mrf.mxu2  ;;  %v3339_v43 = vpop.f32.mrf.mxu3  ;;  %v8822_v61 = vor.u32 %v10446_v57, %v8821_v63  ;;  %v10501_v57 = vld [vmem:[#allocation10 + $0xac] sm:$0xf0] }
 0x596   :  { %v3346_v50 = vadd.f32 %v3325_v13, %v3084_v33  ;;  %v3299_v48 = vpop.f32.mrf.mxu0  ;;  %v3313_v40 = vpop.f32.mrf.mxu1  ;;  %v3347_v39 = vadd.f32 %v3339_v43, %v3085_v58  ;;  %v10441_v33 = vld [vmem:[#allocation8 + $0xc] sm:$0xf0]  ;;  %v10442_v13 = vld [vmem:[#allocation8 + $0x14] sm:$0xf0]  ;;  %3742 = vmatpush.bf16.msra.mxu3 %v8826_v17 }
 0x597   :  { %v3348_v45 = vadd.f32 %v3299_v48, %v3086_v51  ;;  %v3349_v29 = vadd.f32 %v3313_v40, %v3087_v24  ;;  %v8798_v38 = vor.u32 %v10441_v33, %v8797_v41  ;;  %3728 = vmatpush.bf16.msra.mxu2 %v8822_v61  ;;  %v8806_v48 = vor.u32 %v10442_v13, %v8805_v46  ;;  %v9075_v41 = vld [vmem:[#allocation10 + $0xe0] sm:$0xf]  ;;  %v10509_v33 = vld [vmem:[#allocation10 + $0xec] sm:$0xf0]  ;;  %v9083_v61 = vld [vmem:[#allocation10 + $0xe8] sm:$0xf] }
 0x598   :  { %v8791_v14 = vmul.f32 -1.442695, %v3346_v50  ;;  %v10510_v17 = vld [vmem:[#allocation10 + $0xf4] sm:$0xf0]  ;;  %v9085_v46 = vld [vmem:[#allocation10 + $0xf8] sm:$0xf0]  ;;  %v9076_v36 = vor.u32 %v10509_v33, %v9075_v41 }
 0x599   :  { %v11053_v35 = vpop.eup %11052  ;;  %v8792_v6 = vmul.f32 -1.442695, %v3348_v45  ;;  %v8793_v59 = vmul.f32 -1.442695, %v3349_v29  ;;  %3701 = vmatpush.bf16.msra.mxu0 %v8798_v38  ;;  %v9084_v1 = vor.u32 %v10510_v17, %v9083_v61  ;;  %v9051_v33 = vld [vmem:[#allocation10 + $0xa8] sm:$0xf] }
 0x59a   :  { %v11055_v10 = vpop.eup %11054  ;;  %v12725_v5 = vadd.f32 1.0, %v11053_v35  ;;  %11056 = vpow2.f32 %v8791_v14  ;;  %3743 = vmatpush.bf16.msra.mxu3 %v8810_v4  ;;  %v9043_v4 = vld [vmem:[#allocation10 + $0xa0] sm:$0xf]  ;;  %v9053_v61 = vld [vmem:[#allocation10 + $0xb8] sm:$0xf0] }
 0x59b   :  { %v12727_v54 = vadd.f32 1.0, %v11055_v10  ;;  %11058 = vpow2.f32 %v8792_v6  ;;  %3729 = vmatpush.bf16.msra.mxu2 %v8806_v48  ;;  %v9059_v48 = vld [vmem:[#allocation10 + $0xc0] sm:$0xf] }
 0x59c   :  { %11060 = vrcp.f32 %v12725_v5  ;;  %v3385_v24 = vand.u32 2147483647, %v12725_v5  ;;  %v3387_v62 = vand.u32 2147483648, %v12725_v5  ;;  %vm3381_vm1 = vweird.f32 %v12725_v5 }
 0x59d   :  { %11062 = vrcp.f32 %v12727_v54  ;;  %v3327_v32 = vpop.f32.mrf.mxu2  ;;  %v3341_v50 = vpop.f32.mrf.mxu3  ;;  %v3402_v9 = vand.u32 2147483648, %v12727_v54  ;;  %v3400_v52 = vand.u32 2147483647, %v12727_v54  ;;  %vm3396_vm0 = vweird.f32 %v12727_v54  ;;  %4159 = vmatpush.bf16.msrb.mxu0 %v9076_v36 }
 0x59e   :  { %11064 = vpow2.f32 %v8793_v59  ;;  %v3350_v18 = vadd.f32 %v3327_v32, %v3088_v0  ;;  %v3351_v14 = vadd.f32 %v3341_v50, %v3089_v28  ;;  %vm12753_vm2 = vcmp.eq.f32.partialorder %v3385_v24, 8.507059e+37  ;;  %v9029_v28 = vld [vmem:[#allocation10 + $0x90] sm:$0xf0] }
 0x59f   :  { %v3388_v23 = vor.u32 1.1754944e-38, %v3387_v62  ;;  %v3403_v59 = vor.u32 1.1754944e-38, %v3402_v9  ;;  %vm12760_vm5 = vcmp.eq.f32.partialorder %v3400_v52, 8.507059e+37  ;;  %4257 = vmatpush.bf16.msrb.mxu2 %v9084_v1  ;;  %v10493_v1 = vld [vmem:[#allocation10 + $0x6c] sm:$0xf0] }
 0x5a0   :  { %v11057_v7 = vpop.eup %11056  ;;  %v8794_v31 = vmul.f32 -1.442695, %v3350_v18 }
 0x5a1   :  { %v11059_v42 = vpop.eup %11058  ;;  %v12733_v27 = vadd.f32 1.0, %v11057_v7  ;;  %v10507_v7 = vld [vmem:[#allocation10 + $0xe4] sm:$0xf] }
 0x5a2   :  { %v11061_v51 = vpop.eup %11060  ;;  %v12736_v34 = vadd.f32 1.0, %v11059_v42  ;;  %11066 = vpow2.f32 %v8794_v31  ;;  %v9077_v31 = vld [vmem:[#allocation10 + $0xf0] sm:$0xf0] }
 0x5a3   :  { %v12738_v40 = vpop.eup %11062  ;;  %v3377_v56 = vmul.f32 %v11061_v51, %v12725_v5  ;;  %11068 = vrcp.f32 %v12733_v27  ;;  %vm3382_vm3 = vweird.f32 %v11061_v51  ;;  %v3415_v8 = vand.u32 2147483647, %v12733_v27 }
 0x5a4   :  { %v11065_v45 = vpop.eup %11064  ;;  %v3392_v29 = vmul.f32 %v12738_v40, %v12727_v54  ;;  %11070 = vtanh.f32 %v3347_v39  ;;  %vm3397_vm4 = vweird.f32 %v12738_v40  ;;  %v3417_v58 = vand.u32 2147483648, %v12733_v27  ;;  %vm3383_vm6 = vmor %vm3381_vm1, %vm3382_vm3 }
 0x5a5   :  { %v3378_v47 = vsub.f32 1.0, %v3377_v56  ;;  %11072 = vrcp.f32 %v12736_v34  ;;  %v12749_v53 = vadd.f32 1.0, %v11065_v45  ;;  %vm12782_vm7 = vmor %vm3396_vm0, %vm3397_vm4  ;;  %v3430_v5 = vand.u32 2147483647, %v12736_v34  ;;  %v10505_v45 = vld [vmem:[#allocation10 + $0xcc] sm:$0xf0] }
 0x5a6   :  { %v3393_v43 = vsub.f32 1.0, %v3392_v29  ;;  %vm3426_vm8 = vweird.f32 %v12736_v34  ;;  %v3432_v42 = vand.u32 2147483648, %v12736_v34  ;;  %vm3411_vm9 = vweird.f32 %v12733_v27  ;;  %v10503_v29 = vld [vmem:[#allocation10 + $0xc4] sm:$0xf] }
 0x5a7   :  { %v3379_v22 = vmul.f32 %v11061_v51, %v3378_v47  ;;  %11074 = vrcp.f32 %v12749_v53  ;;  %v3447_v37 = vand.u32 2147483648, %v12749_v53  ;;  %v3445_v50 = vand.u32 2147483647, %v12749_v53  ;;  %v9061_v47 = vld [vmem:[#allocation10 + $0xd0] sm:$0xf0] }
 0x5a8   :  { %v11067_v35 = vpop.eup %11066  ;;  %v3394_v6 = vmul.f32 %v12738_v40, %v3393_v43  ;;  %11076 = vtanh.f32 %v3351_v14  ;;  %vm3441_vm10 = vweird.f32 %v12749_v53  ;;  %vm12809_vm11 = vcmp.eq.f32.partialorder %v3430_v5, 8.507059e+37  ;;  %v9067_v14 = vld [vmem:[#allocation10 + $0xc8] sm:$0xf]  ;;  %v8995_v5 = vld [vmem:[#allocation10 + $0x40] sm:$0xf] }
 0x5a9   :  { %v12764_v10 = vpop.eup %11068  ;;  %v3380_v16 = vadd.f32 %v11061_v51, %v3379_v22  ;;  %v12766_v30 = vadd.f32 1.0, %v11067_v35  ;;  %v3448_v62 = vor.u32 1.1754944e-38, %v3447_v37  ;;  %v9080_v26 = vor.u32 %v10507_v7, %v9077_v31  ;;  %v10504_v35 = vld [vmem:[#allocation10 + $0xcc] sm:$0xf]  ;;  %v9045_v37 = vld [vmem:[#allocation10 + $0xb0] sm:$0xf0] }
 0x5aa   :  { %v11071_v0 = vpop.eup %11070  ;;  %v3407_v44 = vmul.f32 %v12764_v10, %v12733_v27  ;;  %v3395_v32 = vadd.f32 %v12738_v40, %v3394_v6  ;;  %v9088_v22 = vor.u32 %v10508_v15, %v9085_v46  ;;  %v9069_v6 = vld [vmem:[#allocation10 + $0xd8] sm:$0xf0]  ;;  %vm3412_vm14 = vweird.f32 %v12764_v10  ;;  %v10500_v31 = vld [vmem:[#allocation10 + $0xac] sm:$0xf] }
 0x5ab   :  { %v12776_v63 = vpop.eup %11072  ;;  %v3384_v18 = vsel %vm3383_vm6, %v11061_v51, %v3380_v16  ;;  %11078 = vrcp.f32 %v12766_v30  ;;  %v3433_v16 = vor.u32 1.1754944e-38, %v3432_v42  ;;  %4208 = vmatpush.bf16.msrb.mxu1 %v9080_v26  ;;  %vm12827_vm15 = vcmp.eq.f32.partialorder %v3415_v8, 8.507059e+37  ;;  %v10502_v8 = vld [vmem:[#allocation10 + $0xb4] sm:$0xf0]  ;;  %vm12856_vm3 = vmor %vm3411_vm9, %vm3412_vm14  ;;  %v10496_v27 = vld [vmem:[#allocation10 + $0x8c] sm:$0xf] }
 0x5ac   :  { %v3408_v2 = vsub.f32 1.0, %v3407_v44  ;;  %v3389_v39 = vsel %vm12753_vm2, %v3388_v23, %v3384_v18  ;;  %v3399_v54 = vsel %vm12782_vm7, %v12738_v40, %v3395_v32  ;;  %v3422_v49 = vmul.f32 %v12776_v63, %v12736_v34  ;;  %v10506_v23 = vld [vmem:[#allocation10 + $0xd4] sm:$0xf0]  ;;  %v10499_v18 = vld [vmem:[#allocation10 + $0xa4] sm:$0xf]  ;;  %4306 = vmatpush.bf16.msrb.mxu3 %v9088_v22 }
 0x5ad   :  { %v12796_v38 = vpop.eup %11074  ;;  %v3404_v3 = vsel %vm12760_vm5, %v3403_v59, %v3399_v54  ;;  %v3470_v21 = vmul.f32 %v11071_v0, %v3389_v39  ;;  %vm3427_vm12 = vweird.f32 %v12776_v63  ;;  %v9060_v44 = vor.u32 %v10505_v45, %v9059_v48  ;;  %v9035_v45 = vld [vmem:[#allocation10 + $0x88] sm:$0xf]  ;;  %v9011_v26 = vld [vmem:[#allocation10 + $0x60] sm:$0xf] }
 0x5ae   :  { %v3468_v13 = vmul.f32 %v3404_v3, %v12654_v25  ;;  %v3423_v51 = vsub.f32 1.0, %v3422_v49  ;;  %v3437_v24 = vmul.f32 %v12796_v38, %v12749_v53  ;;  %v11077_v40 = vpop.eup %11076  ;;  %v3409_v56 = vmul.f32 %v12764_v10, %v3408_v2  ;;  %vm12835_vm0 = vmor %vm3426_vm8, %vm3427_vm12 }
 0x5af   :  { %vm3442_vm13 = vweird.f32 %v12796_v38  ;;  %v9064_v32 = vor.u32 %v10503_v29, %v9061_v47  ;;  %v9068_v49 = vor.u32 %v10506_v23, %v9067_v14  ;;  %v9072_v41 = vor.u32 %v10504_v35, %v9069_v6  ;;  %4160 = vmatpush.bf16.msrb.mxu0 %v9060_v44  ;;  %v10498_v29 = vld [vmem:[#allocation10 + $0x94] sm:$0xf0]  ;;  %v10491_v23 = vld [vmem:[#allocation10 + $0x64] sm:$0xf]  ;;  %v9013_v35 = vld [vmem:[#allocation10 + $0x70] sm:$0xf0] }
 0x5b0   :  { %v12813_v25 = vadd.f32 %v3470_v21, %v3468_v13  ;;  %v3438_v9 = vsub.f32 1.0, %v3437_v24  ;;  %v3424_v52 = vmul.f32 %v12776_v63, %v3423_v51  ;;  %v3410_v7 = vadd.f32 %v12764_v10, %v3409_v56  ;;  %vm3443_vm1 = vmor %vm3441_vm10, %vm3442_vm13  ;;  %v10497_v51 = vld [vmem:[#allocation10 + $0x8c] sm:$0xf0]  ;;  %v10495_v56 = vld [vmem:[#allocation10 + $0x84] sm:$0xf] }
 0x5b1   :  { %v12817_v43 = vpop.eup %11078  ;;  %vm3446_vm2 = vcmp.eq.f32.partialorder %v3445_v50, 8.507059e+37  ;;  %v9044_v21 = vor.u32 %v10501_v57, %v9043_v4  ;;  %v9048_v42 = vor.u32 %v10499_v18, %v9045_v37  ;;  %4209 = vmatpush.bf16.msrb.mxu1 %v9064_v32  ;;  %4258 = vmatpush.bf16.msrb.mxu2 %v9068_v49  ;;  %v9052_v50 = vor.u32 %v10502_v8, %v9051_v33  ;;  %v9019_v6 = vld [vmem:[#allocation10 + $0x68] sm:$0xf]  ;;  %v9021_v4 = vld [vmem:[#allocation10 + $0x78] sm:$0xf0] }
 0x5b2   :  { %v3439_v59 = vmul.f32 %v12796_v38, %v3438_v9  ;;  %v3452_v55 = vmul.f32 %v12817_v43, %v12766_v30  ;;  %v3425_v0 = vadd.f32 %v12776_v63, %v3424_v52  ;;  %11080 = vtanh.f32 %v12813_v25  ;;  %4307 = vmatpush.bf16.msrb.mxu3 %v9072_v41  ;;  %v10487_v49 = vld [vmem:[#allocation10 + $0x44] sm:$0xf]  ;;  %v8997_v41 = vld [vmem:[#allocation10 + $0x50] sm:$0xf0]  ;;  %v9003_v33 = vld [vmem:[#allocation10 + $0x48] sm:$0xf] }
 0x5b3   :  { %v9056_v48 = vor.u32 %v10500_v31, %v9053_v61  ;;  %v3462_v9 = vand.u32 2147483648, %v12766_v30  ;;  %vm3457_vm4 = vweird.f32 %v12817_v43  ;;  %4161 = vmatpush.bf16.msrb.mxu0 %v9044_v21  ;;  %v9032_v36 = vor.u32 %v10495_v56, %v9029_v28  ;;  %v10490_v8 = vld [vmem:[#allocation10 + $0x54] sm:$0xf0]  ;;  %v10484_v28 = vld [vmem:[#allocation10 + $0x2c] sm:$0xf] }
 0x5b4   :  { %v3453_v2 = vsub.f32 1.0, %v3452_v55  ;;  %v3440_v54 = vadd.f32 %v12796_v38, %v3439_v59  ;;  %v3429_v34 = vsel %vm12835_vm0, %v12776_v63, %v3425_v0  ;;  %v3418_v63 = vor.u32 1.1754944e-38, %v3417_v58  ;;  %v9037_v58 = vld [vmem:[#allocation10 + $0x98] sm:$0xf0]  ;;  %v10494_v55 = vld [vmem:[#allocation10 + $0x74] sm:$0xf0] }
 0x5b5   :  { %v3434_v17 = vsel %vm12809_vm11, %v3433_v16, %v3429_v34  ;;  %4210 = vmatpush.bf16.msrb.mxu1 %v9048_v42  ;;  %4259 = vmatpush.bf16.msrb.mxu2 %v9052_v50  ;;  %v9040_v22 = vor.u32 %v10496_v27, %v9037_v58  ;;  %vm3456_vm5 = vweird.f32 %v12766_v30  ;;  %v10492_v16 = vld [vmem:[#allocation10 + $0x6c] sm:$0xf]  ;;  %v3463_v57 = vor.u32 1.1754944e-38, %v3462_v9  ;;  %v9005_v34 = vld [vmem:[#allocation10 + $0x58] sm:$0xf0] }
 0x5b6   :  { %v3444_v3 = vsel %vm3443_vm1, %v12796_v38, %v3440_v54  ;;  %v3454_v15 = vmul.f32 %v12817_v43, %v3453_v2  ;;  %v3471_v13 = vmul.f32 %v11077_v40, %v3434_v17  ;;  %v9027_v38 = vld [vmem:[#allocation10 + $0x80] sm:$0xf]  ;;  %v3414_v40 = vsel %vm12856_vm3, %v12764_v10, %v3410_v7  ;;  %4308 = vmatpush.bf16.msrb.mxu3 %v9056_v48  ;;  %vm12879_vm6 = vmor %vm3456_vm5, %vm3457_vm4  ;;  %v10489_v2 = vld [vmem:[#allocation10 + $0x4c] sm:$0xf0] }
 0x5b7   :  { %v3449_v46 = vsel %vm3446_vm2, %v3448_v62, %v3444_v3  ;;  %v3460_v62 = vand.u32 2147483647, %v12766_v30  ;;  %v9028_v14 = vor.u32 %v10497_v51, %v9027_v38  ;;  %v9036_v10 = vor.u32 %v10498_v29, %v9035_v45  ;;  %v10488_v7 = vld [vmem:[#allocation10 + $0x4c] sm:$0xf]  ;;  %v10483_v38 = vld [vmem:[#allocation10 + $0x24] sm:$0xf] }
 0x5b8   :  { %v3469_v24 = vmul.f32 %v3449_v46, %v12703_v60  ;;  %v11081_v60 = vpop.eup %11080  ;;  %v3455_v47 = vadd.f32 %v12817_v43, %v3454_v15  ;;  %v3419_v59 = vsel %vm12827_vm15, %v3418_v63, %v3414_v40  ;;  %v9012_v18 = vor.u32 %v10493_v1, %v9011_v26  ;;  %v8979_v46 = vld [vmem:[#allocation10 + $0x20] sm:$0xf]  ;;  %v8981_v51 = vld [vmem:[#allocation10 + $0x30] sm:$0xf0]  ;;  %v10486_v50 = vld [vmem:[#allocation10 + $0x34] sm:$0xf0] }
 0x5b9   :  { %vm12883_vm7 = vcmp.eq.f32.partialorder %v3460_v62, 8.507059e+37  ;;  %v3476_v32 = vmul.f32 %v11081_v60, %v3419_v59  ;;  %4162 = vmatpush.bf16.msrb.mxu0 %v9028_v14  ;;  %4211 = vmatpush.bf16.msrb.mxu1 %v9032_v36  ;;  %v9016_v37 = vor.u32 %v10491_v23, %v9013_v35  ;;  %v9020_v39 = vor.u32 %v10494_v55, %v9019_v6  ;;  %v8989_v45 = vld [vmem:[#allocation10 + $0x38] sm:$0xf0]  ;;  %v8963_v40 = vld [vmem:[#allocation10] sm:$0xf]  ;;  %v10471_v59 = vld [vmem:[#allocation3 + $0x30] sm:$0xff] }
 0x5ba   :  { %v12869_v52 = vadd.f32 %v3471_v13, %v3469_v24  ;;  %v3459_v30 = vsel %vm12879_vm6, %v12817_v43, %v3455_v47  ;;  %4260 = vmatpush.bf16.msrb.mxu2 %v9036_v10  ;;  %4309 = vmatpush.bf16.msrb.mxu3 %v9040_v22  ;;  %v9024_v54 = vor.u32 %v10492_v16, %v9021_v4  ;;  %v10485_v13 = vld [vmem:[#allocation10 + $0x2c] sm:$0xf0]  ;;  %v8987_v24 = vld [vmem:[#allocation10 + $0x28] sm:$0xf]  ;;  %v10479_v47 = vld [vmem:[#allocation10 + $0x4] sm:$0xf] }
 0x5bb   :  { %v3464_v61 = vsel %vm12883_vm7, %v3463_v57, %v3459_v30  ;;  %v3478_v17 = vpack.c.bf16 %v3476_v32, %v3476_v32  ;;  %v8996_v3 = vor.u32 %v10489_v2, %v8995_v5  ;;  %v9000_v21 = vor.u32 %v10487_v49, %v8997_v41  ;;  %v10481_v62 = vld [vmem:[#allocation10 + $0xc] sm:$0xf0]  ;;  %v8965_v14 = vld [vmem:[#allocation10 + $0x10] sm:$0xf0]  ;;  %v8971_v36 = vld [vmem:[#allocation10 + $0x8] sm:$0xf] }
 0x5bc   :  { %11082 = vtanh.f32 %v12869_v52  ;;  %v9004_v42 = vor.u32 %v10490_v8, %v9003_v33  ;;  %v9008_v53 = vor.u32 %v10488_v7, %v9005_v34  ;;  %v8980_v27 = vor.u32 %v10485_v13, %v8979_v46  ;;  %v10482_v26 = vld [vmem:[#allocation10 + $0x14] sm:$0xf0]  ;;  %v10480_v1 = vld [vmem:[#allocation10 + $0xc] sm:$0xf]  ;;  %v8973_v10 = vld [vmem:[#allocation10 + $0x18] sm:$0xf0] }
 0x5bd   :  { %4163 = vmatpush.bf16.msrb.mxu0 %v9012_v18  ;;  %4212 = vmatpush.bf16.msrb.mxu1 %v9016_v37  ;;  %v3530_v48 = vunpack.c.l.b16 %v3478_v17  ;;  %v8984_v58 = vor.u32 %v10483_v38, %v8981_v51  ;;  %v8988_v9 = vor.u32 %v10486_v50, %v8987_v24  ;;  %v8992_v60 = vor.u32 %v10484_v28, %v8989_v45  ;;  %v10472_v55 = vld [vmem:[#allocation3] sm:$0xff]  ;;  %v10541_v4 = vld [vmem:[#allocation11 + $0xec] sm:$0xf0]  ;;  %v10473_v30 = vld [vmem:[#allocation3 + $0x18] sm:$0xff] }
 0x5be   :  { %4261 = vmatpush.bf16.msrb.mxu2 %v9020_v39  ;;  %4310 = vmatpush.bf16.msrb.mxu3 %v9024_v54  ;;  %v8964_v22 = vor.u32 %v10481_v62, %v8963_v40  ;;  %v8968_v23 = vor.u32 %v10479_v47, %v8965_v14  ;;  %v8972_v35 = vor.u32 %v10482_v26, %v8971_v36  ;;  %v9203_v16 = vld [vmem:[#allocation11 + $0xe0] sm:$0xf]  ;;  %v10539_v0 = vld [vmem:[#allocation11 + $0xe4] sm:$0xf]  ;;  %v9211_v18 = vld [vmem:[#allocation11 + $0xe8] sm:$0xf] }
 0x5bf   :  { %v8976_v6 = vor.u32 %v10480_v1, %v8973_v10  ;;  %v9204_v44 = vor.u32 %v10541_v4, %v9203_v16  ;;  %v10542_v37 = vld [vmem:[#allocation11 + $0xf4] sm:$0xf0]  ;;  %v10540_v5 = vld [vmem:[#allocation11 + $0xec] sm:$0xf]  ;;  %v9213_v39 = vld [vmem:[#allocation11 + $0xf8] sm:$0xf0] }
 0x5c0   :  { %v9212_v2 = vor.u32 %v10542_v37, %v9211_v18  ;;  %v9187_v54 = vld [vmem:[#allocation11 + $0xc0] sm:$0xf]  ;;  %v10537_v49 = vld [vmem:[#allocation11 + $0xcc] sm:$0xf0]  ;;  %v9216_v41 = vor.u32 %v10540_v5, %v9213_v39  ;;  %v10535_v8 = vld [vmem:[#allocation11 + $0xc4] sm:$0xf] }
 0x5c1   :  { %4164 = vmatpush.bf16.msrb.mxu0 %v8996_v3  ;;  %4213 = vmatpush.bf16.msrb.mxu1 %v9000_v21  ;;  %v9188_v33 = vor.u32 %v10537_v49, %v9187_v54  ;;  %v9189_v7 = vld [vmem:[#allocation11 + $0xd0] sm:$0xf0]  ;;  %v10538_v17 = vld [vmem:[#allocation11 + $0xd4] sm:$0xf0]  ;;  %v9197_v21 = vld [vmem:[#allocation11 + $0xd8] sm:$0xf0] }
 0x5c2   :  { %v11083_v31 = vpop.eup %11082  ;;  %4262 = vmatpush.bf16.msrb.mxu2 %v9004_v42  ;;  %4311 = vmatpush.bf16.msrb.mxu3 %v9008_v53  ;;  %v9192_v34 = vor.u32 %v10535_v8, %v9189_v7  ;;  %v9171_v42 = vld [vmem:[#allocation11 + $0xa0] sm:$0xf]  ;;  %v10533_v53 = vld [vmem:[#allocation11 + $0xac] sm:$0xf0]  ;;  %v10531_v46 = vld [vmem:[#allocation11 + $0xa4] sm:$0xf] }
 0x5c3   :  { %v3477_v43 = vmul.f32 %v11083_v31, %v3464_v61  ;;  %v10474_v31 = vld [vmem:[#allocation3 + $0x10] sm:$0xff]  ;;  %v9195_v61 = vld [vmem:[#allocation11 + $0xc8] sm:$0xf]  ;;  %v10534_v50 = vld [vmem:[#allocation11 + $0xb4] sm:$0xf0] }
 0x5c4   :  { %v9196_v3 = vor.u32 %v10538_v17, %v9195_v61  ;;  %v9173_v13 = vld [vmem:[#allocation11 + $0xb0] sm:$0xf0]  ;;  %v10475_v51 = vld [vmem:[#allocation3 + $0x8] sm:$0xff]  ;;  %v9181_v28 = vld [vmem:[#allocation11 + $0xb8] sm:$0xf0] }
 0x5c5   :  { %v3479_v63 = vpack.c.bf16 %v3477_v43, %v3477_v43  ;;  %v10800_v15 = vpack.c.bf16 %v3477_v43, %v3476_v32  ;;  %4165 = vmatpush.bf16.msrb.mxu0 %v8980_v27  ;;  %4214 = vmatpush.bf16.msrb.mxu1 %v8984_v58  ;;  %v9205_v32 = vld [vmem:[#allocation11 + $0xf0] sm:$0xf0]  ;;  %v10536_v43 = vld [vmem:[#allocation11 + $0xcc] sm:$0xf]  ;;  %v9176_v38 = vor.u32 %v10531_v46, %v9173_v13  ;;  %v9179_v24 = vld [vmem:[#allocation11 + $0xa8] sm:$0xf] }
 0x5c6   :  { %4263 = vmatpush.bf16.msrb.mxu2 %v8988_v9  ;;  %4312 = vmatpush.bf16.msrb.mxu3 %v8992_v60  ;;  %v9208_v57 = vor.u32 %v10539_v0, %v9205_v32  ;;  %v9155_v58 = vld [vmem:[#allocation11 + $0x80] sm:$0xf]  ;;  %v10529_v40 = vld [vmem:[#allocation11 + $0x8c] sm:$0xf0]  ;;  %v10527_v62 = vld [vmem:[#allocation11 + $0x84] sm:$0xf] }
 0x5c7   :  { %10801 = vst [vmem:[#allocation3 + $0x28] sm:$0xff] %v10800_v15   ;;  %v3531_v56 = vunpack.c.l.b16 %v3479_v63  ;;  %v9200_v63 = vor.u32 %v10536_v43, %v9197_v21  ;;  %v9172_v15 = vor.u32 %v10533_v53, %v9171_v42  ;;  %v9156_v9 = vor.u32 %v10529_v40, %v9155_v58  ;;  %v9157_v60 = vld [vmem:[#allocation11 + $0x90] sm:$0xf0]  ;;  %v9163_v47 = vld [vmem:[#allocation11 + $0x88] sm:$0xf]  ;;  %v14601_v1 = vld [vmem:[#allocation36_spill] sm:$0xff] }
 0x5c8   :  { %v10530_v14 = vld [vmem:[#allocation11 + $0x94] sm:$0xf0]  ;;  %v9160_v36 = vor.u32 %v10527_v62, %v9157_v60  ;;  %v431_v10 = vadd.f32 %v14601_v1, %v11585_v11  ;;  %v14605_v11 = vld [vmem:[#allocation40_spill] sm:$0xff] }
 0x5c9   :  { %v3532_v29 = vpack.c.b16 %v3531_v56, %v3530_v48  ;;  %4166 = vmatpush.bf16.msrb.mxu0 %v8964_v22  ;;  %4215 = vmatpush.bf16.msrb.mxu1 %v8968_v23  ;;  %v10532_v48 = vld [vmem:[#allocation11 + $0xac] sm:$0xf]  ;;  %v9180_v56 = vor.u32 %v10534_v50, %v9179_v24  ;;  %v9164_v26 = vor.u32 %v10530_v14, %v9163_v47 }
 0x5ca   :  { %4264 = vmatpush.bf16.msrb.mxu2 %v8972_v35  ;;  %4313 = vmatpush.bf16.msrb.mxu3 %v8976_v6  ;;  %v9184_v45 = vor.u32 %v10532_v48, %v9181_v28  ;;  %v14602_v22 = vld [vmem:[#allocation37_spill] sm:$0xff]  ;;  %v14603_v35 = vld [vmem:[#allocation35_spill] sm:$0xff]  ;;  %v578_v37 = vadd.f32 %v14605_v11, %v11595_v20 }
 0x5cb   :  { %3702 = vmatmul.bf16.vlgmr.msra.gmra.mxu0 %v3532_v29  ;;  %3716 = vmatmul.bf16.vlgmr.msra.gmra.mxu1 %v3532_v29  ;;  %v480_v23 = vadd.f32 %v14602_v22, %v11587_v12  ;;  %v3488_v6 = vunpack.c.l.bf16 %v14603_v35  ;;  %v14606_v12 = vld [vmem:[#allocation38_spill] sm:$0xff] }
 0x5cc   :  { %3730 = vmatmul.bf16.vlgmr.msra.gmra.mxu2 %v3532_v29  ;;  %3744 = vmatmul.bf16.vlgmr.msra.gmra.mxu3 %v3532_v29  ;;  %v10476_v29 = vld [vmem:[#allocation3 + $0x20] sm:$0xff]  ;;  %v3490_v5 = vunpack.c.l.bf16 %v14606_v12 }
 0x5cd   :  { %4630 = vmatpush.bf16.msra.mxu0 %v9204_v44  ;;  %4644 = vmatpush.bf16.msra.mxu1 %v9208_v57  ;;  %v610_v44 = vpack.c.bf16 %v480_v23, %v431_v10 }
 0x5ce   :  { %4658 = vmatpush.bf16.msra.mxu2 %v9212_v2  ;;  %4672 = vmatpush.bf16.msra.mxu3 %v9216_v41  ;;  %v10477_v27 = vld [vmem:[#allocation3 + $0x28] sm:$0xff] }
 0x5cf   :  { %v3492_v54 = vunpack.c.l.bf16 %v610_v44  ;;  %v3493_v49 = vunpack.c.h.bf16 %v610_v44 }
 0x5d1   :  { %4631 = vmatpush.bf16.msra.mxu0 %v9188_v33  ;;  %4645 = vmatpush.bf16.msra.mxu1 %v9192_v34 }
 0x5d2   :  { %4659 = vmatpush.bf16.msra.mxu2 %v9196_v3  ;;  %4673 = vmatpush.bf16.msra.mxu3 %v9200_v63 }
 0x5d5   :  { %4632 = vmatpush.bf16.msra.mxu0 %v9172_v15  ;;  %4646 = vmatpush.bf16.msra.mxu1 %v9176_v38  ;;  %v3491_v38 = vunpack.c.h.bf16 %v14606_v12  ;;  %v9165_v12 = vld [vmem:[#allocation11 + $0x98] sm:$0xf0] }
 0x5d6   :  { %4660 = vmatpush.bf16.msra.mxu2 %v9180_v56  ;;  %4674 = vmatpush.bf16.msra.mxu3 %v9184_v45 }
 0x5d9   :  { %4633 = vmatpush.bf16.msra.mxu0 %v9156_v9  ;;  %4647 = vmatpush.bf16.msra.mxu1 %v9160_v36 }
 0x5da   :  { %4661 = vmatpush.bf16.msra.mxu2 %v9164_v26 }
 0x5db   :  { %4167 = vmatmul.bf16.vlgmr.msrb.gmra.mxu0 %v10471_v59  ;;  %4216 = vmatmul.bf16.vlgmr.msrb.gmra.mxu1 %v10471_v59 }
 0x5dc   :  { %4265 = vmatmul.bf16.vlgmr.msrb.gmra.mxu2 %v10471_v59  ;;  %4314 = vmatmul.bf16.vlgmr.msrb.gmra.mxu3 %v10471_v59  ;;  %v3489_v59 = vunpack.c.h.bf16 %v14603_v35 }
 0x5eb   :  { %4172 = vmatmul.bf16.gmra.mxu0 %v10472_v55  ;;  %4221 = vmatmul.bf16.gmra.mxu1 %v10472_v55 }
 0x5ec   :  { %4270 = vmatmul.bf16.gmra.mxu2 %v10472_v55  ;;  %4319 = vmatmul.bf16.gmra.mxu3 %v10472_v55 }
 0x5fb   :  { %4177 = vmatmul.bf16.gmra.mxu0 %v10473_v30  ;;  %4226 = vmatmul.bf16.gmra.mxu1 %v10473_v30 }
 0x5fc   :  { %4275 = vmatmul.bf16.gmra.mxu2 %v10473_v30  ;;  %4324 = vmatmul.bf16.gmra.mxu3 %v10473_v30  ;;  %v14604_v30 = vld [vmem:[#allocation39_spill] sm:$0xff] }
 0x5fd   :  { %v529_v18 = vadd.f32 %v14604_v30, %v11593_v19  ;;  %v3941_v19 = vld [vmem:[%s14429_s8] sm:$0xf] }
 0x5fe   :  { %v12912_v53 = vperm.slane %v3941_v19, 0  ;;  %v12916_v15 = vperm.slane %v3941_v19, 1  ;;  %v12925_v62 = vperm.slane %v3941_v19, 2  ;;  %v12935_v10 = vperm.slane %v3941_v19, 3 }
 0x60b   :  { %4182 = vmatmul.bf16.gmra.mxu0 %v10474_v31  ;;  %4231 = vmatmul.bf16.gmra.mxu1 %v10474_v31 }
 0x60c   :  { %4280 = vmatmul.bf16.gmra.mxu2 %v10474_v31  ;;  %4329 = vmatmul.bf16.gmra.mxu3 %v10474_v31  ;;  %v12903_v31 = vpack.c.bf16 %v578_v37, %v529_v18  ;;  %v10528_v37 = vld [vmem:[#allocation11 + $0x8c] sm:$0xf] }
 0x60e   :  { %v3494_v63 = vunpack.c.l.bf16 %v12903_v31  ;;  %v3495_v40 = vunpack.c.h.bf16 %v12903_v31 }
 0x61b   :  { %4187 = vmatmul.bf16.gmra.mxu0 %v10475_v51  ;;  %4236 = vmatmul.bf16.gmra.mxu1 %v10475_v51 }
 0x61c   :  { %4285 = vmatmul.bf16.gmra.mxu2 %v10475_v51  ;;  %4334 = vmatmul.bf16.gmra.mxu3 %v10475_v51 }
 0x62b   :  { %4192 = vmatmul.bf16.gmra.mxu0 %v10476_v29  ;;  %4241 = vmatmul.bf16.gmra.mxu1 %v10476_v29 }
 0x62c   :  { %4290 = vmatmul.bf16.gmra.mxu2 %v10476_v29  ;;  %4339 = vmatmul.bf16.gmra.mxu3 %v10476_v29 }
 0x63b   :  { %4197 = vmatmul.bf16.gmra.mxu0 %v10477_v27  ;;  %4246 = vmatmul.bf16.gmra.mxu1 %v10477_v27 }
 0x63c   :  { %4295 = vmatmul.bf16.gmra.mxu2 %v10477_v27  ;;  %4344 = vmatmul.bf16.gmra.mxu3 %v10477_v27 }
 0x648   :  { %v3703_v55 = vpop.f32.mrf.mxu0  ;;  %v3717_v16 = vpop.f32.mrf.mxu1 }
 0x649   :  { %v3750_v4 = vadd.f32 %v3703_v55, %v3488_v6  ;;  %v3751_v0 = vadd.f32 %v3717_v16, %v3489_v59 }
 0x64b   :  { %v8923_v32 = vmul.f32 -1.442695, %v3750_v4  ;;  %v8924_v57 = vmul.f32 -1.442695, %v3751_v0 }
 0x64d   :  { %11084 = vpow2.f32 %v8923_v32 }
 0x64e   :  { %11086 = vpow2.f32 %v8924_v57 }
 0x64f   :  { %v3731_v2 = vpop.f32.mrf.mxu2  ;;  %v3745_v39 = vpop.f32.mrf.mxu3 }
 0x650   :  { %v3752_v41 = vadd.f32 %v3731_v2, %v3490_v5  ;;  %v3705_v33 = vpop.f32.mrf.mxu0  ;;  %v3719_v8 = vpop.f32.mrf.mxu1  ;;  %v3753_v28 = vadd.f32 %v3745_v39, %v3491_v38 }
 0x651   :  { %v3754_v7 = vadd.f32 %v3705_v33, %v3492_v54  ;;  %v3755_v34 = vadd.f32 %v3719_v8, %v3493_v49  ;;  %v9117_v54 = vld [vmem:[#allocation11 + $0x38] sm:$0xf0] }
 0x652   :  { %v8925_v61 = vmul.f32 -1.442695, %v3752_v41 }
 0x653   :  { %v11085_v20 = vpop.eup %11084  ;;  %v8926_v17 = vmul.f32 -1.442695, %v3754_v7  ;;  %v8927_v21 = vmul.f32 -1.442695, %v3755_v34  ;;  %v9168_v7 = vor.u32 %v10528_v37, %v9165_v12 }
 0x654   :  { %v11087_v43 = vpop.eup %11086  ;;  %v12908_v3 = vadd.f32 1.0, %v11085_v20  ;;  %11088 = vpow2.f32 %v8925_v61 }
 0x655   :  { %v12910_v42 = vadd.f32 1.0, %v11087_v43  ;;  %11090 = vpow2.f32 %v8926_v17  ;;  %4675 = vmatpush.bf16.msra.mxu3 %v9168_v7  ;;  %v9149_v7 = vld [vmem:[#allocation11 + $0x78] sm:$0xf0] }
 0x656   :  { %11092 = vrcp.f32 %v12908_v3  ;;  %v3791_v60 = vand.u32 2147483647, %v12908_v3  ;;  %v3793_v1 = vand.u32 2147483648, %v12908_v3  ;;  %vm3787_vm8 = vweird.f32 %v12908_v3 }
 0x657   :  { %11094 = vrcp.f32 %v12910_v42  ;;  %v3733_v46 = vpop.f32.mrf.mxu2  ;;  %v3747_v13 = vpop.f32.mrf.mxu3  ;;  %v3808_v35 = vand.u32 2147483648, %v12910_v42  ;;  %v3806_v6 = vand.u32 2147483647, %v12910_v42  ;;  %vm3802_vm9 = vweird.f32 %v12910_v42 }
 0x658   :  { %11096 = vpow2.f32 %v8927_v21  ;;  %v3756_v51 = vadd.f32 %v3733_v46, %v3494_v63  ;;  %v4168_v24 = vpop.f32.mrf.mxu0  ;;  %v4217_v50 = vpop.f32.mrf.mxu1  ;;  %vm12950_vm10 = vcmp.eq.f32.partialorder %v3791_v60, 8.507059e+37  ;;  %v3794_v11 = vor.u32 1.1754944e-38, %v3793_v1  ;;  %v10526_v1 = vld [vmem:[#allocation11 + $0x74] sm:$0xf0] }
 0x659   :  { %v4169_v48 = vadd.f32 %v4168_v24, %v12912_v53  ;;  %v4218_v29 = vadd.f32 %v4217_v50, %v12916_v15  ;;  %v3809_v39 = vor.u32 1.1754944e-38, %v3808_v35  ;;  %vm12959_vm13 = vcmp.eq.f32.partialorder %v3806_v6, 8.507059e+37 }
 0x65a   :  { %v11089_v56 = vpop.eup %11088  ;;  %v8928_v45 = vmul.f32 -1.442695, %v3756_v51  ;;  %v3757_v8 = vadd.f32 %v3747_v13, %v3495_v40  ;;  %v9139_v51 = vld [vmem:[#allocation11 + $0x60] sm:$0xf] }
 0x65b   :  { %v11091_v27 = vpop.eup %11090  ;;  %v12922_v58 = vadd.f32 1.0, %v11089_v56  ;;  %v12930_v14 = vpack.c.bf16 %v4218_v29, %v4169_v48  ;;  %v10525_v48 = vld [vmem:[#allocation11 + $0x6c] sm:$0xf0]  ;;  %v10523_v56 = vld [vmem:[#allocation11 + $0x64] sm:$0xf] }
 0x65c   :  { %v11093_v9 = vpop.eup %11092  ;;  %v12928_v47 = vadd.f32 1.0, %v11091_v27  ;;  %11098 = vpow2.f32 %v8928_v45 }
 0x65d   :  { %v11095_v36 = vpop.eup %11094  ;;  %v3783_v26 = vmul.f32 %v11093_v9, %v12908_v3  ;;  %11100 = vrcp.f32 %v12922_v58  ;;  %v3823_v44 = vand.u32 2147483648, %v12922_v58  ;;  %vm3788_vm11 = vweird.f32 %v11093_v9 }
 0x65e   :  { %v11097_v22 = vpop.eup %11096  ;;  %v3798_v23 = vmul.f32 %v11095_v36, %v12910_v42  ;;  %11102 = vtanh.f32 %v3753_v28  ;;  %vm3803_vm12 = vweird.f32 %v11095_v36  ;;  %v3821_v61 = vand.u32 2147483647, %v12922_v58  ;;  %vm3789_vm14 = vmor %vm3787_vm8, %vm3788_vm11  ;;  %v9141_v28 = vld [vmem:[#allocation11 + $0x70] sm:$0xf0] }
 0x65f   :  { %v3784_v59 = vsub.f32 1.0, %v3783_v26  ;;  %11104 = vrcp.f32 %v12928_v47  ;;  %v12942_v55 = vadd.f32 1.0, %v11097_v22  ;;  %v12944_v16 = vpop.f32.mrf.mxu2  ;;  %v12946_v4 = vpop.f32.mrf.mxu3  ;;  %v12970_v19 = vor.u32 1.1754944e-38, %v3823_v44  ;;  %vm3804_vm15 = vmor %vm3802_vm9, %vm3803_vm12  ;;  %v9147_v26 = vld [vmem:[#allocation11 + $0x68] sm:$0xf] }
 0x660   :  { %v3799_v0 = vsub.f32 1.0, %v3798_v23  ;;  %v12954_v57 = vpop.f32.mrf.mxu0  ;;  %v12956_v30 = vpop.f32.mrf.mxu1  ;;  %v3836_v63 = vand.u32 2147483647, %v12928_v47  ;;  %vm3817_vm0 = vweird.f32 %v12922_v58  ;;  %vm12997_vm1 = vcmp.eq.f32.partialorder %v3821_v61, 8.507059e+37 }
 0x661   :  { %v3785_v18 = vmul.f32 %v11093_v9, %v3784_v59  ;;  %11106 = vrcp.f32 %v12942_v55  ;;  %v3853_v21 = vand.u32 2147483648, %v12942_v55  ;;  %v3838_v35 = vand.u32 2147483648, %v12928_v47 }
 0x662   :  { %v11099_v5 = vpop.eup %11098  ;;  %v3800_v2 = vmul.f32 %v11095_v36, %v3799_v0  ;;  %v3851_v6 = vand.u32 2147483647, %v12942_v55  ;;  %v9148_v37 = vor.u32 %v10526_v1, %v9147_v26  ;;  %v4267_v12 = vadd.f32 %v12944_v16, %v12925_v62 }
 0x663   :  { %v12963_v49 = vpop.eup %11100  ;;  %v3786_v41 = vadd.f32 %v11093_v9, %v3785_v18  ;;  %v12965_v33 = vadd.f32 1.0, %v11099_v5  ;;  %v9140_v18 = vor.u32 %v10525_v48, %v9139_v51  ;;  %vm3847_vm6 = vweird.f32 %v12942_v55  ;;  %v9125_v51 = vld [vmem:[#allocation11 + $0x50] sm:$0xf0] }
 0x664   :  { %v11103_v34 = vpop.eup %11102  ;;  %v3813_v31 = vmul.f32 %v12963_v49, %v12922_v58  ;;  %v3801_v20 = vadd.f32 %v11095_v36, %v3800_v2  ;;  %vm3818_vm2 = vweird.f32 %v12963_v49  ;;  %vm3832_vm7 = vweird.f32 %v12928_v47  ;;  %4662 = vmatpush.bf16.msra.mxu2 %v9148_v37 }
 0x665   :  { %v12975_v17 = vpop.eup %11104  ;;  %v3790_v43 = vsel %vm3789_vm14, %v11093_v9, %v3786_v41  ;;  %11108 = vrcp.f32 %v12965_v33  ;;  %vm13025_vm5 = vmor %vm3817_vm0, %vm3818_vm2  ;;  %4634 = vmatpush.bf16.msra.mxu0 %v9140_v18  ;;  %v4316_v41 = vadd.f32 %v12946_v4, %v12935_v10  ;;  %v3839_v61 = vor.u32 1.1754944e-38, %v3838_v35  ;;  %v10520_v35 = vld [vmem:[#allocation11 + $0x4c] sm:$0xf]  ;;  %v10515_v18 = vld [vmem:[#allocation11 + $0x24] sm:$0xf] }
 0x666   :  { %v3814_v46 = vsub.f32 1.0, %v3813_v31  ;;  %v3795_v3 = vsel %vm12950_vm10, %v3794_v11, %v3790_v43  ;;  %v3805_v13 = vsel %vm3804_vm15, %v11095_v36, %v3801_v20  ;;  %v3828_v38 = vmul.f32 %v12975_v17, %v12928_v47  ;;  %v9123_v43 = vld [vmem:[#allocation11 + $0x40] sm:$0xf]  ;;  %v9093_v31 = vld [vmem:[#allocation11 + $0x10] sm:$0xf0] }
 0x667   :  { %v12987_v24 = vpop.eup %11106  ;;  %v3810_v42 = vsel %vm12959_vm13, %v3809_v39, %v3805_v13  ;;  %v3876_v50 = vmul.f32 %v11103_v34, %v3795_v3  ;;  %11110 = vtanh.f32 %v3757_v8  ;;  %v12992_v45 = vpop.f32.mrf.mxu2  ;;  %vm3833_vm3 = vweird.f32 %v12975_v17  ;;  %v10524_v8 = vld [vmem:[#allocation11 + $0x6c] sm:$0xf] }
 0x668   :  { %v12994_v29 = vpop.f32.mrf.mxu3  ;;  %v3815_v27 = vmul.f32 %v12963_v49, %v3814_v46  ;;  %v3874_v9 = vmul.f32 %v3810_v42, %v12813_v25  ;;  %v3829_v60 = vsub.f32 1.0, %v3828_v38  ;;  %v3843_v36 = vmul.f32 %v12987_v24, %v12942_v55  ;;  %v4173_v22 = vpop.f32.mrf.mxu0  ;;  %vm13039_vm8 = vmor %vm3832_vm7, %vm3833_vm3  ;;  %v10521_v46 = vld [vmem:[#allocation11 + $0x4c] sm:$0xf0]  ;;  %v10519_v38 = vld [vmem:[#allocation11 + $0x44] sm:$0xf] }
 0x669   :  { %v4222_v23 = vpop.f32.mrf.mxu1  ;;  %v9144_v11 = vor.u32 %v10523_v56, %v9141_v28  ;;  %vm3848_vm4 = vweird.f32 %v12987_v24  ;;  %vm3837_vm10 = vcmp.eq.f32.partialorder %v3836_v63, 8.507059e+37  ;;  %v13059_v13 = vpack.c.bf16 %v4316_v41, %v4267_v12  ;;  %v10522_v28 = vld [vmem:[#allocation11 + $0x54] sm:$0xf0]  ;;  %v10513_v41 = vld [vmem:[#allocation11 + $0xc] sm:$0xf0] }
 0x66a   :  { %v3816_v59 = vadd.f32 %v12963_v49, %v3815_v27  ;;  %v3878_v0 = vadd.f32 %v3876_v50, %v3874_v9  ;;  %v3844_v25 = vsub.f32 1.0, %v3843_v36  ;;  %v3830_v44 = vmul.f32 %v12975_v17, %v3829_v60  ;;  %vm13048_vm9 = vmor %vm3847_vm6, %vm3848_vm4 }
 0x66b   :  { %v13010_v32 = vpop.eup %11108  ;;  %4648 = vmatpush.bf16.msra.mxu1 %v9144_v11  ;;  %vm3852_vm11 = vcmp.eq.f32.partialorder %v3851_v6, 8.507059e+37  ;;  %v9152_v60 = vor.u32 %v10524_v8, %v9149_v7  ;;  %v4223_v1 = vadd.f32 %v4222_v23, %v12916_v15  ;;  %v9133_v6 = vld [vmem:[#allocation11 + $0x58] sm:$0xf0]  ;;  %v9124_v40 = vor.u32 %v10521_v46, %v9123_v43  ;;  %v9109_v11 = vld [vmem:[#allocation11 + $0x30] sm:$0xf0] }
 0x66c   :  { %11112 = vtanh.f32 %v3878_v0  ;;  %7678 = vst [vmem:[%s14432_s11] sm:$0xff] %v3878_v0  ;;  %v3845_v5 = vmul.f32 %v12987_v24, %v3844_v25  ;;  %v3858_v2 = vmul.f32 %v13010_v32, %v12965_v33  ;;  %v3831_v16 = vadd.f32 %v12975_v17, %v3830_v44  ;;  %v10517_v44 = vld [vmem:[#allocation11 + $0x2c] sm:$0xf0]  ;;  %v9115_v23 = vld [vmem:[#allocation11 + $0x28] sm:$0xf] }
 0x66d   :  { %v11111_v39 = vpop.eup %11110  ;;  %v3820_v58 = vsel %vm13025_vm5, %v12963_v49, %v3816_v59  ;;  %v3854_v49 = vor.u32 1.1754944e-38, %v3853_v21  ;;  %v9131_v21 = vld [vmem:[#allocation11 + $0x48] sm:$0xf]  ;;  %vm3863_vm12 = vweird.f32 %v13010_v32  ;;  %v9107_v59 = vld [vmem:[#allocation11 + $0x20] sm:$0xf]  ;;  %4676 = vmatpush.bf16.msra.mxu3 %v9152_v60  ;;  %vm3862_vm13 = vweird.f32 %v12965_v33  ;;  %4635 = vmatpush.bf16.msra.mxu0 %v9124_v40 }
 0x66e   :  { %v3859_v34 = vsub.f32 1.0, %v3858_v2  ;;  %v3846_v20 = vadd.f32 %v12987_v24, %v3845_v5  ;;  %v3835_v3 = vsel %vm13039_vm8, %v12975_v17, %v3831_v16  ;;  %v3825_v63 = vsel %vm12997_vm1, %v12970_v19, %v3820_v58  ;;  %v10518_v5 = vld [vmem:[#allocation11 + $0x34] sm:$0xf0]  ;;  %v10516_v2 = vld [vmem:[#allocation11 + $0x2c] sm:$0xf]  ;;  %vm13096_vm14 = vmor %vm3862_vm13, %vm3863_vm12 }
 0x66f   :  { %v4271_v42 = vpop.f32.mrf.mxu2  ;;  %v3840_v56 = vsel %vm3837_vm10, %v3839_v61, %v3835_v3  ;;  %v9128_v19 = vor.u32 %v10519_v38, %v9125_v51  ;;  %v9132_v25 = vor.u32 %v10522_v28, %v9131_v21  ;;  %v9091_v16 = vld [vmem:[#allocation11] sm:$0xf]  ;;  %v3868_v8 = vand.u32 2147483648, %v12965_v33  ;;  %v9099_v38 = vld [vmem:[#allocation11 + $0x8] sm:$0xf] }
 0x670   :  { %v4320_v50 = vpop.f32.mrf.mxu3  ;;  %v3860_v48 = vmul.f32 %v13010_v32, %v3859_v34  ;;  %v3850_v55 = vsel %vm13048_vm9, %v12987_v24, %v3846_v20  ;;  %v13065_v17 = vpop.f32.mrf.mxu0  ;;  %v3877_v9 = vmul.f32 %v11111_v39, %v3840_v56  ;;  %v4174_v24 = vadd.f32 %v4173_v22, %v12912_v53  ;;  %v10511_v34 = vld [vmem:[#allocation11 + $0x4] sm:$0xf]  ;;  %v10514_v51 = vld [vmem:[#allocation11 + $0x14] sm:$0xf0] }
 0x671   :  { %v13067_v47 = vpop.f32.mrf.mxu1  ;;  %v3855_v27 = vsel %vm3852_vm11, %v3854_v49, %v3850_v55  ;;  %v4272_v22 = vadd.f32 %v4271_v42, %v12925_v62  ;;  %4649 = vmatpush.bf16.msra.mxu1 %v9128_v19  ;;  %v4321_v39 = vadd.f32 %v4320_v50, %v12935_v10  ;;  %4663 = vmatpush.bf16.msra.mxu2 %v9132_v25  ;;  %v3866_v20 = vand.u32 2147483647, %v12965_v33 }
 0x672   :  { %v11113_v36 = vpop.eup %11112  ;;  %v3875_v26 = vmul.f32 %v3855_v27, %v12869_v52  ;;  %v3861_v37 = vadd.f32 %v13010_v32, %v3860_v48  ;;  %v13079_v52 = vpack.c.bf16 %v4223_v1, %v4174_v24  ;;  %v9136_v7 = vor.u32 %v10520_v35, %v9133_v6  ;;  %v9101_v27 = vld [vmem:[#allocation11 + $0x18] sm:$0xf0] }
 0x673   :  { %v13076_v0 = vmul.f32 %v11113_v36, %v3825_v63  ;;  %v9108_v58 = vor.u32 %v10517_v44, %v9107_v59  ;;  %v13101_v43 = vpack.c.bf16 %v4321_v39, %v4272_v22  ;;  %v9112_v49 = vor.u32 %v10515_v18, %v9109_v11  ;;  %v10512_v63 = vld [vmem:[#allocation11 + $0xc] sm:$0xf] }
 0x674   :  { %v3879_v12 = vadd.f32 %v3877_v9, %v3875_v26  ;;  %v9116_v3 = vor.u32 %v10518_v5, %v9115_v23  ;;  %v3865_v42 = vsel %vm13096_vm14, %v13010_v32, %v3861_v37  ;;  %4677 = vmatpush.bf16.msra.mxu3 %v9136_v7  ;;  %v9120_v56 = vor.u32 %v10516_v2, %v9117_v54 }
 0x675   :  { %7670 = vst [vmem:[%s14431_s10] sm:$0xff] %v13076_v0  ;;  %v9092_v55 = vor.u32 %v10513_v41, %v9091_v16  ;;  %4636 = vmatpush.bf16.msra.mxu0 %v9108_v58  ;;  %4650 = vmatpush.bf16.msra.mxu1 %v9112_v49  ;;  %v9096_v28 = vor.u32 %v10511_v34, %v9093_v31  ;;  %v3869_v9 = vor.u32 1.1754944e-38, %v3868_v8  ;;  %vm3867_vm15 = vcmp.eq.f32.partialorder %v3866_v20, 8.507059e+37  ;;  %v104_v34 = vld [vmem:[%s14422_s1 + $0x10] sm:$0xff]  ;;  %v105_v31 = vld [vmem:[%s14422_s1 + $0x18] sm:$0xff] }
 0x676   :  { %11114 = vtanh.f32 %v3879_v12  ;;  %7679 = vst [vmem:[%s14432_s11 + $0x8] sm:$0xff] %v3879_v12  ;;  %4664 = vmatpush.bf16.msra.mxu2 %v9116_v3  ;;  %v9100_v60 = vor.u32 %v10514_v51, %v9099_v38  ;;  %v9104_v24 = vor.u32 %v10512_v63, %v9101_v27  ;;  %v4437_v61 = vpack.c.bf16 %v105_v31, %v104_v34 }
 0x677   :  { %v13103_v46 = vpop.f32.mrf.mxu2  ;;  %v3870_v26 = vsel %vm3867_vm15, %v3869_v9, %v3865_v42 }
 0x678   :  { %v13105_v4 = vpop.f32.mrf.mxu3  ;;  %v4178_v50 = vpop.f32.mrf.mxu0  ;;  %4678 = vmatpush.bf16.msra.mxu3 %v9120_v56 }
 0x679   :  { %v4227_v48 = vpop.f32.mrf.mxu1  ;;  %v4179_v33 = vadd.f32 %v4178_v50, %v12912_v53  ;;  %4637 = vmatpush.bf16.msra.mxu0 %v9092_v55  ;;  %4651 = vmatpush.bf16.msra.mxu1 %v9096_v28 }
 0x67a   :  { %v4228_v21 = vadd.f32 %v4227_v48, %v12916_v15  ;;  %4665 = vmatpush.bf16.msra.mxu2 %v9100_v60 }
 0x67c   :  { %v13112_v36 = vpack.c.bf16 %v4228_v21, %v4179_v33  ;;  %v11115_v32 = vpop.eup %11114  ;;  %4679 = vmatpush.bf16.msra.mxu3 %v9104_v24 }
 0x67d   :  { %v3883_v1 = vmul.f32 %v11115_v32, %v3870_v26 }
 0x67f   :  { %v10805_v35 = vpack.c.bf16 %v3883_v1, %v13076_v0  ;;  %7671 = vst [vmem:[%s14431_s10 + $0x8] sm:$0xff] %v3883_v1  ;;  %v4276_v6 = vpop.f32.mrf.mxu2 }
 0x680   :  { %v4325_v59 = vpop.f32.mrf.mxu3  ;;  %v4277_v40 = vadd.f32 %v4276_v6, %v12925_v62  ;;  %v13120_v25 = vpop.f32.mrf.mxu0 }
 0x681   :  { %v4326_v19 = vadd.f32 %v4325_v59, %v12935_v10  ;;  %v13122_v44 = vpop.f32.mrf.mxu1  ;;  %10806 = vst [vmem:[#allocation3 + $0x38] sm:$0xff] %v10805_v35  }
 0x683   :  { %v13124_v18 = vpack.c.bf16 %v4326_v19, %v4277_v40 }
 0x687   :  { %v13126_v11 = vpop.f32.mrf.mxu2 }
 0x688   :  { %v13128_v0 = vpop.f32.mrf.mxu3  ;;  %v4183_v37 = vpop.f32.mrf.mxu0  ;;  %v10478_v12 = vld [vmem:[#allocation3 + $0x38] sm:$0xff] }
 0x689   :  { %v4232_v22 = vpop.f32.mrf.mxu1  ;;  %v4184_v23 = vadd.f32 %v4183_v37, %v12912_v53  ;;  %4202 = vmatmul.bf16.gmra.mxu0 %v10478_v12  ;;  %4251 = vmatmul.bf16.gmra.mxu1 %v10478_v12 }
 0x68a   :  { %v4233_v5 = vadd.f32 %v4232_v22, %v12916_v15  ;;  %4300 = vmatmul.bf16.gmra.mxu2 %v10478_v12  ;;  %4349 = vmatmul.bf16.gmra.mxu3 %v10478_v12 }
 0x68c   :  { %v13132_v2 = vpack.c.bf16 %v4233_v5, %v4184_v23 }
 0x68f   :  { %v4281_v39 = vpop.f32.mrf.mxu2 }
 0x690   :  { %v4330_v54 = vpop.f32.mrf.mxu3  ;;  %v4282_v16 = vadd.f32 %v4281_v39, %v12925_v62  ;;  %v13136_v8 = vpop.f32.mrf.mxu0 }
 0x691   :  { %v4331_v41 = vadd.f32 %v4330_v54, %v12935_v10  ;;  %v13138_v7 = vpop.f32.mrf.mxu1 }
 0x693   :  { %v13140_v58 = vpack.c.bf16 %v4331_v41, %v4282_v16 }
 0x697   :  { %v13148_v20 = vpop.f32.mrf.mxu2 }
 0x698   :  { %v13150_v49 = vpop.f32.mrf.mxu3  ;;  %v4188_v3 = vpop.f32.mrf.mxu0 }
 0x699   :  { %v4237_v38 = vpop.f32.mrf.mxu1  ;;  %v4189_v51 = vadd.f32 %v4188_v3, %v12912_v53  ;;  %4638 = vmatmul.bf16.vlgmr.msra.gmra.mxu0 %v4437_v61  ;;  %4652 = vmatmul.bf16.vlgmr.msra.gmra.mxu1 %v4437_v61 }
 0x69a   :  { %v4238_v42 = vadd.f32 %v4237_v38, %v12916_v15  ;;  %4666 = vmatmul.bf16.vlgmr.msra.gmra.mxu2 %v4437_v61  ;;  %4680 = vmatmul.bf16.vlgmr.msra.gmra.mxu3 %v4437_v61 }
 0x69c   :  { %v13154_v50 = vpack.c.bf16 %v4238_v42, %v4189_v51 }
 0x69e   :  { %14621 = vst [vmem:[#allocation16_spill] sm:$0xff] %v13154_v50 }
 0x69f   :  { %v4286_v48 = vpop.f32.mrf.mxu2 }
 0x6a0   :  { %v4335_v56 = vpop.f32.mrf.mxu3  ;;  %v4287_v55 = vadd.f32 %v4286_v48, %v12925_v62  ;;  %v4190_v21 = vpop.f32.mrf.mxu0 }
 0x6a1   :  { %v4336_v33 = vadd.f32 %v4335_v56, %v12935_v10  ;;  %v4239_v28 = vpop.f32.mrf.mxu1  ;;  %v4191_v63 = vadd.f32 %v4190_v21, %v12912_v53 }
 0x6a2   :  { %v4240_v27 = vadd.f32 %v4239_v28, %v12916_v15 }
 0x6a3   :  { %v13160_v9 = vpack.c.bf16 %v4336_v33, %v4287_v55 }
 0x6a4   :  { %v13162_v60 = vpack.c.bf16 %v4240_v27, %v4191_v63 }
 0x6a5   :  { %14622 = vst [vmem:[#allocation18_spill] sm:$0xff] %v13160_v9  ;;  %v9291_v9 = vld [vmem:[#allocation11 + $0x90] sm:$0xf0] }
 0x6a6   :  { %14623 = vst [vmem:[#allocation19_spill] sm:$0xff] %v13162_v60  ;;  %v10559_v60 = vld [vmem:[#allocation11 + $0x84] sm:$0xf] }
 0x6a7   :  { %v4288_v32 = vpop.f32.mrf.mxu2 }
 0x6a8   :  { %v4337_v26 = vpop.f32.mrf.mxu3  ;;  %v4289_v24 = vadd.f32 %v4288_v32, %v12925_v62  ;;  %v4193_v35 = vpop.f32.mrf.mxu0 }
 0x6a9   :  { %v4338_v1 = vadd.f32 %v4337_v26, %v12935_v10  ;;  %v4242_v6 = vpop.f32.mrf.mxu1  ;;  %v4194_v59 = vadd.f32 %v4193_v35, %v12912_v53 }
 0x6aa   :  { %v4243_v40 = vadd.f32 %v4242_v6, %v12916_v15 }
 0x6ab   :  { %v13168_v19 = vpack.c.bf16 %v4338_v1, %v4289_v24 }
 0x6ac   :  { %v13170_v37 = vpack.c.bf16 %v4243_v40, %v4194_v59 }
 0x6ad   :  { %14624 = vst [vmem:[#allocation17_spill] sm:$0xff] %v13168_v19  ;;  %v10561_v19 = vld [vmem:[#allocation11 + $0x8c] sm:$0xf0] }
 0x6ae   :  { %14625 = vst [vmem:[#allocation21_spill] sm:$0xff] %v13170_v37 }
 0x6af   :  { %v4291_v12 = vpop.f32.mrf.mxu2 }
 0x6b0   :  { %v4340_v22 = vpop.f32.mrf.mxu3  ;;  %v4292_v23 = vadd.f32 %v4291_v12, %v12925_v62  ;;  %v4195_v39 = vpop.f32.mrf.mxu0 }
 0x6b1   :  { %v4341_v5 = vadd.f32 %v4340_v22, %v12935_v10  ;;  %v4244_v54 = vpop.f32.mrf.mxu1  ;;  %v4196_v16 = vadd.f32 %v4195_v39, %v12912_v53 }
 0x6b2   :  { %v4245_v41 = vadd.f32 %v4244_v54, %v12916_v15 }
 0x6b3   :  { %v13176_v34 = vpack.c.bf16 %v4341_v5, %v4292_v23 }
 0x6b4   :  { %v13178_v31 = vpack.c.bf16 %v4245_v41, %v4196_v16 }
 0x6b5   :  { %14626 = vst [vmem:[#allocation22_spill] sm:$0xff] %v13176_v34 }
 0x6b6   :  { %14627 = vst [vmem:[#allocation20_spill] sm:$0xff] %v13178_v31  ;;  %v9289_v31 = vld [vmem:[#allocation11 + $0x80] sm:$0xf] }
 0x6b7   :  { %v4293_v61 = vpop.f32.mrf.mxu2 }
 0x6b8   :  { %v4342_v3 = vpop.f32.mrf.mxu3  ;;  %v4294_v38 = vadd.f32 %v4293_v61, %v12925_v62  ;;  %v4198_v42 = vpop.f32.mrf.mxu0 }
 0x6b9   :  { %v4343_v51 = vadd.f32 %v4342_v3, %v12935_v10  ;;  %v4247_v48 = vpop.f32.mrf.mxu1  ;;  %v4199_v56 = vadd.f32 %v4198_v42, %v12912_v53 }
 0x6ba   :  { %v4248_v55 = vadd.f32 %v4247_v48, %v12916_v15  ;;  %v4171_v48 = vadd.f32 %v12954_v57, %v12912_v53 }
 0x6bb   :  { %v13184_v33 = vpack.c.bf16 %v4343_v51, %v4294_v38 }
 0x6bc   :  { %v13186_v21 = vpack.c.bf16 %v4248_v55, %v4199_v56  ;;  %v4220_v56 = vadd.f32 %v12956_v30, %v12916_v15  ;;  %v4269_v30 = vadd.f32 %v12992_v45, %v12925_v62 }
 0x6bd   :  { %14628 = vst [vmem:[#allocation24_spill] sm:$0xff] %v13184_v33  ;;  %v9315_v33 = vld [vmem:[#allocation11 + $0xb8] sm:$0xf0] }
 0x6be   :  { %14629 = vst [vmem:[#allocation25_spill] sm:$0xff] %v13186_v21  ;;  %v4357_v57 = vpack.c.bf16 %v4220_v56, %v4171_v48 }
 0x6bf   :  { %v4296_v28 = vpop.f32.mrf.mxu2 }
 0x6c0   :  { %v4345_v63 = vpop.f32.mrf.mxu3  ;;  %v4297_v27 = vadd.f32 %v4296_v28, %v12925_v62  ;;  %v13192_v24 = vpop.f32.mrf.mxu0 }
 0x6c1   :  { %v4346_v32 = vadd.f32 %v4345_v63, %v12935_v10  ;;  %14631 = vst [vmem:[#allocation26_spill] sm:$0xff] %v13192_v24  ;;  %v13194_v1 = vpop.f32.mrf.mxu1  ;;  %v4429_v63 = vunpack.c.l.bf16 %v12930_v14 }
 0x6c2   :  { %14632 = vst [vmem:[#allocation27_spill] sm:$0xff] %v13194_v1  ;;  %v13309_v1 = vld [vmem:[#allocation11 + $0xa8] sm:$0xf] }
 0x6c3   :  { %v13190_v26 = vpack.c.bf16 %v4346_v32, %v4297_v27  ;;  %v4430_v27 = vunpack.c.h.bf16 %v12930_v14  ;;  %v4318_v14 = vadd.f32 %v12994_v29, %v12935_v10 }
 0x6c5   :  { %14630 = vst [vmem:[#allocation23_spill] sm:$0xff] %v13190_v26  ;;  %v4358_v56 = vpack.c.bf16 %v4318_v14, %v4269_v30  ;;  %v10573_v30 = vld [vmem:[#allocation11 + $0xec] sm:$0xf0]  ;;  %v4432_v14 = vunpack.c.h.bf16 %v13059_v13 }
 0x6c7   :  { %v13196_v35 = vpop.f32.mrf.mxu2 }
 0x6c8   :  { %14633 = vst [vmem:[#allocation28_spill] sm:$0xff] %v13196_v35  ;;  %v13198_v6 = vpop.f32.mrf.mxu3  ;;  %v10565_v35 = vld [vmem:[#allocation11 + $0xac] sm:$0xf0] }
 0x6c9   :  { %14634 = vst [vmem:[#allocation29_spill] sm:$0xff] %v13198_v6  ;;  %v9305_v6 = vld [vmem:[#allocation11 + $0xa0] sm:$0xf] }
 0x706   :  { %v4203_v59 = vpop.f32.mrf.mxu0  ;;  %v4252_v40 = vpop.f32.mrf.mxu1 }
 0x707   :  { %v4204_v12 = vadd.f32 %v4203_v59, %v12912_v53  ;;  %v4253_v22 = vadd.f32 %v4252_v40, %v12916_v15 }
 0x709   :  { %v13202_v23 = vpack.c.bf16 %v4253_v22, %v4204_v12 }
 0x70b   :  { %14635 = vst [vmem:[#allocation30_spill] sm:$0xff] %v13202_v23  ;;  %v9331_v23 = vld [vmem:[#allocation11 + $0xd8] sm:$0xf0] }
 0x70d   :  { %v4301_v5 = vpop.f32.mrf.mxu2  ;;  %v4350_v39 = vpop.f32.mrf.mxu3 }
 0x70e   :  { %v4302_v54 = vadd.f32 %v4301_v5, %v12925_v62  ;;  %v4351_v16 = vadd.f32 %v4350_v39, %v12935_v10  ;;  %v4205_v41 = vpop.f32.mrf.mxu0  ;;  %v4254_v61 = vpop.f32.mrf.mxu1 }
 0x70f   :  { %v4206_v3 = vadd.f32 %v4205_v41, %v12912_v53  ;;  %v4255_v38 = vadd.f32 %v4254_v61, %v12916_v15  ;;  %v4431_v41 = vunpack.c.l.bf16 %v13059_v13  ;;  %v9321_v13 = vld [vmem:[#allocation11 + $0xc0] sm:$0xf] }
 0x710   :  { %v13208_v51 = vpack.c.bf16 %v4351_v16, %v4302_v54 }
 0x711   :  { %v13210_v42 = vpack.c.bf16 %v4255_v38, %v4206_v3  ;;  %v4433_v3 = vunpack.c.l.bf16 %v4357_v57  ;;  %v4434_v38 = vunpack.c.h.bf16 %v4357_v57  ;;  %v4435_v57 = vunpack.c.l.bf16 %v4358_v56 }
 0x712   :  { %14636 = vst [vmem:[#allocation31_spill] sm:$0xff] %v13208_v51 }
 0x713   :  { %14637 = vst [vmem:[#allocation33_spill] sm:$0xff] %v13210_v42 }
 0x715   :  { %v4303_v55 = vpop.f32.mrf.mxu2  ;;  %v4352_v28 = vpop.f32.mrf.mxu3 }
 0x716   :  { %v4304_v32 = vadd.f32 %v4303_v55, %v12925_v62  ;;  %v4353_v59 = vadd.f32 %v4352_v28, %v12935_v10  ;;  %v4639_v40 = vpop.f32.mrf.mxu0  ;;  %v4653_v12 = vpop.f32.mrf.mxu1 }
 0x717   :  { %v4686_v22 = vadd.f32 %v4639_v40, %v4429_v63  ;;  %v4687_v5 = vadd.f32 %v4653_v12, %v4430_v27 }
 0x718   :  { %v13220_v39 = vpack.c.bf16 %v4353_v59, %v4304_v32 }
 0x719   :  { %v9217_v54 = vmul.f32 -1.442695, %v4686_v22  ;;  %v9218_v16 = vmul.f32 -1.442695, %v4687_v5 }
 0x71a   :  { %14638 = vst [vmem:[#allocation32_spill] sm:$0xff] %v13220_v39 }
 0x71b   :  { %11116 = vpow2.f32 %v9217_v54  ;;  %v9337_v54 = vld [vmem:[#allocation11 + $0xe0] sm:$0xf] }
 0x71c   :  { %11118 = vpow2.f32 %v9218_v16 }
 0x71d   :  { %v4667_v61 = vpop.f32.mrf.mxu2  ;;  %v4681_v59 = vpop.f32.mrf.mxu3 }
 0x71e   :  { %v4688_v55 = vadd.f32 %v4667_v61, %v4431_v41  ;;  %v4641_v28 = vpop.f32.mrf.mxu0  ;;  %v4655_v63 = vpop.f32.mrf.mxu1  ;;  %v10571_v61 = vld [vmem:[#allocation11 + $0xe4] sm:$0xf] }
 0x71f   :  { %v4690_v27 = vadd.f32 %v4641_v28, %v4433_v3  ;;  %v4691_v48 = vadd.f32 %v4655_v63, %v4434_v38  ;;  %v9339_v3 = vld [vmem:[#allocation11 + $0xf0] sm:$0xf0]  ;;  %v9338_v38 = vor.u32 %v10573_v30, %v9337_v54  ;;  %v10574_v28 = vld [vmem:[#allocation11 + $0xf4] sm:$0xf0] }
 0x720   :  { %v9219_v32 = vmul.f32 -1.442695, %v4688_v55  ;;  %v9345_v55 = vld [vmem:[#allocation11 + $0xe8] sm:$0xf] }
 0x721   :  { %v11117_v40 = vpop.eup %11116  ;;  %v9220_v12 = vmul.f32 -1.442695, %v4690_v27  ;;  %v9221_v29 = vmul.f32 -1.442695, %v4691_v48  ;;  %v4689_v27 = vadd.f32 %v4681_v59, %v4432_v14  ;;  %5034 = vmatpush.bf16.msrb.mxu0 %v9338_v38 }
 0x722   :  { %v11119_v45 = vpop.eup %11118  ;;  %v13227_v22 = vadd.f32 1.0, %v11117_v40  ;;  %11120 = vpow2.f32 %v9219_v32  ;;  %v9342_v32 = vor.u32 %v10571_v61, %v9339_v3  ;;  %v9346_v40 = vor.u32 %v10574_v28, %v9345_v55 }
 0x723   :  { %v13229_v5 = vadd.f32 1.0, %v11119_v45  ;;  %11122 = vpow2.f32 %v9220_v12  ;;  %v10572_v12 = vld [vmem:[#allocation11 + $0xec] sm:$0xf]  ;;  %v9347_v45 = vld [vmem:[#allocation11 + $0xf8] sm:$0xf0]  ;;  %v4436_v3 = vunpack.c.h.bf16 %v4358_v56 }
 0x724   :  { %11124 = vrcp.f32 %v13227_v22  ;;  %v9350_v51 = vor.u32 %v10572_v12, %v9347_v45  ;;  %5048 = vmatpush.bf16.msrb.mxu1 %v9342_v32  ;;  %5062 = vmatpush.bf16.msrb.mxu2 %v9346_v40  ;;  %v4729_v61 = vand.u32 2147483648, %v13227_v22  ;;  %vm4723_vm1 = vweird.f32 %v13227_v22  ;;  %v10567_v56 = vld [vmem:[#allocation11 + $0xc4] sm:$0xf]  ;;  %v9323_v12 = vld [vmem:[#allocation11 + $0xd0] sm:$0xf0] }
 0x725   :  { %11126 = vrcp.f32 %v13229_v5  ;;  %v4669_v16 = vpop.f32.mrf.mxu2  ;;  %v4683_v30 = vpop.f32.mrf.mxu3  ;;  %v4744_v55 = vand.u32 2147483648, %v13229_v5  ;;  %v4742_v28 = vand.u32 2147483647, %v13229_v5  ;;  %vm4738_vm0 = vweird.f32 %v13229_v5 }
 0x726   :  { %11128 = vpow2.f32 %v9221_v29  ;;  %v4692_v41 = vadd.f32 %v4669_v16, %v4435_v57  ;;  %v10569_v29 = vld [vmem:[#allocation11 + $0xcc] sm:$0xf0]  ;;  %v4727_v16 = vand.u32 2147483647, %v13227_v22  ;;  %5076 = vmatpush.bf16.msrb.mxu3 %v9350_v51  ;;  %v4693_v32 = vadd.f32 %v4683_v30, %v4436_v3 }
 0x727   :  { %v9322_v59 = vor.u32 %v10569_v29, %v9321_v13  ;;  %v4745_v30 = vor.u32 1.1754944e-38, %v4744_v55  ;;  %vm13260_vm5 = vcmp.eq.f32.partialorder %v4742_v28, 8.507059e+37 }
 0x728   :  { %v11121_v63 = vpop.eup %11120  ;;  %v9222_v48 = vmul.f32 -1.442695, %v4692_v41  ;;  %vm13253_vm2 = vcmp.eq.f32.partialorder %v4727_v16, 8.507059e+37 }
 0x729   :  { %v11123_v39 = vpop.eup %11122  ;;  %v13234_v42 = vadd.f32 1.0, %v11121_v63  ;;  %5035 = vmatpush.bf16.msrb.mxu0 %v9322_v59 }
 0x72a   :  { %v11125_v57 = vpop.eup %11124  ;;  %v13237_v54 = vadd.f32 1.0, %v11123_v39  ;;  %11130 = vpow2.f32 %v9222_v48 }
 0x72b   :  { %v13239_v14 = vpop.eup %11126  ;;  %v4719_v41 = vmul.f32 %v11125_v57, %v13227_v22  ;;  %11132 = vrcp.f32 %v13234_v42  ;;  %vm4724_vm3 = vweird.f32 %v11125_v57  ;;  %vm4753_vm9 = vweird.f32 %v13234_v42 }
 0x72c   :  { %v11129_v38 = vpop.eup %11128  ;;  %v4734_v39 = vmul.f32 %v13239_v14, %v13229_v5  ;;  %11134 = vtanh.f32 %v4689_v27  ;;  %v4730_v27 = vor.u32 1.1754944e-38, %v4729_v61  ;;  %vm4739_vm4 = vweird.f32 %v13239_v14  ;;  %vm4725_vm6 = vmor %vm4723_vm1, %vm4724_vm3 }
 0x72d   :  { %v4720_v63 = vsub.f32 1.0, %v4719_v41  ;;  %11136 = vrcp.f32 %v13237_v54  ;;  %v13249_v48 = vadd.f32 1.0, %v11129_v38  ;;  %v9326_v38 = vor.u32 %v10567_v56, %v9323_v12  ;;  %vm13282_vm7 = vmor %vm4738_vm0, %vm4739_vm4  ;;  %v112_v56 = vld [vmem:[%s14423_s2 + $0x10] sm:$0xff] }
 0x72e   :  { %v4735_v40 = vsub.f32 1.0, %v4734_v39  ;;  %vm4768_vm8 = vweird.f32 %v13237_v54 }
 0x72f   :  { %v4721_v45 = vmul.f32 %v11125_v57, %v4720_v63  ;;  %11138 = vrcp.f32 %v13249_v48  ;;  %v4789_v22 = vand.u32 2147483648, %v13249_v48  ;;  %5049 = vmatpush.bf16.msrb.mxu1 %v9326_v38  ;;  %v9329_v63 = vld [vmem:[#allocation11 + $0xc8] sm:$0xf]  ;;  %v4787_v21 = vand.u32 2147483647, %v13249_v48 }
 0x730   :  { %v11131_v13 = vpop.eup %11130  ;;  %v4736_v29 = vmul.f32 %v13239_v14, %v4735_v40  ;;  %11140 = vtanh.f32 %v4693_v32  ;;  %vm4783_vm10 = vweird.f32 %v13249_v48 }
 0x731   :  { %v13264_v16 = vpop.eup %11132  ;;  %v4722_v41 = vadd.f32 %v11125_v57, %v4721_v45  ;;  %v13266_v3 = vadd.f32 1.0, %v11131_v13  ;;  %v4772_v45 = vand.u32 2147483647, %v13237_v54 }
 0x732   :  { %v11135_v61 = vpop.eup %11134  ;;  %v4749_v39 = vmul.f32 %v13264_v16, %v13234_v42  ;;  %v4737_v55 = vadd.f32 %v13239_v14, %v4736_v29  ;;  %vm4754_vm14 = vweird.f32 %v13264_v16 }
 0x733   :  { %v13276_v28 = vpop.eup %11136  ;;  %v4726_v12 = vsel %vm4725_vm6, %v11125_v57, %v4722_v41  ;;  %11142 = vrcp.f32 %v13266_v3  ;;  %v10570_v57 = vld [vmem:[#allocation11 + $0xd4] sm:$0xf0]  ;;  %v10568_v41 = vld [vmem:[#allocation11 + $0xcc] sm:$0xf]  ;;  %vm13313_vm11 = vcmp.eq.f32.partialorder %v4772_v45, 8.507059e+37  ;;  %vm13364_vm3 = vmor %vm4753_vm9, %vm4754_vm14 }
 0x734   :  { %v4750_v13 = vsub.f32 1.0, %v4749_v39  ;;  %v4731_v5 = vsel %vm13253_vm2, %v4730_v27, %v4726_v12  ;;  %v4741_v29 = vsel %vm13282_vm7, %v13239_v14, %v4737_v55  ;;  %v4764_v40 = vmul.f32 %v13276_v28, %v13237_v54  ;;  %v10563_v14 = vld [vmem:[#allocation11 + $0xa4] sm:$0xf]  ;;  %v9307_v39 = vld [vmem:[#allocation11 + $0xb0] sm:$0xf0] }
 0x735   :  { %v13299_v26 = vpop.eup %11138  ;;  %v4746_v38 = vsel %vm13260_vm5, %v4745_v30, %v4741_v29  ;;  %v4812_v51 = vmul.f32 %v11135_v61, %v4731_v5  ;;  %v4774_v27 = vand.u32 2147483648, %v13237_v54  ;;  %v4790_v61 = vor.u32 1.1754944e-38, %v4789_v22  ;;  %v10566_v29 = vld [vmem:[#allocation11 + $0xb4] sm:$0xf0] }
 0x736   :  { %v4810_v55 = vmul.f32 %v4746_v38, %v112_v56  ;;  %v4765_v32 = vsub.f32 1.0, %v4764_v40  ;;  %v4779_v12 = vmul.f32 %v13299_v26, %v13249_v48  ;;  %v11141_v59 = vpop.eup %11140  ;;  %v4751_v30 = vmul.f32 %v13264_v16, %v4750_v13  ;;  %v10564_v56 = vld [vmem:[#allocation11 + $0xac] sm:$0xf] }
 0x737   :  { %vm4769_vm12 = vweird.f32 %v13276_v28  ;;  %v9330_v13 = vor.u32 %v10570_v57, %v9329_v63  ;;  %v9334_v37 = vor.u32 %v10568_v41, %v9331_v23  ;;  %v9306_v22 = vor.u32 %v10565_v35, %v9305_v6  ;;  %v113_v23 = vld [vmem:[%s14423_s2 + $0x18] sm:$0xff]  ;;  %v10560_v41 = vld [vmem:[#allocation11 + $0x8c] sm:$0xf] }
 0x738   :  { %v13317_v40 = vadd.f32 %v4812_v51, %v4810_v55  ;;  %v4780_v38 = vsub.f32 1.0, %v4779_v12  ;;  %v4766_v24 = vmul.f32 %v13276_v28, %v4765_v32  ;;  %v9310_v45 = vor.u32 %v10563_v14, %v9307_v39  ;;  %v9297_v32 = vld [vmem:[#allocation11 + $0x88] sm:$0xf]  ;;  %v10562_v57 = vld [vmem:[#allocation11 + $0x94] sm:$0xf0]  ;;  %vm13337_vm15 = vmor %vm4768_vm8, %vm4769_vm12 }
 0x739   :  { %v13321_v34 = vpop.eup %11142  ;;  %vm4784_vm13 = vweird.f32 %v13299_v26  ;;  %v4775_v55 = vor.u32 1.1754944e-38, %v4774_v27  ;;  %5063 = vmatpush.bf16.msrb.mxu2 %v9330_v13  ;;  %5077 = vmatpush.bf16.msrb.mxu3 %v9334_v37  ;;  %v9314_v6 = vor.u32 %v10566_v29, %v13309_v1  ;;  %v9318_v63 = vor.u32 %v10564_v56, %v9315_v33  ;;  %v9299_v14 = vld [vmem:[#allocation11 + $0x98] sm:$0xf0]  ;;  %v9273_v1 = vld [vmem:[#allocation11 + $0x60] sm:$0xf] }
 0x73a   :  { %v4781_v50 = vmul.f32 %v13299_v26, %v4780_v38  ;;  %v4794_v51 = vmul.f32 %v13321_v34, %v13266_v3  ;;  %v4767_v35 = vadd.f32 %v13276_v28, %v4766_v24  ;;  %5036 = vmatpush.bf16.msrb.mxu0 %v9306_v22  ;;  %5050 = vmatpush.bf16.msrb.mxu1 %v9310_v45  ;;  %v10557_v33 = vld [vmem:[#allocation11 + $0x6c] sm:$0xf0]  ;;  %v14649_v56 = vand.u32 2147483647, %v13234_v42  ;;  %vm4785_vm1 = vmor %vm4783_vm10, %vm4784_vm13  ;;  %v10558_v45 = vld [vmem:[#allocation11 + $0x74] sm:$0xf0] }
 0x73b   :  { %v9290_v37 = vor.u32 %v10561_v19, %v9289_v31  ;;  %v9294_v24 = vor.u32 %v10559_v60, %v9291_v9  ;;  %v4752_v29 = vadd.f32 %v13264_v16, %v4751_v30  ;;  %11144 = vtanh.f32 %v13317_v40  ;;  %v10555_v9 = vld [vmem:[#allocation11 + $0x64] sm:$0xf]  ;;  %v9275_v60 = vld [vmem:[#allocation11 + $0x70] sm:$0xf0]  ;;  %v10545_v38 = vld [vmem:[#allocation11 + $0xc] sm:$0xf0] }
 0x73c   :  { %v4795_v39 = vsub.f32 1.0, %v4794_v51  ;;  %v4782_v12 = vadd.f32 %v13299_v26, %v4781_v50  ;;  %vm13345_vm0 = vcmp.eq.f32.partialorder %v14649_v56, 8.507059e+37  ;;  %v4771_v50 = vsel %vm13337_vm15, %v13276_v28, %v4767_v35  ;;  %v10556_v35 = vld [vmem:[#allocation11 + $0x6c] sm:$0xf]  ;;  %v10551_v27 = vld [vmem:[#allocation11 + $0x44] sm:$0xf] }
 0x73d   :  { %vm4788_vm2 = vcmp.eq.f32.partialorder %v4787_v21, 8.507059e+37  ;;  %v4776_v19 = vsel %vm13313_vm11, %v4775_v55, %v4771_v50  ;;  %v9298_v54 = vor.u32 %v10562_v57, %v9297_v32  ;;  %v9302_v30 = vor.u32 %v10560_v41, %v9299_v14  ;;  %5064 = vmatpush.bf16.msrb.mxu2 %v9314_v6  ;;  %5078 = vmatpush.bf16.msrb.mxu3 %v9318_v63  ;;  %v9283_v57 = vld [vmem:[#allocation11 + $0x78] sm:$0xf0]  ;;  %v9257_v41 = vld [vmem:[#allocation11 + $0x40] sm:$0xf] }
 0x73e   :  { %v4786_v31 = vsel %vm4785_vm1, %v13299_v26, %v4782_v12  ;;  %v14654_v28 = vand.u32 2147483648, %v13234_v42  ;;  %v4796_v13 = vmul.f32 %v13321_v34, %v4795_v39  ;;  %v4813_v5 = vmul.f32 %v11141_v59, %v4776_v19  ;;  %v9281_v26 = vld [vmem:[#allocation11 + $0x68] sm:$0xf]  ;;  %5037 = vmatpush.bf16.msrb.mxu0 %v9290_v37  ;;  %5051 = vmatpush.bf16.msrb.mxu1 %v9294_v24  ;;  %v10553_v14 = vld [vmem:[#allocation11 + $0x4c] sm:$0xf0] }
 0x73f   :  { %v4791_v22 = vsel %vm4788_vm2, %v4790_v61, %v4786_v31  ;;  %v9274_v55 = vor.u32 %v10557_v33, %v9273_v1  ;;  %v9278_v32 = vor.u32 %v10555_v9, %v9275_v60  ;;  %v9259_v42 = vld [vmem:[#allocation11 + $0x50] sm:$0xf0]  ;;  %v4756_v61 = vsel %vm13364_vm3, %v13264_v16, %v4752_v29  ;;  %v9265_v24 = vld [vmem:[#allocation11 + $0x48] sm:$0xf]  ;;  %v10554_v1 = vld [vmem:[#allocation11 + $0x54] sm:$0xf0] }
 0x740   :  { %v4760_v21 = vor.u32 1.1754944e-38, %v14654_v28  ;;  %v4811_v51 = vmul.f32 %v4791_v22, %v113_v23  ;;  %v4802_v59 = vand.u32 2147483647, %v13266_v3  ;;  %v4804_v6 = vand.u32 2147483648, %v13266_v3  ;;  %v10552_v29 = vld [vmem:[#allocation11 + $0x4c] sm:$0xf] }
 0x741   :  { %v11145_v23 = vpop.eup %11144  ;;  %v4797_v39 = vadd.f32 %v13321_v34, %v4796_v13  ;;  %vm4799_vm4 = vweird.f32 %v13321_v34  ;;  %5065 = vmatpush.bf16.msrb.mxu2 %v9298_v54  ;;  %5079 = vmatpush.bf16.msrb.mxu3 %v9302_v30  ;;  %v9282_v12 = vor.u32 %v10558_v45, %v9281_v26  ;;  %v9286_v37 = vor.u32 %v10556_v35, %v9283_v57  ;;  %v9267_v56 = vld [vmem:[#allocation11 + $0x58] sm:$0xf0]  ;;  %v9241_v50 = vld [vmem:[#allocation11 + $0x20] sm:$0xf]  ;;  %v10549_v9 = vld [vmem:[#allocation11 + $0x2c] sm:$0xf0] }
 0x742   :  { %v13376_v63 = vadd.f32 %v4813_v5, %v4811_v51  ;;  %5038 = vmatpush.bf16.msrb.mxu0 %v9274_v55  ;;  %5052 = vmatpush.bf16.msrb.mxu1 %v9278_v32  ;;  %v9258_v16 = vor.u32 %v10553_v14, %v9257_v41  ;;  %v9262_v33 = vor.u32 %v10551_v27, %v9259_v42  ;;  %vm4798_vm5 = vweird.f32 %v13266_v3  ;;  %v10547_v60 = vld [vmem:[#allocation11 + $0x24] sm:$0xf]  ;;  %v9243_v19 = vld [vmem:[#allocation11 + $0x30] sm:$0xf0]  ;;  %v9249_v22 = vld [vmem:[#allocation11 + $0x28] sm:$0xf] }
 0x743   :  { %vm13384_vm6 = vmor %vm4798_vm5, %vm4799_vm4  ;;  %vm13388_vm7 = vcmp.eq.f32.partialorder %v4802_v59, 8.507059e+37  ;;  %v9266_v30 = vor.u32 %v10554_v1, %v9265_v24  ;;  %v4761_v48 = vsel %vm13345_vm0, %v4760_v21, %v4756_v61  ;;  %v4805_v28 = vor.u32 1.1754944e-38, %v4804_v6  ;;  %v10550_v5 = vld [vmem:[#allocation11 + $0x34] sm:$0xf0]  ;;  %v10548_v55 = vld [vmem:[#allocation11 + $0x2c] sm:$0xf] }
 0x744   :  { %11146 = vtanh.f32 %v13376_v63  ;;  %v4801_v3 = vsel %vm13384_vm6, %v13321_v34, %v4797_v39  ;;  %v9270_v13 = vor.u32 %v10552_v29, %v9267_v56  ;;  %v4818_v26 = vmul.f32 %v11145_v23, %v4761_v48  ;;  %v9251_v32 = vld [vmem:[#allocation11 + $0x38] sm:$0xf0]  ;;  %v9225_v35 = vld [vmem:[#allocation11] sm:$0xf]  ;;  %v10543_v21 = vld [vmem:[#allocation11 + $0x4] sm:$0xf] }
 0x745   :  { %5066 = vmatpush.bf16.msrb.mxu2 %v9282_v12  ;;  %5080 = vmatpush.bf16.msrb.mxu3 %v9286_v37  ;;  %v9242_v45 = vor.u32 %v10549_v9, %v9241_v50  ;;  %v9246_v51 = vor.u32 %v10547_v60, %v9243_v19  ;;  %v9227_v57 = vld [vmem:[#allocation11 + $0x10] sm:$0xf0]  ;;  %v9250_v14 = vor.u32 %v10550_v5, %v9249_v22  ;;  %v9233_v42 = vld [vmem:[#allocation11 + $0x8] sm:$0xf]  ;;  %v10546_v39 = vld [vmem:[#allocation11 + $0x14] sm:$0xf0]  ;;  %v4828_v9 = vunpack.c.l.bf16 %v13079_v52 }
 0x746   :  { %5039 = vmatpush.bf16.msrb.mxu0 %v9258_v16  ;;  %5053 = vmatpush.bf16.msrb.mxu1 %v9262_v33  ;;  %v4806_v34 = vsel %vm13388_vm7, %v4805_v28, %v4801_v3  ;;  %v9254_v27 = vor.u32 %v10548_v55, %v9251_v32  ;;  %v4820_v59 = vpack.c.bf16 %v4818_v26, %v4818_v26  ;;  %v10544_v12 = vld [vmem:[#allocation11 + $0xc] sm:$0xf]  ;;  %v9235_v37 = vld [vmem:[#allocation11 + $0x18] sm:$0xf0]  ;;  %v4829_v60 = vunpack.c.h.bf16 %v13079_v52 }
 0x747   :  { %v9226_v6 = vor.u32 %v10545_v38, %v9225_v35  ;;  %v9230_v23 = vor.u32 %v10543_v21, %v9227_v57  ;;  %v9234_v16 = vor.u32 %v10546_v39, %v9233_v42  ;;  %v9238_v33 = vor.u32 %v10544_v12, %v9235_v37 }
 0x748   :  { %v4870_v29 = vunpack.c.l.b16 %v4820_v59  ;;  %v4176_v19 = vadd.f32 %v13065_v17, %v12912_v53  ;;  %v4225_v31 = vadd.f32 %v13067_v47, %v12916_v15  ;;  %v4274_v5 = vadd.f32 %v13103_v46, %v12925_v62  ;;  %v9473_v59 = vld [vmem:[#allocation11 + $0xe0] sm:$0xf] }
 0x749   :  { %5067 = vmatpush.bf16.msrb.mxu2 %v9266_v30  ;;  %5081 = vmatpush.bf16.msrb.mxu3 %v9270_v13  ;;  %v4323_v52 = vadd.f32 %v13105_v4, %v12935_v10  ;;  %v4830_v17 = vunpack.c.l.bf16 %v13101_v43 }
 0x74a   :  { %v11147_v41 = vpop.eup %11146  ;;  %5040 = vmatpush.bf16.msrb.mxu0 %v9242_v45  ;;  %5054 = vmatpush.bf16.msrb.mxu1 %v9246_v51  ;;  %v4361_v22 = vpack.c.bf16 %v4225_v31, %v4176_v19 }
 0x74b   :  { %v4819_v61 = vmul.f32 %v11147_v41, %v4806_v34  ;;  %v13413_v57 = vpack.c.bf16 %v4323_v52, %v4274_v5  ;;  %v9465_v5 = vld [vmem:[#allocation11 + $0xc8] sm:$0xf] }
 0x74c   :  { %v4832_v45 = vunpack.c.l.bf16 %v4361_v22  ;;  %v4833_v47 = vunpack.c.h.bf16 %v4361_v22  ;;  %v9459_v22 = vld [vmem:[#allocation11 + $0xd0] sm:$0xf0] }
 0x74d   :  { %v4821_v24 = vpack.c.bf16 %v4819_v61, %v4819_v61  ;;  %v10810_v1 = vpack.c.bf16 %v4819_v61, %v4818_v26  ;;  %5068 = vmatpush.bf16.msrb.mxu2 %v9250_v14  ;;  %5082 = vmatpush.bf16.msrb.mxu3 %v9254_v27  ;;  %v4831_v61 = vunpack.c.h.bf16 %v13101_v43  ;;  %v10604_v43 = vld [vmem:[#allocation11 + $0xec] sm:$0xf] }
 0x74e   :  { %5041 = vmatpush.bf16.msrb.mxu0 %v9226_v6  ;;  %5055 = vmatpush.bf16.msrb.mxu1 %v9230_v23  ;;  %v4834_v6 = vunpack.c.l.bf16 %v13413_v57  ;;  %v10605_v23 = vld [vmem:[#allocation11 + $0xec] sm:$0xf0] }
 0x74f   :  { %10811 = vst [vmem:[%s14430_s9] sm:$0xff] %v10810_v1   ;;  %v4871_v56 = vunpack.c.l.b16 %v4821_v24  ;;  %v9474_v37 = vor.u32 %v10605_v23, %v9473_v59  ;;  %v10603_v24 = vld [vmem:[#allocation11 + $0xe4] sm:$0xf]  ;;  %v9475_v1 = vld [vmem:[#allocation11 + $0xf0] sm:$0xf0] }
 0x751   :  { %v4872_v50 = vpack.c.b16 %v4871_v56, %v4870_v29  ;;  %5069 = vmatpush.bf16.msrb.mxu2 %v9234_v16  ;;  %5083 = vmatpush.bf16.msrb.mxu3 %v9238_v33  ;;  %v9481_v33 = vld [vmem:[#allocation11 + $0xe8] sm:$0xf]  ;;  %v10606_v29 = vld [vmem:[#allocation11 + $0xf4] sm:$0xf0]  ;;  %v9478_v56 = vor.u32 %v10603_v24, %v9475_v1 }
 0x752   :  { %5439 = vmatpush.bf16.msra.mxu0 %v9474_v37 }
 0x753   :  { %5042 = vmatmul.bf16.vlgmr.msrb.gmra.mxu0 %v4872_v50  ;;  %5056 = vmatmul.bf16.vlgmr.msrb.gmra.mxu1 %v4872_v50 }
 0x754   :  { %5070 = vmatmul.bf16.vlgmr.msrb.gmra.mxu2 %v4872_v50  ;;  %5084 = vmatmul.bf16.vlgmr.msrb.gmra.mxu3 %v4872_v50  ;;  %v9482_v50 = vor.u32 %v10606_v29, %v9481_v33 }
 0x755   :  { %5453 = vmatpush.bf16.msra.mxu1 %v9478_v56 }
 0x756   :  { %5467 = vmatpush.bf16.msra.mxu2 %v9482_v50 }
 0x7d0   :  { %v5043_v54 = vpop.f32.mrf.mxu0  ;;  %v5057_v30 = vpop.f32.mrf.mxu1 }
 0x7d1   :  { %v5090_v48 = vadd.f32 %v5043_v54, %v4828_v9  ;;  %v5091_v3 = vadd.f32 %v5057_v30, %v4829_v60  ;;  %v9483_v9 = vld [vmem:[#allocation11 + $0xf8] sm:$0xf0]  ;;  %v9457_v60 = vld [vmem:[#allocation11 + $0xc0] sm:$0xf]  ;;  %v10601_v30 = vld [vmem:[#allocation11 + $0xcc] sm:$0xf0] }
 0x7d2   :  { %v9486_v54 = vor.u32 %v10604_v43, %v9483_v9 }
 0x7d3   :  { %v9351_v28 = vmul.f32 -1.442695, %v5090_v48  ;;  %v9352_v13 = vmul.f32 -1.442695, %v5091_v3  ;;  %v10599_v48 = vld [vmem:[#allocation11 + $0xc4] sm:$0xf] }
 0x7d4   :  { %5481 = vmatpush.bf16.msra.mxu3 %v9486_v54  ;;  %v9441_v54 = vld [vmem:[#allocation11 + $0xa0] sm:$0xf] }
 0x7d5   :  { %11148 = vpow2.f32 %v9351_v28 }
 0x7d6   :  { %11150 = vpow2.f32 %v9352_v13  ;;  %v9458_v13 = vor.u32 %v10601_v30, %v9457_v60  ;;  %v10597_v30 = vld [vmem:[#allocation11 + $0xac] sm:$0xf0] }
 0x7d7   :  { %v5071_v26 = vpop.f32.mrf.mxu2  ;;  %v5085_v46 = vpop.f32.mrf.mxu3 }
 0x7d8   :  { %v5092_v51 = vadd.f32 %v5071_v26, %v4830_v17  ;;  %v5045_v55 = vpop.f32.mrf.mxu0  ;;  %v5059_v32 = vpop.f32.mrf.mxu1  ;;  %v5093_v39 = vadd.f32 %v5085_v46, %v4831_v61  ;;  %v4835_v26 = vunpack.c.h.bf16 %v13413_v57  ;;  %5440 = vmatpush.bf16.msra.mxu0 %v9458_v13 }
 0x7d9   :  { %v5094_v35 = vadd.f32 %v5045_v55, %v4832_v45  ;;  %v5095_v38 = vadd.f32 %v5059_v32, %v4833_v47  ;;  %v9462_v45 = vor.u32 %v10599_v48, %v9459_v22  ;;  %v10602_v47 = vld [vmem:[#allocation11 + $0xd4] sm:$0xf0]  ;;  %v9467_v55 = vld [vmem:[#allocation11 + $0xd8] sm:$0xf0] }
 0x7da   :  { %v9353_v41 = vmul.f32 -1.442695, %v5092_v51  ;;  %v10600_v51 = vld [vmem:[#allocation11 + $0xcc] sm:$0xf] }
 0x7db   :  { %v11149_v21 = vpop.eup %11148  ;;  %v9354_v27 = vmul.f32 -1.442695, %v5094_v35  ;;  %v9355_v42 = vmul.f32 -1.442695, %v5095_v38  ;;  %5454 = vmatpush.bf16.msra.mxu1 %v9462_v45  ;;  %v9470_v23 = vor.u32 %v10600_v51, %v9467_v55  ;;  %v9449_v51 = vld [vmem:[#allocation11 + $0xa8] sm:$0xf] }
 0x7dc   :  { %v11151_v14 = vpop.eup %11150  ;;  %v13415_v34 = vadd.f32 1.0, %v11149_v21  ;;  %11152 = vpow2.f32 %v9353_v41  ;;  %v10598_v55 = vld [vmem:[#allocation11 + $0xb4] sm:$0xf0] }
 0x7dd   :  { %v13417_v4 = vadd.f32 1.0, %v11151_v14  ;;  %5482 = vmatpush.bf16.msra.mxu3 %v9470_v23 }
 0x7de   :  { %11154 = vrcp.f32 %v13415_v34  ;;  %v5131_v38 = vand.u32 2147483647, %v13415_v34  ;;  %v5133_v21 = vand.u32 2147483648, %v13415_v34  ;;  %vm5127_vm10 = vweird.f32 %v13415_v34 }
 0x7df   :  { %11156 = vrcp.f32 %v13417_v4  ;;  %v5073_v12 = vpop.f32.mrf.mxu2  ;;  %v5087_v41 = vpop.f32.mrf.mxu3  ;;  %v5148_v57 = vand.u32 2147483648, %v13417_v4  ;;  %vm5142_vm11 = vweird.f32 %v13417_v4 }
 0x7e0   :  { %11158 = vpow2.f32 %v9354_v27  ;;  %v5096_v16 = vadd.f32 %v5073_v12, %v4834_v6  ;;  %v5146_v27 = vand.u32 2147483647, %v13417_v4  ;;  %v9466_v6 = vor.u32 %v10602_v47, %v9465_v5  ;;  %v9443_v47 = vld [vmem:[#allocation11 + $0xb0] sm:$0xf0] }
 0x7e1   :  { %11160 = vpow2.f32 %v9355_v42  ;;  %v5097_v12 = vadd.f32 %v5087_v41, %v4835_v26  ;;  %vm5132_vm12 = vcmp.eq.f32.partialorder %v5131_v38, 8.507059e+37  ;;  %v5134_v33 = vor.u32 1.1754944e-38, %v5133_v21  ;;  %v10595_v26 = vld [vmem:[#allocation11 + $0xa4] sm:$0xf]  ;;  %v9451_v41 = vld [vmem:[#allocation11 + $0xb8] sm:$0xf0] }
 0x7e2   :  { %v11153_v19 = vpop.eup %11152  ;;  %v9356_v31 = vmul.f32 -1.442695, %v5096_v16  ;;  %11162 = vtanh.f32 %v5093_v39  ;;  %5468 = vmatpush.bf16.msra.mxu2 %v9466_v6  ;;  %v5149_v56 = vor.u32 1.1754944e-38, %v5148_v57  ;;  %vm5147_vm14 = vcmp.eq.f32.partialorder %v5146_v27, 8.507059e+37  ;;  %v10591_v6 = vld [vmem:[#allocation11 + $0x84] sm:$0xf] }
 0x7e3   :  { %v13425_v28 = vadd.f32 1.0, %v11153_v19 }
 0x7e4   :  { %v13423_v3 = vpop.eup %11154  ;;  %11164 = vpow2.f32 %v9356_v31 }
 0x7e5   :  { %v13427_v52 = vpop.eup %11156  ;;  %v5123_v17 = vmul.f32 %v13423_v3, %v13415_v34  ;;  %11166 = vrcp.f32 %v13425_v28  ;;  %vm5128_vm8 = vweird.f32 %v13423_v3  ;;  %v5163_v43 = vand.u32 2147483648, %v13425_v28 }
 0x7e6   :  { %v11159_v32 = vpop.eup %11158  ;;  %v5138_v35 = vmul.f32 %v13427_v52, %v13417_v4  ;;  %vm5143_vm9 = vweird.f32 %v13427_v52  ;;  %vm5129_vm13 = vmor %vm5127_vm10, %vm5128_vm8 }
 0x7e7   :  { %v11161_v14 = vpop.eup %11160  ;;  %v5124_v46 = vsub.f32 1.0, %v5123_v17  ;;  %v13439_v42 = vadd.f32 1.0, %v11159_v32  ;;  %vm5144_vm15 = vmor %vm5142_vm11, %vm5143_vm9  ;;  %vm5157_vm9 = vweird.f32 %v13425_v28 }
 0x7e8   :  { %v5139_v61 = vsub.f32 1.0, %v5138_v35  ;;  %v13441_v59 = vadd.f32 1.0, %v11161_v14  ;;  %v11163_v37 = vpop.eup %11162  ;;  %v9425_v14 = vld [vmem:[#allocation11 + $0x80] sm:$0xf] }
 0x7e9   :  { %v5125_v39 = vmul.f32 %v13423_v3, %v5124_v46  ;;  %11168 = vrcp.f32 %v13439_v42  ;;  %v5176_v17 = vand.u32 2147483647, %v13439_v42  ;;  %vm5172_vm1 = vweird.f32 %v13439_v42 }
 0x7ea   :  { %v5140_v24 = vmul.f32 %v13427_v52, %v5139_v61  ;;  %11170 = vrcp.f32 %v13441_v59  ;;  %v11165_v1 = vpop.eup %11164  ;;  %v5193_v31 = vand.u32 2147483648, %v13441_v59  ;;  %vm5187_vm0 = vweird.f32 %v13441_v59  ;;  %v10593_v61 = vld [vmem:[#allocation11 + $0x8c] sm:$0xf0] }
 0x7eb   :  { %v5126_v16 = vadd.f32 %v13423_v3, %v5125_v39  ;;  %v13452_v29 = vpop.eup %11166  ;;  %v13457_v34 = vadd.f32 1.0, %v11165_v1  ;;  %11172 = vtanh.f32 %v5097_v12  ;;  %v5178_v38 = vand.u32 2147483648, %v13439_v42  ;;  %v9433_v1 = vld [vmem:[#allocation11 + $0x88] sm:$0xf] }
 0x7ec   :  { %v5141_v50 = vadd.f32 %v13427_v52, %v5140_v24  ;;  %v5153_v4 = vmul.f32 %v13452_v29, %v13425_v28  ;;  %v5191_v21 = vand.u32 2147483647, %v13441_v59  ;;  %vm5158_vm2 = vweird.f32 %v13452_v29  ;;  %v9427_v24 = vld [vmem:[#allocation11 + $0x90] sm:$0xf0] }
 0x7ed   :  { %v5130_v9 = vsel %vm5129_vm13, %v13423_v3, %v5126_v16  ;;  %11174 = vrcp.f32 %v13457_v34  ;;  %v5194_v27 = vor.u32 1.1754944e-38, %v5193_v31  ;;  %vm13487_vm4 = vcmp.eq.f32.partialorder %v5176_v17, 8.507059e+37  ;;  %vm13527_vm10 = vmor %vm5157_vm9, %vm5158_vm2 }
 0x7ee   :  { %v5135_v60 = vsel %vm5132_vm12, %v5134_v33, %v5130_v9  ;;  %v5145_v19 = vsel %vm5144_vm15, %v13427_v52, %v5141_v50  ;;  %v5154_v13 = vsub.f32 1.0, %v5153_v4  ;;  %v9450_v50 = vor.u32 %v10598_v55, %v9449_v51  ;;  %v10594_v4 = vld [vmem:[#allocation11 + $0x94] sm:$0xf0]  ;;  %v10592_v9 = vld [vmem:[#allocation11 + $0x8c] sm:$0xf] }
 0x7ef   :  { %v13468_v48 = vpop.eup %11168  ;;  %v5150_v22 = vsel %vm5147_vm14, %v5149_v56, %v5145_v19  ;;  %v5216_v5 = vmul.f32 %v11163_v37, %v5135_v60  ;;  %v9442_v37 = vor.u32 %v10597_v30, %v9441_v54  ;;  %v9446_v56 = vor.u32 %v10595_v26, %v9443_v47  ;;  %v9435_v60 = vld [vmem:[#allocation11 + $0x98] sm:$0xf0]  ;;  %v9411_v47 = vld [vmem:[#allocation11 + $0x70] sm:$0xf0] }
 0x7f0   :  { %v13471_v45 = vpop.eup %11170  ;;  %v5214_v3 = vmul.f32 %v5150_v22, %v13317_v40  ;;  %v5168_v52 = vmul.f32 %v13468_v48, %v13439_v42  ;;  %v5155_v32 = vmul.f32 %v13452_v29, %v5154_v13  ;;  %v10596_v40 = vld [vmem:[#allocation11 + $0xac] sm:$0xf]  ;;  %vm5173_vm3 = vweird.f32 %v13468_v48  ;;  %v9409_v13 = vld [vmem:[#allocation11 + $0x60] sm:$0xf]  ;;  %v10589_v22 = vld [vmem:[#allocation11 + $0x6c] sm:$0xf0]  ;;  %5469 = vmatpush.bf16.msra.mxu2 %v9450_v50 }
 0x7f1   :  { %v5183_v35 = vmul.f32 %v13471_v45, %v13441_v59  ;;  %v11173_v23 = vpop.eup %11172  ;;  %vm5188_vm5 = vweird.f32 %v13471_v45  ;;  %v5179_v30 = vor.u32 1.1754944e-38, %v5178_v38  ;;  %5441 = vmatpush.bf16.msra.mxu0 %v9442_v37  ;;  %vm13502_vm6 = vcmp.eq.f32.partialorder %v5191_v21, 8.507059e+37  ;;  %5455 = vmatpush.bf16.msra.mxu1 %v9446_v56  ;;  %vm5174_vm7 = vmor %vm5172_vm1, %vm5173_vm3  ;;  %v9417_v38 = vld [vmem:[#allocation11 + $0x68] sm:$0xf]  ;;  %v10590_v21 = vld [vmem:[#allocation11 + $0x74] sm:$0xf0] }
 0x7f2   :  { %v13484_v46 = vadd.f32 %v5216_v5, %v5214_v3  ;;  %v5169_v57 = vsub.f32 1.0, %v5168_v52  ;;  %v13496_v19 = vadd.f32 %v13452_v29, %v5155_v32  ;;  %v9454_v26 = vor.u32 %v10596_v40, %v9451_v41  ;;  %v10587_v52 = vld [vmem:[#allocation11 + $0x64] sm:$0xf]  ;;  %vm5189_vm8 = vmor %vm5187_vm0, %vm5188_vm5  ;;  %v9419_v37 = vld [vmem:[#allocation11 + $0x78] sm:$0xf0] }
 0x7f3   :  { %v5184_v39 = vsub.f32 1.0, %v5183_v35  ;;  %v13491_v16 = vpop.eup %11174  ;;  %v9426_v3 = vor.u32 %v10593_v61, %v9425_v14  ;;  %v9430_v32 = vor.u32 %v10591_v6, %v9427_v24  ;;  %v9434_v35 = vor.u32 %v10594_v4, %v9433_v1  ;;  %v9393_v1 = vld [vmem:[#allocation11 + $0x40] sm:$0xf]  ;;  %v10583_v56 = vld [vmem:[#allocation11 + $0x44] sm:$0xf] }
 0x7f4   :  { %v5170_v33 = vmul.f32 %v13468_v48, %v5169_v57  ;;  %v5198_v54 = vmul.f32 %v13491_v16, %v13457_v34  ;;  %11176 = vtanh.f32 %v13484_v46  ;;  %5483 = vmatpush.bf16.msra.mxu3 %v9454_v26  ;;  %v9438_v41 = vor.u32 %v10592_v9, %v9435_v60  ;;  %v9395_v50 = vld [vmem:[#allocation11 + $0x50] sm:$0xf0]  ;;  %v10586_v4 = vld [vmem:[#allocation11 + $0x54] sm:$0xf0] }
 0x7f5   :  { %v5185_v31 = vmul.f32 %v13471_v45, %v5184_v39  ;;  %v9410_v14 = vor.u32 %v10589_v22, %v9409_v13  ;;  %5442 = vmatpush.bf16.msra.mxu0 %v9426_v3  ;;  %v9414_v6 = vor.u32 %v10587_v52, %v9411_v47  ;;  %v10588_v39 = vld [vmem:[#allocation11 + $0x6c] sm:$0xf]  ;;  %5456 = vmatpush.bf16.msra.mxu1 %v9430_v32  ;;  %vm5203_vm11 = vweird.f32 %v13491_v16  ;;  %v9377_v13 = vld [vmem:[#allocation11 + $0x20] sm:$0xf]  ;;  %v10581_v3 = vld [vmem:[#allocation11 + $0x2c] sm:$0xf0] }
 0x7f6   :  { %v5171_v5 = vadd.f32 %v13468_v48, %v5170_v33  ;;  %v5199_v51 = vsub.f32 1.0, %v5198_v54  ;;  %5470 = vmatpush.bf16.msra.mxu2 %v9434_v35  ;;  %v10585_v33 = vld [vmem:[#allocation11 + $0x4c] sm:$0xf0]  ;;  %v5160_v60 = vsel %vm13527_vm10, %v13452_v29, %v13496_v19  ;;  %v10584_v54 = vld [vmem:[#allocation11 + $0x4c] sm:$0xf]  ;;  %v9398_v17 = vor.u32 %v10583_v56, %v9395_v50 }
 0x7f7   :  { %v5186_v55 = vadd.f32 %v13471_v45, %v5185_v31  ;;  %v9394_v31 = vor.u32 %v10585_v33, %v9393_v1  ;;  %v10579_v52 = vld [vmem:[#allocation11 + $0x24] sm:$0xf]  ;;  %v9379_v47 = vld [vmem:[#allocation11 + $0x30] sm:$0xf0]  ;;  %v5164_v29 = vor.u32 1.1754944e-38, %v5163_v43  ;;  %vm5202_vm12 = vweird.f32 %v13457_v34 }
 0x7f8   :  { %v5175_v40 = vsel %vm5174_vm7, %v13468_v48, %v5171_v5  ;;  %v5200_v42 = vmul.f32 %v13491_v16, %v5199_v51  ;;  %v9418_v48 = vor.u32 %v10590_v21, %v9417_v38  ;;  %5484 = vmatpush.bf16.msra.mxu3 %v9438_v41  ;;  %v5208_v19 = vand.u32 2147483648, %v13457_v34  ;;  %v9385_v51 = vld [vmem:[#allocation11 + $0x28] sm:$0xf]  ;;  %vm13547_vm14 = vmor %vm5202_vm12, %vm5203_vm11  ;;  %v10580_v21 = vld [vmem:[#allocation11 + $0x2c] sm:$0xf] }
 0x7f9   :  { %v5180_v57 = vsel %vm13487_vm4, %v5179_v30, %v5175_v40  ;;  %v5190_v61 = vsel %vm5189_vm8, %v13471_v45, %v5186_v55  ;;  %v9401_v45 = vld [vmem:[#allocation11 + $0x48] sm:$0xf]  ;;  %5443 = vmatpush.bf16.msra.mxu0 %v9410_v14  ;;  %v9403_v30 = vld [vmem:[#allocation11 + $0x58] sm:$0xf0]  ;;  %5457 = vmatpush.bf16.msra.mxu1 %v9414_v6  ;;  %v10582_v55 = vld [vmem:[#allocation11 + $0x34] sm:$0xf0]  ;;  %v9378_v43 = vor.u32 %v10581_v3, %v9377_v13 }
 0x7fa   :  { %v5195_v59 = vsel %vm13502_vm6, %v5194_v27, %v5190_v61  ;;  %v5217_v24 = vmul.f32 %v11173_v23, %v5180_v57  ;;  %v5161_v27 = vand.u32 2147483647, %v13425_v28  ;;  %v9422_v23 = vor.u32 %v10588_v39, %v9419_v37  ;;  %v11177_v22 = vpop.eup %11176  ;;  %5471 = vmatpush.bf16.msra.mxu2 %v9418_v48  ;;  %v9387_v40 = vld [vmem:[#allocation11 + $0x38] sm:$0xf0]  ;;  %v9361_v41 = vld [vmem:[#allocation11] sm:$0xf] }
 0x7fb   :  { %v5215_v12 = vmul.f32 %v5195_v59, %v13376_v63  ;;  %v5201_v5 = vadd.f32 %v13491_v16, %v5200_v42  ;;  %v9402_v26 = vor.u32 %v10586_v4, %v9401_v45  ;;  %v5206_v35 = vand.u32 2147483647, %v13457_v34  ;;  %v10577_v61 = vld [vmem:[#allocation11 + $0xc] sm:$0xf0]  ;;  %v10575_v6 = vld [vmem:[#allocation11 + $0x4] sm:$0xf] }
 0x7fc   :  { %vm5162_vm13 = vcmp.eq.f32.partialorder %v5161_v27, 8.507059e+37  ;;  %5485 = vmatpush.bf16.msra.mxu3 %v9422_v23  ;;  %v9406_v28 = vor.u32 %v10584_v54, %v9403_v30  ;;  %v9382_v38 = vor.u32 %v10579_v52, %v9379_v47  ;;  %v9386_v57 = vor.u32 %v10582_v55, %v9385_v51  ;;  %v9363_v39 = vld [vmem:[#allocation11 + $0x10] sm:$0xf0]  ;;  %v9369_v59 = vld [vmem:[#allocation11 + $0x8] sm:$0xf] }
 0x7fd   :  { %v13537_v63 = vadd.f32 %v5217_v24, %v5215_v12  ;;  %5444 = vmatpush.bf16.msra.mxu0 %v9394_v31  ;;  %v5165_v14 = vsel %vm5162_vm13, %v5164_v29, %v5160_v60  ;;  %v5205_v42 = vsel %vm13547_vm14, %v13491_v16, %v5201_v5  ;;  %5458 = vmatpush.bf16.msra.mxu1 %v9398_v17  ;;  %v5209_v37 = vor.u32 1.1754944e-38, %v5208_v19  ;;  %v10578_v24 = vld [vmem:[#allocation11 + $0x14] sm:$0xf0]  ;;  %v10576_v12 = vld [vmem:[#allocation11 + $0xc] sm:$0xf] }
 0x7fe   :  { %5472 = vmatpush.bf16.msra.mxu2 %v9402_v26  ;;  %v5222_v34 = vmul.f32 %v11177_v22, %v5165_v14  ;;  %vm5207_vm15 = vcmp.eq.f32.partialorder %v5206_v35, 8.507059e+37  ;;  %v9390_v48 = vor.u32 %v10580_v21, %v9387_v40  ;;  %v9362_v33 = vor.u32 %v10577_v61, %v9361_v41  ;;  %v9371_v50 = vld [vmem:[#allocation11 + $0x18] sm:$0xf0] }
 0x7ff   :  { %11178 = vtanh.f32 %v13537_v63  ;;  %v9366_v56 = vor.u32 %v10575_v6, %v9363_v39  ;;  %v5210_v16 = vsel %vm5207_vm15, %v5209_v37, %v5205_v42  ;;  %v9370_v45 = vor.u32 %v10578_v24, %v9369_v59  ;;  %v10635_v39 = vld [vmem:[#allocation11 + $0xe4] sm:$0xf]  ;;  %v9611_v24 = vld [vmem:[#allocation11 + $0xf0] sm:$0xf0] }
 0x800   :  { %5486 = vmatpush.bf16.msra.mxu3 %v9406_v28  ;;  %v5224_v9 = vpack.c.bf16 %v5222_v34, %v5222_v34  ;;  %v9374_v27 = vor.u32 %v10576_v12, %v9371_v50  ;;  %v4181_v13 = vadd.f32 %v13120_v25, %v12912_v53  ;;  %v4230_v22 = vadd.f32 %v13122_v44, %v12916_v15  ;;  %v10638_v12 = vld [vmem:[#allocation11 + $0xf4] sm:$0xf0] }
 0x801   :  { %5445 = vmatpush.bf16.msra.mxu0 %v9378_v43  ;;  %5459 = vmatpush.bf16.msra.mxu1 %v9382_v38  ;;  %v5233_v5 = vunpack.c.l.bf16 %v13112_v36  ;;  %v5234_v17 = vunpack.c.h.bf16 %v13112_v36  ;;  %v4279_v55 = vadd.f32 %v13126_v11, %v12925_v62  ;;  %v4328_v25 = vadd.f32 %v13128_v0, %v12935_v10  ;;  %v10637_v11 = vld [vmem:[#allocation11 + $0xec] sm:$0xf0] }
 0x802   :  { %5473 = vmatpush.bf16.msra.mxu2 %v9386_v57  ;;  %v5275_v31 = vunpack.c.l.b16 %v5224_v9  ;;  %v4365_v29 = vpack.c.bf16 %v4230_v22, %v4181_v13  ;;  %v5235_v44 = vunpack.c.l.bf16 %v13124_v18  ;;  %v9609_v57 = vld [vmem:[#allocation11 + $0xe0] sm:$0xf]  ;;  %v5236_v50 = vunpack.c.h.bf16 %v13124_v18  ;;  %v9601_v13 = vld [vmem:[#allocation11 + $0xc8] sm:$0xf]  ;;  %v10632_v18 = vld [vmem:[#allocation11 + $0xcc] sm:$0xf] }
 0x803   :  { %v13569_v41 = vpack.c.bf16 %v4328_v25, %v4279_v55  ;;  %v9610_v0 = vor.u32 %v10637_v11, %v9609_v57  ;;  %v9593_v9 = vld [vmem:[#allocation11 + $0xc0] sm:$0xf] }
 0x804   :  { %5487 = vmatpush.bf16.msra.mxu3 %v9390_v48  ;;  %v5237_v35 = vunpack.c.l.bf16 %v4365_v29  ;;  %v5238_v36 = vunpack.c.h.bf16 %v4365_v29 }
 0x805   :  { %v11179_v1 = vpop.eup %11178  ;;  %5446 = vmatpush.bf16.msra.mxu0 %v9362_v33  ;;  %5460 = vmatpush.bf16.msra.mxu1 %v9366_v56  ;;  %v5239_v33 = vunpack.c.l.bf16 %v13569_v41  ;;  %v9617_v56 = vld [vmem:[#allocation11 + $0xe8] sm:$0xf] }
 0x806   :  { %v5223_v4 = vmul.f32 %v11179_v1, %v5210_v16  ;;  %5474 = vmatpush.bf16.msra.mxu2 %v9370_v45  ;;  %v9614_v1 = vor.u32 %v10635_v39, %v9611_v24  ;;  %v10636_v45 = vld [vmem:[#allocation11 + $0xec] sm:$0xf]  ;;  %v10629_v39 = vld [vmem:[#allocation11 + $0xac] sm:$0xf0] }
 0x808   :  { %v5225_v23 = vpack.c.bf16 %v5223_v4, %v5223_v4  ;;  %v10815_v60 = vpack.c.bf16 %v5223_v4, %v5222_v34  ;;  %5488 = vmatpush.bf16.msra.mxu3 %v9374_v27  ;;  %v9619_v4 = vld [vmem:[#allocation11 + $0xf8] sm:$0xf0] }
 0x809   :  { %5844 = vmatpush.bf16.msrb.mxu0 %v9610_v0  ;;  %5858 = vmatpush.bf16.msrb.mxu1 %v9614_v1  ;;  %v9577_v0 = vld [vmem:[#allocation11 + $0xa0] sm:$0xf] }
 0x80a   :  { %10847 = vst [vmem:[%s14430_s9 + $0x8] sm:$0xff] %v10815_v60   ;;  %v5276_v54 = vunpack.c.l.b16 %v5225_v23  ;;  %v10633_v23 = vld [vmem:[#allocation11 + $0xcc] sm:$0xf0]  ;;  %v10631_v60 = vld [vmem:[#allocation11 + $0xc4] sm:$0xf] }
 0x80c   :  { %v5277_v30 = vpack.c.b16 %v5276_v54, %v5275_v31  ;;  %v9618_v54 = vor.u32 %v10638_v12, %v9617_v56 }
 0x80e   :  { %5447 = vmatmul.bf16.vlgmr.msra.gmra.mxu0 %v5277_v30  ;;  %5461 = vmatmul.bf16.vlgmr.msra.gmra.mxu1 %v5277_v30 }
 0x80f   :  { %5475 = vmatmul.bf16.vlgmr.msra.gmra.mxu2 %v5277_v30  ;;  %5489 = vmatmul.bf16.vlgmr.msra.gmra.mxu3 %v5277_v30  ;;  %v9595_v30 = vld [vmem:[#allocation11 + $0xd0] sm:$0xf0] }
 0x810   :  { %5872 = vmatpush.bf16.msrb.mxu2 %v9618_v54 }
 0x88b   :  { %v5448_v26 = vpop.f32.mrf.mxu0  ;;  %v5462_v3 = vpop.f32.mrf.mxu1 }
 0x88c   :  { %v5495_v52 = vadd.f32 %v5448_v26, %v5233_v5  ;;  %v5496_v47 = vadd.f32 %v5462_v3, %v5234_v17  ;;  %v9622_v17 = vor.u32 %v10636_v45, %v9619_v4  ;;  %v9594_v26 = vor.u32 %v10633_v23, %v9593_v9 }
 0x88d   :  { %v9598_v3 = vor.u32 %v10631_v60, %v9595_v30  ;;  %v9578_v45 = vor.u32 %v10629_v39, %v9577_v0 }
 0x88e   :  { %v9487_v19 = vmul.f32 -1.442695, %v5495_v52  ;;  %v9488_v51 = vmul.f32 -1.442695, %v5496_v47  ;;  %v10634_v52 = vld [vmem:[#allocation11 + $0xd4] sm:$0xf0]  ;;  %5886 = vmatpush.bf16.msrb.mxu3 %v9622_v17  ;;  %5845 = vmatpush.bf16.msrb.mxu0 %v9594_v26 }
 0x88f   :  { %5859 = vmatpush.bf16.msrb.mxu1 %v9598_v3  ;;  %v10627_v26 = vld [vmem:[#allocation11 + $0xa4] sm:$0xf]  ;;  %v9579_v3 = vld [vmem:[#allocation11 + $0xb0] sm:$0xf0] }
 0x890   :  { %11180 = vpow2.f32 %v9487_v19  ;;  %v9602_v19 = vor.u32 %v10634_v52, %v9601_v13  ;;  %v9585_v52 = vld [vmem:[#allocation11 + $0xa8] sm:$0xf] }
 0x891   :  { %11182 = vpow2.f32 %v9488_v51  ;;  %v9603_v51 = vld [vmem:[#allocation11 + $0xd8] sm:$0xf0] }
 0x892   :  { %v5476_v32 = vpop.f32.mrf.mxu2  ;;  %v5490_v42 = vpop.f32.mrf.mxu3  ;;  %5873 = vmatpush.bf16.msrb.mxu2 %v9602_v19  ;;  %5846 = vmatpush.bf16.msrb.mxu0 %v9578_v45  ;;  %v9587_v19 = vld [vmem:[#allocation11 + $0xb8] sm:$0xf0] }
 0x893   :  { %v5497_v28 = vadd.f32 %v5476_v32, %v5235_v44  ;;  %v5450_v43 = vpop.f32.mrf.mxu0  ;;  %v5464_v38 = vpop.f32.mrf.mxu1  ;;  %v5498_v31 = vadd.f32 %v5490_v42, %v5236_v50  ;;  %v9571_v45 = vld [vmem:[#allocation11 + $0x98] sm:$0xf0] }
 0x894   :  { %v5499_v21 = vadd.f32 %v5450_v43, %v5237_v35  ;;  %v5500_v40 = vadd.f32 %v5464_v38, %v5238_v36  ;;  %v9606_v35 = vor.u32 %v10632_v18, %v9603_v51  ;;  %v5240_v38 = vunpack.c.h.bf16 %v13569_v41  ;;  %v10630_v18 = vld [vmem:[#allocation11 + $0xb4] sm:$0xf0]  ;;  %v9569_v41 = vld [vmem:[#allocation11 + $0x88] sm:$0xf] }
 0x895   :  { %v9489_v14 = vmul.f32 -1.442695, %v5497_v28 }
 0x896   :  { %v11181_v61 = vpop.eup %11180  ;;  %v9490_v6 = vmul.f32 -1.442695, %v5499_v21  ;;  %v9491_v59 = vmul.f32 -1.442695, %v5500_v40  ;;  %5887 = vmatpush.bf16.msrb.mxu3 %v9606_v35  ;;  %v9561_v35 = vld [vmem:[#allocation11 + $0x80] sm:$0xf] }
 0x897   :  { %v11183_v34 = vpop.eup %11182  ;;  %v13571_v37 = vadd.f32 1.0, %v11181_v61  ;;  %11184 = vpow2.f32 %v9489_v14 }
 0x898   :  { %v13573_v48 = vadd.f32 1.0, %v11183_v34  ;;  %11186 = vpow2.f32 %v9490_v6 }
 0x899   :  { %11188 = vrcp.f32 %v13571_v37  ;;  %v5536_v25 = vand.u32 2147483647, %v13571_v37  ;;  %v5538_v43 = vand.u32 2147483648, %v13571_v37  ;;  %vm5532_vm1 = vweird.f32 %v13571_v37 }
 0x89a   :  { %11190 = vrcp.f32 %v13573_v48  ;;  %v5478_v16 = vpop.f32.mrf.mxu2  ;;  %v5492_v32 = vpop.f32.mrf.mxu3  ;;  %v5553_v14 = vand.u32 2147483648, %v13573_v48  ;;  %v5551_v42 = vand.u32 2147483647, %v13573_v48  ;;  %vm5547_vm0 = vweird.f32 %v13573_v48 }
 0x89b   :  { %11192 = vpow2.f32 %v9491_v59  ;;  %v5501_v27 = vadd.f32 %v5478_v16, %v5239_v33  ;;  %v5502_v61 = vadd.f32 %v5492_v32, %v5240_v38  ;;  %vm13599_vm2 = vcmp.eq.f32.partialorder %v5536_v25, 8.507059e+37 }
 0x89c   :  { %v5539_v59 = vor.u32 1.1754944e-38, %v5538_v43  ;;  %v5554_v33 = vor.u32 1.1754944e-38, %v5553_v14  ;;  %vm13606_vm5 = vcmp.eq.f32.partialorder %v5551_v42, 8.507059e+37 }
 0x89d   :  { %v11185_v22 = vpop.eup %11184  ;;  %v9492_v5 = vmul.f32 -1.442695, %v5501_v27 }
 0x89e   :  { %v11187_v47 = vpop.eup %11186  ;;  %v13579_v29 = vadd.f32 1.0, %v11185_v22 }
 0x89f   :  { %v11189_v55 = vpop.eup %11188  ;;  %v13582_v44 = vadd.f32 1.0, %v11187_v47  ;;  %11194 = vpow2.f32 %v9492_v5  ;;  %v10628_v47 = vld [vmem:[#allocation11 + $0xac] sm:$0xf] }
 0x8a0   :  { %v13584_v36 = vpop.eup %11190  ;;  %v5528_v28 = vmul.f32 %v11189_v55, %v13571_v37  ;;  %11196 = vrcp.f32 %v13579_v29  ;;  %vm5533_vm3 = vweird.f32 %v11189_v55  ;;  %v5566_v27 = vand.u32 2147483647, %v13579_v29 }
 0x8a1   :  { %v11193_v21 = vpop.eup %11192  ;;  %v5543_v40 = vmul.f32 %v13584_v36, %v13573_v48  ;;  %11198 = vtanh.f32 %v5498_v31  ;;  %vm5548_vm4 = vweird.f32 %v13584_v36  ;;  %v5568_v23 = vand.u32 2147483648, %v13579_v29  ;;  %vm5534_vm6 = vmor %vm5532_vm1, %vm5533_vm3 }
 0x8a2   :  { %v5529_v57 = vsub.f32 1.0, %v5528_v28  ;;  %11200 = vrcp.f32 %v13582_v44  ;;  %v13595_v11 = vadd.f32 1.0, %v11193_v21  ;;  %vm13628_vm7 = vmor %vm5547_vm0, %vm5548_vm4  ;;  %v5581_v37 = vand.u32 2147483647, %v13582_v44 }
 0x8a3   :  { %v5544_v6 = vsub.f32 1.0, %v5543_v40  ;;  %vm5577_vm8 = vweird.f32 %v13582_v44  ;;  %v5583_v32 = vand.u32 2147483648, %v13582_v44  ;;  %vm5562_vm9 = vweird.f32 %v13579_v29  ;;  %v10623_v40 = vld [vmem:[#allocation11 + $0x84] sm:$0xf] }
 0x8a4   :  { %v5530_v34 = vmul.f32 %v11189_v55, %v5529_v57  ;;  %11202 = vrcp.f32 %v13595_v11  ;;  %v5598_v13 = vand.u32 2147483648, %v13595_v11  ;;  %v5596_v21 = vand.u32 2147483647, %v13595_v11 }
 0x8a5   :  { %v11195_v24 = vpop.eup %11194  ;;  %v5545_v1 = vmul.f32 %v13584_v36, %v5544_v6  ;;  %11204 = vtanh.f32 %v5502_v61  ;;  %vm5592_vm10 = vweird.f32 %v13595_v11  ;;  %vm13655_vm11 = vcmp.eq.f32.partialorder %v5581_v37, 8.507059e+37  ;;  %v9563_v6 = vld [vmem:[#allocation11 + $0x90] sm:$0xf0] }
 0x8a6   :  { %v13610_v12 = vpop.eup %11196  ;;  %v5531_v50 = vadd.f32 %v11189_v55, %v5530_v34  ;;  %v13612_v16 = vadd.f32 1.0, %v11195_v24  ;;  %v5599_v57 = vor.u32 1.1754944e-38, %v5598_v13  ;;  %v10626_v34 = vld [vmem:[#allocation11 + $0x94] sm:$0xf0]  ;;  %v9590_v56 = vor.u32 %v10628_v47, %v9587_v19  ;;  %v10619_v13 = vld [vmem:[#allocation11 + $0x64] sm:$0xf] }
 0x8a7   :  { %v11199_v4 = vpop.eup %11198  ;;  %v5558_v9 = vmul.f32 %v13610_v12, %v13579_v29  ;;  %v5546_v60 = vadd.f32 %v13584_v36, %v5545_v1  ;;  %v9582_v1 = vor.u32 %v10627_v26, %v9579_v3  ;;  %vm5563_vm14 = vweird.f32 %v13610_v12  ;;  %v10622_v26 = vld [vmem:[#allocation11 + $0x74] sm:$0xf0]  ;;  %v9513_v29 = vld [vmem:[#allocation11 + $0x20] sm:$0xf] }
 0x8a8   :  { %v13622_v31 = vpop.eup %11200  ;;  %v5535_v30 = vsel %vm5534_vm6, %v11189_v55, %v5531_v50  ;;  %11206 = vrcp.f32 %v13612_v16  ;;  %5888 = vmatpush.bf16.msrb.mxu3 %v9590_v56  ;;  %vm13683_vm0 = vcmp.eq.f32.partialorder %v5566_v27, 8.507059e+37  ;;  %vm13702_vm3 = vmor %vm5562_vm9, %vm5563_vm14  ;;  %v5613_v56 = vand.u32 2147483648, %v13612_v16 }
 0x8a9   :  { %v5559_v22 = vsub.f32 1.0, %v5558_v9  ;;  %v5540_v5 = vsel %vm13599_vm2, %v5539_v59, %v5535_v30  ;;  %v5550_v48 = vsel %vm13628_vm7, %v13584_v36, %v5546_v60  ;;  %v5573_v17 = vmul.f32 %v13622_v31, %v13582_v44  ;;  %v10625_v36 = vld [vmem:[#allocation11 + $0x8c] sm:$0xf0]  ;;  %v10624_v59 = vld [vmem:[#allocation11 + $0x8c] sm:$0xf]  ;;  %5860 = vmatpush.bf16.msrb.mxu1 %v9582_v1 }
 0x8aa   :  { %v13642_v51 = vpop.eup %11202  ;;  %v5555_v55 = vsel %vm13606_vm5, %v5554_v33, %v5550_v48  ;;  %v5621_v25 = vmul.f32 %v11199_v4, %v5540_v5  ;;  %vm5578_vm12 = vweird.f32 %v13622_v31  ;;  %v9586_v33 = vor.u32 %v10630_v18, %v9585_v52  ;;  %v9545_v4 = vld [vmem:[#allocation11 + $0x60] sm:$0xf]  ;;  %v10621_v9 = vld [vmem:[#allocation11 + $0x6c] sm:$0xf0]  ;;  %v9547_v48 = vld [vmem:[#allocation11 + $0x70] sm:$0xf0] }
 0x8ab   :  { %v5619_v28 = vmul.f32 %v5555_v55, %v13484_v46  ;;  %v5574_v43 = vsub.f32 1.0, %v5573_v17  ;;  %v5588_v38 = vmul.f32 %v13642_v51, %v13595_v11  ;;  %v11205_v14 = vpop.eup %11204  ;;  %v5560_v42 = vmul.f32 %v13610_v12, %v5559_v22  ;;  %v9553_v17 = vld [vmem:[#allocation11 + $0x68] sm:$0xf]  ;;  %vm13675_vm15 = vmor %vm5577_vm8, %vm5578_vm12  ;;  %v10620_v55 = vld [vmem:[#allocation11 + $0x6c] sm:$0xf] }
 0x8ac   :  { %v9562_v50 = vor.u32 %v10625_v36, %v9561_v35  ;;  %vm5593_vm13 = vweird.f32 %v13642_v51  ;;  %v5584_v30 = vor.u32 1.1754944e-38, %v5583_v32  ;;  %5874 = vmatpush.bf16.msrb.mxu2 %v9586_v33  ;;  %v9566_v22 = vor.u32 %v10623_v40, %v9563_v6  ;;  %v9529_v36 = vld [vmem:[#allocation11 + $0x40] sm:$0xf]  ;;  %v9531_v6 = vld [vmem:[#allocation11 + $0x50] sm:$0xf0] }
 0x8ad   :  { %v13659_v46 = vadd.f32 %v5621_v25, %v5619_v28  ;;  %v5589_v0 = vsub.f32 1.0, %v5588_v38  ;;  %v5575_v39 = vmul.f32 %v13622_v31, %v5574_v43  ;;  %v9570_v5 = vor.u32 %v10626_v34, %v9569_v41  ;;  %v9555_v25 = vld [vmem:[#allocation11 + $0x78] sm:$0xf0]  ;;  %vm5594_vm1 = vmor %vm5592_vm10, %vm5593_vm13  ;;  %v10617_v28 = vld [vmem:[#allocation11 + $0x4c] sm:$0xf0] }
 0x8ae   :  { %v13663_v24 = vpop.eup %11206  ;;  %5847 = vmatpush.bf16.msrb.mxu0 %v9562_v50  ;;  %v9574_v47 = vor.u32 %v10624_v59, %v9571_v45  ;;  %v9546_v19 = vor.u32 %v10621_v9, %v9545_v4  ;;  %v5561_v32 = vadd.f32 %v13610_v12, %v5560_v42  ;;  %vm5597_vm2 = vcmp.eq.f32.partialorder %v5596_v21, 8.507059e+37  ;;  %5861 = vmatpush.bf16.msrb.mxu1 %v9566_v22  ;;  %v9537_v34 = vld [vmem:[#allocation11 + $0x48] sm:$0xf]  ;;  %v10618_v59 = vld [vmem:[#allocation11 + $0x54] sm:$0xf0] }
 0x8af   :  { %v5590_v60 = vmul.f32 %v13642_v51, %v5589_v0  ;;  %v5603_v54 = vmul.f32 %v13663_v24, %v13612_v16  ;;  %v5576_v37 = vadd.f32 %v13622_v31, %v5575_v39  ;;  %11208 = vtanh.f32 %v13659_v46  ;;  %v10616_v1 = vld [vmem:[#allocation11 + $0x4c] sm:$0xf]  ;;  %v9539_v33 = vld [vmem:[#allocation11 + $0x58] sm:$0xf0] }
 0x8b0   :  { %v9550_v38 = vor.u32 %v10619_v13, %v9547_v48  ;;  %v9554_v40 = vor.u32 %v10622_v26, %v9553_v17  ;;  %5875 = vmatpush.bf16.msrb.mxu2 %v9570_v5  ;;  %5889 = vmatpush.bf16.msrb.mxu3 %v9574_v47  ;;  %v9558_v0 = vor.u32 %v10620_v55, %v9555_v25  ;;  %vm5608_vm4 = vweird.f32 %v13663_v24  ;;  %v9521_v13 = vld [vmem:[#allocation11 + $0x28] sm:$0xf]  ;;  %v10612_v22 = vld [vmem:[#allocation11 + $0x2c] sm:$0xf]  ;;  %v9523_v5 = vld [vmem:[#allocation11 + $0x38] sm:$0xf0] }
 0x8b1   :  { %v5604_v3 = vsub.f32 1.0, %v5603_v54  ;;  %v5591_v18 = vadd.f32 %v13642_v51, %v5590_v60  ;;  %v5580_v44 = vsel %vm13675_vm15, %v13622_v31, %v5576_v37  ;;  %v5569_v31 = vor.u32 1.1754944e-38, %v5568_v23  ;;  %v10613_v23 = vld [vmem:[#allocation11 + $0x2c] sm:$0xf0]  ;;  %v10611_v60 = vld [vmem:[#allocation11 + $0x24] sm:$0xf] }
 0x8b2   :  { %v5585_v27 = vsel %vm13655_vm11, %v5584_v30, %v5580_v44  ;;  %5848 = vmatpush.bf16.msrb.mxu0 %v9546_v19  ;;  %v9530_v39 = vor.u32 %v10617_v28, %v9529_v36  ;;  %5862 = vmatpush.bf16.msrb.mxu1 %v9550_v38  ;;  %v9538_v9 = vor.u32 %v10618_v59, %v9537_v34  ;;  %v9515_v54 = vld [vmem:[#allocation11 + $0x30] sm:$0xf0]  ;;  %v10614_v37 = vld [vmem:[#allocation11 + $0x34] sm:$0xf0]  ;;  %vm5607_vm5 = vweird.f32 %v13612_v16  ;;  %v9497_v48 = vld [vmem:[#allocation11] sm:$0xf] }
 0x8b3   :  { %v5595_v43 = vsel %vm5594_vm1, %v13642_v51, %v5591_v18  ;;  %v5605_v21 = vmul.f32 %v13663_v24, %v5604_v3  ;;  %v5622_v61 = vmul.f32 %v11205_v14, %v5585_v27  ;;  %v10615_v51 = vld [vmem:[#allocation11 + $0x44] sm:$0xf]  ;;  %v5565_v14 = vsel %vm13702_vm3, %v13610_v12, %v5561_v32  ;;  %v10609_v17 = vld [vmem:[#allocation11 + $0xc] sm:$0xf0]  ;;  %vm13723_vm6 = vmor %vm5607_vm5, %vm5608_vm4 }
 0x8b4   :  { %v5600_v42 = vsel %vm5597_vm2, %v5599_v57, %v5595_v43  ;;  %v5611_v57 = vand.u32 2147483647, %v13612_v16  ;;  %5876 = vmatpush.bf16.msrb.mxu2 %v9554_v40  ;;  %v9534_v4 = vor.u32 %v10615_v51, %v9531_v6  ;;  %5890 = vmatpush.bf16.msrb.mxu3 %v9558_v0  ;;  %v9542_v12 = vor.u32 %v10616_v1, %v9539_v33  ;;  %v10607_v47 = vld [vmem:[#allocation11 + $0x4] sm:$0xf]  ;;  %v9499_v19 = vld [vmem:[#allocation11 + $0x10] sm:$0xf0] }
 0x8b5   :  { %v5620_v41 = vmul.f32 %v5600_v42, %v13537_v63  ;;  %v11209_v63 = vpop.eup %11208  ;;  %v5606_v45 = vadd.f32 %v13663_v24, %v5605_v21  ;;  %v9514_v30 = vor.u32 %v10613_v23, %v9513_v29  ;;  %v9518_v3 = vor.u32 %v10611_v60, %v9515_v54  ;;  %v9505_v36 = vld [vmem:[#allocation11 + $0x8] sm:$0xf]  ;;  %v10610_v28 = vld [vmem:[#allocation11 + $0x14] sm:$0xf0]  ;;  %v10608_v35 = vld [vmem:[#allocation11 + $0xc] sm:$0xf] }
 0x8b6   :  { %5849 = vmatpush.bf16.msrb.mxu0 %v9530_v39  ;;  %v5570_v52 = vsel %vm13683_vm0, %v5569_v31, %v5565_v14  ;;  %5863 = vmatpush.bf16.msrb.mxu1 %v9534_v4  ;;  %v9522_v16 = vor.u32 %v10614_v37, %v9521_v13  ;;  %v5614_v25 = vor.u32 1.1754944e-38, %v5613_v56  ;;  %v9526_v32 = vor.u32 %v10612_v22, %v9523_v5  ;;  %v9507_v27 = vld [vmem:[#allocation11 + $0x18] sm:$0xf0]  ;;  %v10669_v60 = vld [vmem:[#allocation11 + $0xec] sm:$0xf0] }
 0x8b7   :  { %v13715_v50 = vadd.f32 %v5622_v61, %v5620_v41  ;;  %v5610_v18 = vsel %vm13723_vm6, %v13663_v24, %v5606_v45  ;;  %v5627_v55 = vmul.f32 %v11209_v63, %v5570_v52  ;;  %v9498_v44 = vor.u32 %v10609_v17, %v9497_v48  ;;  %v10667_v54 = vld [vmem:[#allocation11 + $0xe4] sm:$0xf]  ;;  %v9747_v22 = vld [vmem:[#allocation11 + $0xf0] sm:$0xf0]  ;;  %v9753_v5 = vld [vmem:[#allocation11 + $0xe8] sm:$0xf] }
 0x8b8   :  { %5877 = vmatpush.bf16.msrb.mxu2 %v9538_v9  ;;  %5891 = vmatpush.bf16.msrb.mxu3 %v9542_v12  ;;  %vm5612_vm7 = vcmp.eq.f32.partialorder %v5611_v57, 8.507059e+37  ;;  %v9502_v38 = vor.u32 %v10607_v47, %v9499_v19  ;;  %v9506_v24 = vor.u32 %v10610_v28, %v9505_v36  ;;  %v9510_v21 = vor.u32 %v10608_v35, %v9507_v27  ;;  %v9745_v9 = vld [vmem:[#allocation11 + $0xe0] sm:$0xf]  ;;  %v10670_v48 = vld [vmem:[#allocation11 + $0xf4] sm:$0xf0] }
 0x8b9   :  { %11210 = vtanh.f32 %v13715_v50  ;;  %v5615_v40 = vsel %vm5612_vm7, %v5614_v25, %v5610_v18  ;;  %v5629_v31 = vpack.c.bf16 %v5627_v55, %v5627_v55  ;;  %v4186_v0 = vadd.f32 %v13136_v8, %v12912_v53  ;;  %v9755_v52 = vld [vmem:[#allocation11 + $0xf8] sm:$0xf0]  ;;  %v10665_v35 = vld [vmem:[#allocation11 + $0xcc] sm:$0xf0] }
 0x8ba   :  { %5850 = vmatpush.bf16.msrb.mxu0 %v9514_v30  ;;  %5864 = vmatpush.bf16.msrb.mxu1 %v9518_v3  ;;  %v4235_v39 = vadd.f32 %v13138_v7, %v12916_v15  ;;  %v5638_v34 = vunpack.c.l.bf16 %v13132_v2  ;;  %v5639_v59 = vunpack.c.h.bf16 %v13132_v2  ;;  %v4284_v63 = vadd.f32 %v13148_v20, %v12925_v62  ;;  %v10668_v3 = vld [vmem:[#allocation11 + $0xec] sm:$0xf] }
 0x8bb   :  { %v5680_v51 = vunpack.c.l.b16 %v5629_v31  ;;  %v4333_v8 = vadd.f32 %v13150_v49, %v12935_v10  ;;  %v5640_v7 = vunpack.c.l.bf16 %v13140_v58  ;;  %v9746_v37 = vor.u32 %v10669_v60, %v9745_v9 }
 0x8bc   :  { %5878 = vmatpush.bf16.msrb.mxu2 %v9522_v16  ;;  %5892 = vmatpush.bf16.msrb.mxu3 %v9526_v32  ;;  %v4369_v14 = vpack.c.bf16 %v4235_v39, %v4186_v0  ;;  %v9750_v26 = vor.u32 %v10667_v54, %v9747_v22  ;;  %v9754_v49 = vor.u32 %v10670_v48, %v9753_v5  ;;  %v9729_v32 = vld [vmem:[#allocation11 + $0xc0] sm:$0xf] }
 0x8bd   :  { %v13746_v18 = vpack.c.bf16 %v4333_v8, %v4284_v63  ;;  %v9758_v19 = vor.u32 %v10668_v3, %v9755_v52  ;;  %v10660_v52 = vld [vmem:[#allocation11 + $0xac] sm:$0xf] }
 0x8be   :  { %5851 = vmatpush.bf16.msrb.mxu0 %v9498_v44  ;;  %5865 = vmatpush.bf16.msrb.mxu1 %v9502_v38  ;;  %v5642_v4 = vunpack.c.l.bf16 %v4369_v14  ;;  %v5643_v2 = vunpack.c.h.bf16 %v4369_v14 }
 0x8bf   :  { %v11211_v43 = vpop.eup %11210  ;;  %v5644_v38 = vunpack.c.l.bf16 %v13746_v18 }
 0x8c0   :  { %v5628_v11 = vmul.f32 %v11211_v43, %v5615_v40  ;;  %5879 = vmatpush.bf16.msrb.mxu2 %v9506_v24  ;;  %5893 = vmatpush.bf16.msrb.mxu3 %v9510_v21  ;;  %v9730_v43 = vor.u32 %v10665_v35, %v9729_v32  ;;  %v10663_v40 = vld [vmem:[#allocation11 + $0xc4] sm:$0xf]  ;;  %v9731_v24 = vld [vmem:[#allocation11 + $0xd0] sm:$0xf0]  ;;  %v9737_v21 = vld [vmem:[#allocation11 + $0xc8] sm:$0xf] }
 0x8c1   :  { %v9734_v39 = vor.u32 %v10663_v40, %v9731_v24 }
 0x8c2   :  { %v5630_v42 = vpack.c.bf16 %v5628_v11, %v5628_v11  ;;  %v10820_v61 = vpack.c.bf16 %v5628_v11, %v5627_v55  ;;  %6249 = vmatpush.bf16.msra.mxu0 %v9746_v37  ;;  %6263 = vmatpush.bf16.msra.mxu1 %v9750_v26  ;;  %v5641_v11 = vunpack.c.h.bf16 %v13140_v58  ;;  %v9721_v58 = vld [vmem:[#allocation11 + $0xa8] sm:$0xf] }
 0x8c4   :  { %10848 = vst [vmem:[%s14430_s9 + $0x10] sm:$0xff] %v10820_v61   ;;  %v5681_v6 = vunpack.c.l.b16 %v5630_v42  ;;  %6277 = vmatpush.bf16.msra.mxu2 %v9754_v49  ;;  %6291 = vmatpush.bf16.msra.mxu3 %v9758_v19  ;;  %v10666_v42 = vld [vmem:[#allocation11 + $0xd4] sm:$0xf0]  ;;  %v10664_v61 = vld [vmem:[#allocation11 + $0xcc] sm:$0xf] }
 0x8c6   :  { %v5682_v41 = vpack.c.b16 %v5681_v6, %v5680_v51  ;;  %6250 = vmatpush.bf16.msra.mxu0 %v9730_v43  ;;  %v9739_v6 = vld [vmem:[#allocation11 + $0xd8] sm:$0xf0]  ;;  %6264 = vmatpush.bf16.msra.mxu1 %v9734_v39  ;;  %v9697_v39 = vld [vmem:[#allocation11 + $0x80] sm:$0xf] }
 0x8c8   :  { %5852 = vmatmul.bf16.vlgmr.msrb.gmra.mxu0 %v5682_v41  ;;  %5866 = vmatmul.bf16.vlgmr.msrb.gmra.mxu1 %v5682_v41 }
 0x8c9   :  { %5880 = vmatmul.bf16.vlgmr.msrb.gmra.mxu2 %v5682_v41  ;;  %5894 = vmatmul.bf16.vlgmr.msrb.gmra.mxu3 %v5682_v41  ;;  %v9713_v41 = vld [vmem:[#allocation11 + $0xa0] sm:$0xf] }
 0x945   :  { %v5853_v1 = vpop.f32.mrf.mxu0  ;;  %v5867_v33 = vpop.f32.mrf.mxu1 }
 0x946   :  { %v5900_v29 = vadd.f32 %v5853_v1, %v5638_v34  ;;  %v5901_v23 = vadd.f32 %v5867_v33, %v5639_v59  ;;  %v10661_v34 = vld [vmem:[#allocation11 + $0xac] sm:$0xf0]  ;;  %v10659_v59 = vld [vmem:[#allocation11 + $0xa4] sm:$0xf] }
 0x947   :  { %v9714_v14 = vor.u32 %v10661_v34, %v9713_v41  ;;  %v10657_v34 = vld [vmem:[#allocation11 + $0x8c] sm:$0xf0] }
 0x948   :  { %v9623_v57 = vmul.f32 -1.442695, %v5900_v29  ;;  %v9624_v56 = vmul.f32 -1.442695, %v5901_v23  ;;  %v9738_v29 = vor.u32 %v10666_v42, %v9737_v21  ;;  %v9742_v23 = vor.u32 %v10664_v61, %v9739_v6  ;;  %v10649_v42 = vld [vmem:[#allocation11 + $0x4c] sm:$0xf0] }
 0x949   :  { %6251 = vmatpush.bf16.msra.mxu0 %v9714_v14  ;;  %v9698_v3 = vor.u32 %v10657_v34, %v9697_v39  ;;  %v9673_v39 = vld [vmem:[#allocation11 + $0x48] sm:$0xf]  ;;  %v10650_v34 = vld [vmem:[#allocation11 + $0x54] sm:$0xf0] }
 0x94a   :  { %11212 = vpow2.f32 %v9623_v57  ;;  %v9715_v57 = vld [vmem:[#allocation11 + $0xb0] sm:$0xf0]  ;;  %6278 = vmatpush.bf16.msra.mxu2 %v9738_v29  ;;  %6292 = vmatpush.bf16.msra.mxu3 %v9742_v23  ;;  %v10658_v29 = vld [vmem:[#allocation11 + $0x94] sm:$0xf0] }
 0x94b   :  { %11214 = vpow2.f32 %v9624_v56  ;;  %v9718_v8 = vor.u32 %v10659_v59, %v9715_v57  ;;  %v10655_v59 = vld [vmem:[#allocation11 + $0x84] sm:$0xf] }
 0x94c   :  { %v5881_v45 = vpop.f32.mrf.mxu2  ;;  %v5895_v47 = vpop.f32.mrf.mxu3 }
 0x94d   :  { %v5902_v12 = vadd.f32 %v5881_v45, %v5640_v7  ;;  %v5855_v30 = vpop.f32.mrf.mxu0  ;;  %v5869_v13 = vpop.f32.mrf.mxu1  ;;  %v5903_v0 = vadd.f32 %v5895_v47, %v5641_v11  ;;  %v10662_v7 = vld [vmem:[#allocation11 + $0xb4] sm:$0xf0]  ;;  %6265 = vmatpush.bf16.msra.mxu1 %v9718_v8  ;;  %v9707_v8 = vld [vmem:[#allocation11 + $0x98] sm:$0xf0]  ;;  %6252 = vmatpush.bf16.msra.mxu0 %v9698_v3 }
 0x94e   :  { %v5904_v20 = vadd.f32 %v5855_v30, %v5642_v4  ;;  %v5905_v17 = vadd.f32 %v5869_v13, %v5643_v2  ;;  %v9722_v60 = vor.u32 %v10662_v7, %v9721_v58  ;;  %v5645_v13 = vunpack.c.h.bf16 %v13746_v18  ;;  %v9723_v18 = vld [vmem:[#allocation11 + $0xb8] sm:$0xf0] }
 0x94f   :  { %v9625_v16 = vmul.f32 -1.442695, %v5902_v12  ;;  %v9726_v43 = vor.u32 %v10660_v52, %v9723_v18 }
 0x950   :  { %v11213_v55 = vpop.eup %11212  ;;  %v9626_v25 = vmul.f32 -1.442695, %v5904_v20  ;;  %v9627_v28 = vmul.f32 -1.442695, %v5905_v17  ;;  %6279 = vmatpush.bf16.msra.mxu2 %v9722_v60  ;;  %v9681_v60 = vld [vmem:[#allocation11 + $0x60] sm:$0xf] }
 0x951   :  { %v11215_v44 = vpop.eup %11214  ;;  %v13748_v36 = vadd.f32 1.0, %v11213_v55  ;;  %11216 = vpow2.f32 %v9625_v16  ;;  %6293 = vmatpush.bf16.msra.mxu3 %v9726_v43  ;;  %v9665_v43 = vld [vmem:[#allocation11 + $0x40] sm:$0xf] }
 0x952   :  { %v13750_v27 = vadd.f32 1.0, %v11215_v44  ;;  %11218 = vpow2.f32 %v9626_v25 }
 0x953   :  { %11220 = vrcp.f32 %v13748_v36  ;;  %v5941_v4 = vand.u32 2147483647, %v13748_v36  ;;  %v5943_v30 = vand.u32 2147483648, %v13748_v36  ;;  %vm5937_vm9 = vweird.f32 %v13748_v36 }
 0x954   :  { %11222 = vrcp.f32 %v13750_v27  ;;  %v5883_v31 = vpop.f32.mrf.mxu2  ;;  %v5897_v9 = vpop.f32.mrf.mxu3  ;;  %v5958_v5 = vand.u32 2147483648, %v13750_v27  ;;  %v5956_v48 = vand.u32 2147483647, %v13750_v27  ;;  %vm5952_vm8 = vweird.f32 %v13750_v27 }
 0x955   :  { %11224 = vpow2.f32 %v9627_v28  ;;  %v5906_v51 = vadd.f32 %v5883_v31, %v5644_v38  ;;  %v5907_v26 = vadd.f32 %v5897_v9, %v5645_v13  ;;  %vm13776_vm10 = vcmp.eq.f32.partialorder %v5941_v4, 8.507059e+37  ;;  %v9651_v13 = vld [vmem:[#allocation11 + $0x30] sm:$0xf0] }
 0x956   :  { %v5944_v47 = vor.u32 1.1754944e-38, %v5943_v30  ;;  %v5959_v25 = vor.u32 1.1754944e-38, %v5958_v5  ;;  %vm13783_vm13 = vcmp.eq.f32.partialorder %v5956_v48, 8.507059e+37 }
 0x957   :  { %v11217_v1 = vpop.eup %11216  ;;  %v9628_v33 = vmul.f32 -1.442695, %v5906_v51 }
 0x958   :  { %v11219_v56 = vpop.eup %11218  ;;  %v13756_v63 = vadd.f32 1.0, %v11217_v1  ;;  %v9699_v1 = vld [vmem:[#allocation11 + $0x90] sm:$0xf0] }
 0x959   :  { %v11221_v45 = vpop.eup %11220  ;;  %v13759_v2 = vadd.f32 1.0, %v11219_v56  ;;  %11226 = vpow2.f32 %v9628_v33  ;;  %v9705_v33 = vld [vmem:[#allocation11 + $0x88] sm:$0xf]  ;;  %v10656_v56 = vld [vmem:[#allocation11 + $0x8c] sm:$0xf]  ;;  %v9702_v52 = vor.u32 %v10655_v59, %v9699_v1 }
 0x95a   :  { %v13761_v54 = vpop.eup %11222  ;;  %v5933_v12 = vmul.f32 %v11221_v45, %v13748_v36  ;;  %11228 = vrcp.f32 %v13756_v63  ;;  %vm5938_vm11 = vweird.f32 %v11221_v45  ;;  %v5971_v24 = vand.u32 2147483647, %v13756_v63 }
 0x95b   :  { %v11225_v37 = vpop.eup %11224  ;;  %v5948_v22 = vmul.f32 %v13761_v54, %v13750_v27  ;;  %11230 = vtanh.f32 %v5903_v0  ;;  %vm5953_vm12 = vweird.f32 %v13761_v54  ;;  %v5973_v11 = vand.u32 2147483648, %v13756_v63  ;;  %vm5939_vm14 = vmor %vm5937_vm9, %vm5938_vm11  ;;  %6266 = vmatpush.bf16.msra.mxu1 %v9702_v52  ;;  %v9633_v52 = vld [vmem:[#allocation11] sm:$0xf] }
 0x95c   :  { %v5934_v20 = vsub.f32 1.0, %v5933_v12  ;;  %11232 = vrcp.f32 %v13759_v2  ;;  %v13772_v17 = vadd.f32 1.0, %v11225_v37  ;;  %vm13805_vm15 = vmor %vm5952_vm8, %vm5953_vm12  ;;  %v5986_v36 = vand.u32 2147483647, %v13759_v2  ;;  %v10653_v37 = vld [vmem:[#allocation11 + $0x6c] sm:$0xf0] }
 0x95d   :  { %v5949_v49 = vsub.f32 1.0, %v5948_v22  ;;  %vm5982_vm0 = vweird.f32 %v13759_v2  ;;  %v5988_v58 = vand.u32 2147483648, %v13759_v2  ;;  %vm5967_vm1 = vweird.f32 %v13756_v63  ;;  %v10651_v22 = vld [vmem:[#allocation11 + $0x64] sm:$0xf] }
 0x95e   :  { %v5935_v16 = vmul.f32 %v11221_v45, %v5934_v20  ;;  %11234 = vrcp.f32 %v13772_v17  ;;  %v6003_v51 = vand.u32 2147483648, %v13772_v17  ;;  %v6001_v9 = vand.u32 2147483647, %v13772_v17  ;;  %v9683_v20 = vld [vmem:[#allocation11 + $0x70] sm:$0xf0] }
 0x95f   :  { %v11227_v19 = vpop.eup %11226  ;;  %v5950_v55 = vmul.f32 %v13761_v54, %v5949_v49  ;;  %11236 = vtanh.f32 %v5907_v26  ;;  %vm5997_vm2 = vweird.f32 %v13772_v17  ;;  %vm13832_vm3 = vcmp.eq.f32.partialorder %v5986_v36, 8.507059e+37  ;;  %v9689_v26 = vld [vmem:[#allocation11 + $0x68] sm:$0xf] }
 0x960   :  { %v13787_v44 = vpop.eup %11228  ;;  %v5936_v28 = vadd.f32 %v11221_v45, %v5935_v16  ;;  %v13789_v35 = vadd.f32 1.0, %v11227_v19  ;;  %v6004_v30 = vor.u32 1.1754944e-38, %v6003_v51  ;;  %v9706_v18 = vor.u32 %v10658_v29, %v9705_v33  ;;  %v10652_v19 = vld [vmem:[#allocation11 + $0x6c] sm:$0xf]  ;;  %v9667_v51 = vld [vmem:[#allocation11 + $0x50] sm:$0xf0] }
 0x961   :  { %v11231_v38 = vpop.eup %11230  ;;  %v5963_v40 = vmul.f32 %v13787_v44, %v13756_v63  ;;  %v5951_v31 = vadd.f32 %v13761_v54, %v5950_v55  ;;  %v9710_v16 = vor.u32 %v10656_v56, %v9707_v8  ;;  %v9691_v55 = vld [vmem:[#allocation11 + $0x78] sm:$0xf0]  ;;  %vm5968_vm6 = vweird.f32 %v13787_v44  ;;  %v10648_v33 = vld [vmem:[#allocation11 + $0x4c] sm:$0xf] }
 0x962   :  { %v13799_v21 = vpop.eup %11232  ;;  %v5940_v61 = vsel %vm5939_vm14, %v11221_v45, %v5936_v28  ;;  %11238 = vrcp.f32 %v13789_v35  ;;  %v5989_v28 = vor.u32 1.1754944e-38, %v5988_v58  ;;  %6280 = vmatpush.bf16.msra.mxu2 %v9706_v18  ;;  %vm13860_vm8 = vcmp.eq.f32.partialorder %v5971_v24, 8.507059e+37  ;;  %v9675_v29 = vld [vmem:[#allocation11 + $0x58] sm:$0xf0]  ;;  %vm13879_vm11 = vmor %vm5967_vm1, %vm5968_vm6  ;;  %v10644_v63 = vld [vmem:[#allocation11 + $0x2c] sm:$0xf] }
 0x963   :  { %v5964_v6 = vsub.f32 1.0, %v5963_v40  ;;  %v5945_v41 = vsel %vm13776_vm10, %v5944_v47, %v5940_v61  ;;  %v5955_v27 = vsel %vm13805_vm15, %v13761_v54, %v5951_v31  ;;  %v5978_v0 = vmul.f32 %v13799_v21, %v13759_v2  ;;  %v10654_v47 = vld [vmem:[#allocation11 + $0x74] sm:$0xf0]  ;;  %v10647_v61 = vld [vmem:[#allocation11 + $0x44] sm:$0xf]  ;;  %6294 = vmatpush.bf16.msra.mxu3 %v9710_v16 }
 0x964   :  { %v13819_v23 = vpop.eup %11234  ;;  %v5960_v14 = vsel %vm13783_vm13, %v5959_v25, %v5955_v27  ;;  %v6026_v57 = vmul.f32 %v11231_v38, %v5945_v41  ;;  %vm5983_vm4 = vweird.f32 %v13799_v21  ;;  %v9682_v40 = vor.u32 %v10653_v37, %v9681_v60  ;;  %v9657_v37 = vld [vmem:[#allocation11 + $0x28] sm:$0xf]  ;;  %v10641_v18 = vld [vmem:[#allocation11 + $0xc] sm:$0xf0] }
 0x965   :  { %v6024_v7 = vmul.f32 %v5960_v14, %v13659_v46  ;;  %v5979_v45 = vsub.f32 1.0, %v5978_v0  ;;  %v5993_v4 = vmul.f32 %v13819_v23, %v13772_v17  ;;  %v11237_v54 = vpop.eup %11236  ;;  %v5965_v12 = vmul.f32 %v13787_v44, %v5964_v6  ;;  %vm13852_vm7 = vmor %vm5982_vm0, %vm5983_vm4 }
 0x966   :  { %vm5998_vm5 = vweird.f32 %v13819_v23  ;;  %v9686_v31 = vor.u32 %v10651_v22, %v9683_v20  ;;  %v9690_v27 = vor.u32 %v10654_v47, %v9689_v26  ;;  %v9694_v0 = vor.u32 %v10652_v19, %v9691_v55  ;;  %6253 = vmatpush.bf16.msra.mxu0 %v9682_v40  ;;  %v10646_v22 = vld [vmem:[#allocation11 + $0x34] sm:$0xf0]  ;;  %v10639_v47 = vld [vmem:[#allocation11 + $0x4] sm:$0xf]  ;;  %v9635_v19 = vld [vmem:[#allocation11 + $0x10] sm:$0xf0] }
 0x967   :  { %v13836_v46 = vadd.f32 %v6026_v57, %v6024_v7  ;;  %v5994_v5 = vsub.f32 1.0, %v5993_v4  ;;  %v5980_v48 = vmul.f32 %v13799_v21, %v5979_v45  ;;  %v5966_v59 = vadd.f32 %v13787_v44, %v5965_v12  ;;  %vm5999_vm9 = vmor %vm5997_vm2, %vm5998_vm5  ;;  %v10645_v45 = vld [vmem:[#allocation11 + $0x2c] sm:$0xf0]  ;;  %v10643_v12 = vld [vmem:[#allocation11 + $0x24] sm:$0xf] }
 0x968   :  { %v13840_v49 = vpop.eup %11238  ;;  %vm6002_vm10 = vcmp.eq.f32.partialorder %v6001_v9, 8.507059e+37  ;;  %v9666_v57 = vor.u32 %v10649_v42, %v9665_v43  ;;  %v9670_v58 = vor.u32 %v10647_v61, %v9667_v51  ;;  %6267 = vmatpush.bf16.msra.mxu1 %v9686_v31  ;;  %6281 = vmatpush.bf16.msra.mxu2 %v9690_v27  ;;  %v9674_v9 = vor.u32 %v10650_v34, %v9673_v39  ;;  %v9641_v55 = vld [vmem:[#allocation11 + $0x8] sm:$0xf] }
 0x969   :  { %v5995_v25 = vmul.f32 %v13819_v23, %v5994_v5  ;;  %v6008_v32 = vmul.f32 %v13840_v49, %v13789_v35  ;;  %v5981_v38 = vadd.f32 %v13799_v21, %v5980_v48  ;;  %11240 = vtanh.f32 %v13836_v46  ;;  %6295 = vmatpush.bf16.msra.mxu3 %v9694_v0 }
 0x96a   :  { %v9678_v60 = vor.u32 %v10648_v33, %v9675_v29  ;;  %v6018_v5 = vand.u32 2147483648, %v13789_v35  ;;  %vm6013_vm12 = vweird.f32 %v13840_v49  ;;  %6254 = vmatpush.bf16.msra.mxu0 %v9666_v57  ;;  %v9654_v3 = vor.u32 %v10643_v12, %v9651_v13 }
 0x96b   :  { %v6009_v36 = vsub.f32 1.0, %v6008_v32  ;;  %v5996_v41 = vadd.f32 %v13819_v23, %v5995_v25  ;;  %v5985_v2 = vsel %vm13852_vm7, %v13799_v21, %v5981_v38  ;;  %v5974_v21 = vor.u32 1.1754944e-38, %v5973_v11  ;;  %v9659_v11 = vld [vmem:[#allocation11 + $0x38] sm:$0xf0]  ;;  %v10642_v25 = vld [vmem:[#allocation11 + $0x14] sm:$0xf0] }
 0x96c   :  { %v5990_v24 = vsel %vm13832_vm3, %v5989_v28, %v5985_v2  ;;  %6268 = vmatpush.bf16.msra.mxu1 %v9670_v58  ;;  %6282 = vmatpush.bf16.msra.mxu2 %v9674_v9  ;;  %v9662_v16 = vor.u32 %v10644_v63, %v9659_v11  ;;  %vm6012_vm13 = vweird.f32 %v13789_v35  ;;  %v10640_v32 = vld [vmem:[#allocation11 + $0xc] sm:$0xf]  ;;  %v9643_v28 = vld [vmem:[#allocation11 + $0x18] sm:$0xf0]  ;;  %v9634_v38 = vor.u32 %v10641_v18, %v9633_v52  ;;  %v14699_v2 = vld [vmem:[#allocation16_spill] sm:$0xff] }
 0x96d   :  { %v6000_v14 = vsel %vm5999_vm9, %v13819_v23, %v5996_v41  ;;  %v6010_v56 = vmul.f32 %v13840_v49, %v6009_v36  ;;  %v6027_v7 = vmul.f32 %v11237_v54, %v5990_v24  ;;  %v9649_v23 = vld [vmem:[#allocation11 + $0x20] sm:$0xf]  ;;  %v5970_v54 = vsel %vm13879_vm11, %v13787_v44, %v5966_v59  ;;  %6296 = vmatpush.bf16.msra.mxu3 %v9678_v60  ;;  %vm13900_vm14 = vmor %vm6012_vm13, %vm6013_vm12  ;;  %v10702_v9 = vld [vmem:[#allocation11 + $0xf4] sm:$0xf0] }
 0x96e   :  { %v6005_v8 = vsel %vm6002_vm10, %v6004_v30, %v6000_v14  ;;  %v6016_v30 = vand.u32 2147483647, %v13789_v35  ;;  %v9650_v26 = vor.u32 %v10645_v45, %v9649_v23  ;;  %v9658_v44 = vor.u32 %v10646_v22, %v9657_v37  ;;  %v9883_v45 = vld [vmem:[#allocation11 + $0xf0] sm:$0xf0]  ;;  %v10700_v22 = vld [vmem:[#allocation11 + $0xec] sm:$0xf] }
 0x96f   :  { %v6025_v4 = vmul.f32 %v6005_v8, %v13715_v50  ;;  %v11241_v50 = vpop.eup %11240  ;;  %v6011_v20 = vadd.f32 %v13840_v49, %v6010_v56  ;;  %v5975_v40 = vsel %vm13860_vm8, %v5974_v21, %v5970_v54  ;;  %v9638_v35 = vor.u32 %v10639_v47, %v9635_v19  ;;  %v9881_v56 = vld [vmem:[#allocation11 + $0xe0] sm:$0xf]  ;;  %v10701_v8 = vld [vmem:[#allocation11 + $0xec] sm:$0xf0]  ;;  %v9891_v63 = vld [vmem:[#allocation11 + $0xf8] sm:$0xf0] }
 0x970   :  { %6255 = vmatpush.bf16.msra.mxu0 %v9650_v26  ;;  %6269 = vmatpush.bf16.msra.mxu1 %v9654_v3  ;;  %v6032_v42 = vmul.f32 %v11241_v50, %v5975_v40  ;;  %v6019_v61 = vor.u32 1.1754944e-38, %v6018_v5  ;;  %v9642_v51 = vor.u32 %v10642_v25, %v9641_v55  ;;  %v9646_v36 = vor.u32 %v10640_v32, %v9643_v28  ;;  %v14700_v60 = vld [vmem:[#allocation18_spill] sm:$0xff]  ;;  %v14701_v54 = vld [vmem:[#allocation19_spill] sm:$0xff]  ;;  %v9865_v52 = vld [vmem:[#allocation11 + $0xc0] sm:$0xf] }
 0x971   :  { %v13892_v48 = vadd.f32 %v6027_v7, %v6025_v4  ;;  %v6015_v31 = vsel %vm13900_vm14, %v13840_v49, %v6011_v20  ;;  %6283 = vmatpush.bf16.msra.mxu2 %v9658_v44  ;;  %6297 = vmatpush.bf16.msra.mxu3 %v9662_v16  ;;  %vm6017_vm15 = vcmp.eq.f32.partialorder %v6016_v30, 8.507059e+37  ;;  %v6043_v33 = vunpack.c.l.bf16 %v14699_v2  ;;  %v10699_v7 = vld [vmem:[#allocation11 + $0xe4] sm:$0xf]  ;;  %v9889_v4 = vld [vmem:[#allocation11 + $0xe8] sm:$0xf] }
 0x972   :  { %v6020_v41 = vsel %vm6017_vm15, %v6019_v61, %v6015_v31  ;;  %v6034_v0 = vpack.c.bf16 %v6032_v42, %v6032_v42  ;;  %v6044_v29 = vunpack.c.h.bf16 %v14699_v2  ;;  %v9882_v23 = vor.u32 %v10701_v8, %v9881_v56  ;;  %v10697_v18 = vld [vmem:[#allocation11 + $0xcc] sm:$0xf0]  ;;  %v10695_v44 = vld [vmem:[#allocation11 + $0xc4] sm:$0xf]  ;;  %v9867_v55 = vld [vmem:[#allocation11 + $0xd0] sm:$0xf0] }
 0x973   :  { %11242 = vtanh.f32 %v13892_v48  ;;  %v6045_v12 = vunpack.c.l.bf16 %v14700_v60  ;;  %v9886_v13 = vor.u32 %v10699_v7, %v9883_v45  ;;  %v9890_v37 = vor.u32 %v10702_v9, %v9889_v4  ;;  %v9873_v25 = vld [vmem:[#allocation11 + $0xc8] sm:$0xf]  ;;  %v10698_v32 = vld [vmem:[#allocation11 + $0xd4] sm:$0xf0]  ;;  %v10696_v40 = vld [vmem:[#allocation11 + $0xcc] sm:$0xf] }
 0x974   :  { %6256 = vmatpush.bf16.msra.mxu0 %v9634_v38  ;;  %6270 = vmatpush.bf16.msra.mxu1 %v9638_v35  ;;  %v6085_v34 = vunpack.c.l.b16 %v6034_v0  ;;  %v6047_v30 = vunpack.c.l.bf16 %v14701_v54  ;;  %v6048_v5 = vunpack.c.h.bf16 %v14701_v54  ;;  %v9894_v50 = vor.u32 %v10700_v22, %v9891_v63  ;;  %v9875_v31 = vld [vmem:[#allocation11 + $0xd8] sm:$0xf0]  ;;  %v10693_v0 = vld [vmem:[#allocation11 + $0xac] sm:$0xf0]  ;;  %v9851_v2 = vld [vmem:[#allocation11 + $0xb0] sm:$0xf0] }
 0x975   :  { %6284 = vmatpush.bf16.msra.mxu2 %v9642_v51  ;;  %6298 = vmatpush.bf16.msra.mxu3 %v9646_v36  ;;  %v9866_v19 = vor.u32 %v10697_v18, %v9865_v52  ;;  %v9870_v43 = vor.u32 %v10695_v44, %v9867_v55  ;;  %v9874_v38 = vor.u32 %v10698_v32, %v9873_v25  ;;  %v9833_v8 = vld [vmem:[#allocation11 + $0x80] sm:$0xf]  ;;  %v10689_v7 = vld [vmem:[#allocation11 + $0x8c] sm:$0xf0]  ;;  %v10690_v54 = vld [vmem:[#allocation11 + $0x94] sm:$0xf0] }
 0x976   :  { %v9878_v36 = vor.u32 %v10696_v40, %v9875_v31  ;;  %v9843_v40 = vld [vmem:[#allocation11 + $0x98] sm:$0xf0] }
 0x978   :  { %6654 = vmatpush.bf16.msrb.mxu0 %v9882_v23  ;;  %6668 = vmatpush.bf16.msrb.mxu1 %v9886_v13  ;;  %v10687_v13 = vld [vmem:[#allocation11 + $0x84] sm:$0xf] }
 0x979   :  { %v11243_v6 = vpop.eup %11242  ;;  %6682 = vmatpush.bf16.msrb.mxu2 %v9890_v37  ;;  %6696 = vmatpush.bf16.msrb.mxu3 %v9894_v50  ;;  %v9835_v37 = vld [vmem:[#allocation11 + $0x90] sm:$0xf0] }
 0x97a   :  { %v6033_v27 = vmul.f32 %v11243_v6, %v6020_v41  ;;  %v9838_v63 = vor.u32 %v10687_v13, %v9835_v37 }
 0x97c   :  { %v6035_v39 = vpack.c.bf16 %v6033_v27, %v6033_v27  ;;  %v10825_v49 = vpack.c.bf16 %v6033_v27, %v6032_v42  ;;  %6655 = vmatpush.bf16.msrb.mxu0 %v9866_v19  ;;  %6669 = vmatpush.bf16.msrb.mxu1 %v9870_v43  ;;  %v9849_v27 = vld [vmem:[#allocation11 + $0xa0] sm:$0xf] }
 0x97d   :  { %6683 = vmatpush.bf16.msrb.mxu2 %v9874_v38  ;;  %6697 = vmatpush.bf16.msrb.mxu3 %v9878_v36  ;;  %v10688_v38 = vld [vmem:[#allocation11 + $0x8c] sm:$0xf] }
 0x97e   :  { %10849 = vst [vmem:[%s14430_s9 + $0x18] sm:$0xff] %v10825_v49   ;;  %v6086_v59 = vunpack.c.l.b16 %v6035_v39  ;;  %v9850_v49 = vor.u32 %v10693_v0, %v9849_v27  ;;  %v9785_v0 = vld [vmem:[#allocation11 + $0x20] sm:$0xf] }
 0x980   :  { %v6087_v1 = vpack.c.b16 %v6086_v59, %v6085_v34  ;;  %v14702_v34 = vld [vmem:[#allocation17_spill] sm:$0xff]  ;;  %6656 = vmatpush.bf16.msrb.mxu0 %v9850_v49 }
 0x981   :  { %v6049_v59 = vunpack.c.l.bf16 %v14702_v34  ;;  %v6050_v52 = vunpack.c.h.bf16 %v14702_v34  ;;  %v9846_v34 = vor.u32 %v10688_v38, %v9843_v40 }
 0x982   :  { %6257 = vmatmul.bf16.vlgmr.msra.gmra.mxu0 %v6087_v1  ;;  %6271 = vmatmul.bf16.vlgmr.msra.gmra.mxu1 %v6087_v1 }
 0x983   :  { %6285 = vmatmul.bf16.vlgmr.msra.gmra.mxu2 %v6087_v1  ;;  %6299 = vmatmul.bf16.vlgmr.msra.gmra.mxu3 %v6087_v1  ;;  %v10691_v1 = vld [vmem:[#allocation11 + $0xa4] sm:$0xf] }
 0x984   :  { %v9854_v56 = vor.u32 %v10691_v1, %v9851_v2 }
 0x986   :  { %6670 = vmatpush.bf16.msrb.mxu1 %v9854_v56  ;;  %v9817_v56 = vld [vmem:[#allocation11 + $0x60] sm:$0xf] }
 0x98a   :  { %6671 = vmatpush.bf16.msrb.mxu1 %v9838_v63  ;;  %v9827_v63 = vld [vmem:[#allocation11 + $0x78] sm:$0xf0] }
 0x9ff   :  { %v6258_v24 = vpop.f32.mrf.mxu0  ;;  %v6272_v14 = vpop.f32.mrf.mxu1 }
 0xa00   :  { %v6305_v57 = vadd.f32 %v6258_v24, %v6043_v33  ;;  %v6306_v58 = vadd.f32 %v6272_v14, %v6044_v29  ;;  %v6046_v33 = vunpack.c.h.bf16 %v14700_v60  ;;  %v9857_v24 = vld [vmem:[#allocation11 + $0xa8] sm:$0xf]  ;;  %v10694_v14 = vld [vmem:[#allocation11 + $0xb4] sm:$0xf0] }
 0xa01   :  { %v9858_v4 = vor.u32 %v10694_v14, %v9857_v24  ;;  %v10675_v24 = vld [vmem:[#allocation11 + $0x24] sm:$0xf] }
 0xa02   :  { %v9759_v17 = vmul.f32 -1.442695, %v6305_v57  ;;  %v9760_v21 = vmul.f32 -1.442695, %v6306_v58  ;;  %v10692_v58 = vld [vmem:[#allocation11 + $0xac] sm:$0xf] }
 0xa03   :  { %6684 = vmatpush.bf16.msrb.mxu2 %v9858_v4  ;;  %v10686_v4 = vld [vmem:[#allocation11 + $0x74] sm:$0xf0] }
 0xa04   :  { %11244 = vpow2.f32 %v9759_v17  ;;  %v9859_v17 = vld [vmem:[#allocation11 + $0xb8] sm:$0xf0] }
 0xa05   :  { %11246 = vpow2.f32 %v9760_v21  ;;  %v9862_v9 = vor.u32 %v10692_v58, %v9859_v17 }
 0xa06   :  { %v6286_v11 = vpop.f32.mrf.mxu2  ;;  %v6300_v42 = vpop.f32.mrf.mxu3 }
 0xa07   :  { %v6307_v20 = vadd.f32 %v6286_v11, %v6045_v12  ;;  %v6260_v26 = vpop.f32.mrf.mxu0  ;;  %v6274_v3 = vpop.f32.mrf.mxu1  ;;  %v6308_v21 = vadd.f32 %v6300_v42, %v6046_v33  ;;  %v9834_v12 = vor.u32 %v10689_v7, %v9833_v8  ;;  %v9841_v11 = vld [vmem:[#allocation11 + $0x88] sm:$0xf]  ;;  %6698 = vmatpush.bf16.msrb.mxu3 %v9862_v9  ;;  %v10685_v8 = vld [vmem:[#allocation11 + $0x6c] sm:$0xf0]  ;;  %v10683_v7 = vld [vmem:[#allocation11 + $0x64] sm:$0xf] }
 0xa08   :  { %v6309_v16 = vadd.f32 %v6260_v26, %v6047_v30  ;;  %v6310_v47 = vadd.f32 %v6274_v3, %v6048_v5  ;;  %v9842_v50 = vor.u32 %v10690_v54, %v9841_v11 }
 0xa09   :  { %v9761_v28 = vmul.f32 -1.442695, %v6307_v20  ;;  %6657 = vmatpush.bf16.msrb.mxu0 %v9834_v12 }
 0xa0a   :  { %v11245_v35 = vpop.eup %11244  ;;  %v9762_v61 = vmul.f32 -1.442695, %v6309_v16  ;;  %v9763_v51 = vmul.f32 -1.442695, %v6310_v47  ;;  %6685 = vmatpush.bf16.msrb.mxu2 %v9842_v50 }
 0xa0b   :  { %v11247_v6 = vpop.eup %11246  ;;  %v13917_v41 = vadd.f32 1.0, %v11245_v35  ;;  %11248 = vpow2.f32 %v9761_v28  ;;  %6699 = vmatpush.bf16.msrb.mxu3 %v9846_v34  ;;  %v10682_v35 = vld [vmem:[#allocation11 + $0x54] sm:$0xf0] }
 0xa0c   :  { %v13919_v39 = vadd.f32 1.0, %v11247_v6  ;;  %11250 = vpow2.f32 %v9762_v61 }
 0xa0d   :  { %11252 = vrcp.f32 %v13917_v41  ;;  %v6346_v3 = vand.u32 2147483647, %v13917_v41  ;;  %v6348_v19 = vand.u32 2147483648, %v13917_v41  ;;  %vm6342_vm1 = vweird.f32 %v13917_v41 }
 0xa0e   :  { %11254 = vrcp.f32 %v13919_v39  ;;  %v6288_v29 = vpop.f32.mrf.mxu2  ;;  %v6302_v18 = vpop.f32.mrf.mxu3  ;;  %v6363_v47 = vand.u32 2147483648, %v13919_v39  ;;  %v6361_v25 = vand.u32 2147483647, %v13919_v39  ;;  %vm6357_vm0 = vweird.f32 %v13919_v39 }
 0xa0f   :  { %11256 = vpow2.f32 %v9763_v51  ;;  %v6311_v57 = vadd.f32 %v6288_v29, %v6049_v59  ;;  %v6312_v43 = vadd.f32 %v6302_v18, %v6050_v52  ;;  %vm13945_vm3 = vcmp.eq.f32.partialorder %v6346_v3, 8.507059e+37  ;;  %v10681_v18 = vld [vmem:[#allocation11 + $0x4c] sm:$0xf0]  ;;  %v9777_v52 = vld [vmem:[#allocation11 + $0x8] sm:$0xf] }
 0xa10   :  { %v6364_v51 = vor.u32 1.1754944e-38, %v6363_v47  ;;  %v6349_v36 = vor.u32 1.1754944e-38, %v6348_v19  ;;  %vm13954_vm5 = vcmp.eq.f32.partialorder %v6361_v25, 8.507059e+37  ;;  %v9809_v25 = vld [vmem:[#allocation11 + $0x48] sm:$0xf] }
 0xa11   :  { %v11249_v23 = vpop.eup %11248  ;;  %v9764_v45 = vmul.f32 -1.442695, %v6311_v57 }
 0xa12   :  { %v11251_v60 = vpop.eup %11250  ;;  %v13925_v22 = vadd.f32 1.0, %v11249_v23  ;;  %v9819_v23 = vld [vmem:[#allocation11 + $0x70] sm:$0xf0] }
 0xa13   :  { %v11253_v30 = vpop.eup %11252  ;;  %v13927_v5 = vadd.f32 1.0, %v11251_v60  ;;  %11258 = vpow2.f32 %v9764_v45  ;;  %v9825_v45 = vld [vmem:[#allocation11 + $0x68] sm:$0xf]  ;;  %v10684_v60 = vld [vmem:[#allocation11 + $0x6c] sm:$0xf]  ;;  %v9822_v38 = vor.u32 %v10683_v7, %v9819_v23 }
 0xa14   :  { %v13929_v20 = vpop.eup %11254  ;;  %v6338_v26 = vmul.f32 %v11253_v30, %v13917_v41  ;;  %11260 = vrcp.f32 %v13925_v22  ;;  %vm6343_vm2 = vweird.f32 %v11253_v30  ;;  %v6378_v2 = vand.u32 2147483648, %v13925_v22  ;;  %v10676_v7 = vld [vmem:[#allocation11 + $0x2c] sm:$0xf]  ;;  %v9795_v23 = vld [vmem:[#allocation11 + $0x38] sm:$0xf0] }
 0xa15   :  { %v11257_v44 = vpop.eup %11256  ;;  %v6353_v16 = vmul.f32 %v13929_v20, %v13919_v39  ;;  %11262 = vtanh.f32 %v6308_v21  ;;  %vm6358_vm4 = vweird.f32 %v13929_v20  ;;  %vm6344_vm6 = vmor %vm6342_vm1, %vm6343_vm2  ;;  %v6391_v41 = vand.u32 2147483647, %v13927_v5  ;;  %6672 = vmatpush.bf16.msrb.mxu1 %v9822_v38 }
 0xa16   :  { %v6339_v55 = vsub.f32 1.0, %v6338_v26  ;;  %11264 = vrcp.f32 %v13927_v5  ;;  %v13941_v32 = vadd.f32 1.0, %v11257_v44  ;;  %vm13973_vm7 = vmor %vm6357_vm0, %vm6358_vm4  ;;  %vm6387_vm8 = vweird.f32 %v13927_v5  ;;  %v10679_v44 = vld [vmem:[#allocation11 + $0x44] sm:$0xf] }
 0xa17   :  { %v6354_v28 = vsub.f32 1.0, %v6353_v16  ;;  %v6393_v37 = vand.u32 2147483648, %v13927_v5  ;;  %vm6372_vm9 = vweird.f32 %v13925_v22  ;;  %vm14000_vm11 = vcmp.eq.f32.partialorder %v6391_v41, 8.507059e+37 }
 0xa18   :  { %v6340_v31 = vmul.f32 %v11253_v30, %v6339_v55  ;;  %11266 = vrcp.f32 %v13941_v32  ;;  %v6408_v57 = vand.u32 2147483648, %v13941_v32  ;;  %v6406_v50 = vand.u32 2147483647, %v13941_v32  ;;  %v9803_v55 = vld [vmem:[#allocation11 + $0x50] sm:$0xf0] }
 0xa19   :  { %v11259_v42 = vpop.eup %11258  ;;  %v6355_v61 = vmul.f32 %v13929_v20, %v6354_v28  ;;  %11268 = vtanh.f32 %v6312_v43  ;;  %vm6402_vm10 = vweird.f32 %v13941_v32  ;;  %v9818_v43 = vor.u32 %v10685_v8, %v9817_v56  ;;  %v10678_v56 = vld [vmem:[#allocation11 + $0x34] sm:$0xf0] }
 0xa1a   :  { %v13952_v6 = vpop.eup %11260  ;;  %v6341_v27 = vadd.f32 %v11253_v30, %v6340_v31  ;;  %v13958_v49 = vadd.f32 1.0, %v11259_v42  ;;  %v6409_v3 = vor.u32 1.1754944e-38, %v6408_v57  ;;  %v9826_v40 = vor.u32 %v10686_v4, %v9825_v45  ;;  %v10680_v42 = vld [vmem:[#allocation11 + $0x4c] sm:$0xf] }
 0xa1b   :  { %v11263_v59 = vpop.eup %11262  ;;  %v6368_v1 = vmul.f32 %v13952_v6, %v13925_v22  ;;  %v6356_v33 = vadd.f32 %v13929_v20, %v6355_v61  ;;  %v9830_v31 = vor.u32 %v10684_v60, %v9827_v63  ;;  %v9811_v61 = vld [vmem:[#allocation11 + $0x58] sm:$0xf0]  ;;  %vm6373_vm14 = vweird.f32 %v13952_v6  ;;  %6658 = vmatpush.bf16.msrb.mxu0 %v9818_v43 }
 0xa1c   :  { %v13967_v29 = vpop.eup %11264  ;;  %v6345_v14 = vsel %vm6344_vm6, %v11253_v30, %v6341_v27  ;;  %11270 = vrcp.f32 %v13958_v49  ;;  %v6394_v27 = vor.u32 1.1754944e-38, %v6393_v37  ;;  %6686 = vmatpush.bf16.msrb.mxu2 %v9826_v40  ;;  %vm6407_vm1 = vcmp.eq.f32.partialorder %v6406_v50, 8.507059e+37  ;;  %vm14041_vm2 = vmor %vm6372_vm9, %vm6373_vm14 }
 0xa1d   :  { %v6369_v58 = vsub.f32 1.0, %v6368_v1  ;;  %v6350_v17 = vsel %vm13945_vm3, %v6349_v36, %v6345_v14  ;;  %v6360_v39 = vsel %vm13973_vm7, %v13929_v20, %v6356_v33  ;;  %v6383_v21 = vmul.f32 %v13967_v29, %v13927_v5  ;;  %v9801_v20 = vld [vmem:[#allocation11 + $0x40] sm:$0xf]  ;;  %v10677_v33 = vld [vmem:[#allocation11 + $0x2c] sm:$0xf0]  ;;  %6700 = vmatpush.bf16.msrb.mxu3 %v9830_v31 }
 0xa1e   :  { %v13987_v9 = vpop.eup %11266  ;;  %v6365_v12 = vsel %vm13954_vm5, %v6364_v51, %v6360_v39  ;;  %v6431_v13 = vmul.f32 %v11263_v59, %v6350_v17  ;;  %vm6388_vm12 = vweird.f32 %v13967_v29  ;;  %v9802_v59 = vor.u32 %v10681_v18, %v9801_v20  ;;  %v9787_v14 = vld [vmem:[#allocation11 + $0x30] sm:$0xf0]  ;;  %v10671_v20 = vld [vmem:[#allocation11 + $0x4] sm:$0xf]  ;;  %v10674_v18 = vld [vmem:[#allocation11 + $0x14] sm:$0xf0] }
 0xa1f   :  { %v6429_v11 = vmul.f32 %v6365_v12, %v13836_v46  ;;  %v6384_v54 = vsub.f32 1.0, %v6383_v21  ;;  %v6398_v30 = vmul.f32 %v13987_v9, %v13941_v32  ;;  %v6370_v26 = vmul.f32 %v13952_v6, %v6369_v58  ;;  %v11269_v16 = vpop.eup %11268  ;;  %vm14020_vm15 = vmor %vm6387_vm8, %vm6388_vm12  ;;  %v9793_v21 = vld [vmem:[#allocation11 + $0x28] sm:$0xf]  ;;  %v10027_v32 = vld [vmem:[#allocation11 + $0xf8] sm:$0xf0] }
 0xa20   :  { %vm6403_vm13 = vweird.f32 %v13987_v9  ;;  %v9806_v1 = vor.u32 %v10679_v44, %v9803_v55  ;;  %v9810_v17 = vor.u32 %v10682_v35, %v9809_v25  ;;  %v9814_v39 = vor.u32 %v10680_v42, %v9811_v61  ;;  %6659 = vmatpush.bf16.msrb.mxu0 %v9802_v59  ;;  %v10672_v44 = vld [vmem:[#allocation11 + $0xc] sm:$0xf] }
 0xa21   :  { %v14004_v46 = vadd.f32 %v6431_v13, %v6429_v11  ;;  %v6399_v47 = vsub.f32 1.0, %v6398_v30  ;;  %v6385_v19 = vmul.f32 %v13967_v29, %v6384_v54  ;;  %v6371_v8 = vadd.f32 %v13952_v6, %v6370_v26  ;;  %vm6404_vm0 = vmor %vm6402_vm10, %vm6403_vm13  ;;  %v9769_v11 = vld [vmem:[#allocation11] sm:$0xf]  ;;  %v9771_v26 = vld [vmem:[#allocation11 + $0x10] sm:$0xf0] }
 0xa22   :  { %v14008_v28 = vpop.eup %11270  ;;  %v9786_v12 = vor.u32 %v10677_v33, %v9785_v0  ;;  %v9790_v13 = vor.u32 %v10675_v24, %v9787_v14  ;;  %6673 = vmatpush.bf16.msrb.mxu1 %v9806_v1  ;;  %6687 = vmatpush.bf16.msrb.mxu2 %v9810_v17  ;;  %v9794_v30 = vor.u32 %v10678_v56, %v9793_v21  ;;  %v6423_v38 = vand.u32 2147483648, %v13958_v49  ;;  %v14715_v1 = vld [vmem:[#allocation21_spill] sm:$0xff]  ;;  %v10017_v17 = vld [vmem:[#allocation11 + $0xe0] sm:$0xf]  ;;  %v10731_v21 = vld [vmem:[#allocation11 + $0xe4] sm:$0xf] }
 0xa23   :  { %v6400_v51 = vmul.f32 %v13987_v9, %v6399_v47  ;;  %v6413_v36 = vmul.f32 %v14008_v28, %v13958_v49  ;;  %v6386_v34 = vadd.f32 %v13967_v29, %v6385_v19  ;;  %11272 = vtanh.f32 %v14004_v46  ;;  %6701 = vmatpush.bf16.msrb.mxu3 %v9814_v39  ;;  %v9779_v47 = vld [vmem:[#allocation11 + $0x18] sm:$0xf0]  ;;  %v10733_v39 = vld [vmem:[#allocation11 + $0xec] sm:$0xf0] }
 0xa24   :  { %v9798_v50 = vor.u32 %v10676_v7, %v9795_v23  ;;  %vm6418_vm3 = vweird.f32 %v14008_v28  ;;  %6660 = vmatpush.bf16.msrb.mxu0 %v9786_v12  ;;  %v9774_v43 = vor.u32 %v10671_v20, %v9771_v26  ;;  %vm6417_vm5 = vweird.f32 %v13958_v49  ;;  %v10734_v7 = vld [vmem:[#allocation11 + $0xf4] sm:$0xf0] }
 0xa25   :  { %v6414_v57 = vsub.f32 1.0, %v6413_v36  ;;  %v6401_v58 = vadd.f32 %v13987_v9, %v6400_v51  ;;  %v6390_v5 = vsel %vm14020_vm15, %v13967_v29, %v6386_v34  ;;  %v6376_v29 = vand.u32 2147483647, %v13925_v22  ;;  %vm6419_vm6 = vmor %vm6417_vm5, %vm6418_vm3  ;;  %v10730_v20 = vld [vmem:[#allocation11 + $0xd4] sm:$0xf0] }
 0xa26   :  { %v6395_v45 = vsel %vm14000_vm11, %v6394_v27, %v6390_v5  ;;  %6674 = vmatpush.bf16.msrb.mxu1 %v9790_v13  ;;  %6688 = vmatpush.bf16.msrb.mxu2 %v9794_v30  ;;  %v9782_v22 = vor.u32 %v10672_v44, %v9779_v47  ;;  %v6424_v42 = vor.u32 1.1754944e-38, %v6423_v38  ;;  %v6448_v33 = vunpack.c.l.bf16 %v14715_v1  ;;  %v10025_v5 = vld [vmem:[#allocation11 + $0xe8] sm:$0xf]  ;;  %v10732_v13 = vld [vmem:[#allocation11 + $0xec] sm:$0xf] }
 0xa27   :  { %v6405_v4 = vsel %vm6404_vm0, %v13987_v9, %v6401_v58  ;;  %v6415_v37 = vmul.f32 %v14008_v28, %v6414_v57  ;;  %v6432_v63 = vmul.f32 %v11269_v16, %v6395_v45  ;;  %v10673_v9 = vld [vmem:[#allocation11 + $0xc] sm:$0xf0]  ;;  %v6379_v16 = vor.u32 1.1754944e-38, %v6378_v2  ;;  %6702 = vmatpush.bf16.msrb.mxu3 %v9798_v50  ;;  %v10003_v30 = vld [vmem:[#allocation11 + $0xd0] sm:$0xf0] }
 0xa28   :  { %v6410_v60 = vsel %vm6407_vm1, %v6409_v3, %v6405_v4  ;;  %v6375_v3 = vsel %vm14041_vm2, %v13952_v6, %v6371_v8  ;;  %v9770_v25 = vor.u32 %v10673_v9, %v9769_v11  ;;  %v9778_v6 = vor.u32 %v10674_v18, %v9777_v52  ;;  %v10019_v8 = vld [vmem:[#allocation11 + $0xf0] sm:$0xf0]  ;;  %v10009_v50 = vld [vmem:[#allocation11 + $0xc8] sm:$0xf]  ;;  %v14717_v52 = vld [vmem:[#allocation20_spill] sm:$0xff] }
 0xa29   :  { %v6430_v54 = vmul.f32 %v6410_v60, %v13892_v48  ;;  %v11273_v48 = vpop.eup %11272  ;;  %v6416_v55 = vadd.f32 %v14008_v28, %v6415_v37  ;;  %vm6377_vm4 = vcmp.eq.f32.partialorder %v6376_v29, 8.507059e+37  ;;  %v6421_v2 = vand.u32 2147483647, %v13958_v49  ;;  %v10001_v37 = vld [vmem:[#allocation11 + $0xc0] sm:$0xf]  ;;  %v14716_v11 = vld [vmem:[#allocation22_spill] sm:$0xff] }
 0xa2a   :  { %v6380_v40 = vsel %vm6377_vm4, %v6379_v16, %v6375_v3  ;;  %6661 = vmatpush.bf16.msrb.mxu0 %v9770_v25  ;;  %6675 = vmatpush.bf16.msrb.mxu1 %v9774_v43  ;;  %v6449_v24 = vunpack.c.h.bf16 %v14715_v1  ;;  %v10018_v56 = vor.u32 %v10733_v39, %v10017_v17  ;;  %v10022_v4 = vor.u32 %v10731_v21, %v10019_v8  ;;  %v10729_v60 = vld [vmem:[#allocation11 + $0xcc] sm:$0xf0]  ;;  %v10728_v16 = vld [vmem:[#allocation11 + $0xcc] sm:$0xf]  ;;  %v9969_v39 = vld [vmem:[#allocation11 + $0x80] sm:$0xf] }
 0xa2b   :  { %v14053_v19 = vadd.f32 %v6432_v63, %v6430_v54  ;;  %v6420_v31 = vsel %vm6419_vm6, %v14008_v28, %v6416_v55  ;;  %v6437_v35 = vmul.f32 %v11273_v48, %v6380_v40  ;;  %6689 = vmatpush.bf16.msrb.mxu2 %v9778_v6  ;;  %6703 = vmatpush.bf16.msrb.mxu3 %v9782_v22  ;;  %vm6422_vm7 = vcmp.eq.f32.partialorder %v6421_v2, 8.507059e+37  ;;  %v10727_v63 = vld [vmem:[#allocation11 + $0xc4] sm:$0xf]  ;;  %v10011_v48 = vld [vmem:[#allocation11 + $0xd8] sm:$0xf0] }
 0xa2c   :  { %v6425_v51 = vsel %vm6422_vm7, %v6424_v42, %v6420_v31  ;;  %v10026_v12 = vor.u32 %v10734_v7, %v10025_v5  ;;  %v10030_v29 = vor.u32 %v10732_v13, %v10027_v32  ;;  %v6450_v9 = vunpack.c.l.bf16 %v14716_v11  ;;  %v9985_v2 = vld [vmem:[#allocation11 + $0xa0] sm:$0xf]  ;;  %v10725_v40 = vld [vmem:[#allocation11 + $0xac] sm:$0xf0]  ;;  %v10723_v31 = vld [vmem:[#allocation11 + $0xa4] sm:$0xf] }
 0xa2d   :  { %11274 = vtanh.f32 %v14053_v19  ;;  %v6439_v27 = vpack.c.bf16 %v6437_v35, %v6437_v35  ;;  %v10002_v54 = vor.u32 %v10729_v60, %v10001_v37  ;;  %v6452_v18 = vunpack.c.l.bf16 %v14717_v52  ;;  %v10721_v21 = vld [vmem:[#allocation11 + $0x8c] sm:$0xf0]  ;;  %v10719_v8 = vld [vmem:[#allocation11 + $0x84] sm:$0xf]  ;;  %v9971_v5 = vld [vmem:[#allocation11 + $0x90] sm:$0xf0] }
 0xa2e   :  { %7059 = vmatpush.bf16.msra.mxu0 %v10018_v56  ;;  %7073 = vmatpush.bf16.msra.mxu1 %v10022_v4  ;;  %v6453_v44 = vunpack.c.h.bf16 %v14717_v52  ;;  %v10006_v47 = vor.u32 %v10727_v63, %v10003_v30  ;;  %v10010_v3 = vor.u32 %v10730_v20, %v10009_v50  ;;  %v10014_v38 = vor.u32 %v10728_v16, %v10011_v48  ;;  %v10720_v13 = vld [vmem:[#allocation11 + $0x8c] sm:$0xf]  ;;  %v9979_v32 = vld [vmem:[#allocation11 + $0x98] sm:$0xf0]  ;;  %v10717_v30 = vld [vmem:[#allocation11 + $0x6c] sm:$0xf0] }
 0xa2f   :  { %v6490_v49 = vunpack.c.l.b16 %v6439_v27  ;;  %7087 = vmatpush.bf16.msra.mxu2 %v10026_v12  ;;  %7101 = vmatpush.bf16.msra.mxu3 %v10030_v29  ;;  %v9986_v42 = vor.u32 %v10725_v40, %v9985_v2  ;;  %v6451_v4 = vunpack.c.h.bf16 %v14716_v11  ;;  %v9970_v12 = vor.u32 %v10721_v21, %v9969_v39  ;;  %v10715_v52 = vld [vmem:[#allocation11 + $0x64] sm:$0xf]  ;;  %v9931_v39 = vld [vmem:[#allocation11 + $0x38] sm:$0xf0] }
 0xa30   :  { %v9974_v60 = vor.u32 %v10719_v8, %v9971_v5 }
 0xa32   :  { %7060 = vmatpush.bf16.msra.mxu0 %v10002_v54  ;;  %7074 = vmatpush.bf16.msra.mxu1 %v10006_v47  ;;  %v9953_v54 = vld [vmem:[#allocation11 + $0x60] sm:$0xf] }
 0xa33   :  { %v11275_v61 = vpop.eup %11274  ;;  %7088 = vmatpush.bf16.msra.mxu2 %v10010_v3  ;;  %7102 = vmatpush.bf16.msra.mxu3 %v10014_v38 }
 0xa34   :  { %v6438_v36 = vmul.f32 %v11275_v61, %v6425_v51  ;;  %v9987_v61 = vld [vmem:[#allocation11 + $0xb0] sm:$0xf0]  ;;  %v9993_v51 = vld [vmem:[#allocation11 + $0xa8] sm:$0xf] }
 0xa36   :  { %v6440_v0 = vpack.c.bf16 %v6438_v36, %v6438_v36  ;;  %v10830_v34 = vpack.c.bf16 %v6438_v36, %v6437_v35  ;;  %7061 = vmatpush.bf16.msra.mxu0 %v9986_v42 }
 0xa38   :  { %10850 = vst [vmem:[%s14430_s9 + $0x20] sm:$0xff] %v10830_v34   ;;  %v6491_v59 = vunpack.c.l.b16 %v6440_v0  ;;  %v9990_v34 = vor.u32 %v10723_v31, %v9987_v61  ;;  %v9961_v61 = vld [vmem:[#allocation11 + $0x68] sm:$0xf] }
 0xa3a   :  { %v6492_v28 = vpack.c.b16 %v6491_v59, %v6490_v49  ;;  %v10726_v49 = vld [vmem:[#allocation11 + $0xb4] sm:$0xf0]  ;;  %7075 = vmatpush.bf16.msra.mxu1 %v9990_v34  ;;  %7062 = vmatpush.bf16.msra.mxu0 %v9970_v12  ;;  %v10716_v12 = vld [vmem:[#allocation11 + $0x6c] sm:$0xf] }
 0xa3b   :  { %v9994_v1 = vor.u32 %v10726_v49, %v9993_v51  ;;  %v10718_v51 = vld [vmem:[#allocation11 + $0x74] sm:$0xf0] }
 0xa3c   :  { %6662 = vmatmul.bf16.vlgmr.msrb.gmra.mxu0 %v6492_v28  ;;  %6676 = vmatmul.bf16.vlgmr.msrb.gmra.mxu1 %v6492_v28 }
 0xa3d   :  { %6690 = vmatmul.bf16.vlgmr.msrb.gmra.mxu2 %v6492_v28  ;;  %6704 = vmatmul.bf16.vlgmr.msrb.gmra.mxu3 %v6492_v28 }
 0xa3e   :  { %7089 = vmatpush.bf16.msra.mxu2 %v9994_v1  ;;  %7076 = vmatpush.bf16.msra.mxu1 %v9974_v60  ;;  %v9939_v60 = vld [vmem:[#allocation11 + $0x50] sm:$0xf0] }
 0xab9   :  { %v6663_v14 = vpop.f32.mrf.mxu0  ;;  %v6677_v57 = vpop.f32.mrf.mxu1 }
 0xaba   :  { %v6710_v41 = vadd.f32 %v6663_v14, %v6448_v33  ;;  %v6711_v58 = vadd.f32 %v6677_v57, %v6449_v24  ;;  %v10724_v33 = vld [vmem:[#allocation11 + $0xac] sm:$0xf]  ;;  %v9995_v24 = vld [vmem:[#allocation11 + $0xb8] sm:$0xf0] }
 0xabb   :  { %v9998_v57 = vor.u32 %v10724_v33, %v9995_v24 }
 0xabc   :  { %v9895_v23 = vmul.f32 -1.442695, %v6710_v41  ;;  %v9896_v45 = vmul.f32 -1.442695, %v6711_v58  ;;  %v14718_v58 = vld [vmem:[#allocation24_spill] sm:$0xff] }
 0xabd   :  { %v6454_v17 = vunpack.c.l.bf16 %v14718_v58  ;;  %7103 = vmatpush.bf16.msra.mxu3 %v9998_v57  ;;  %v9962_v57 = vor.u32 %v10718_v51, %v9961_v61 }
 0xabe   :  { %11276 = vpow2.f32 %v9895_v23  ;;  %v9977_v23 = vld [vmem:[#allocation11 + $0x88] sm:$0xf] }
 0xabf   :  { %11278 = vpow2.f32 %v9896_v45  ;;  %v10722_v45 = vld [vmem:[#allocation11 + $0x94] sm:$0xf0] }
 0xac0   :  { %v6691_v26 = vpop.f32.mrf.mxu2  ;;  %v6705_v41 = vpop.f32.mrf.mxu3  ;;  %v9978_v63 = vor.u32 %v10722_v45, %v9977_v23 }
 0xac1   :  { %v6712_v55 = vadd.f32 %v6691_v26, %v6450_v9  ;;  %v6665_v25 = vpop.f32.mrf.mxu0  ;;  %v6679_v43 = vpop.f32.mrf.mxu1  ;;  %v9982_v9 = vor.u32 %v10720_v13, %v9979_v32  ;;  %v9954_v26 = vor.u32 %v10717_v30, %v9953_v54  ;;  %v6713_v47 = vadd.f32 %v6705_v41, %v6451_v4  ;;  %v9963_v13 = vld [vmem:[#allocation11 + $0x78] sm:$0xf0]  ;;  %v9937_v32 = vld [vmem:[#allocation11 + $0x40] sm:$0xf] }
 0xac2   :  { %v6714_v6 = vadd.f32 %v6665_v25, %v6452_v18  ;;  %v6715_v22 = vadd.f32 %v6679_v43, %v6453_v44  ;;  %v9955_v18 = vld [vmem:[#allocation11 + $0x70] sm:$0xf0]  ;;  %7090 = vmatpush.bf16.msra.mxu2 %v9978_v63 }
 0xac3   :  { %v9897_v35 = vmul.f32 -1.442695, %v6712_v55  ;;  %v9958_v3 = vor.u32 %v10715_v52, %v9955_v18  ;;  %7104 = vmatpush.bf16.msra.mxu3 %v9982_v9  ;;  %7063 = vmatpush.bf16.msra.mxu0 %v9954_v26  ;;  %v10714_v26 = vld [vmem:[#allocation11 + $0x54] sm:$0xf0] }
 0xac4   :  { %v11277_v36 = vpop.eup %11276  ;;  %v9898_v27 = vmul.f32 -1.442695, %v6714_v6  ;;  %v9899_v0 = vmul.f32 -1.442695, %v6715_v22  ;;  %v6455_v6 = vunpack.c.h.bf16 %v14718_v58 }
 0xac5   :  { %v11279_v59 = vpop.eup %11278  ;;  %v14070_v28 = vadd.f32 1.0, %v11277_v36  ;;  %11280 = vpow2.f32 %v9897_v35  ;;  %7077 = vmatpush.bf16.msra.mxu1 %v9958_v3  ;;  %v10712_v3 = vld [vmem:[#allocation11 + $0x4c] sm:$0xf] }
 0xac6   :  { %v14072_v14 = vadd.f32 1.0, %v11279_v59  ;;  %11282 = vpow2.f32 %v9898_v27  ;;  %7091 = vmatpush.bf16.msra.mxu2 %v9962_v57 }
 0xac7   :  { %11284 = vrcp.f32 %v14070_v28  ;;  %v6751_v43 = vand.u32 2147483647, %v14070_v28  ;;  %v6753_v38 = vand.u32 2147483648, %v14070_v28  ;;  %vm6747_vm8 = vweird.f32 %v14070_v28 }
 0xac8   :  { %11286 = vrcp.f32 %v14072_v14  ;;  %v6693_v56 = vpop.f32.mrf.mxu2  ;;  %v6766_v2 = vand.u32 2147483647, %v14072_v14  ;;  %v6768_v35 = vand.u32 2147483648, %v14072_v14  ;;  %v6707_v42 = vpop.f32.mrf.mxu3  ;;  %vm6762_vm9 = vweird.f32 %v14072_v14 }
 0xac9   :  { %11288 = vpow2.f32 %v9899_v0  ;;  %v6716_v7 = vadd.f32 %v6693_v56, %v6454_v17  ;;  %vm14096_vm12 = vcmp.eq.f32.partialorder %v6751_v43, 8.507059e+37  ;;  %v6754_v49 = vor.u32 1.1754944e-38, %v6753_v38  ;;  %v9921_v43 = vld [vmem:[#allocation11 + $0x20] sm:$0xf] }
 0xaca   :  { %v6717_v24 = vadd.f32 %v6707_v42, %v6455_v6  ;;  %v6769_v41 = vor.u32 1.1754944e-38, %v6768_v35  ;;  %vm14108_vm14 = vcmp.eq.f32.partialorder %v6766_v2, 8.507059e+37  ;;  %v10707_v2 = vld [vmem:[#allocation11 + $0x24] sm:$0xf]  ;;  %v9966_v35 = vor.u32 %v10716_v12, %v9963_v13  ;;  %v9905_v56 = vld [vmem:[#allocation11] sm:$0xf] }
 0xacb   :  { %v11281_v29 = vpop.eup %11280  ;;  %v9900_v37 = vmul.f32 -1.442695, %v6716_v7  ;;  %v9913_v13 = vld [vmem:[#allocation11 + $0x8] sm:$0xf] }
 0xacc   :  { %v11283_v50 = vpop.eup %11282  ;;  %v14078_v20 = vadd.f32 1.0, %v11281_v29  ;;  %v10713_v29 = vld [vmem:[#allocation11 + $0x4c] sm:$0xf0]  ;;  %7105 = vmatpush.bf16.msra.mxu3 %v9966_v35 }
 0xacd   :  { %v11285_v44 = vpop.eup %11284  ;;  %v14080_v11 = vadd.f32 1.0, %v11283_v50  ;;  %11290 = vpow2.f32 %v9900_v37  ;;  %v10711_v37 = vld [vmem:[#allocation11 + $0x44] sm:$0xf]  ;;  %v9945_v50 = vld [vmem:[#allocation11 + $0x48] sm:$0xf]  ;;  %v9938_v42 = vor.u32 %v10713_v29, %v9937_v32 }
 0xace   :  { %v11287_v16 = vpop.eup %11286  ;;  %v6743_v48 = vmul.f32 %v11285_v44, %v14070_v28  ;;  %11292 = vrcp.f32 %v14078_v20  ;;  %vm6748_vm10 = vweird.f32 %v11285_v44  ;;  %v9942_v61 = vor.u32 %v10711_v37, %v9939_v60  ;;  %v10706_v32 = vld [vmem:[#allocation11 + $0x14] sm:$0xf0] }
 0xacf   :  { %v11289_v55 = vpop.eup %11288  ;;  %v6758_v25 = vmul.f32 %v11287_v16, %v14072_v14  ;;  %11294 = vrcp.f32 %v14080_v11  ;;  %vm6763_vm11 = vweird.f32 %v11287_v16  ;;  %vm6749_vm13 = vmor %vm6747_vm8, %vm6748_vm10  ;;  %v6796_v28 = vand.u32 2147483647, %v14080_v11  ;;  %7064 = vmatpush.bf16.msra.mxu0 %v9938_v42 }
 0xad0   :  { %v6744_v22 = vsub.f32 1.0, %v6743_v48  ;;  %v14090_v40 = vadd.f32 1.0, %v11289_v55  ;;  %11296 = vtanh.f32 %v6713_v47  ;;  %vm14116_vm15 = vmor %vm6762_vm9, %vm6763_vm11  ;;  %v6798_v30 = vand.u32 2147483648, %v14080_v11  ;;  %7078 = vmatpush.bf16.msra.mxu1 %v9942_v61 }
 0xad1   :  { %v6759_v31 = vsub.f32 1.0, %v6758_v25  ;;  %vm6792_vm0 = vweird.f32 %v14080_v11  ;;  %vm14140_vm1 = vcmp.eq.f32.partialorder %v6796_v28, 8.507059e+37  ;;  %v9947_v25 = vld [vmem:[#allocation11 + $0x58] sm:$0xf0]  ;;  %v9946_v51 = vor.u32 %v10714_v26, %v9945_v50  ;;  %v10763_v28 = vld [vmem:[#allocation11 + $0xe4] sm:$0xf] }
 0xad2   :  { %v6745_v36 = vmul.f32 %v11285_v44, %v6744_v22  ;;  %11298 = vrcp.f32 %v14090_v40  ;;  %v6813_v5 = vand.u32 2147483648, %v14090_v40  ;;  %v6811_v47 = vand.u32 2147483647, %v14090_v40  ;;  %v10709_v22 = vld [vmem:[#allocation11 + $0x2c] sm:$0xf0] }
 0xad3   :  { %v11291_v27 = vpop.eup %11290  ;;  %v6760_v0 = vmul.f32 %v11287_v16, %v6759_v31  ;;  %vm6807_vm4 = vweird.f32 %v14090_v40  ;;  %7092 = vmatpush.bf16.msra.mxu2 %v9946_v51  ;;  %vm6777_vm9 = vweird.f32 %v14078_v20 }
 0xad4   :  { %v14100_v59 = vpop.eup %11292  ;;  %v6746_v1 = vadd.f32 %v11285_v44, %v6745_v36  ;;  %v14102_v33 = vadd.f32 1.0, %v11291_v27  ;;  %v6814_v48 = vor.u32 1.1754944e-38, %v6813_v5  ;;  %v9923_v36 = vld [vmem:[#allocation11 + $0x30] sm:$0xf0]  ;;  %v9929_v27 = vld [vmem:[#allocation11 + $0x28] sm:$0xf] }
 0xad5   :  { %v6773_v58 = vmul.f32 %v14100_v59, %v14078_v20  ;;  %v6761_v17 = vadd.f32 %v11287_v16, %v6760_v0  ;;  %v14112_v21 = vpop.eup %11294  ;;  %v10710_v0 = vld [vmem:[#allocation11 + $0x34] sm:$0xf0]  ;;  %vm6812_vm7 = vcmp.eq.f32.partialorder %v6811_v47, 8.507059e+37  ;;  %vm6778_vm8 = vweird.f32 %v14100_v59 }
 0xad6   :  { %v6750_v8 = vsel %vm6749_vm13, %v11285_v44, %v6746_v1  ;;  %11300 = vrcp.f32 %v14102_v33  ;;  %v11297_v7 = vpop.eup %11296  ;;  %v6788_v4 = vmul.f32 %v14112_v21, %v14080_v11  ;;  %vm6793_vm2 = vweird.f32 %v14112_v21  ;;  %vm14185_vm10 = vmor %vm6777_vm9, %vm6778_vm8 }
 0xad7   :  { %v6774_v23 = vsub.f32 1.0, %v6773_v58  ;;  %v6755_v45 = vsel %vm14096_vm12, %v6754_v49, %v6750_v8  ;;  %v6765_v14 = vsel %vm14116_vm15, %v11287_v16, %v6761_v17  ;;  %11302 = vtanh.f32 %v6717_v24  ;;  %v10708_v24 = vld [vmem:[#allocation11 + $0x2c] sm:$0xf]  ;;  %v10705_v8 = vld [vmem:[#allocation11 + $0xc] sm:$0xf0]  ;;  %vm14160_vm5 = vmor %vm6792_vm0, %vm6793_vm2 }
 0xad8   :  { %v14129_v63 = vpop.eup %11298  ;;  %v6770_v9 = vsel %vm14108_vm14, %v6769_v41, %v6765_v14  ;;  %v6836_v54 = vmul.f32 %v11297_v7, %v6755_v45  ;;  %v6789_v18 = vsub.f32 1.0, %v6788_v4  ;;  %v6799_v1 = vor.u32 1.1754944e-38, %v6798_v30  ;;  %v10703_v14 = vld [vmem:[#allocation11 + $0x4] sm:$0xf]  ;;  %v9907_v4 = vld [vmem:[#allocation11 + $0x10] sm:$0xf0] }
 0xad9   :  { %v6834_v52 = vmul.f32 %v6770_v9, %v14004_v46  ;;  %v6803_v44 = vmul.f32 %v14129_v63, %v14090_v40  ;;  %v6775_v16 = vmul.f32 %v14100_v59, %v6774_v23  ;;  %vm6808_vm3 = vweird.f32 %v14129_v63 }
 0xada   :  { %v6790_v6 = vmul.f32 %v14112_v21, %v6789_v18  ;;  %v9950_v58 = vor.u32 %v10712_v3, %v9947_v25  ;;  %v9922_v17 = vor.u32 %v10709_v22, %v9921_v43  ;;  %v9926_v23 = vor.u32 %v10707_v2, %v9923_v36  ;;  %vm6809_vm6 = vmor %vm6807_vm4, %vm6808_vm3  ;;  %v10704_v18 = vld [vmem:[#allocation11 + $0xc] sm:$0xf] }
 0xadb   :  { %v14144_v38 = vadd.f32 %v6836_v54, %v6834_v52  ;;  %v6804_v46 = vsub.f32 1.0, %v6803_v44  ;;  %v9930_v45 = vor.u32 %v10710_v0, %v9929_v27  ;;  %v6776_v12 = vadd.f32 %v14100_v59, %v6775_v16 }
 0xadc   :  { %v14148_v31 = vpop.eup %11300  ;;  %v6791_v41 = vadd.f32 %v14112_v21, %v6790_v6  ;;  %v9934_v60 = vor.u32 %v10708_v24, %v9931_v39  ;;  %v9906_v9 = vor.u32 %v10705_v8, %v9905_v56  ;;  %7106 = vmatpush.bf16.msra.mxu3 %v9950_v58  ;;  %7065 = vmatpush.bf16.msra.mxu0 %v9922_v17  ;;  %v6781_v44 = vand.u32 2147483647, %v14078_v20  ;;  %v14733_v24 = vld [vmem:[#allocation25_spill] sm:$0xff]  ;;  %v10153_v8 = vld [vmem:[#allocation11 + $0xe0] sm:$0xf] }
 0xadd   :  { %v6805_v34 = vmul.f32 %v14129_v63, %v6804_v46  ;;  %v6818_v49 = vmul.f32 %v14148_v31, %v14102_v33  ;;  %v11303_v57 = vpop.eup %11302  ;;  %11304 = vtanh.f32 %v14144_v38  ;;  %7079 = vmatpush.bf16.msra.mxu1 %v9926_v23  ;;  %7093 = vmatpush.bf16.msra.mxu2 %v9930_v45  ;;  %v9910_v26 = vor.u32 %v10703_v14, %v9907_v4  ;;  %v10155_v45 = vld [vmem:[#allocation11 + $0xf0] sm:$0xf0]  ;;  %v10161_v14 = vld [vmem:[#allocation11 + $0xe8] sm:$0xf]  ;;  %v10766_v4 = vld [vmem:[#allocation11 + $0xf4] sm:$0xf0] }
 0xade   :  { %v6795_v11 = vsel %vm14160_vm5, %v14112_v21, %v6791_v41  ;;  %v6783_v21 = vand.u32 2147483648, %v14078_v20  ;;  %v9914_v52 = vor.u32 %v10706_v32, %v9913_v13  ;;  %vm6823_vm11 = vweird.f32 %v14148_v31  ;;  %v10764_v13 = vld [vmem:[#allocation11 + $0xec] sm:$0xf]  ;;  %v10163_v32 = vld [vmem:[#allocation11 + $0xf8] sm:$0xf0] }
 0xadf   :  { %v6819_v5 = vsub.f32 1.0, %v6818_v49  ;;  %v6806_v7 = vadd.f32 %v14129_v63, %v6805_v34  ;;  %v6800_v29 = vsel %vm14140_vm1, %v6799_v1, %v6795_v11  ;;  %v6828_v25 = vand.u32 2147483648, %v14102_v33  ;;  %v14732_v49 = vld [vmem:[#allocation27_spill] sm:$0xff] }
 0xae0   :  { %v6837_v30 = vmul.f32 %v11303_v57, %v6800_v29  ;;  %7107 = vmatpush.bf16.msra.mxu3 %v9934_v60  ;;  %7066 = vmatpush.bf16.msra.mxu0 %v9906_v9  ;;  %v6784_v55 = vor.u32 1.1754944e-38, %v6783_v21  ;;  %vm6782_vm12 = vcmp.eq.f32.partialorder %v6781_v44, 8.507059e+37  ;;  %vm6822_vm13 = vweird.f32 %v14102_v33  ;;  %v14734_v29 = vld [vmem:[#allocation23_spill] sm:$0xff]  ;;  %v10137_v9 = vld [vmem:[#allocation11 + $0xc0] sm:$0xf] }
 0xae1   :  { %v6810_v37 = vsel %vm6809_vm6, %v14129_v63, %v6806_v7  ;;  %v6820_v54 = vmul.f32 %v14148_v31, %v6819_v5  ;;  %v9915_v63 = vld [vmem:[#allocation11 + $0x18] sm:$0xf0]  ;;  %7080 = vmatpush.bf16.msra.mxu1 %v9910_v26  ;;  %7094 = vmatpush.bf16.msra.mxu2 %v9914_v52  ;;  %v6826_v43 = vand.u32 2147483647, %v14102_v33  ;;  %vm6824_vm14 = vmor %vm6822_vm13, %vm6823_vm11  ;;  %v6829_v22 = vor.u32 1.1754944e-38, %v6828_v25 }
 0xae2   :  { %v6815_v40 = vsel %vm6812_vm7, %v6814_v48, %v6810_v37  ;;  %v9918_v20 = vor.u32 %v10704_v18, %v9915_v63  ;;  %v4250_v1 = vadd.f32 %v14732_v49, %v12916_v15  ;;  %v6853_v57 = vunpack.c.l.bf16 %v14733_v24  ;;  %v10765_v5 = vld [vmem:[#allocation11 + $0xec] sm:$0xf0]  ;;  %v10139_v18 = vld [vmem:[#allocation11 + $0xd0] sm:$0xf0]  ;;  %v10145_v63 = vld [vmem:[#allocation11 + $0xc8] sm:$0xf] }
 0xae3   :  { %v6835_v50 = vmul.f32 %v6815_v40, %v14053_v19  ;;  %v11305_v16 = vpop.eup %11304  ;;  %v6780_v19 = vsel %vm14185_vm10, %v14100_v59, %v6776_v12  ;;  %v6821_v48 = vadd.f32 %v14148_v31, %v6820_v54  ;;  %vm6827_vm15 = vcmp.eq.f32.partialorder %v6826_v43, 8.507059e+37  ;;  %v10761_v54 = vld [vmem:[#allocation11 + $0xcc] sm:$0xf0]  ;;  %v10759_v40 = vld [vmem:[#allocation11 + $0xc4] sm:$0xf] }
 0xae4   :  { %v6785_v59 = vsel %vm6782_vm12, %v6784_v55, %v6780_v19  ;;  %7108 = vmatpush.bf16.msra.mxu3 %v9918_v20  ;;  %v6854_v41 = vunpack.c.h.bf16 %v14733_v24  ;;  %v10154_v23 = vor.u32 %v10765_v5, %v10153_v8  ;;  %v10158_v11 = vor.u32 %v10763_v28, %v10155_v45  ;;  %v10762_v44 = vld [vmem:[#allocation11 + $0xd4] sm:$0xf0]  ;;  %v10760_v55 = vld [vmem:[#allocation11 + $0xcc] sm:$0xf]  ;;  %v10147_v25 = vld [vmem:[#allocation11 + $0xd8] sm:$0xf0] }
 0xae5   :  { %v14189_v3 = vadd.f32 %v6837_v30, %v6835_v50  ;;  %v6825_v46 = vsel %vm6824_vm14, %v14148_v31, %v6821_v48  ;;  %v6842_v6 = vmul.f32 %v11305_v16, %v6785_v59  ;;  %v14731_v31 = vld [vmem:[#allocation26_spill] sm:$0xff]  ;;  %v10162_v15 = vor.u32 %v10766_v4, %v10161_v14  ;;  %v14735_v30 = vld [vmem:[#allocation28_spill] sm:$0xff]  ;;  %v14736_v50 = vld [vmem:[#allocation29_spill] sm:$0xff] }
 0xae6   :  { %v6830_v35 = vsel %vm6827_vm15, %v6829_v22, %v6825_v46  ;;  %v4201_v34 = vadd.f32 %v14731_v31, %v12912_v53  ;;  %7464 = vmatpush.bf16.msrb.mxu0 %v10154_v23  ;;  %v6855_v37 = vunpack.c.l.bf16 %v14734_v29  ;;  %7478 = vmatpush.bf16.msrb.mxu1 %v10158_v11  ;;  %v10166_v60 = vor.u32 %v10764_v13, %v10163_v32  ;;  %v10121_v22 = vld [vmem:[#allocation11 + $0xa0] sm:$0xf]  ;;  %v10758_v49 = vld [vmem:[#allocation11 + $0xb4] sm:$0xf0]  ;;  %v10753_v28 = vld [vmem:[#allocation11 + $0x8c] sm:$0xf0] }
 0xae7   :  { %11306 = vtanh.f32 %v14189_v3  ;;  %v6844_v61 = vpack.c.bf16 %v6842_v6, %v6842_v6  ;;  %7492 = vmatpush.bf16.msrb.mxu2 %v10162_v15  ;;  %v4299_v21 = vadd.f32 %v14735_v30, %v12925_v62  ;;  %v4348_v26 = vadd.f32 %v14736_v50, %v12935_v10  ;;  %v10105_v5 = vld [vmem:[#allocation11 + $0x80] sm:$0xf]  ;;  %v10751_v23 = vld [vmem:[#allocation11 + $0x84] sm:$0xf]  ;;  %v10107_v45 = vld [vmem:[#allocation11 + $0x90] sm:$0xf0] }
 0xae8   :  { %v4381_v7 = vpack.c.bf16 %v4250_v1, %v4201_v34  ;;  %v10138_v52 = vor.u32 %v10761_v54, %v10137_v9  ;;  %7506 = vmatpush.bf16.msrb.mxu3 %v10166_v60  ;;  %v10142_v48 = vor.u32 %v10759_v40, %v10139_v18  ;;  %v10146_v20 = vor.u32 %v10762_v44, %v10145_v63  ;;  %v10113_v4 = vld [vmem:[#allocation11 + $0x88] sm:$0xf]  ;;  %v10752_v15 = vld [vmem:[#allocation11 + $0x8c] sm:$0xf]  ;;  %v10115_v13 = vld [vmem:[#allocation11 + $0x98] sm:$0xf0] }
 0xae9   :  { %v6895_v27 = vunpack.c.l.b16 %v6844_v61  ;;  %v10150_v62 = vor.u32 %v10760_v55, %v10147_v25  ;;  %v10106_v11 = vor.u32 %v10753_v28, %v10105_v5  ;;  %v10110_v60 = vor.u32 %v10751_v23, %v10107_v45  ;;  %v10089_v40 = vld [vmem:[#allocation11 + $0x60] sm:$0xf]  ;;  %v10749_v30 = vld [vmem:[#allocation11 + $0x6c] sm:$0xf0]  ;;  %v10091_v18 = vld [vmem:[#allocation11 + $0x70] sm:$0xf0] }
 0xaea   :  { %v6857_v16 = vunpack.c.l.bf16 %v4381_v7  ;;  %v6858_v19 = vunpack.c.h.bf16 %v4381_v7  ;;  %7465 = vmatpush.bf16.msrb.mxu0 %v10138_v52  ;;  %7479 = vmatpush.bf16.msrb.mxu1 %v10142_v48  ;;  %v10118_v54 = vor.u32 %v10752_v15, %v10115_v13  ;;  %v10747_v52 = vld [vmem:[#allocation11 + $0x64] sm:$0xf]  ;;  %v10075_v15 = vld [vmem:[#allocation11 + $0x50] sm:$0xf0] }
 0xaeb   :  { %7493 = vmatpush.bf16.msrb.mxu2 %v10146_v20 }
 0xaec   :  { %7507 = vmatpush.bf16.msrb.mxu3 %v10150_v62 }
 0xaed   :  { %v11307_v2 = vpop.eup %11306 }
 0xaee   :  { %v6843_v42 = vmul.f32 %v11307_v2, %v6830_v35  ;;  %v10757_v2 = vld [vmem:[#allocation11 + $0xac] sm:$0xf0]  ;;  %v10755_v35 = vld [vmem:[#allocation11 + $0xa4] sm:$0xf] }
 0xaf0   :  { %v6845_v51 = vpack.c.bf16 %v6843_v42, %v6843_v42  ;;  %v10835_v36 = vpack.c.bf16 %v6843_v42, %v6842_v6  ;;  %v14215_v42 = vpack.c.bf16 %v4348_v26, %v4299_v21  ;;  %v10090_v26 = vor.u32 %v10749_v30, %v10089_v40 }
 0xaf2   :  { %10851 = vst [vmem:[%s14430_s9 + $0x28] sm:$0xff] %v10835_v36   ;;  %v6896_v33 = vunpack.c.l.b16 %v6845_v51  ;;  %v10122_v51 = vor.u32 %v10757_v2, %v10121_v22  ;;  %v10123_v36 = vld [vmem:[#allocation11 + $0xb0] sm:$0xf0]  ;;  %v6859_v8 = vunpack.c.l.bf16 %v14215_v42  ;;  %v10097_v2 = vld [vmem:[#allocation11 + $0x68] sm:$0xf] }
 0xaf3   :  { %v10126_v34 = vor.u32 %v10755_v35, %v10123_v36  ;;  %v10750_v35 = vld [vmem:[#allocation11 + $0x74] sm:$0xf0] }
 0xaf4   :  { %v6897_v0 = vpack.c.b16 %v6896_v33, %v6895_v27  ;;  %v10129_v27 = vld [vmem:[#allocation11 + $0xa8] sm:$0xf]  ;;  %7466 = vmatpush.bf16.msrb.mxu0 %v10122_v51 }
 0xaf5   :  { %7480 = vmatpush.bf16.msrb.mxu1 %v10126_v34 }
 0xaf6   :  { %7067 = vmatmul.bf16.vlgmr.msra.gmra.mxu0 %v6897_v0  ;;  %7081 = vmatmul.bf16.vlgmr.msra.gmra.mxu1 %v6897_v0 }
 0xaf7   :  { %7095 = vmatmul.bf16.vlgmr.msra.gmra.mxu2 %v6897_v0  ;;  %7109 = vmatmul.bf16.vlgmr.msra.gmra.mxu3 %v6897_v0 }
 0xaf8   :  { %7467 = vmatpush.bf16.msrb.mxu0 %v10106_v11  ;;  %v10743_v11 = vld [vmem:[#allocation11 + $0x44] sm:$0xf] }
 0xaf9   :  { %7481 = vmatpush.bf16.msrb.mxu1 %v10110_v60 }
 0xafc   :  { %7468 = vmatpush.bf16.msrb.mxu0 %v10090_v26 }
 0xb73   :  { %v7068_v58 = vpop.f32.mrf.mxu0  ;;  %v7082_v17 = vpop.f32.mrf.mxu1 }
 0xb74   :  { %v7115_v39 = vadd.f32 %v7068_v58, %v6853_v57  ;;  %v7116_v56 = vadd.f32 %v7082_v17, %v6854_v41  ;;  %v10130_v57 = vor.u32 %v10758_v49, %v10129_v27  ;;  %v10756_v41 = vld [vmem:[#allocation11 + $0xac] sm:$0xf]  ;;  %v10131_v58 = vld [vmem:[#allocation11 + $0xb8] sm:$0xf0]  ;;  %v10098_v49 = vor.u32 %v10750_v35, %v10097_v2  ;;  %v10742_v2 = vld [vmem:[#allocation11 + $0x34] sm:$0xf0] }
 0xb76   :  { %v10031_v53 = vmul.f32 -1.442695, %v7115_v39  ;;  %v10032_v12 = vmul.f32 -1.442695, %v7116_v56  ;;  %v10134_v39 = vor.u32 %v10756_v41, %v10131_v58  ;;  %7494 = vmatpush.bf16.msrb.mxu2 %v10130_v57 }
 0xb78   :  { %11308 = vpow2.f32 %v10031_v53  ;;  %7508 = vmatpush.bf16.msrb.mxu3 %v10134_v39  ;;  %v10754_v53 = vld [vmem:[#allocation11 + $0x94] sm:$0xf0] }
 0xb79   :  { %11310 = vpow2.f32 %v10032_v12  ;;  %v6856_v12 = vunpack.c.h.bf16 %v14734_v29  ;;  %v10114_v9 = vor.u32 %v10754_v53, %v10113_v4  ;;  %v10099_v4 = vld [vmem:[#allocation11 + $0x78] sm:$0xf0]  ;;  %v10073_v53 = vld [vmem:[#allocation11 + $0x40] sm:$0xf] }
 0xb7a   :  { %v7096_v47 = vpop.f32.mrf.mxu2  ;;  %v7110_v56 = vpop.f32.mrf.mxu3 }
 0xb7b   :  { %v7117_v43 = vadd.f32 %v7096_v47, %v6855_v37  ;;  %v7070_v59 = vpop.f32.mrf.mxu0  ;;  %v7084_v46 = vpop.f32.mrf.mxu1  ;;  %v7118_v44 = vadd.f32 %v7110_v56, %v6856_v12  ;;  %7495 = vmatpush.bf16.msrb.mxu2 %v10114_v9  ;;  %v10094_v47 = vor.u32 %v10747_v52, %v10091_v18  ;;  %v10745_v12 = vld [vmem:[#allocation11 + $0x4c] sm:$0xf0]  ;;  %v10081_v9 = vld [vmem:[#allocation11 + $0x48] sm:$0xf]  ;;  %v10744_v52 = vld [vmem:[#allocation11 + $0x4c] sm:$0xf] }
 0xb7c   :  { %v7119_v6 = vadd.f32 %v7070_v59, %v6857_v16  ;;  %v7120_v10 = vadd.f32 %v7084_v46, %v6858_v19  ;;  %7509 = vmatpush.bf16.msrb.mxu3 %v10118_v54  ;;  %v10746_v54 = vld [vmem:[#allocation11 + $0x54] sm:$0xf0] }
 0xb7d   :  { %v10033_v61 = vmul.f32 -1.442695, %v7117_v43  ;;  %v6860_v43 = vunpack.c.h.bf16 %v14215_v42  ;;  %7482 = vmatpush.bf16.msrb.mxu1 %v10094_v47  ;;  %v10083_v47 = vld [vmem:[#allocation11 + $0x58] sm:$0xf0] }
 0xb7e   :  { %v11309_v33 = vpop.eup %11308  ;;  %v10034_v0 = vmul.f32 -1.442695, %v7119_v6  ;;  %v10035_v31 = vmul.f32 -1.442695, %v7120_v10 }
 0xb7f   :  { %v11311_v1 = vpop.eup %11310  ;;  %v14217_v24 = vadd.f32 1.0, %v11309_v33  ;;  %11312 = vpow2.f32 %v10033_v61  ;;  %7496 = vmatpush.bf16.msrb.mxu2 %v10098_v49  ;;  %v10067_v49 = vld [vmem:[#allocation11 + $0x38] sm:$0xf0] }
 0xb80   :  { %v14219_v17 = vadd.f32 1.0, %v11311_v1  ;;  %11314 = vpow2.f32 %v10034_v0 }
 0xb81   :  { %11316 = vrcp.f32 %v14217_v24  ;;  %v7156_v55 = vand.u32 2147483647, %v14217_v24  ;;  %v7158_v25 = vand.u32 2147483648, %v14217_v24  ;;  %vm7152_vm0 = vweird.f32 %v14217_v24 }
 0xb82   :  { %11318 = vrcp.f32 %v14219_v17  ;;  %v7098_v7 = vpop.f32.mrf.mxu2  ;;  %v7171_v46 = vand.u32 2147483647, %v14219_v17  ;;  %v7173_v10 = vand.u32 2147483648, %v14219_v17  ;;  %v7112_v22 = vpop.f32.mrf.mxu3  ;;  %vm7167_vm1 = vweird.f32 %v14219_v17 }
 0xb83   :  { %11320 = vpow2.f32 %v10035_v31  ;;  %v7121_v14 = vadd.f32 %v7098_v7, %v6859_v8  ;;  %vm14243_vm4 = vcmp.eq.f32.partialorder %v7156_v55, 8.507059e+37  ;;  %v7159_v27 = vor.u32 1.1754944e-38, %v7158_v25  ;;  %v10739_v55 = vld [vmem:[#allocation11 + $0x24] sm:$0xf] }
 0xb84   :  { %v7122_v34 = vadd.f32 %v7112_v22, %v6860_v43  ;;  %v7174_v1 = vor.u32 1.1754944e-38, %v7173_v10  ;;  %vm14255_vm6 = vcmp.eq.f32.partialorder %v7171_v46, 8.507059e+37  ;;  %v10078_v46 = vor.u32 %v10743_v11, %v10075_v15  ;;  %v10059_v10 = vld [vmem:[#allocation11 + $0x30] sm:$0xf0]  ;;  %v10065_v22 = vld [vmem:[#allocation11 + $0x28] sm:$0xf] }
 0xb85   :  { %v11313_v32 = vpop.eup %11312  ;;  %v10036_v37 = vmul.f32 -1.442695, %v7121_v14  ;;  %v10748_v14 = vld [vmem:[#allocation11 + $0x6c] sm:$0xf] }
 0xb86   :  { %v11315_v21 = vpop.eup %11314  ;;  %v14225_v50 = vadd.f32 1.0, %v11313_v32  ;;  %v10102_v43 = vor.u32 %v10748_v14, %v10099_v4  ;;  %7483 = vmatpush.bf16.msrb.mxu1 %v10078_v46 }
 0xb87   :  { %v11317_v63 = vpop.eup %11316  ;;  %v14227_v29 = vadd.f32 1.0, %v11315_v21  ;;  %11322 = vpow2.f32 %v10036_v37 }
 0xb88   :  { %v11319_v16 = vpop.eup %11318  ;;  %v7148_v19 = vmul.f32 %v11317_v63, %v14217_v24  ;;  %11324 = vrcp.f32 %v14225_v50  ;;  %vm7153_vm2 = vweird.f32 %v11317_v63  ;;  %7510 = vmatpush.bf16.msrb.mxu3 %v10102_v43 }
 0xb89   :  { %v11321_v48 = vpop.eup %11320  ;;  %v7163_v20 = vmul.f32 %v11319_v16, %v14219_v17  ;;  %11326 = vrcp.f32 %v14227_v29  ;;  %vm7168_vm3 = vweird.f32 %v11319_v16  ;;  %vm7154_vm5 = vmor %vm7152_vm0, %vm7153_vm2  ;;  %v7201_v24 = vand.u32 2147483647, %v14227_v29 }
 0xb8a   :  { %v7149_v59 = vsub.f32 1.0, %v7148_v19  ;;  %v14237_v62 = vadd.f32 1.0, %v11321_v48  ;;  %11328 = vtanh.f32 %v7118_v44  ;;  %vm14263_vm7 = vmor %vm7167_vm1, %vm7168_vm3  ;;  %v7203_v60 = vand.u32 2147483648, %v14227_v29 }
 0xb8b   :  { %v7164_v6 = vsub.f32 1.0, %v7163_v20  ;;  %vm7197_vm8 = vweird.f32 %v14227_v29  ;;  %vm14287_vm9 = vcmp.eq.f32.partialorder %v7201_v24, 8.507059e+37  ;;  %v10741_v20 = vld [vmem:[#allocation11 + $0x2c] sm:$0xf0]  ;;  %v10735_v24 = vld [vmem:[#allocation11 + $0x4] sm:$0xf]  ;;  %vm7182_vm1 = vweird.f32 %v14225_v50 }
 0xb8c   :  { %v7150_v42 = vmul.f32 %v11317_v63, %v7149_v59  ;;  %11330 = vrcp.f32 %v14237_v62  ;;  %v7218_v5 = vand.u32 2147483648, %v14237_v62  ;;  %v7216_v26 = vand.u32 2147483647, %v14237_v62 }
 0xb8d   :  { %v11323_v61 = vpop.eup %11322  ;;  %v7165_v51 = vmul.f32 %v11319_v16, %v7164_v6  ;;  %v10074_v59 = vor.u32 %v10745_v12, %v10073_v53  ;;  %v10082_v6 = vor.u32 %v10746_v54, %v10081_v9  ;;  %vm7212_vm12 = vweird.f32 %v14237_v62 }
 0xb8e   :  { %v14247_v33 = vpop.eup %11324  ;;  %v7151_v0 = vadd.f32 %v11317_v63, %v7150_v42  ;;  %v14249_v31 = vadd.f32 1.0, %v11323_v61  ;;  %v7204_v61 = vor.u32 1.1754944e-38, %v7203_v60  ;;  %vm7217_vm15 = vcmp.eq.f32.partialorder %v7216_v26, 8.507059e+37  ;;  %v10736_v60 = vld [vmem:[#allocation11 + $0xc] sm:$0xf] }
 0xb8f   :  { %v7178_v57 = vmul.f32 %v14247_v33, %v14225_v50  ;;  %v7166_v41 = vadd.f32 %v11319_v16, %v7165_v51  ;;  %v14259_v39 = vpop.eup %11326  ;;  %v10740_v51 = vld [vmem:[#allocation11 + $0x2c] sm:$0xf]  ;;  %7469 = vmatpush.bf16.msrb.mxu0 %v10074_v59  ;;  %7497 = vmatpush.bf16.msrb.mxu2 %v10082_v6  ;;  %vm7183_vm0 = vweird.f32 %v14247_v33  ;;  %v7186_v9 = vand.u32 2147483647, %v14225_v50 }
 0xb90   :  { %v7155_v8 = vsel %vm7154_vm5, %v11317_v63, %v7151_v0  ;;  %11332 = vrcp.f32 %v14249_v31  ;;  %v11329_v28 = vpop.eup %11328  ;;  %v7193_v45 = vmul.f32 %v14259_v39, %v14227_v29  ;;  %v7219_v63 = vor.u32 1.1754944e-38, %v7218_v5  ;;  %vm14332_vm2 = vmor %vm7182_vm1, %vm7183_vm0 }
 0xb91   :  { %v7179_v7 = vsub.f32 1.0, %v7178_v57  ;;  %v7160_v23 = vsel %vm14243_vm4, %v7159_v27, %v7155_v8  ;;  %v7170_v17 = vsel %vm14263_vm7, %v11319_v16, %v7166_v41  ;;  %11334 = vtanh.f32 %v7122_v34  ;;  %v10057_v16 = vld [vmem:[#allocation11 + $0x20] sm:$0xf]  ;;  %v10737_v57 = vld [vmem:[#allocation11 + $0xc] sm:$0xf0] }
 0xb92   :  { %v14276_v13 = vpop.eup %11330  ;;  %v7175_v32 = vsel %vm14255_vm6, %v7174_v1, %v7170_v17  ;;  %v7241_v37 = vmul.f32 %v11329_v28, %v7160_v23  ;;  %v7194_v30 = vsub.f32 1.0, %v7193_v45  ;;  %vm7198_vm10 = vweird.f32 %v14259_v39  ;;  %v10041_v1 = vld [vmem:[#allocation11] sm:$0xf]  ;;  %v10043_v28 = vld [vmem:[#allocation11 + $0x10] sm:$0xf0] }
 0xb93   :  { %v7239_v40 = vmul.f32 %v7175_v32, %v14144_v38  ;;  %v7208_v21 = vmul.f32 %v14276_v13, %v14237_v62  ;;  %v7180_v18 = vmul.f32 %v14247_v33, %v7179_v7  ;;  %vm7213_vm11 = vweird.f32 %v14276_v13  ;;  %vm14307_vm13 = vmor %vm7197_vm8, %vm7198_vm10  ;;  %v10049_v23 = vld [vmem:[#allocation11 + $0x8] sm:$0xf]  ;;  %v10738_v17 = vld [vmem:[#allocation11 + $0x14] sm:$0xf0] }
 0xb94   :  { %v7195_v48 = vmul.f32 %v14259_v39, %v7194_v30  ;;  %v10086_v0 = vor.u32 %v10744_v52, %v10083_v47  ;;  %v10058_v34 = vor.u32 %v10741_v20, %v10057_v16  ;;  %v10062_v8 = vor.u32 %v10739_v55, %v10059_v10  ;;  %vm7214_vm14 = vmor %vm7212_vm12, %vm7213_vm11 }
 0xb95   :  { %v14291_v19 = vadd.f32 %v7241_v37, %v7239_v40  ;;  %v7209_v38 = vsub.f32 1.0, %v7208_v21  ;;  %v10066_v5 = vor.u32 %v10742_v2, %v10065_v22  ;;  %v7181_v7 = vadd.f32 %v14247_v33, %v7180_v18 }
 0xb96   :  { %v14295_v25 = vpop.eup %11332  ;;  %v7196_v27 = vadd.f32 %v14259_v39, %v7195_v48  ;;  %v10070_v4 = vor.u32 %v10740_v51, %v10067_v49  ;;  %v10042_v53 = vor.u32 %v10737_v57, %v10041_v1  ;;  %7511 = vmatpush.bf16.msrb.mxu3 %v10086_v0  ;;  %7470 = vmatpush.bf16.msrb.mxu0 %v10058_v34  ;;  %v7233_v52 = vand.u32 2147483648, %v14249_v31  ;;  %v14751_v34 = vld [vmem:[#allocation33_spill] sm:$0xff] }
 0xb97   :  { %v7210_v35 = vmul.f32 %v14276_v13, %v7209_v38  ;;  %v7223_v42 = vmul.f32 %v14295_v25, %v14249_v31  ;;  %v11335_v36 = vpop.eup %11334  ;;  %11336 = vtanh.f32 %v14291_v19  ;;  %7484 = vmatpush.bf16.msrb.mxu1 %v10062_v8  ;;  %7498 = vmatpush.bf16.msrb.mxu2 %v10066_v5  ;;  %v10046_v32 = vor.u32 %v10735_v24, %v10043_v28 }
 0xb98   :  { %v7200_v29 = vsel %vm14307_vm13, %v14259_v39, %v7196_v27  ;;  %v7188_v39 = vand.u32 2147483648, %v14225_v50  ;;  %v10050_v37 = vor.u32 %v10738_v17, %v10049_v23  ;;  %vm7228_vm3 = vweird.f32 %v14295_v25 }
 0xb99   :  { %v7224_v41 = vsub.f32 1.0, %v7223_v42  ;;  %v7211_v56 = vadd.f32 %v14276_v13, %v7210_v35  ;;  %v7205_v45 = vsel %vm14287_vm9, %v7204_v61, %v7200_v29  ;;  %vm7187_vm4 = vcmp.eq.f32.partialorder %v7186_v9, 8.507059e+37 }
 0xb9a   :  { %v7242_v11 = vmul.f32 %v11335_v36, %v7205_v45  ;;  %7512 = vmatpush.bf16.msrb.mxu3 %v10070_v4  ;;  %7471 = vmatpush.bf16.msrb.mxu0 %v10042_v53  ;;  %v7189_v26 = vor.u32 1.1754944e-38, %v7188_v39  ;;  %vm7227_vm5 = vweird.f32 %v14249_v31  ;;  %v7231_v18 = vand.u32 2147483647, %v14249_v31  ;;  %v14750_v36 = vld [vmem:[#allocation31_spill] sm:$0xff] }
 0xb9b   :  { %v7215_v14 = vsel %vm7214_vm14, %v14276_v13, %v7211_v56  ;;  %v7225_v12 = vmul.f32 %v14295_v25, %v7224_v41  ;;  %v10051_v13 = vld [vmem:[#allocation11 + $0x18] sm:$0xf0]  ;;  %7485 = vmatpush.bf16.msrb.mxu1 %v10046_v32  ;;  %7499 = vmatpush.bf16.msrb.mxu2 %v10050_v37  ;;  %vm7229_vm6 = vmor %vm7227_vm5, %vm7228_vm3  ;;  %v7234_v47 = vor.u32 1.1754944e-38, %v7233_v52  ;;  %v7260_v27 = vunpack.c.l.bf16 %v14750_v36 }
 0xb9c   :  { %v7220_v62 = vsel %vm7217_vm15, %v7219_v63, %v7215_v14  ;;  %v10054_v50 = vor.u32 %v10736_v60, %v10051_v13  ;;  %vm7232_vm7 = vcmp.eq.f32.partialorder %v7231_v18, 8.507059e+37  ;;  %v7262_v49 = vunpack.c.l.bf16 %v14751_v34  ;;  %v14752_v14 = vld [vmem:[#allocation32_spill] sm:$0xff] }
 0xb9d   :  { %v7240_v15 = vmul.f32 %v7220_v62, %v14189_v3  ;;  %v11337_v30 = vpop.eup %11336  ;;  %v7185_v3 = vsel %vm14332_vm2, %v14247_v33, %v7181_v7  ;;  %v7226_v21 = vadd.f32 %v14295_v25, %v7225_v12  ;;  %v7263_v1 = vunpack.c.h.bf16 %v14751_v34 }
 0xb9e   :  { %v7190_v33 = vsel %vm7187_vm4, %v7189_v26, %v7185_v3  ;;  %7513 = vmatpush.bf16.msrb.mxu3 %v10054_v50  ;;  %v7264_v4 = vunpack.c.l.bf16 %v14752_v14  ;;  %v7261_v12 = vunpack.c.h.bf16 %v14750_v36  ;;  %v7265_v26 = vunpack.c.h.bf16 %v14752_v14 }
 0xb9f   :  { %v14336_v40 = vadd.f32 %v7242_v11, %v7240_v15  ;;  %v7230_v63 = vsel %vm7229_vm6, %v14295_v25, %v7226_v21  ;;  %v7247_v44 = vmul.f32 %v11337_v30, %v7190_v33  ;;  %v14749_v25 = vld [vmem:[#allocation30_spill] sm:$0xff] }
 0xba0   :  { %v7235_v38 = vsel %vm7232_vm7, %v7234_v47, %v7230_v63  ;;  %v7258_v6 = vunpack.c.l.bf16 %v14749_v25  ;;  %v7259_v10 = vunpack.c.h.bf16 %v14749_v25 }
 0xba1   :  { %11338 = vtanh.f32 %v14336_v40  ;;  %v7249_v20 = vpack.c.bf16 %v7247_v44, %v7247_v44 }
 0xba3   :  { %v7300_v59 = vunpack.c.l.b16 %v7249_v20 }
 0xba7   :  { %v11339_v16 = vpop.eup %11338 }
 0xba8   :  { %v7248_v48 = vmul.f32 %v11339_v16, %v7235_v38 }
 0xbaa   :  { %v7250_v55 = vpack.c.bf16 %v7248_v48, %v7248_v48  ;;  %v10840_v43 = vpack.c.bf16 %v7248_v48, %v7247_v44 }
 0xbac   :  { %10852 = vst [vmem:[%s14430_s9 + $0x30] sm:$0xff] %v10840_v43   ;;  %v7301_v31 = vunpack.c.l.b16 %v7250_v55 }
 0xbae   :  { %v7302_v46 = vpack.c.b16 %v7301_v31, %v7300_v59 }
 0xbb0   :  { %7472 = vmatmul.bf16.vlgmr.msrb.gmra.mxu0 %v7302_v46  ;;  %7486 = vmatmul.bf16.vlgmr.msrb.gmra.mxu1 %v7302_v46 }
 0xbb1   :  { %7500 = vmatmul.bf16.vlgmr.msrb.gmra.mxu2 %v7302_v46  ;;  %7514 = vmatmul.bf16.vlgmr.msrb.gmra.mxu3 %v7302_v46 }
 0xc2d   :  { %v7473_v22 = vpop.f32.mrf.mxu0  ;;  %v7487_v2 = vpop.f32.mrf.mxu1 }
 0xc2e   :  { %v7520_v35 = vadd.f32 %v7473_v22, %v7258_v6  ;;  %v7521_v42 = vadd.f32 %v7487_v2, %v7259_v10 }
 0xc30   :  { %v10167_v61 = vmul.f32 -1.442695, %v7520_v35  ;;  %v10168_v51 = vmul.f32 -1.442695, %v7521_v42 }
 0xc32   :  { %11340 = vpow2.f32 %v10167_v61 }
 0xc33   :  { %11342 = vpow2.f32 %v10168_v51 }
 0xc34   :  { %v7501_v0 = vpop.f32.mrf.mxu2  ;;  %v7515_v45 = vpop.f32.mrf.mxu3 }
 0xc35   :  { %v7522_v57 = vadd.f32 %v7501_v0, %v7260_v27  ;;  %v7475_v41 = vpop.f32.mrf.mxu0  ;;  %v7489_v58 = vpop.f32.mrf.mxu1  ;;  %v7523_v39 = vadd.f32 %v7515_v45, %v7261_v12 }
 0xc36   :  { %v7524_v56 = vadd.f32 %v7475_v41, %v7262_v49  ;;  %v7525_v8 = vadd.f32 %v7489_v58, %v7263_v1 }
 0xc37   :  { %v10169_v5 = vmul.f32 -1.442695, %v7522_v57 }
 0xc38   :  { %v11341_v24 = vpop.eup %11340  ;;  %v10170_v28 = vmul.f32 -1.442695, %v7524_v56  ;;  %v10171_v23 = vmul.f32 -1.442695, %v7525_v8 }
 0xc39   :  { %v11343_v7 = vpop.eup %11342  ;;  %v7546_v29 = vadd.f32 1.0, %v11341_v24  ;;  %11344 = vpow2.f32 %v10169_v5 }
 0xc3a   :  { %v7547_v17 = vadd.f32 1.0, %v11343_v7  ;;  %11346 = vpow2.f32 %v10170_v28 }
 0xc3b   :  { %11348 = vrcp.f32 %v7546_v29  ;;  %v7561_v33 = vand.u32 2147483647, %v7546_v29  ;;  %v7563_v63 = vand.u32 2147483648, %v7546_v29  ;;  %vm7557_vm10 = vweird.f32 %v7546_v29 }
 0xc3c   :  { %11350 = vrcp.f32 %v7547_v17  ;;  %v7503_v53 = vpop.f32.mrf.mxu2  ;;  %v7578_v18 = vand.u32 2147483648, %v7547_v17  ;;  %v7517_v44 = vpop.f32.mrf.mxu3  ;;  %v7576_v16 = vand.u32 2147483647, %v7547_v17  ;;  %vm7572_vm11 = vweird.f32 %v7547_v17 }
 0xc3d   :  { %11352 = vpow2.f32 %v10171_v23  ;;  %v7526_v62 = vadd.f32 %v7503_v53, %v7264_v4  ;;  %v7527_v59 = vadd.f32 %v7517_v44, %v7265_v26  ;;  %vm7562_vm13 = vcmp.eq.f32.partialorder %v7561_v33, 8.507059e+37 }
 0xc3e   :  { %v7564_v25 = vor.u32 1.1754944e-38, %v7563_v63  ;;  %v7579_v22 = vor.u32 1.1754944e-38, %v7578_v18  ;;  %vm7577_vm15 = vcmp.eq.f32.partialorder %v7576_v16, 8.507059e+37 }
 0xc3f   :  { %v11345_v11 = vpop.eup %11344  ;;  %v10172_v15 = vmul.f32 -1.442695, %v7526_v62 }
 0xc40   :  { %v11347_v32 = vpop.eup %11346  ;;  %v14358_v37 = vadd.f32 1.0, %v11345_v11 }
 0xc41   :  { %v11349_v60 = vpop.eup %11348  ;;  %v14360_v13 = vadd.f32 1.0, %v11347_v32  ;;  %11354 = vpow2.f32 %v10172_v15 }
 0xc42   :  { %v11351_v9 = vpop.eup %11350  ;;  %v7553_v54 = vmul.f32 %v11349_v60, %v7546_v29  ;;  %11356 = vrcp.f32 %v14358_v37  ;;  %vm7558_vm8 = vweird.f32 %v11349_v60  ;;  %vm7587_vm0 = vweird.f32 %v14358_v37 }
 0xc43   :  { %v11353_v30 = vpop.eup %11352  ;;  %v7568_v3 = vmul.f32 %v11351_v9, %v7547_v17  ;;  %11358 = vtanh.f32 %v7523_v39  ;;  %vm7573_vm9 = vweird.f32 %v11351_v9  ;;  %vm7559_vm12 = vmor %vm7557_vm10, %vm7558_vm8  ;;  %v7593_v41 = vand.u32 2147483648, %v14358_v37 }
 0xc44   :  { %v7554_v21 = vsub.f32 1.0, %v7553_v54  ;;  %11360 = vrcp.f32 %v14360_v13  ;;  %v14364_v50 = vadd.f32 1.0, %v11353_v30  ;;  %vm7574_vm14 = vmor %vm7572_vm11, %vm7573_vm9  ;;  %v7606_v58 = vand.u32 2147483647, %v14360_v13 }
 0xc45   :  { %v7569_v52 = vsub.f32 1.0, %v7568_v3  ;;  %v7608_v56 = vand.u32 2147483648, %v14360_v13  ;;  %v7591_v4 = vand.u32 2147483647, %v14358_v37  ;;  %vm7602_vm5 = vweird.f32 %v14360_v13 }
 0xc46   :  { %v7555_v47 = vmul.f32 %v11349_v60, %v7554_v21  ;;  %11362 = vrcp.f32 %v14364_v50  ;;  %v7621_v29 = vand.u32 2147483647, %v14364_v50  ;;  %vm7617_vm6 = vweird.f32 %v14364_v50 }
 0xc47   :  { %v11355_v38 = vpop.eup %11354  ;;  %v7570_v48 = vmul.f32 %v11351_v9, %v7569_v52  ;;  %v7609_v62 = vor.u32 1.1754944e-38, %v7608_v56  ;;  %vm7607_vm9 = vcmp.eq.f32.partialorder %v7606_v58, 8.507059e+37  ;;  %vm7592_vm11 = vcmp.eq.f32.partialorder %v7591_v4, 8.507059e+37 }
 0xc48   :  { %v14368_v20 = vpop.eup %11356  ;;  %v7556_v55 = vadd.f32 %v11349_v60, %v7555_v47  ;;  %v14370_v43 = vadd.f32 1.0, %v11355_v38  ;;  %vm7622_vm10 = vcmp.eq.f32.partialorder %v7621_v29, 8.507059e+37 }
 0xc49   :  { %v11359_v31 = vpop.eup %11358  ;;  %v7583_v46 = vmul.f32 %v14368_v20, %v14358_v37  ;;  %v7571_v6 = vadd.f32 %v11351_v9, %v7570_v48  ;;  %vm7588_vm1 = vweird.f32 %v14368_v20 }
 0xc4a   :  { %v11361_v10 = vpop.eup %11360  ;;  %v7560_v2 = vsel %vm7559_vm12, %v11349_v60, %v7556_v55  ;;  %11364 = vrcp.f32 %v14370_v43  ;;  %vm14395_vm4 = vmor %vm7587_vm0, %vm7588_vm1  ;;  %v7594_v60 = vor.u32 1.1754944e-38, %v7593_v41  ;;  %v7638_v33 = vand.u32 2147483648, %v14370_v43 }
 0xc4b   :  { %v7584_v35 = vsub.f32 1.0, %v7583_v46  ;;  %v7565_v42 = vsel %vm7562_vm13, %v7564_v25, %v7560_v2  ;;  %v7575_v61 = vsel %vm7574_vm14, %v11351_v9, %v7571_v6  ;;  %v7598_v51 = vmul.f32 %v11361_v10, %v14360_v13 }
 0xc4c   :  { %v11363_v36 = vpop.eup %11362  ;;  %v7580_v27 = vsel %vm7577_vm15, %v7579_v22, %v7575_v61  ;;  %v7646_v0 = vmul.f32 %v11359_v31, %v7565_v42  ;;  %11366 = vtanh.f32 %v7527_v59  ;;  %vm7603_vm2 = vweird.f32 %v11361_v10 }
 0xc4d   :  { %v7585_v34 = vmul.f32 %v14368_v20, %v7584_v35  ;;  %v7644_v49 = vmul.f32 %v7580_v27, %v14291_v19  ;;  %v7599_v1 = vsub.f32 1.0, %v7598_v51  ;;  %v7613_v57 = vmul.f32 %v11363_v36, %v14364_v50  ;;  %vm7604_vm7 = vmor %vm7602_vm5, %vm7603_vm2 }
 0xc4e   :  { %v7623_v19 = vand.u32 2147483648, %v14364_v50  ;;  %vm7618_vm3 = vweird.f32 %v11363_v36  ;;  %vm7632_vm13 = vweird.f32 %v14370_v43  ;;  %v7636_v63 = vand.u32 2147483647, %v14370_v43 }
 0xc4f   :  { %v7648_v8 = vadd.f32 %v7646_v0, %v7644_v49  ;;  %v7614_v5 = vsub.f32 1.0, %v7613_v57  ;;  %v7600_v24 = vmul.f32 %v11361_v10, %v7599_v1  ;;  %v7586_v7 = vadd.f32 %v14368_v20, %v7585_v34  ;;  %vm7619_vm8 = vmor %vm7617_vm6, %vm7618_vm3 }
 0xc50   :  { %v11365_v28 = vpop.eup %11364  ;;  %v7624_v15 = vor.u32 1.1754944e-38, %v7623_v19  ;;  %v7639_v44 = vor.u32 1.1754944e-38, %v7638_v33  ;;  %vm7637_vm15 = vcmp.eq.f32.partialorder %v7636_v63, 8.507059e+37 }
 0xc51   :  { %11368 = vtanh.f32 %v7648_v8  ;;  %7680 = vst [vmem:[%s14432_s11 + $0x10] sm:$0xff] %v7648_v8  ;;  %v7615_v23 = vmul.f32 %v11363_v36, %v7614_v5  ;;  %v7628_v17 = vmul.f32 %v11365_v28, %v14370_v43  ;;  %v7601_v53 = vadd.f32 %v11361_v10, %v7600_v24 }
 0xc52   :  { %v11367_v45 = vpop.eup %11366  ;;  %v7590_v39 = vsel %vm14395_vm4, %v14368_v20, %v7586_v7  ;;  %vm7633_vm12 = vweird.f32 %v11365_v28 }
 0xc53   :  { %v7629_v12 = vsub.f32 1.0, %v7628_v17  ;;  %v7616_v11 = vadd.f32 %v11363_v36, %v7615_v23  ;;  %v7605_v32 = vsel %vm7604_vm7, %v11361_v10, %v7601_v53  ;;  %v7595_v21 = vsel %vm7592_vm11, %v7594_v60, %v7590_v39  ;;  %vm7634_vm14 = vmor %vm7632_vm13, %vm7633_vm12 }
 0xc54   :  { %v7610_v9 = vsel %vm7607_vm9, %v7609_v62, %v7605_v32 }
 0xc55   :  { %v7620_v37 = vsel %vm7619_vm8, %v11363_v36, %v7616_v11  ;;  %v7630_v13 = vmul.f32 %v11365_v28, %v7629_v12  ;;  %v7647_v30 = vmul.f32 %v11367_v45, %v7610_v9 }
 0xc56   :  { %v7625_v54 = vsel %vm7622_vm10, %v7624_v15, %v7620_v37 }
 0xc57   :  { %v11369_v3 = vpop.eup %11368  ;;  %v7645_v50 = vmul.f32 %v7625_v54, %v14336_v40  ;;  %v7631_v18 = vadd.f32 %v11365_v28, %v7630_v13 }
 0xc58   :  { %v7652_v26 = vmul.f32 %v11369_v3, %v7595_v21 }
 0xc59   :  { %v7649_v52 = vadd.f32 %v7647_v30, %v7645_v50  ;;  %v7635_v40 = vsel %vm7634_vm14, %v11365_v28, %v7631_v18 }
 0xc5a   :  { %7672 = vst [vmem:[%s14431_s10 + $0x10] sm:$0xff] %v7652_v26  ;;  %v7640_v16 = vsel %vm7637_vm15, %v7639_v44, %v7635_v40 }
 0xc5b   :  { %11370 = vtanh.f32 %v7649_v52  ;;  %7681 = vst [vmem:[%s14432_s11 + $0x18] sm:$0xff] %v7649_v52 }
 0xc61   :  { %v11371_v47 = vpop.eup %11370 }
 0xc62   :  { %v7653_v38 = vmul.f32 %v11371_v47, %v7640_v16 }
 0xc64   :  { %v10845_v48 = vpack.c.bf16 %v7653_v38, %v7652_v26  ;;  %7673 = vst [vmem:[%s14431_s10 + $0x18] sm:$0xff] %v7653_v38 }
 0xc66   :  { %10853 = vst [vmem:[%s14430_s9 + $0x38] sm:$0xff] %v10845_v48  }
 0xc67   :  { %7694 = vsyncpa [#allocation7], 1 }
 0xc68   :  { %7695 = vsyncpa [#allocation9], 1 }
 0xc69   :  { %7696 = vsyncpa [#allocation12], 1 }

</bundles_post_ra>
